<compile_context>
chip_gen: v5e
topology: v5e:2x2
jax: 0.10.0
libtpu: 0.0.40
codegen_flags: <defaults>
</compile_context>

<pallas_src>
import functools

import jax
import jax.numpy as jnp
import numpy as np
from jax.experimental import pallas as pl
from jax.experimental.pallas import tpu as pltpu


# Left halo width inside the padded VMEM scratch.  16 keeps the interior
# store sublane-tile aligned for both f32 (8-row tiles) and bf16 (16-row
# tiles); the conv taps then read at offsets 15/16/17 (unaligned *loads*,
# which Mosaic handles cheaply), while all stores stay aligned.
_LPAD = 16


def _default_vmem_limit():
    # Raise the scoped-VMEM limit above the conservative defaults (16 MiB on
    # v5e, 32 MiB on v6e/v7x) so fused per-example blocks + double-buffered
    # bf16 weights fit at real VGGish sizes, while staying below v7x's 64 MiB
    # physical VMEM.
    try:
        cap = int(pltpu.get_tpu_info().vmem_capacity_bytes)
    except Exception:  # older jax / attribute rename: fall back conservatively
        cap = 128 * 1024 * 1024
    return int(min(48 * 1024 * 1024, cap * 3 // 4))


_VMEM_LIMIT = _default_vmem_limit()


def _cparams(semantics):
    return pltpu.CompilerParams(dimension_semantics=semantics,
                                vmem_limit_bytes=_VMEM_LIMIT)


# ----------------------------------------------------------------------------
# In-kernel halo helpers (replace the wrapper-side jnp.pad HBM round trips).
# ----------------------------------------------------------------------------
def _halo_scratch(H, W, C, dtype):
    return pltpu.VMEM((H + 2, W + _LPAD + 1, C), dtype)


def _fill_halo(pad_ref, x):
    """Zero the scratch, then place x at (row 1, col _LPAD): aligned store."""
    H, W, _ = x.shape
    pad_ref[...] = jnp.zeros_like(pad_ref)
    pad_ref[1:H + 1, _LPAD:_LPAD + W, :] = x


def _halo_window(pad_ref, dy, dx, H, W):
    """(H, W, C) window of the zero-padded image for conv tap (dy, dx)."""
    c0 = _LPAD - 1 + dx
    return pad_ref[dy:dy + H, c0:c0 + W, :]


# ----------------------------------------------------------------------------
# Shared conv / pool building blocks (traced inside kernel bodies).
# ----------------------------------------------------------------------------
def _conv3x3_mxu(pad_ref, w_ref, bias, H, W, *, relu):
    """3x3 SAME conv from a zero-padded VMEM scratch: 9 bf16 MXU matmuls with
    one f32 accumulator.  Returns an (H, W, Cout) f32 value."""
    Cin = pad_ref.shape[-1]
    Cout = w_ref.shape[-1]
    acc = jnp.zeros((H * W, Cout), jnp.float32)
    for dy in range(3):
        for dx in range(3):
            patch = _halo_window(pad_ref, dy, dx, H, W).reshape(H * W, Cin)
            acc = acc + jnp.dot(patch, w_ref[dy, dx],
                                preferred_element_type=jnp.float32)
    acc = acc + bias
    if relu:
        acc = jnp.maximum(acc, 0.0)
    return acc.reshape(H, W, Cout)


def _maxpool2x2(x):
    """2x2 stride-2 max pool of an (H, W, C) value.  H (outer dim, free
    reshape) is pooled first so the sublane-splitting W reshape sees half the
    data."""
    H, W, C = x.shape
    x = jnp.max(x.reshape(H // 2, 2, W, C), axis=1)
    x = jnp.max(x.reshape(H // 2, W // 2, 2, C), axis=2)
    return x


# ----------------------------------------------------------------------------
# Block 1: conv1 (Cin=1, VPU broadcast-FMA) + ReLU + maxpool   = features[0:3]
# ----------------------------------------------------------------------------
def _block1_kernel(x_ref, w_ref, b_ref, o_ref, xpad_ref):
    # x: (1, H, W, 1) f32   w: (3, 3, 1, C1) bf16   b: (1, C1) f32
    # o: (1, H/2, W/2, C1) bf16   xpad: (H+2, W+_LPAD+1, 1) f32
    _, H, W, _ = x_ref.shape
    C1 = w_ref.shape[-1]
    _fill_halo(xpad_ref, x_ref[0])
    acc = jnp.zeros((H, W, C1), jnp.float32)
    for dy in range(3):
        for dx in range(3):
            # (H, W, 1) * (1, C1): scalar image tap broadcast across the C1
            # lanes -- pure VPU work instead of 9 K=1 MXU matmuls.
            tap = _halo_window(xpad_ref, dy, dx, H, W)
            acc = acc + tap * w_ref[dy, dx].astype(jnp.float32)
    acc = jnp.maximum(acc + b_ref[0], 0.0)
    o_ref[0] = _maxpool2x2(acc).astype(o_ref.dtype)


def conv1_relu_pool(x, w, b):
    N, H, W, _ = x.shape
    C1 = w.shape[-1]
    return pl.pallas_call(
        _block1_kernel,
        out_shape=jax.ShapeDtypeStruct((N, H // 2, W // 2, C1), jnp.bfloat16),
        grid=(N,),
        in_specs=[
            pl.BlockSpec((1, H, W, 1), lambda n: (n, 0, 0, 0)),
            pl.BlockSpec((3, 3, 1, C1), lambda n: (0, 0, 0, 0)),
            pl.BlockSpec((1, C1), lambda n: (0, 0)),
        ],
        out_specs=pl.BlockSpec((1, H // 2, W // 2, C1), lambda n: (n, 0, 0, 0)),
        scratch_shapes=[_halo_scratch(H, W, 1, jnp.float32)],
        compiler_params=_cparams(("parallel",)),
    )(x, w, b.reshape(1, C1))


# ----------------------------------------------------------------------------
# Block 2: conv2 + ReLU + maxpool                               = features[3:6]
# ----------------------------------------------------------------------------
def _block2_kernel(x_ref, w_ref, b_ref, o_ref, xpad_ref):
    _, H, W, _ = x_ref.shape
    _fill_halo(xpad_ref, x_ref[0])
    y = _conv3x3_mxu(xpad_ref, w_ref, b_ref[0], H, W, relu=True)
    o_ref[0] = _maxpool2x2(y).astype(o_ref.dtype)


def conv2_relu_pool(x, w, b):
    N, H, W, Cin = x.shape
    Cout = w.shape[-1]
    return pl.pallas_call(
        _block2_kernel,
        out_shape=jax.ShapeDtypeStruct((N, H // 2, W // 2, Cout), jnp.bfloat16),
        grid=(N,),
        in_specs=[
            pl.BlockSpec((1, H, W, Cin), lambda n: (n, 0, 0, 0)),
            pl.BlockSpec((3, 3, Cin, Cout), lambda n: (0, 0, 0, 0)),
            pl.BlockSpec((1, Cout), lambda n: (0, 0)),
        ],
        out_specs=pl.BlockSpec((1, H // 2, W // 2, Cout),
                               lambda n: (n, 0, 0, 0)),
        scratch_shapes=[_halo_scratch(H, W, Cin, jnp.bfloat16)],
        compiler_params=_cparams(("parallel",)),
    )(x, w, b.reshape(1, Cout))


# ----------------------------------------------------------------------------
# Block 3: conv3 + ReLU + conv4 + ReLU + maxpool               = features[6:11]
# (conv3 output never leaves VMEM; it is re-haloed in a scratch for conv4)
# ----------------------------------------------------------------------------
def _block34_kernel(x_ref, w3_ref, b3_ref, w4_ref, b4_ref, o_ref,
                    xpad_ref, ypad_ref):
    _, H, W, _ = x_ref.shape
    _fill_halo(xpad_ref, x_ref[0])
    y3 = _conv3x3_mxu(xpad_ref, w3_ref, b3_ref[0], H, W, relu=True)
    _fill_halo(ypad_ref, y3.astype(ypad_ref.dtype))
    y4 = _conv3x3_mxu(ypad_ref, w4_ref, b4_ref[0], H, W, relu=True)
    o_ref[0] = _maxpool2x2(y4).astype(o_ref.dtype)


def conv3_conv4_pool(x, w3, b3, w4, b4):
    N, H, W, Cin = x.shape
    C3 = w3.shape[-1]
    C4 = w4.shape[-1]
    return pl.pallas_call(
        _block34_kernel,
        out_shape=jax.ShapeDtypeStruct((N, H // 2, W // 2, C4), jnp.bfloat16),
        grid=(N,),
        in_specs=[
            pl.BlockSpec((1, H, W, Cin), lambda n: (n, 0, 0, 0)),
            pl.BlockSpec((3, 3, Cin, C3), lambda n: (0, 0, 0, 0)),
            pl.BlockSpec((1, C3), lambda n: (0, 0)),
            pl.BlockSpec((3, 3, C3, C4), lambda n: (0, 0, 0, 0)),
            pl.BlockSpec((1, C4), lambda n: (0, 0)),
        ],
        out_specs=pl.BlockSpec((1, H // 2, W // 2, C4),
                               lambda n: (n, 0, 0, 0)),
        scratch_shapes=[_halo_scratch(H, W, Cin, jnp.bfloat16),
                        _halo_scratch(H, W, C3, jnp.bfloat16)],
        compiler_params=_cparams(("parallel",)),
    )(x, w3, b3.reshape(1, C3), w4, b4.reshape(1, C4))


# ----------------------------------------------------------------------------
# Block 4: conv5 (l5 tap), ReLU, conv6 (l6 tap) + batch-mean   = features[11:14]
# Outputs keep a constant index_map over the "arbitrary" N axis, so they stay
# VMEM-resident and accumulate the batch sums; finalize divides by N.
# ----------------------------------------------------------------------------
def _block56_mean_kernel(x_ref, w5_ref, b5_ref, w6_ref, b6_ref,
                         m5_ref, m6_ref, xpad_ref, ypad_ref, *, inv_n):
    _, H, W, _ = x_ref.shape
    n = pl.program_id(0)

    @pl.when(n == 0)
    def _init():
        m5_ref[...] = jnp.zeros_like(m5_ref)
        m6_ref[...] = jnp.zeros_like(m6_ref)

    _fill_halo(xpad_ref, x_ref[0])
    x5 = _conv3x3_mxu(xpad_ref, w5_ref, b5_ref[0], H, W, relu=False)   # l5
    _fill_halo(ypad_ref, jnp.maximum(x5, 0.0).astype(ypad_ref.dtype))  # ReLU
    x6 = _conv3x3_mxu(ypad_ref, w6_ref, b6_ref[0], H, W, relu=False)   # l6

    m5_ref[...] = m5_ref[...] + x5
    m6_ref[...] = m6_ref[...] + x6

    @pl.when(n == pl.num_programs(0) - 1)
    def _finalize():
        m5_ref[...] = m5_ref[...] * inv_n
        m6_ref[...] = m6_ref[...] * inv_n


def conv5_conv6_batch_mean(x, w5, b5, w6, b6):
    N, H, W, Cin = x.shape
    C5 = w5.shape[-1]
    C6 = w6.shape[-1]
    kernel = functools.partial(_block56_mean_kernel, inv_n=1.0 / N)
    return pl.pallas_call(
        kernel,
        out_shape=(jax.ShapeDtypeStruct((H, W, C5), jnp.float32),
                   jax.ShapeDtypeStruct((H, W, C6), jnp.float32)),
        grid=(N,),
        in_specs=[
            pl.BlockSpec((1, H, W, Cin), lambda n: (n, 0, 0, 0)),
            pl.BlockSpec((3, 3, Cin, C5), lambda n: (0, 0, 0, 0)),
            pl.BlockSpec((1, C5), lambda n: (0, 0)),
            pl.BlockSpec((3, 3, C5, C6), lambda n: (0, 0, 0, 0)),
            pl.BlockSpec((1, C6), lambda n: (0, 0)),
        ],
        out_specs=(pl.BlockSpec((H, W, C5), lambda n: (0, 0, 0)),
                   pl.BlockSpec((H, W, C6), lambda n: (0, 0, 0))),
        scratch_shapes=[_halo_scratch(H, W, Cin, jnp.bfloat16),
                        _halo_scratch(H, W, C5, jnp.bfloat16)],
        compiler_params=_cparams(("arbitrary",)),
    )(x, w5, b5.reshape(1, C5), w6, b6.reshape(1, C6))


# ----------------------------------------------------------------------------
# Full forward: VGGish features[:12] (l5) and features[:14] (l6), concat + mean
# ----------------------------------------------------------------------------
def m_vggish_forward(x_nchw, params):
    # NCHW -> NHWC (C=1, effectively a reshape).  Layer-1 input stays f32.
    x = jnp.transpose(x_nchw, (0, 2, 3, 1)).astype(jnp.float32)
    x = conv1_relu_pool(x, params["w1"], params["b1"])            # features[0:3]
    x = conv2_relu_pool(x, params["w2"], params["b2"])            # features[3:6]
    x = conv3_conv4_pool(x, params["w3"], params["b3"],
                         params["w4"], params["b4"])              # features[6:11]
    m5, m6 = conv5_conv6_batch_mean(x, params["w5"], params["b5"],
                                    params["w6"], params["b6"])   # features[11:14] + mean
    # The batch-mean commutes with torch's NCHW flatten + concat, so only a
    # tiny (1, F) channel-major reorder remains outside the kernels.
    x1 = jnp.transpose(m5, (2, 0, 1)).reshape(1, -1)
    x2 = jnp.transpose(m6, (2, 0, 1)).reshape(1, -1)
    return jnp.concatenate([x1, x2], axis=1)


# ----------------------------------------------------------------------------
# Deterministic synthetic parameters (real VGGish channels are
# 1->64->128->256->256->512->512; scaled down for the small demo).
# Weights are bf16 HWIO, biases f32.
# ----------------------------------------------------------------------------
def init_params(key, channels=(1, 8, 16, 32, 32, 64, 64)):
    params = {}
    for i in range(6):
        cin, cout = channels[i], channels[i + 1]
        key, kw, kb = jax.random.split(key, 3)
        w_oihw = jax.random.normal(kw, (cout, cin, 3, 3), jnp.float32)
        w_oihw = w_oihw * (1.0 / np.sqrt(cin * 9.0))
        params[f"w{i + 1}"] = jnp.transpose(
            w_oihw, (2, 3, 1, 0)).astype(jnp.bfloat16)     # OIHW -> HWIO bf16
        params[f"b{i + 1}"] = 0.01 * jax.random.normal(kb, (cout,), jnp.float32)
    return params


# ----------------------------------------------------------------------------
# Pure-JAX/XLA reference with bf16 quantization at exactly the same points as
# the kernels (weights bf16, inter-conv activations bf16, f32 accumulation),
# so the tolerance can be tight.
# ----------------------------------------------------------------------------
def reference_forward(x_nchw, params):
    f32, bf16 = jnp.float32, jnp.bfloat16
    x = jnp.transpose(x_nchw, (0, 2, 3, 1)).astype(f32)

    def conv(v, w, b):
        y = jax.lax.conv_general_dilated(
            v, w, window_strides=(1, 1), padding="SAME",
            dimension_numbers=("NHWC", "HWIO", "NHWC"),
            preferred_element_type=f32,
            precision=jax.lax.Precision.HIGHEST)
        return y + b[None, None, None, :]

    def pool(v):
        return jax.lax.reduce_window(v, -jnp.inf, jax.lax.max,
                                     (1, 2, 2, 1), (1, 2, 2, 1), "VALID")

    relu = lambda v: jnp.maximum(v, 0.0)

    x = pool(relu(conv(x, params["w1"].astype(f32), params["b1"]))).astype(bf16)
    x = pool(relu(conv(x, params["w2"], params["b2"]))).astype(bf16)
    y3 = relu(conv(x, params["w3"], params["b3"])).astype(bf16)
    x = pool(relu(conv(y3, params["w4"], params["b4"]))).astype(bf16)
    x5 = conv(x, params["w5"], params["b5"])                        # f32, l5
    x6 = conv(relu(x5).astype(bf16), params["w6"], params["b6"])    # f32, l6
    N = x_nchw.shape[0]
    x1 = jnp.transpose(x5, (0, 3, 1, 2)).reshape(N, -1)
    x2 = jnp.transpose(x6, (0, 3, 1, 2)).reshape(N, -1)
    return jnp.concatenate([x1, x2], axis=1).mean(axis=0)[None, :]


if __name__ == "__main__":
    root = jax.random.PRNGKey(0)
    kx, kp = jax.random.split(root)
    # Preprocessed log-mel "examples": real VGGish produces (N, 1, 96, 64);
    # small (2, 1, 16, 16) demo with scaled-down channel widths here.
    x = jax.random.normal(kx, (2, 1, 16, 16), jnp.float32)
    params = init_params(kp)

    fwd = jax.jit(m_vggish_forward)
    out = jax.block_until_ready(fwd(x, params))

    ref = jax.block_until_ready(reference_forward(x, params))
    assert out.shape == ref.shape == (1, 2 * 64 * 2 * 2), out.shape
    err = float(jnp.max(jnp.abs(out - ref)))
    scale = float(jnp.max(jnp.abs(ref)))
    # bf16-matched reference -> only accumulation-order noise should remain;
    # ~20x tighter than the previous 1e-1 absolute tolerance.
    assert err <= 5e-3 * scale + 1e-4, (
        f"kernel/reference mismatch: max abs err {err} (ref scale {scale})")
    print("KERNEL_OK")
</pallas_src>

<mosaic_0001>
module attributes {stable_mosaic.version = 11 : i64} {
  func.func @_block1_kernel(%arg0: i32, %arg1: memref<1x16x16x1xf32, #tpu.memory_space<vmem>>, %arg2: memref<3x3x1x8xbf16, #tpu.memory_space<vmem>>, %arg3: memref<1x8xf32, #tpu.memory_space<vmem>>, %arg4: memref<1x8x8x8xbf16, #tpu.memory_space<vmem>>, %arg5: memref<18x33x1xf32, #tpu.memory_space<vmem>>) attributes {dimension_semantics = [#tpu.dimension_semantics<parallel>], iteration_bounds = array<i64: 2>, scalar_prefetch = 0 : i64, scratch_operands = 1 : i64, tpu.core_type = #tpu.core_type<tc>, window_params = [{transform_indices = @transform_0, window_bounds = array<i64: 1, 16, 16, 1>}, {pipeline_mode = #tpu.pipeline_mode<synchronous>, transform_indices = @transform_1, window_bounds = array<i64: 3, 3, 1, 8>}, {pipeline_mode = #tpu.pipeline_mode<synchronous>, transform_indices = @transform_2, window_bounds = array<i64: 1, 8>}, {transform_indices = @transform_3, window_bounds = array<i64: 1, 8, 8, 8>}]} {
    %c0 = arith.constant 0 : index
    %c0_0 = arith.constant 0 : index
    %c0_1 = arith.constant 0 : index
    %c0_2 = arith.constant 0 : index
    %0 = vector.load %arg1[%c0, %c0_0, %c0_1, %c0_2] : memref<1x16x16x1xf32, #tpu.memory_space<vmem>>, vector<1x16x16x1xf32>
    %1 = vector.shape_cast %0 : vector<1x16x16x1xf32> to vector<16x16x1xf32>
    %cst = arith.constant 0.000000e+00 : f32
    %2 = vector.broadcast %cst : f32 to vector<18x33x1xf32>
    %c0_3 = arith.constant 0 : index
    %c0_4 = arith.constant 0 : index
    %c0_5 = arith.constant 0 : index
    %3 = vector.load %arg5[%c0_3, %c0_4, %c0_5] : memref<18x33x1xf32, #tpu.memory_space<vmem>>, vector<18x33x1xf32>
    tpu.vector_store %arg5[%c0_3, %c0_4, %c0_5], %2 {strides = array<i32>} : memref<18x33x1xf32, #tpu.memory_space<vmem>>, vector<18x33x1xf32>,
    %c1 = arith.constant 1 : index
    %c16 = arith.constant 16 : index
    %c0_6 = arith.constant 0 : index
    %4 = vector.load %arg5[%c1, %c16, %c0_6] : memref<18x33x1xf32, #tpu.memory_space<vmem>>, vector<16x16x1xf32>
    tpu.vector_store %arg5[%c1, %c16, %c0_6], %1 {strides = array<i32>} : memref<18x33x1xf32, #tpu.memory_space<vmem>>, vector<16x16x1xf32>,
    %cst_7 = arith.constant 0.000000e+00 : f32
    %5 = vector.broadcast %cst_7 : f32 to vector<16x16x8xf32>
    %c0_8 = arith.constant 0 : index
    %c15 = arith.constant 15 : index
    %c0_9 = arith.constant 0 : index
    %6 = vector.load %arg5[%c0_8, %c15, %c0_9] : memref<18x33x1xf32, #tpu.memory_space<vmem>>, vector<16x16x1xf32>
    %c0_10 = arith.constant 0 : index
    %c0_11 = arith.constant 0 : index
    %c0_12 = arith.constant 0 : index
    %c0_13 = arith.constant 0 : index
    %7 = vector.load %arg2[%c0_10, %c0_11, %c0_12, %c0_13] : memref<3x3x1x8xbf16, #tpu.memory_space<vmem>>, vector<1x1x1x8xbf16>
    %8 = vector.shape_cast %7 : vector<1x1x1x8xbf16> to vector<1x8xbf16>
    %9 = arith.extf %8 : vector<1x8xbf16> to vector<1x8xf32>
    %10 = vector.shape_cast %9 : vector<1x8xf32> to vector<1x1x8xf32>
    %11 = vector.broadcast %6 : vector<16x16x1xf32> to vector<16x16x8xf32>
    %12 = vector.broadcast %10 : vector<1x1x8xf32> to vector<16x16x8xf32>
    %13 = arith.mulf %11, %12 : vector<16x16x8xf32>
    %14 = arith.addf %5, %13 : vector<16x16x8xf32>
    %c0_14 = arith.constant 0 : index
    %c16_15 = arith.constant 16 : index
    %c0_16 = arith.constant 0 : index
    %15 = vector.load %arg5[%c0_14, %c16_15, %c0_16] : memref<18x33x1xf32, #tpu.memory_space<vmem>>, vector<16x16x1xf32>
    %c0_17 = arith.constant 0 : index
    %c1_18 = arith.constant 1 : index
    %c0_19 = arith.constant 0 : index
    %c0_20 = arith.constant 0 : index
    %16 = vector.load %arg2[%c0_17, %c1_18, %c0_19, %c0_20] : memref<3x3x1x8xbf16, #tpu.memory_space<vmem>>, vector<1x1x1x8xbf16>
    %17 = vector.shape_cast %16 : vector<1x1x1x8xbf16> to vector<1x8xbf16>
    %18 = arith.extf %17 : vector<1x8xbf16> to vector<1x8xf32>
    %19 = vector.shape_cast %18 : vector<1x8xf32> to vector<1x1x8xf32>
    %20 = vector.broadcast %15 : vector<16x16x1xf32> to vector<16x16x8xf32>
    %21 = vector.broadcast %19 : vector<1x1x8xf32> to vector<16x16x8xf32>
    %22 = arith.mulf %20, %21 : vector<16x16x8xf32>
    %23 = arith.addf %14, %22 : vector<16x16x8xf32>
    %c0_21 = arith.constant 0 : index
    %c17 = arith.constant 17 : index
    %c0_22 = arith.constant 0 : index
    %24 = vector.load %arg5[%c0_21, %c17, %c0_22] : memref<18x33x1xf32, #tpu.memory_space<vmem>>, vector<16x16x1xf32>
    %c0_23 = arith.constant 0 : index
    %c2 = arith.constant 2 : index
    %c0_24 = arith.constant 0 : index
    %c0_25 = arith.constant 0 : index
    %25 = vector.load %arg2[%c0_23, %c2, %c0_24, %c0_25] : memref<3x3x1x8xbf16, #tpu.memory_space<vmem>>, vector<1x1x1x8xbf16>
    %26 = vector.shape_cast %25 : vector<1x1x1x8xbf16> to vector<1x8xbf16>
    %27 = arith.extf %26 : vector<1x8xbf16> to vector<1x8xf32>
    %28 = vector.shape_cast %27 : vector<1x8xf32> to vector<1x1x8xf32>
    %29 = vector.broadcast %24 : vector<16x16x1xf32> to vector<16x16x8xf32>
    %30 = vector.broadcast %28 : vector<1x1x8xf32> to vector<16x16x8xf32>
    %31 = arith.mulf %29, %30 : vector<16x16x8xf32>
    %32 = arith.addf %23, %31 : vector<16x16x8xf32>
    %c1_26 = arith.constant 1 : index
    %c15_27 = arith.constant 15 : index
    %c0_28 = arith.constant 0 : index
    %33 = vector.load %arg5[%c1_26, %c15_27, %c0_28] : memref<18x33x1xf32, #tpu.memory_space<vmem>>, vector<16x16x1xf32>
    %c1_29 = arith.constant 1 : index
    %c0_30 = arith.constant 0 : index
    %c0_31 = arith.constant 0 : index
    %c0_32 = arith.constant 0 : index
    %34 = vector.load %arg2[%c1_29, %c0_30, %c0_31, %c0_32] : memref<3x3x1x8xbf16, #tpu.memory_space<vmem>>, vector<1x1x1x8xbf16>
    %35 = vector.shape_cast %34 : vector<1x1x1x8xbf16> to vector<1x8xbf16>
    %36 = arith.extf %35 : vector<1x8xbf16> to vector<1x8xf32>
    %37 = vector.shape_cast %36 : vector<1x8xf32> to vector<1x1x8xf32>
    %38 = vector.broadcast %33 : vector<16x16x1xf32> to vector<16x16x8xf32>
    %39 = vector.broadcast %37 : vector<1x1x8xf32> to vector<16x16x8xf32>
    %40 = arith.mulf %38, %39 : vector<16x16x8xf32>
    %41 = arith.addf %32, %40 : vector<16x16x8xf32>
    %c1_33 = arith.constant 1 : index
    %c16_34 = arith.constant 16 : index
    %c0_35 = arith.constant 0 : index
    %42 = vector.load %arg5[%c1_33, %c16_34, %c0_35] : memref<18x33x1xf32, #tpu.memory_space<vmem>>, vector<16x16x1xf32>
    %c1_36 = arith.constant 1 : index
    %c1_37 = arith.constant 1 : index
    %c0_38 = arith.constant 0 : index
    %c0_39 = arith.constant 0 : index
    %43 = vector.load %arg2[%c1_36, %c1_37, %c0_38, %c0_39] : memref<3x3x1x8xbf16, #tpu.memory_space<vmem>>, vector<1x1x1x8xbf16>
    %44 = vector.shape_cast %43 : vector<1x1x1x8xbf16> to vector<1x8xbf16>
    %45 = arith.extf %44 : vector<1x8xbf16> to vector<1x8xf32>
    %46 = vector.shape_cast %45 : vector<1x8xf32> to vector<1x1x8xf32>
    %47 = vector.broadcast %42 : vector<16x16x1xf32> to vector<16x16x8xf32>
    %48 = vector.broadcast %46 : vector<1x1x8xf32> to vector<16x16x8xf32>
    %49 = arith.mulf %47, %48 : vector<16x16x8xf32>
    %50 = arith.addf %41, %49 : vector<16x16x8xf32>
    %c1_40 = arith.constant 1 : index
    %c17_41 = arith.constant 17 : index
    %c0_42 = arith.constant 0 : index
    %51 = vector.load %arg5[%c1_40, %c17_41, %c0_42] : memref<18x33x1xf32, #tpu.memory_space<vmem>>, vector<16x16x1xf32>
    %c1_43 = arith.constant 1 : index
    %c2_44 = arith.constant 2 : index
    %c0_45 = arith.constant 0 : index
    %c0_46 = arith.constant 0 : index
    %52 = vector.load %arg2[%c1_43, %c2_44, %c0_45, %c0_46] : memref<3x3x1x8xbf16, #tpu.memory_space<vmem>>, vector<1x1x1x8xbf16>
    %53 = vector.shape_cast %52 : vector<1x1x1x8xbf16> to vector<1x8xbf16>
    %54 = arith.extf %53 : vector<1x8xbf16> to vector<1x8xf32>
    %55 = vector.shape_cast %54 : vector<1x8xf32> to vector<1x1x8xf32>
    %56 = vector.broadcast %51 : vector<16x16x1xf32> to vector<16x16x8xf32>
    %57 = vector.broadcast %55 : vector<1x1x8xf32> to vector<16x16x8xf32>
    %58 = arith.mulf %56, %57 : vector<16x16x8xf32>
    %59 = arith.addf %50, %58 : vector<16x16x8xf32>
    %c2_47 = arith.constant 2 : index
    %c15_48 = arith.constant 15 : index
    %c0_49 = arith.constant 0 : index
    %60 = vector.load %arg5[%c2_47, %c15_48, %c0_49] : memref<18x33x1xf32, #tpu.memory_space<vmem>>, vector<16x16x1xf32>
    %c2_50 = arith.constant 2 : index
    %c0_51 = arith.constant 0 : index
    %c0_52 = arith.constant 0 : index
    %c0_53 = arith.constant 0 : index
    %61 = vector.load %arg2[%c2_50, %c0_51, %c0_52, %c0_53] : memref<3x3x1x8xbf16, #tpu.memory_space<vmem>>, vector<1x1x1x8xbf16>
    %62 = vector.shape_cast %61 : vector<1x1x1x8xbf16> to vector<1x8xbf16>
    %63 = arith.extf %62 : vector<1x8xbf16> to vector<1x8xf32>
    %64 = vector.shape_cast %63 : vector<1x8xf32> to vector<1x1x8xf32>
    %65 = vector.broadcast %60 : vector<16x16x1xf32> to vector<16x16x8xf32>
    %66 = vector.broadcast %64 : vector<1x1x8xf32> to vector<16x16x8xf32>
    %67 = arith.mulf %65, %66 : vector<16x16x8xf32>
    %68 = arith.addf %59, %67 : vector<16x16x8xf32>
    %c2_54 = arith.constant 2 : index
    %c16_55 = arith.constant 16 : index
    %c0_56 = arith.constant 0 : index
    %69 = vector.load %arg5[%c2_54, %c16_55, %c0_56] : memref<18x33x1xf32, #tpu.memory_space<vmem>>, vector<16x16x1xf32>
    %c2_57 = arith.constant 2 : index
    %c1_58 = arith.constant 1 : index
    %c0_59 = arith.constant 0 : index
    %c0_60 = arith.constant 0 : index
    %70 = vector.load %arg2[%c2_57, %c1_58, %c0_59, %c0_60] : memref<3x3x1x8xbf16, #tpu.memory_space<vmem>>, vector<1x1x1x8xbf16>
    %71 = vector.shape_cast %70 : vector<1x1x1x8xbf16> to vector<1x8xbf16>
    %72 = arith.extf %71 : vector<1x8xbf16> to vector<1x8xf32>
    %73 = vector.shape_cast %72 : vector<1x8xf32> to vector<1x1x8xf32>
    %74 = vector.broadcast %69 : vector<16x16x1xf32> to vector<16x16x8xf32>
    %75 = vector.broadcast %73 : vector<1x1x8xf32> to vector<16x16x8xf32>
    %76 = arith.mulf %74, %75 : vector<16x16x8xf32>
    %77 = arith.addf %68, %76 : vector<16x16x8xf32>
    %c2_61 = arith.constant 2 : index
    %c17_62 = arith.constant 17 : index
    %c0_63 = arith.constant 0 : index
    %78 = vector.load %arg5[%c2_61, %c17_62, %c0_63] : memref<18x33x1xf32, #tpu.memory_space<vmem>>, vector<16x16x1xf32>
    %c2_64 = arith.constant 2 : index
    %c2_65 = arith.constant 2 : index
    %c0_66 = arith.constant 0 : index
    %c0_67 = arith.constant 0 : index
    %79 = vector.load %arg2[%c2_64, %c2_65, %c0_66, %c0_67] : memref<3x3x1x8xbf16, #tpu.memory_space<vmem>>, vector<1x1x1x8xbf16>
    %80 = vector.shape_cast %79 : vector<1x1x1x8xbf16> to vector<1x8xbf16>
    %81 = arith.extf %80 : vector<1x8xbf16> to vector<1x8xf32>
    %82 = vector.shape_cast %81 : vector<1x8xf32> to vector<1x1x8xf32>
    %83 = vector.broadcast %78 : vector<16x16x1xf32> to vector<16x16x8xf32>
    %84 = vector.broadcast %82 : vector<1x1x8xf32> to vector<16x16x8xf32>
    %85 = arith.mulf %83, %84 : vector<16x16x8xf32>
    %86 = arith.addf %77, %85 : vector<16x16x8xf32>
    %c0_68 = arith.constant 0 : index
    %c0_69 = arith.constant 0 : index
    %87 = vector.load %arg3[%c0_68, %c0_69] : memref<1x8xf32, #tpu.memory_space<vmem>>, vector<1x8xf32>
    %88 = vector.shape_cast %87 : vector<1x8xf32> to vector<8xf32>
    %89 = vector.shape_cast %88 : vector<8xf32> to vector<1x1x8xf32>
    %90 = vector.broadcast %89 : vector<1x1x8xf32> to vector<16x16x8xf32>
    %91 = arith.addf %86, %90 : vector<16x16x8xf32>
    %cst_70 = arith.constant 0.000000e+00 : f32
    %92 = vector.broadcast %cst_70 : f32 to vector<16x16x8xf32>
    %93 = arith.maximumf %91, %92 : vector<16x16x8xf32>
    %94 = vector.shape_cast %93 : vector<16x16x8xf32> to vector<8x2x16x8xf32>
    %cst_71 = arith.constant dense<0xFF800000> : vector<8x16x8xf32>
    %95 = vector.multi_reduction <maximumf>, %94, %cst_71 [1] : vector<8x2x16x8xf32> to vector<8x16x8xf32>
    %96 = vector.shape_cast %95 : vector<8x16x8xf32> to vector<8x8x2x8xf32>
    %cst_72 = arith.constant dense<0xFF800000> : vector<8x8x8xf32>
    %97 = vector.multi_reduction <maximumf>, %96, %cst_72 [2] : vector<8x8x2x8xf32> to vector<8x8x8xf32>
    %98 = arith.truncf %97 : vector<8x8x8xf32> to vector<8x8x8xbf16>
    %c0_73 = arith.constant 0 : index
    %c0_74 = arith.constant 0 : index
    %c0_75 = arith.constant 0 : index
    %c0_76 = arith.constant 0 : index
    %99 = vector.load %arg4[%c0_73, %c0_74, %c0_75, %c0_76] : memref<1x8x8x8xbf16, #tpu.memory_space<vmem>>, vector<1x8x8x8xbf16>
    %100 = vector.shape_cast %99 : vector<1x8x8x8xbf16> to vector<8x8x8xbf16>
    %101 = vector.shape_cast %98 : vector<8x8x8xbf16> to vector<1x8x8x8xbf16>
    tpu.vector_store %arg4[%c0_73, %c0_74, %c0_75, %c0_76], %101 {strides = array<i32>} : memref<1x8x8x8xbf16, #tpu.memory_space<vmem>>, vector<1x8x8x8xbf16>,
    return
  }
  func.func @transform_0(%arg0: i32) -> (i32, i32, i32, i32) {
    %c0_i32 = arith.constant 0 : i32
    %c0_i32_0 = arith.constant 0 : i32
    %c0_i32_1 = arith.constant 0 : i32
    %c0_i32_2 = arith.constant 0 : i32
    return %arg0, %c0_i32, %c0_i32_0, %c0_i32_1 : i32, i32, i32, i32
  }
  func.func @transform_1(%arg0: i32) -> (i32, i32, i32, i32) {
    %c0_i32 = arith.constant 0 : i32
    %c0_i32_0 = arith.constant 0 : i32
    %c0_i32_1 = arith.constant 0 : i32
    %c0_i32_2 = arith.constant 0 : i32
    %c0_i32_3 = arith.constant 0 : i32
    return %c0_i32, %c0_i32_0, %c0_i32_1, %c0_i32_2 : i32, i32, i32, i32
  }
  func.func @transform_2(%arg0: i32) -> (i32, i32) {
    %c0_i32 = arith.constant 0 : i32
    %c0_i32_0 = arith.constant 0 : i32
    %c0_i32_1 = arith.constant 0 : i32
    return %c0_i32, %c0_i32_0 : i32, i32
  }
  func.func @transform_3(%arg0: i32) -> (i32, i32, i32, i32) {
    %c0_i32 = arith.constant 0 : i32
    %c0_i32_0 = arith.constant 0 : i32
    %c0_i32_1 = arith.constant 0 : i32
    %c0_i32_2 = arith.constant 0 : i32
    return %arg0, %c0_i32, %c0_i32_0, %c0_i32_1 : i32, i32, i32, i32
  }
}

module attributes {stable_mosaic.version = 11 : i64} {
  func.func @_block2_kernel(%arg0: i32, %arg1: memref<1x8x8x8xbf16, #tpu.memory_space<vmem>>, %arg2: memref<3x3x8x16xbf16, #tpu.memory_space<vmem>>, %arg3: memref<1x16xf32, #tpu.memory_space<vmem>>, %arg4: memref<1x4x4x16xbf16, #tpu.memory_space<vmem>>, %arg5: memref<10x25x8xbf16, #tpu.memory_space<vmem>>) attributes {dimension_semantics = [#tpu.dimension_semantics<parallel>], iteration_bounds = array<i64: 2>, scalar_prefetch = 0 : i64, scratch_operands = 1 : i64, tpu.core_type = #tpu.core_type<tc>, window_params = [{transform_indices = @transform_0, window_bounds = array<i64: 1, 8, 8, 8>}, {pipeline_mode = #tpu.pipeline_mode<synchronous>, transform_indices = @transform_1, window_bounds = array<i64: 3, 3, 8, 16>}, {pipeline_mode = #tpu.pipeline_mode<synchronous>, transform_indices = @transform_2, window_bounds = array<i64: 1, 16>}, {transform_indices = @transform_3, window_bounds = array<i64: 1, 4, 4, 16>}]} {
    %c0 = arith.constant 0 : index
    %c0_0 = arith.constant 0 : index
    %c0_1 = arith.constant 0 : index
    %c0_2 = arith.constant 0 : index
    %0 = vector.load %arg1[%c0, %c0_0, %c0_1, %c0_2] : memref<1x8x8x8xbf16, #tpu.memory_space<vmem>>, vector<1x8x8x8xbf16>
    %1 = vector.shape_cast %0 : vector<1x8x8x8xbf16> to vector<8x8x8xbf16>
    %cst = arith.constant 0.000000e+00 : bf16
    %2 = vector.broadcast %cst : bf16 to vector<10x25x8xbf16>
    %c0_3 = arith.constant 0 : index
    %c0_4 = arith.constant 0 : index
    %c0_5 = arith.constant 0 : index
    %3 = vector.load %arg5[%c0_3, %c0_4, %c0_5] : memref<10x25x8xbf16, #tpu.memory_space<vmem>>, vector<10x25x8xbf16>
    tpu.vector_store %arg5[%c0_3, %c0_4, %c0_5], %2 {strides = array<i32>} : memref<10x25x8xbf16, #tpu.memory_space<vmem>>, vector<10x25x8xbf16>,
    %c1 = arith.constant 1 : index
    %c16 = arith.constant 16 : index
    %c0_6 = arith.constant 0 : index
    %4 = vector.load %arg5[%c1, %c16, %c0_6] : memref<10x25x8xbf16, #tpu.memory_space<vmem>>, vector<8x8x8xbf16>
    tpu.vector_store %arg5[%c1, %c16, %c0_6], %1 {strides = array<i32>} : memref<10x25x8xbf16, #tpu.memory_space<vmem>>, vector<8x8x8xbf16>,
    %c0_7 = arith.constant 0 : index
    %c0_8 = arith.constant 0 : index
    %5 = vector.load %arg3[%c0_7, %c0_8] : memref<1x16xf32, #tpu.memory_space<vmem>>, vector<1x16xf32>
    %6 = vector.shape_cast %5 : vector<1x16xf32> to vector<16xf32>
    %cst_9 = arith.constant 0.000000e+00 : f32
    %7 = vector.broadcast %cst_9 : f32 to vector<64x16xf32>
    %c0_10 = arith.constant 0 : index
    %c15 = arith.constant 15 : index
    %c0_11 = arith.constant 0 : index
    %8 = vector.load %arg5[%c0_10, %c15, %c0_11] : memref<10x25x8xbf16, #tpu.memory_space<vmem>>, vector<8x8x8xbf16>
    %9 = vector.shape_cast %8 : vector<8x8x8xbf16> to vector<64x8xbf16>
    %c0_12 = arith.constant 0 : index
    %c0_13 = arith.constant 0 : index
    %c0_14 = arith.constant 0 : index
    %c0_15 = arith.constant 0 : index
    %10 = vector.load %arg2[%c0_12, %c0_13, %c0_14, %c0_15] : memref<3x3x8x16xbf16, #tpu.memory_space<vmem>>, vector<1x1x8x16xbf16>
    %11 = vector.shape_cast %10 : vector<1x1x8x16xbf16> to vector<8x16xbf16>
    %cst_16 = arith.constant dense<0.000000e+00> : vector<64x16xf32>
    %12 = tpu.matmul %9, %11, %cst_16 {dimension_numbers = #tpu.dot_dimension_numbers<[1], [0], [0], [1], [0, 0, 1, 1], [], []>} : vector<64x8xbf16>, vector<8x16xbf16>, vector<64x16xf32> -> vector<64x16xf32>
    %13 = arith.addf %7, %12 : vector<64x16xf32>
    %c0_17 = arith.constant 0 : index
    %c16_18 = arith.constant 16 : index
    %c0_19 = arith.constant 0 : index
    %14 = vector.load %arg5[%c0_17, %c16_18, %c0_19] : memref<10x25x8xbf16, #tpu.memory_space<vmem>>, vector<8x8x8xbf16>
    %15 = vector.shape_cast %14 : vector<8x8x8xbf16> to vector<64x8xbf16>
    %c0_20 = arith.constant 0 : index
    %c1_21 = arith.constant 1 : index
    %c0_22 = arith.constant 0 : index
    %c0_23 = arith.constant 0 : index
    %16 = vector.load %arg2[%c0_20, %c1_21, %c0_22, %c0_23] : memref<3x3x8x16xbf16, #tpu.memory_space<vmem>>, vector<1x1x8x16xbf16>
    %17 = vector.shape_cast %16 : vector<1x1x8x16xbf16> to vector<8x16xbf16>
    %cst_24 = arith.constant dense<0.000000e+00> : vector<64x16xf32>
    %18 = tpu.matmul %15, %17, %cst_24 {dimension_numbers = #tpu.dot_dimension_numbers<[1], [0], [0], [1], [0, 0, 1, 1], [], []>} : vector<64x8xbf16>, vector<8x16xbf16>, vector<64x16xf32> -> vector<64x16xf32>
    %19 = arith.addf %13, %18 : vector<64x16xf32>
    %c0_25 = arith.constant 0 : index
    %c17 = arith.constant 17 : index
    %c0_26 = arith.constant 0 : index
    %20 = vector.load %arg5[%c0_25, %c17, %c0_26] : memref<10x25x8xbf16, #tpu.memory_space<vmem>>, vector<8x8x8xbf16>
    %21 = vector.shape_cast %20 : vector<8x8x8xbf16> to vector<64x8xbf16>
    %c0_27 = arith.constant 0 : index
    %c2 = arith.constant 2 : index
    %c0_28 = arith.constant 0 : index
    %c0_29 = arith.constant 0 : index
    %22 = vector.load %arg2[%c0_27, %c2, %c0_28, %c0_29] : memref<3x3x8x16xbf16, #tpu.memory_space<vmem>>, vector<1x1x8x16xbf16>
    %23 = vector.shape_cast %22 : vector<1x1x8x16xbf16> to vector<8x16xbf16>
    %cst_30 = arith.constant dense<0.000000e+00> : vector<64x16xf32>
    %24 = tpu.matmul %21, %23, %cst_30 {dimension_numbers = #tpu.dot_dimension_numbers<[1], [0], [0], [1], [0, 0, 1, 1], [], []>} : vector<64x8xbf16>, vector<8x16xbf16>, vector<64x16xf32> -> vector<64x16xf32>
    %25 = arith.addf %19, %24 : vector<64x16xf32>
    %c1_31 = arith.constant 1 : index
    %c15_32 = arith.constant 15 : index
    %c0_33 = arith.constant 0 : index
    %26 = vector.load %arg5[%c1_31, %c15_32, %c0_33] : memref<10x25x8xbf16, #tpu.memory_space<vmem>>, vector<8x8x8xbf16>
    %27 = vector.shape_cast %26 : vector<8x8x8xbf16> to vector<64x8xbf16>
    %c1_34 = arith.constant 1 : index
    %c0_35 = arith.constant 0 : index
    %c0_36 = arith.constant 0 : index
    %c0_37 = arith.constant 0 : index
    %28 = vector.load %arg2[%c1_34, %c0_35, %c0_36, %c0_37] : memref<3x3x8x16xbf16, #tpu.memory_space<vmem>>, vector<1x1x8x16xbf16>
    %29 = vector.shape_cast %28 : vector<1x1x8x16xbf16> to vector<8x16xbf16>
    %cst_38 = arith.constant dense<0.000000e+00> : vector<64x16xf32>
    %30 = tpu.matmul %27, %29, %cst_38 {dimension_numbers = #tpu.dot_dimension_numbers<[1], [0], [0], [1], [0, 0, 1, 1], [], []>} : vector<64x8xbf16>, vector<8x16xbf16>, vector<64x16xf32> -> vector<64x16xf32>
    %31 = arith.addf %25, %30 : vector<64x16xf32>
    %c1_39 = arith.constant 1 : index
    %c16_40 = arith.constant 16 : index
    %c0_41 = arith.constant 0 : index
    %32 = vector.load %arg5[%c1_39, %c16_40, %c0_41] : memref<10x25x8xbf16, #tpu.memory_space<vmem>>, vector<8x8x8xbf16>
    %33 = vector.shape_cast %32 : vector<8x8x8xbf16> to vector<64x8xbf16>
    %c1_42 = arith.constant 1 : index
    %c1_43 = arith.constant 1 : index
    %c0_44 = arith.constant 0 : index
    %c0_45 = arith.constant 0 : index
    %34 = vector.load %arg2[%c1_42, %c1_43, %c0_44, %c0_45] : memref<3x3x8x16xbf16, #tpu.memory_space<vmem>>, vector<1x1x8x16xbf16>
    %35 = vector.shape_cast %34 : vector<1x1x8x16xbf16> to vector<8x16xbf16>
    %cst_46 = arith.constant dense<0.000000e+00> : vector<64x16xf32>
    %36 = tpu.matmul %33, %35, %cst_46 {dimension_numbers = #tpu.dot_dimension_numbers<[1], [0], [0], [1], [0, 0, 1, 1], [], []>} : vector<64x8xbf16>, vector<8x16xbf16>, vector<64x16xf32> -> vector<64x16xf32>
    %37 = arith.addf %31, %36 : vector<64x16xf32>
    %c1_47 = arith.constant 1 : index
    %c17_48 = arith.constant 17 : index
    %c0_49 = arith.constant 0 : index
    %38 = vector.load %arg5[%c1_47, %c17_48, %c0_49] : memref<10x25x8xbf16, #tpu.memory_space<vmem>>, vector<8x8x8xbf16>
    %39 = vector.shape_cast %38 : vector<8x8x8xbf16> to vector<64x8xbf16>
    %c1_50 = arith.constant 1 : index
    %c2_51 = arith.constant 2 : index
    %c0_52 = arith.constant 0 : index
    %c0_53 = arith.constant 0 : index
    %40 = vector.load %arg2[%c1_50, %c2_51, %c0_52, %c0_53] : memref<3x3x8x16xbf16, #tpu.memory_space<vmem>>, vector<1x1x8x16xbf16>
    %41 = vector.shape_cast %40 : vector<1x1x8x16xbf16> to vector<8x16xbf16>
    %cst_54 = arith.constant dense<0.000000e+00> : vector<64x16xf32>
    %42 = tpu.matmul %39, %41, %cst_54 {dimension_numbers = #tpu.dot_dimension_numbers<[1], [0], [0], [1], [0, 0, 1, 1], [], []>} : vector<64x8xbf16>, vector<8x16xbf16>, vector<64x16xf32> -> vector<64x16xf32>
    %43 = arith.addf %37, %42 : vector<64x16xf32>
    %c2_55 = arith.constant 2 : index
    %c15_56 = arith.constant 15 : index
    %c0_57 = arith.constant 0 : index
    %44 = vector.load %arg5[%c2_55, %c15_56, %c0_57] : memref<10x25x8xbf16, #tpu.memory_space<vmem>>, vector<8x8x8xbf16>
    %45 = vector.shape_cast %44 : vector<8x8x8xbf16> to vector<64x8xbf16>
    %c2_58 = arith.constant 2 : index
    %c0_59 = arith.constant 0 : index
    %c0_60 = arith.constant 0 : index
    %c0_61 = arith.constant 0 : index
    %46 = vector.load %arg2[%c2_58, %c0_59, %c0_60, %c0_61] : memref<3x3x8x16xbf16, #tpu.memory_space<vmem>>, vector<1x1x8x16xbf16>
    %47 = vector.shape_cast %46 : vector<1x1x8x16xbf16> to vector<8x16xbf16>
    %cst_62 = arith.constant dense<0.000000e+00> : vector<64x16xf32>
    %48 = tpu.matmul %45, %47, %cst_62 {dimension_numbers = #tpu.dot_dimension_numbers<[1], [0], [0], [1], [0, 0, 1, 1], [], []>} : vector<64x8xbf16>, vector<8x16xbf16>, vector<64x16xf32> -> vector<64x16xf32>
    %49 = arith.addf %43, %48 : vector<64x16xf32>
    %c2_63 = arith.constant 2 : index
    %c16_64 = arith.constant 16 : index
    %c0_65 = arith.constant 0 : index
    %50 = vector.load %arg5[%c2_63, %c16_64, %c0_65] : memref<10x25x8xbf16, #tpu.memory_space<vmem>>, vector<8x8x8xbf16>
    %51 = vector.shape_cast %50 : vector<8x8x8xbf16> to vector<64x8xbf16>
    %c2_66 = arith.constant 2 : index
    %c1_67 = arith.constant 1 : index
    %c0_68 = arith.constant 0 : index
    %c0_69 = arith.constant 0 : index
    %52 = vector.load %arg2[%c2_66, %c1_67, %c0_68, %c0_69] : memref<3x3x8x16xbf16, #tpu.memory_space<vmem>>, vector<1x1x8x16xbf16>
    %53 = vector.shape_cast %52 : vector<1x1x8x16xbf16> to vector<8x16xbf16>
    %cst_70 = arith.constant dense<0.000000e+00> : vector<64x16xf32>
    %54 = tpu.matmul %51, %53, %cst_70 {dimension_numbers = #tpu.dot_dimension_numbers<[1], [0], [0], [1], [0, 0, 1, 1], [], []>} : vector<64x8xbf16>, vector<8x16xbf16>, vector<64x16xf32> -> vector<64x16xf32>
    %55 = arith.addf %49, %54 : vector<64x16xf32>
    %c2_71 = arith.constant 2 : index
    %c17_72 = arith.constant 17 : index
    %c0_73 = arith.constant 0 : index
    %56 = vector.load %arg5[%c2_71, %c17_72, %c0_73] : memref<10x25x8xbf16, #tpu.memory_space<vmem>>, vector<8x8x8xbf16>
    %57 = vector.shape_cast %56 : vector<8x8x8xbf16> to vector<64x8xbf16>
    %c2_74 = arith.constant 2 : index
    %c2_75 = arith.constant 2 : index
    %c0_76 = arith.constant 0 : index
    %c0_77 = arith.constant 0 : index
    %58 = vector.load %arg2[%c2_74, %c2_75, %c0_76, %c0_77] : memref<3x3x8x16xbf16, #tpu.memory_space<vmem>>, vector<1x1x8x16xbf16>
    %59 = vector.shape_cast %58 : vector<1x1x8x16xbf16> to vector<8x16xbf16>
    %cst_78 = arith.constant dense<0.000000e+00> : vector<64x16xf32>
    %60 = tpu.matmul %57, %59, %cst_78 {dimension_numbers = #tpu.dot_dimension_numbers<[1], [0], [0], [1], [0, 0, 1, 1], [], []>} : vector<64x8xbf16>, vector<8x16xbf16>, vector<64x16xf32> -> vector<64x16xf32>
    %61 = arith.addf %55, %60 : vector<64x16xf32>
    %62 = vector.shape_cast %6 : vector<16xf32> to vector<1x16xf32>
    %63 = vector.broadcast %62 : vector<1x16xf32> to vector<64x16xf32>
    %64 = arith.addf %61, %63 : vector<64x16xf32>
    %cst_79 = arith.constant 0.000000e+00 : f32
    %65 = vector.broadcast %cst_79 : f32 to vector<64x16xf32>
    %66 = arith.maximumf %64, %65 : vector<64x16xf32>
    %67 = vector.shape_cast %66 : vector<64x16xf32> to vector<8x8x16xf32>
    %68 = vector.shape_cast %67 : vector<8x8x16xf32> to vector<4x2x8x16xf32>
    %cst_80 = arith.constant dense<0xFF800000> : vector<4x8x16xf32>
    %69 = vector.multi_reduction <maximumf>, %68, %cst_80 [1] : vector<4x2x8x16xf32> to vector<4x8x16xf32>
    %70 = vector.shape_cast %69 : vector<4x8x16xf32> to vector<4x4x2x16xf32>
    %cst_81 = arith.constant dense<0xFF800000> : vector<4x4x16xf32>
    %71 = vector.multi_reduction <maximumf>, %70, %cst_81 [2] : vector<4x4x2x16xf32> to vector<4x4x16xf32>
    %72 = arith.truncf %71 : vector<4x4x16xf32> to vector<4x4x16xbf16>
    %c0_82 = arith.constant 0 : index
    %c0_83 = arith.constant 0 : index
    %c0_84 = arith.constant 0 : index
    %c0_85 = arith.constant 0 : index
    %73 = vector.load %arg4[%c0_82, %c0_83, %c0_84, %c0_85] : memref<1x4x4x16xbf16, #tpu.memory_space<vmem>>, vector<1x4x4x16xbf16>
    %74 = vector.shape_cast %73 : vector<1x4x4x16xbf16> to vector<4x4x16xbf16>
    %75 = vector.shape_cast %72 : vector<4x4x16xbf16> to vector<1x4x4x16xbf16>
    tpu.vector_store %arg4[%c0_82, %c0_83, %c0_84, %c0_85], %75 {strides = array<i32>} : memref<1x4x4x16xbf16, #tpu.memory_space<vmem>>, vector<1x4x4x16xbf16>,
    return
  }
  func.func @transform_0(%arg0: i32) -> (i32, i32, i32, i32) {
    %c0_i32 = arith.constant 0 : i32
    %c0_i32_0 = arith.constant 0 : i32
    %c0_i32_1 = arith.constant 0 : i32
    %c0_i32_2 = arith.constant 0 : i32
    return %arg0, %c0_i32, %c0_i32_0, %c0_i32_1 : i32, i32, i32, i32
  }
  func.func @transform_1(%arg0: i32) -> (i32, i32, i32, i32) {
    %c0_i32 = arith.constant 0 : i32
    %c0_i32_0 = arith.constant 0 : i32
    %c0_i32_1 = arith.constant 0 : i32
    %c0_i32_2 = arith.constant 0 : i32
    %c0_i32_3 = arith.constant 0 : i32
    return %c0_i32, %c0_i32_0, %c0_i32_1, %c0_i32_2 : i32, i32, i32, i32
  }
  func.func @transform_2(%arg0: i32) -> (i32, i32) {
    %c0_i32 = arith.constant 0 : i32
    %c0_i32_0 = arith.constant 0 : i32
    %c0_i32_1 = arith.constant 0 : i32
    return %c0_i32, %c0_i32_0 : i32, i32
  }
  func.func @transform_3(%arg0: i32) -> (i32, i32, i32, i32) {
    %c0_i32 = arith.constant 0 : i32
    %c0_i32_0 = arith.constant 0 : i32
    %c0_i32_1 = arith.constant 0 : i32
    %c0_i32_2 = arith.constant 0 : i32
    return %arg0, %c0_i32, %c0_i32_0, %c0_i32_1 : i32, i32, i32, i32
  }
}

module attributes {stable_mosaic.version = 11 : i64} {
  func.func @_block34_kernel(%arg0: i32, %arg1: memref<1x4x4x16xbf16, #tpu.memory_space<vmem>>, %arg2: memref<3x3x16x32xbf16, #tpu.memory_space<vmem>>, %arg3: memref<1x32xf32, #tpu.memory_space<vmem>>, %arg4: memref<3x3x32x32xbf16, #tpu.memory_space<vmem>>, %arg5: memref<1x32xf32, #tpu.memory_space<vmem>>, %arg6: memref<1x2x2x32xbf16, #tpu.memory_space<vmem>>, %arg7: memref<6x21x16xbf16, #tpu.memory_space<vmem>>, %arg8: memref<6x21x32xbf16, #tpu.memory_space<vmem>>) attributes {dimension_semantics = [#tpu.dimension_semantics<parallel>], iteration_bounds = array<i64: 2>, scalar_prefetch = 0 : i64, scratch_operands = 2 : i64, tpu.core_type = #tpu.core_type<tc>, window_params = [{transform_indices = @transform_0, window_bounds = array<i64: 1, 4, 4, 16>}, {pipeline_mode = #tpu.pipeline_mode<synchronous>, transform_indices = @transform_1, window_bounds = array<i64: 3, 3, 16, 32>}, {pipeline_mode = #tpu.pipeline_mode<synchronous>, transform_indices = @transform_2, window_bounds = array<i64: 1, 32>}, {pipeline_mode = #tpu.pipeline_mode<synchronous>, transform_indices = @transform_3, window_bounds = array<i64: 3, 3, 32, 32>}, {pipeline_mode = #tpu.pipeline_mode<synchronous>, transform_indices = @transform_4, window_bounds = array<i64: 1, 32>}, {transform_indices = @transform_5, window_bounds = array<i64: 1, 2, 2, 32>}]} {
    %c0 = arith.constant 0 : index
    %c0_0 = arith.constant 0 : index
    %c0_1 = arith.constant 0 : index
    %c0_2 = arith.constant 0 : index
    %0 = vector.load %arg1[%c0, %c0_0, %c0_1, %c0_2] : memref<1x4x4x16xbf16, #tpu.memory_space<vmem>>, vector<1x4x4x16xbf16>
    %1 = vector.shape_cast %0 : vector<1x4x4x16xbf16> to vector<4x4x16xbf16>
    %cst = arith.constant 0.000000e+00 : bf16
    %2 = vector.broadcast %cst : bf16 to vector<6x21x16xbf16>
    %c0_3 = arith.constant 0 : index
    %c0_4 = arith.constant 0 : index
    %c0_5 = arith.constant 0 : index
    %3 = vector.load %arg7[%c0_3, %c0_4, %c0_5] : memref<6x21x16xbf16, #tpu.memory_space<vmem>>, vector<6x21x16xbf16>
    tpu.vector_store %arg7[%c0_3, %c0_4, %c0_5], %2 {strides = array<i32>} : memref<6x21x16xbf16, #tpu.memory_space<vmem>>, vector<6x21x16xbf16>,
    %c1 = arith.constant 1 : index
    %c16 = arith.constant 16 : index
    %c0_6 = arith.constant 0 : index
    %4 = vector.load %arg7[%c1, %c16, %c0_6] : memref<6x21x16xbf16, #tpu.memory_space<vmem>>, vector<4x4x16xbf16>
    tpu.vector_store %arg7[%c1, %c16, %c0_6], %1 {strides = array<i32>} : memref<6x21x16xbf16, #tpu.memory_space<vmem>>, vector<4x4x16xbf16>,
    %c0_7 = arith.constant 0 : index
    %c0_8 = arith.constant 0 : index
    %5 = vector.load %arg3[%c0_7, %c0_8] : memref<1x32xf32, #tpu.memory_space<vmem>>, vector<1x32xf32>
    %6 = vector.shape_cast %5 : vector<1x32xf32> to vector<32xf32>
    %cst_9 = arith.constant 0.000000e+00 : f32
    %7 = vector.broadcast %cst_9 : f32 to vector<16x32xf32>
    %c0_10 = arith.constant 0 : index
    %c15 = arith.constant 15 : index
    %c0_11 = arith.constant 0 : index
    %8 = vector.load %arg7[%c0_10, %c15, %c0_11] : memref<6x21x16xbf16, #tpu.memory_space<vmem>>, vector<4x4x16xbf16>
    %9 = vector.shape_cast %8 : vector<4x4x16xbf16> to vector<16x16xbf16>
    %c0_12 = arith.constant 0 : index
    %c0_13 = arith.constant 0 : index
    %c0_14 = arith.constant 0 : index
    %c0_15 = arith.constant 0 : index
    %10 = vector.load %arg2[%c0_12, %c0_13, %c0_14, %c0_15] : memref<3x3x16x32xbf16, #tpu.memory_space<vmem>>, vector<1x1x16x32xbf16>
    %11 = vector.shape_cast %10 : vector<1x1x16x32xbf16> to vector<16x32xbf16>
    %cst_16 = arith.constant dense<0.000000e+00> : vector<16x32xf32>
    %12 = tpu.matmul %9, %11, %cst_16 {dimension_numbers = #tpu.dot_dimension_numbers<[1], [0], [0], [1], [0, 0, 1, 1], [], []>} : vector<16x16xbf16>, vector<16x32xbf16>, vector<16x32xf32> -> vector<16x32xf32>
    %13 = arith.addf %7, %12 : vector<16x32xf32>
    %c0_17 = arith.constant 0 : index
    %c16_18 = arith.constant 16 : index
    %c0_19 = arith.constant 0 : index
    %14 = vector.load %arg7[%c0_17, %c16_18, %c0_19] : memref<6x21x16xbf16, #tpu.memory_space<vmem>>, vector<4x4x16xbf16>
    %15 = vector.shape_cast %14 : vector<4x4x16xbf16> to vector<16x16xbf16>
    %c0_20 = arith.constant 0 : index
    %c1_21 = arith.constant 1 : index
    %c0_22 = arith.constant 0 : index
    %c0_23 = arith.constant 0 : index
    %16 = vector.load %arg2[%c0_20, %c1_21, %c0_22, %c0_23] : memref<3x3x16x32xbf16, #tpu.memory_space<vmem>>, vector<1x1x16x32xbf16>
    %17 = vector.shape_cast %16 : vector<1x1x16x32xbf16> to vector<16x32xbf16>
    %cst_24 = arith.constant dense<0.000000e+00> : vector<16x32xf32>
    %18 = tpu.matmul %15, %17, %cst_24 {dimension_numbers = #tpu.dot_dimension_numbers<[1], [0], [0], [1], [0, 0, 1, 1], [], []>} : vector<16x16xbf16>, vector<16x32xbf16>, vector<16x32xf32> -> vector<16x32xf32>
    %19 = arith.addf %13, %18 : vector<16x32xf32>
    %c0_25 = arith.constant 0 : index
    %c17 = arith.constant 17 : index
    %c0_26 = arith.constant 0 : index
    %20 = vector.load %arg7[%c0_25, %c17, %c0_26] : memref<6x21x16xbf16, #tpu.memory_space<vmem>>, vector<4x4x16xbf16>
    %21 = vector.shape_cast %20 : vector<4x4x16xbf16> to vector<16x16xbf16>
    %c0_27 = arith.constant 0 : index
    %c2 = arith.constant 2 : index
    %c0_28 = arith.constant 0 : index
    %c0_29 = arith.constant 0 : index
    %22 = vector.load %arg2[%c0_27, %c2, %c0_28, %c0_29] : memref<3x3x16x32xbf16, #tpu.memory_space<vmem>>, vector<1x1x16x32xbf16>
    %23 = vector.shape_cast %22 : vector<1x1x16x32xbf16> to vector<16x32xbf16>
    %cst_30 = arith.constant dense<0.000000e+00> : vector<16x32xf32>
    %24 = tpu.matmul %21, %23, %cst_30 {dimension_numbers = #tpu.dot_dimension_numbers<[1], [0], [0], [1], [0, 0, 1, 1], [], []>} : vector<16x16xbf16>, vector<16x32xbf16>, vector<16x32xf32> -> vector<16x32xf32>
    %25 = arith.addf %19, %24 : vector<16x32xf32>
    %c1_31 = arith.constant 1 : index
    %c15_32 = arith.constant 15 : index
    %c0_33 = arith.constant 0 : index
    %26 = vector.load %arg7[%c1_31, %c15_32, %c0_33] : memref<6x21x16xbf16, #tpu.memory_space<vmem>>, vector<4x4x16xbf16>
    %27 = vector.shape_cast %26 : vector<4x4x16xbf16> to vector<16x16xbf16>
    %c1_34 = arith.constant 1 : index
    %c0_35 = arith.constant 0 : index
    %c0_36 = arith.constant 0 : index
    %c0_37 = arith.constant 0 : index
    %28 = vector.load %arg2[%c1_34, %c0_35, %c0_36, %c0_37] : memref<3x3x16x32xbf16, #tpu.memory_space<vmem>>, vector<1x1x16x32xbf16>
    %29 = vector.shape_cast %28 : vector<1x1x16x32xbf16> to vector<16x32xbf16>
    %cst_38 = arith.constant dense<0.000000e+00> : vector<16x32xf32>
    %30 = tpu.matmul %27, %29, %cst_38 {dimension_numbers = #tpu.dot_dimension_numbers<[1], [0], [0], [1], [0, 0, 1, 1], [], []>} : vector<16x16xbf16>, vector<16x32xbf16>, vector<16x32xf32> -> vector<16x32xf32>
    %31 = arith.addf %25, %30 : vector<16x32xf32>
    %c1_39 = arith.constant 1 : index
    %c16_40 = arith.constant 16 : index
    %c0_41 = arith.constant 0 : index
    %32 = vector.load %arg7[%c1_39, %c16_40, %c0_41] : memref<6x21x16xbf16, #tpu.memory_space<vmem>>, vector<4x4x16xbf16>
    %33 = vector.shape_cast %32 : vector<4x4x16xbf16> to vector<16x16xbf16>
    %c1_42 = arith.constant 1 : index
    %c1_43 = arith.constant 1 : index
    %c0_44 = arith.constant 0 : index
    %c0_45 = arith.constant 0 : index
    %34 = vector.load %arg2[%c1_42, %c1_43, %c0_44, %c0_45] : memref<3x3x16x32xbf16, #tpu.memory_space<vmem>>, vector<1x1x16x32xbf16>
    %35 = vector.shape_cast %34 : vector<1x1x16x32xbf16> to vector<16x32xbf16>
    %cst_46 = arith.constant dense<0.000000e+00> : vector<16x32xf32>
    %36 = tpu.matmul %33, %35, %cst_46 {dimension_numbers = #tpu.dot_dimension_numbers<[1], [0], [0], [1], [0, 0, 1, 1], [], []>} : vector<16x16xbf16>, vector<16x32xbf16>, vector<16x32xf32> -> vector<16x32xf32>
    %37 = arith.addf %31, %36 : vector<16x32xf32>
    %c1_47 = arith.constant 1 : index
    %c17_48 = arith.constant 17 : index
    %c0_49 = arith.constant 0 : index
    %38 = vector.load %arg7[%c1_47, %c17_48, %c0_49] : memref<6x21x16xbf16, #tpu.memory_space<vmem>>, vector<4x4x16xbf16>
    %39 = vector.shape_cast %38 : vector<4x4x16xbf16> to vector<16x16xbf16>
    %c1_50 = arith.constant 1 : index
    %c2_51 = arith.constant 2 : index
    %c0_52 = arith.constant 0 : index
    %c0_53 = arith.constant 0 : index
    %40 = vector.load %arg2[%c1_50, %c2_51, %c0_52, %c0_53] : memref<3x3x16x32xbf16, #tpu.memory_space<vmem>>, vector<1x1x16x32xbf16>
    %41 = vector.shape_cast %40 : vector<1x1x16x32xbf16> to vector<16x32xbf16>
    %cst_54 = arith.constant dense<0.000000e+00> : vector<16x32xf32>
    %42 = tpu.matmul %39, %41, %cst_54 {dimension_numbers = #tpu.dot_dimension_numbers<[1], [0], [0], [1], [0, 0, 1, 1], [], []>} : vector<16x16xbf16>, vector<16x32xbf16>, vector<16x32xf32> -> vector<16x32xf32>
    %43 = arith.addf %37, %42 : vector<16x32xf32>
    %c2_55 = arith.constant 2 : index
    %c15_56 = arith.constant 15 : index
    %c0_57 = arith.constant 0 : index
    %44 = vector.load %arg7[%c2_55, %c15_56, %c0_57] : memref<6x21x16xbf16, #tpu.memory_space<vmem>>, vector<4x4x16xbf16>
    %45 = vector.shape_cast %44 : vector<4x4x16xbf16> to vector<16x16xbf16>
    %c2_58 = arith.constant 2 : index
    %c0_59 = arith.constant 0 : index
    %c0_60 = arith.constant 0 : index
    %c0_61 = arith.constant 0 : index
    %46 = vector.load %arg2[%c2_58, %c0_59, %c0_60, %c0_61] : memref<3x3x16x32xbf16, #tpu.memory_space<vmem>>, vector<1x1x16x32xbf16>
    %47 = vector.shape_cast %46 : vector<1x1x16x32xbf16> to vector<16x32xbf16>
    %cst_62 = arith.constant dense<0.000000e+00> : vector<16x32xf32>
    %48 = tpu.matmul %45, %47, %cst_62 {dimension_numbers = #tpu.dot_dimension_numbers<[1], [0], [0], [1], [0, 0, 1, 1], [], []>} : vector<16x16xbf16>, vector<16x32xbf16>, vector<16x32xf32> -> vector<16x32xf32>
    %49 = arith.addf %43, %48 : vector<16x32xf32>
    %c2_63 = arith.constant 2 : index
    %c16_64 = arith.constant 16 : index
    %c0_65 = arith.constant 0 : index
    %50 = vector.load %arg7[%c2_63, %c16_64, %c0_65] : memref<6x21x16xbf16, #tpu.memory_space<vmem>>, vector<4x4x16xbf16>
    %51 = vector.shape_cast %50 : vector<4x4x16xbf16> to vector<16x16xbf16>
    %c2_66 = arith.constant 2 : index
    %c1_67 = arith.constant 1 : index
    %c0_68 = arith.constant 0 : index
    %c0_69 = arith.constant 0 : index
    %52 = vector.load %arg2[%c2_66, %c1_67, %c0_68, %c0_69] : memref<3x3x16x32xbf16, #tpu.memory_space<vmem>>, vector<1x1x16x32xbf16>
    %53 = vector.shape_cast %52 : vector<1x1x16x32xbf16> to vector<16x32xbf16>
    %cst_70 = arith.constant dense<0.000000e+00> : vector<16x32xf32>
    %54 = tpu.matmul %51, %53, %cst_70 {dimension_numbers = #tpu.dot_dimension_numbers<[1], [0], [0], [1], [0, 0, 1, 1], [], []>} : vector<16x16xbf16>, vector<16x32xbf16>, vector<16x32xf32> -> vector<16x32xf32>
    %55 = arith.addf %49, %54 : vector<16x32xf32>
    %c2_71 = arith.constant 2 : index
    %c17_72 = arith.constant 17 : index
    %c0_73 = arith.constant 0 : index
    %56 = vector.load %arg7[%c2_71, %c17_72, %c0_73] : memref<6x21x16xbf16, #tpu.memory_space<vmem>>, vector<4x4x16xbf16>
    %57 = vector.shape_cast %56 : vector<4x4x16xbf16> to vector<16x16xbf16>
    %c2_74 = arith.constant 2 : index
    %c2_75 = arith.constant 2 : index
    %c0_76 = arith.constant 0 : index
    %c0_77 = arith.constant 0 : index
    %58 = vector.load %arg2[%c2_74, %c2_75, %c0_76, %c0_77] : memref<3x3x16x32xbf16, #tpu.memory_space<vmem>>, vector<1x1x16x32xbf16>
    %59 = vector.shape_cast %58 : vector<1x1x16x32xbf16> to vector<16x32xbf16>
    %cst_78 = arith.constant dense<0.000000e+00> : vector<16x32xf32>
    %60 = tpu.matmul %57, %59, %cst_78 {dimension_numbers = #tpu.dot_dimension_numbers<[1], [0], [0], [1], [0, 0, 1, 1], [], []>} : vector<16x16xbf16>, vector<16x32xbf16>, vector<16x32xf32> -> vector<16x32xf32>
    %61 = arith.addf %55, %60 : vector<16x32xf32>
    %62 = vector.shape_cast %6 : vector<32xf32> to vector<1x32xf32>
    %63 = vector.broadcast %62 : vector<1x32xf32> to vector<16x32xf32>
    %64 = arith.addf %61, %63 : vector<16x32xf32>
    %cst_79 = arith.constant 0.000000e+00 : f32
    %65 = vector.broadcast %cst_79 : f32 to vector<16x32xf32>
    %66 = arith.maximumf %64, %65 : vector<16x32xf32>
    %67 = vector.shape_cast %66 : vector<16x32xf32> to vector<4x4x32xf32>
    %68 = arith.truncf %67 : vector<4x4x32xf32> to vector<4x4x32xbf16>
    %cst_80 = arith.constant 0.000000e+00 : bf16
    %69 = vector.broadcast %cst_80 : bf16 to vector<6x21x32xbf16>
    %c0_81 = arith.constant 0 : index
    %c0_82 = arith.constant 0 : index
    %c0_83 = arith.constant 0 : index
    %70 = vector.load %arg8[%c0_81, %c0_82, %c0_83] : memref<6x21x32xbf16, #tpu.memory_space<vmem>>, vector<6x21x32xbf16>
    tpu.vector_store %arg8[%c0_81, %c0_82, %c0_83], %69 {strides = array<i32>} : memref<6x21x32xbf16, #tpu.memory_space<vmem>>, vector<6x21x32xbf16>,
    %c1_84 = arith.constant 1 : index
    %c16_85 = arith.constant 16 : index
    %c0_86 = arith.constant 0 : index
    %71 = vector.load %arg8[%c1_84, %c16_85, %c0_86] : memref<6x21x32xbf16, #tpu.memory_space<vmem>>, vector<4x4x32xbf16>
    tpu.vector_store %arg8[%c1_84, %c16_85, %c0_86], %68 {strides = array<i32>} : memref<6x21x32xbf16, #tpu.memory_space<vmem>>, vector<4x4x32xbf16>,
    %c0_87 = arith.constant 0 : index
    %c0_88 = arith.constant 0 : index
    %72 = vector.load %arg5[%c0_87, %c0_88] : memref<1x32xf32, #tpu.memory_space<vmem>>, vector<1x32xf32>
    %73 = vector.shape_cast %72 : vector<1x32xf32> to vector<32xf32>
    %cst_89 = arith.constant 0.000000e+00 : f32
    %74 = vector.broadcast %cst_89 : f32 to vector<16x32xf32>
    %c0_90 = arith.constant 0 : index
    %c15_91 = arith.constant 15 : index
    %c0_92 = arith.constant 0 : index
    %75 = vector.load %arg8[%c0_90, %c15_91, %c0_92] : memref<6x21x32xbf16, #tpu.memory_space<vmem>>, vector<4x4x32xbf16>
    %76 = vector.shape_cast %75 : vector<4x4x32xbf16> to vector<16x32xbf16>
    %c0_93 = arith.constant 0 : index
    %c0_94 = arith.constant 0 : index
    %c0_95 = arith.constant 0 : index
    %c0_96 = arith.constant 0 : index
    %77 = vector.load %arg4[%c0_93, %c0_94, %c0_95, %c0_96] : memref<3x3x32x32xbf16, #tpu.memory_space<vmem>>, vector<1x1x32x32xbf16>
    %78 = vector.shape_cast %77 : vector<1x1x32x32xbf16> to vector<32x32xbf16>
    %cst_97 = arith.constant dense<0.000000e+00> : vector<16x32xf32>
    %79 = tpu.matmul %76, %78, %cst_97 {dimension_numbers = #tpu.dot_dimension_numbers<[1], [0], [0], [1], [0, 0, 1, 1], [], []>} : vector<16x32xbf16>, vector<32x32xbf16>, vector<16x32xf32> -> vector<16x32xf32>
    %80 = arith.addf %74, %79 : vector<16x32xf32>
    %c0_98 = arith.constant 0 : index
    %c16_99 = arith.constant 16 : index
    %c0_100 = arith.constant 0 : index
    %81 = vector.load %arg8[%c0_98, %c16_99, %c0_100] : memref<6x21x32xbf16, #tpu.memory_space<vmem>>, vector<4x4x32xbf16>
    %82 = vector.shape_cast %81 : vector<4x4x32xbf16> to vector<16x32xbf16>
    %c0_101 = arith.constant 0 : index
    %c1_102 = arith.constant 1 : index
    %c0_103 = arith.constant 0 : index
    %c0_104 = arith.constant 0 : index
    %83 = vector.load %arg4[%c0_101, %c1_102, %c0_103, %c0_104] : memref<3x3x32x32xbf16, #tpu.memory_space<vmem>>, vector<1x1x32x32xbf16>
    %84 = vector.shape_cast %83 : vector<1x1x32x32xbf16> to vector<32x32xbf16>
    %cst_105 = arith.constant dense<0.000000e+00> : vector<16x32xf32>
    %85 = tpu.matmul %82, %84, %cst_105 {dimension_numbers = #tpu.dot_dimension_numbers<[1], [0], [0], [1], [0, 0, 1, 1], [], []>} : vector<16x32xbf16>, vector<32x32xbf16>, vector<16x32xf32> -> vector<16x32xf32>
    %86 = arith.addf %80, %85 : vector<16x32xf32>
    %c0_106 = arith.constant 0 : index
    %c17_107 = arith.constant 17 : index
    %c0_108 = arith.constant 0 : index
    %87 = vector.load %arg8[%c0_106, %c17_107, %c0_108] : memref<6x21x32xbf16, #tpu.memory_space<vmem>>, vector<4x4x32xbf16>
    %88 = vector.shape_cast %87 : vector<4x4x32xbf16> to vector<16x32xbf16>
    %c0_109 = arith.constant 0 : index
    %c2_110 = arith.constant 2 : index
    %c0_111 = arith.constant 0 : index
    %c0_112 = arith.constant 0 : index
    %89 = vector.load %arg4[%c0_109, %c2_110, %c0_111, %c0_112] : memref<3x3x32x32xbf16, #tpu.memory_space<vmem>>, vector<1x1x32x32xbf16>
    %90 = vector.shape_cast %89 : vector<1x1x32x32xbf16> to vector<32x32xbf16>
    %cst_113 = arith.constant dense<0.000000e+00> : vector<16x32xf32>
    %91 = tpu.matmul %88, %90, %cst_113 {dimension_numbers = #tpu.dot_dimension_numbers<[1], [0], [0], [1], [0, 0, 1, 1], [], []>} : vector<16x32xbf16>, vector<32x32xbf16>, vector<16x32xf32> -> vector<16x32xf32>
    %92 = arith.addf %86, %91 : vector<16x32xf32>
    %c1_114 = arith.constant 1 : index
    %c15_115 = arith.constant 15 : index
    %c0_116 = arith.constant 0 : index
    %93 = vector.load %arg8[%c1_114, %c15_115, %c0_116] : memref<6x21x32xbf16, #tpu.memory_space<vmem>>, vector<4x4x32xbf16>
    %94 = vector.shape_cast %93 : vector<4x4x32xbf16> to vector<16x32xbf16>
    %c1_117 = arith.constant 1 : index
    %c0_118 = arith.constant 0 : index
    %c0_119 = arith.constant 0 : index
    %c0_120 = arith.constant 0 : index
    %95 = vector.load %arg4[%c1_117, %c0_118, %c0_119, %c0_120] : memref<3x3x32x32xbf16, #tpu.memory_space<vmem>>, vector<1x1x32x32xbf16>
    %96 = vector.shape_cast %95 : vector<1x1x32x32xbf16> to vector<32x32xbf16>
    %cst_121 = arith.constant dense<0.000000e+00> : vector<16x32xf32>
    %97 = tpu.matmul %94, %96, %cst_121 {dimension_numbers = #tpu.dot_dimension_numbers<[1], [0], [0], [1], [0, 0, 1, 1], [], []>} : vector<16x32xbf16>, vector<32x32xbf16>, vector<16x32xf32> -> vector<16x32xf32>
    %98 = arith.addf %92, %97 : vector<16x32xf32>
    %c1_122 = arith.constant 1 : index
    %c16_123 = arith.constant 16 : index
    %c0_124 = arith.constant 0 : index
    %99 = vector.load %arg8[%c1_122, %c16_123, %c0_124] : memref<6x21x32xbf16, #tpu.memory_space<vmem>>, vector<4x4x32xbf16>
    %100 = vector.shape_cast %99 : vector<4x4x32xbf16> to vector<16x32xbf16>
    %c1_125 = arith.constant 1 : index
    %c1_126 = arith.constant 1 : index
    %c0_127 = arith.constant 0 : index
    %c0_128 = arith.constant 0 : index
    %101 = vector.load %arg4[%c1_125, %c1_126, %c0_127, %c0_128] : memref<3x3x32x32xbf16, #tpu.memory_space<vmem>>, vector<1x1x32x32xbf16>
    %102 = vector.shape_cast %101 : vector<1x1x32x32xbf16> to vector<32x32xbf16>
    %cst_129 = arith.constant dense<0.000000e+00> : vector<16x32xf32>
    %103 = tpu.matmul %100, %102, %cst_129 {dimension_numbers = #tpu.dot_dimension_numbers<[1], [0], [0], [1], [0, 0, 1, 1], [], []>} : vector<16x32xbf16>, vector<32x32xbf16>, vector<16x32xf32> -> vector<16x32xf32>
    %104 = arith.addf %98, %103 : vector<16x32xf32>
    %c1_130 = arith.constant 1 : index
    %c17_131 = arith.constant 17 : index
    %c0_132 = arith.constant 0 : index
    %105 = vector.load %arg8[%c1_130, %c17_131, %c0_132] : memref<6x21x32xbf16, #tpu.memory_space<vmem>>, vector<4x4x32xbf16>
    %106 = vector.shape_cast %105 : vector<4x4x32xbf16> to vector<16x32xbf16>
    %c1_133 = arith.constant 1 : index
    %c2_134 = arith.constant 2 : index
    %c0_135 = arith.constant 0 : index
    %c0_136 = arith.constant 0 : index
    %107 = vector.load %arg4[%c1_133, %c2_134, %c0_135, %c0_136] : memref<3x3x32x32xbf16, #tpu.memory_space<vmem>>, vector<1x1x32x32xbf16>
    %108 = vector.shape_cast %107 : vector<1x1x32x32xbf16> to vector<32x32xbf16>
    %cst_137 = arith.constant dense<0.000000e+00> : vector<16x32xf32>
    %109 = tpu.matmul %106, %108, %cst_137 {dimension_numbers = #tpu.dot_dimension_numbers<[1], [0], [0], [1], [0, 0, 1, 1], [], []>} : vector<16x32xbf16>, vector<32x32xbf16>, vector<16x32xf32> -> vector<16x32xf32>
    %110 = arith.addf %104, %109 : vector<16x32xf32>
    %c2_138 = arith.constant 2 : index
    %c15_139 = arith.constant 15 : index
    %c0_140 = arith.constant 0 : index
    %111 = vector.load %arg8[%c2_138, %c15_139, %c0_140] : memref<6x21x32xbf16, #tpu.memory_space<vmem>>, vector<4x4x32xbf16>
    %112 = vector.shape_cast %111 : vector<4x4x32xbf16> to vector<16x32xbf16>
    %c2_141 = arith.constant 2 : index
    %c0_142 = arith.constant 0 : index
    %c0_143 = arith.constant 0 : index
    %c0_144 = arith.constant 0 : index
    %113 = vector.load %arg4[%c2_141, %c0_142, %c0_143, %c0_144] : memref<3x3x32x32xbf16, #tpu.memory_space<vmem>>, vector<1x1x32x32xbf16>
    %114 = vector.shape_cast %113 : vector<1x1x32x32xbf16> to vector<32x32xbf16>
    %cst_145 = arith.constant dense<0.000000e+00> : vector<16x32xf32>
    %115 = tpu.matmul %112, %114, %cst_145 {dimension_numbers = #tpu.dot_dimension_numbers<[1], [0], [0], [1], [0, 0, 1, 1], [], []>} : vector<16x32xbf16>, vector<32x32xbf16>, vector<16x32xf32> -> vector<16x32xf32>
    %116 = arith.addf %110, %115 : vector<16x32xf32>
    %c2_146 = arith.constant 2 : index
    %c16_147 = arith.constant 16 : index
    %c0_148 = arith.constant 0 : index
    %117 = vector.load %arg8[%c2_146, %c16_147, %c0_148] : memref<6x21x32xbf16, #tpu.memory_space<vmem>>, vector<4x4x32xbf16>
    %118 = vector.shape_cast %117 : vector<4x4x32xbf16> to vector<16x32xbf16>
    %c2_149 = arith.constant 2 : index
    %c1_150 = arith.constant 1 : index
    %c0_151 = arith.constant 0 : index
    %c0_152 = arith.constant 0 : index
    %119 = vector.load %arg4[%c2_149, %c1_150, %c0_151, %c0_152] : memref<3x3x32x32xbf16, #tpu.memory_space<vmem>>, vector<1x1x32x32xbf16>
    %120 = vector.shape_cast %119 : vector<1x1x32x32xbf16> to vector<32x32xbf16>
    %cst_153 = arith.constant dense<0.000000e+00> : vector<16x32xf32>
    %121 = tpu.matmul %118, %120, %cst_153 {dimension_numbers = #tpu.dot_dimension_numbers<[1], [0], [0], [1], [0, 0, 1, 1], [], []>} : vector<16x32xbf16>, vector<32x32xbf16>, vector<16x32xf32> -> vector<16x32xf32>
    %122 = arith.addf %116, %121 : vector<16x32xf32>
    %c2_154 = arith.constant 2 : index
    %c17_155 = arith.constant 17 : index
    %c0_156 = arith.constant 0 : index
    %123 = vector.load %arg8[%c2_154, %c17_155, %c0_156] : memref<6x21x32xbf16, #tpu.memory_space<vmem>>, vector<4x4x32xbf16>
    %124 = vector.shape_cast %123 : vector<4x4x32xbf16> to vector<16x32xbf16>
    %c2_157 = arith.constant 2 : index
    %c2_158 = arith.constant 2 : index
    %c0_159 = arith.constant 0 : index
    %c0_160 = arith.constant 0 : index
    %125 = vector.load %arg4[%c2_157, %c2_158, %c0_159, %c0_160] : memref<3x3x32x32xbf16, #tpu.memory_space<vmem>>, vector<1x1x32x32xbf16>
    %126 = vector.shape_cast %125 : vector<1x1x32x32xbf16> to vector<32x32xbf16>
    %cst_161 = arith.constant dense<0.000000e+00> : vector<16x32xf32>
    %127 = tpu.matmul %124, %126, %cst_161 {dimension_numbers = #tpu.dot_dimension_numbers<[1], [0], [0], [1], [0, 0, 1, 1], [], []>} : vector<16x32xbf16>, vector<32x32xbf16>, vector<16x32xf32> -> vector<16x32xf32>
    %128 = arith.addf %122, %127 : vector<16x32xf32>
    %129 = vector.shape_cast %73 : vector<32xf32> to vector<1x32xf32>
    %130 = vector.broadcast %129 : vector<1x32xf32> to vector<16x32xf32>
    %131 = arith.addf %128, %130 : vector<16x32xf32>
    %cst_162 = arith.constant 0.000000e+00 : f32
    %132 = vector.broadcast %cst_162 : f32 to vector<16x32xf32>
    %133 = arith.maximumf %131, %132 : vector<16x32xf32>
    %134 = vector.shape_cast %133 : vector<16x32xf32> to vector<4x4x32xf32>
    %135 = vector.shape_cast %134 : vector<4x4x32xf32> to vector<2x2x4x32xf32>
    %cst_163 = arith.constant dense<0xFF800000> : vector<2x4x32xf32>
    %136 = vector.multi_reduction <maximumf>, %135, %cst_163 [1] : vector<2x2x4x32xf32> to vector<2x4x32xf32>
    %137 = vector.shape_cast %136 : vector<2x4x32xf32> to vector<2x2x2x32xf32>
    %cst_164 = arith.constant dense<0xFF800000> : vector<2x2x32xf32>
    %138 = vector.multi_reduction <maximumf>, %137, %cst_164 [2] : vector<2x2x2x32xf32> to vector<2x2x32xf32>
    %139 = arith.truncf %138 : vector<2x2x32xf32> to vector<2x2x32xbf16>
    %c0_165 = arith.constant 0 : index
    %c0_166 = arith.constant 0 : index
    %c0_167 = arith.constant 0 : index
    %c0_168 = arith.constant 0 : index
    %140 = vector.load %arg6[%c0_165, %c0_166, %c0_167, %c0_168] : memref<1x2x2x32xbf16, #tpu.memory_space<vmem>>, vector<1x2x2x32xbf16>
    %141 = vector.shape_cast %140 : vector<1x2x2x32xbf16> to vector<2x2x32xbf16>
    %142 = vector.shape_cast %139 : vector<2x2x32xbf16> to vector<1x2x2x32xbf16>
    tpu.vector_store %arg6[%c0_165, %c0_166, %c0_167, %c0_168], %142 {strides = array<i32>} : memref<1x2x2x32xbf16, #tpu.memory_space<vmem>>, vector<1x2x2x32xbf16>,
    return
  }
  func.func @transform_0(%arg0: i32) -> (i32, i32, i32, i32) {
    %c0_i32 = arith.constant 0 : i32
    %c0_i32_0 = arith.constant 0 : i32
    %c0_i32_1 = arith.constant 0 : i32
    %c0_i32_2 = arith.constant 0 : i32
    return %arg0, %c0_i32, %c0_i32_0, %c0_i32_1 : i32, i32, i32, i32
  }
  func.func @transform_1(%arg0: i32) -> (i32, i32, i32, i32) {
    %c0_i32 = arith.constant 0 : i32
    %c0_i32_0 = arith.constant 0 : i32
    %c0_i32_1 = arith.constant 0 : i32
    %c0_i32_2 = arith.constant 0 : i32
    %c0_i32_3 = arith.constant 0 : i32
    return %c0_i32, %c0_i32_0, %c0_i32_1, %c0_i32_2 : i32, i32, i32, i32
  }
  func.func @transform_2(%arg0: i32) -> (i32, i32) {
    %c0_i32 = arith.constant 0 : i32
    %c0_i32_0 = arith.constant 0 : i32
    %c0_i32_1 = arith.constant 0 : i32
    return %c0_i32, %c0_i32_0 : i32, i32
  }
  func.func @transform_3(%arg0: i32) -> (i32, i32, i32, i32) {
    %c0_i32 = arith.constant 0 : i32
    %c0_i32_0 = arith.constant 0 : i32
    %c0_i32_1 = arith.constant 0 : i32
    %c0_i32_2 = arith.constant 0 : i32
    %c0_i32_3 = arith.constant 0 : i32
    return %c0_i32, %c0_i32_0, %c0_i32_1, %c0_i32_2 : i32, i32, i32, i32
  }
  func.func @transform_4(%arg0: i32) -> (i32, i32) {
    %c0_i32 = arith.constant 0 : i32
    %c0_i32_0 = arith.constant 0 : i32
    %c0_i32_1 = arith.constant 0 : i32
    return %c0_i32, %c0_i32_0 : i32, i32
  }
  func.func @transform_5(%arg0: i32) -> (i32, i32, i32, i32) {
    %c0_i32 = arith.constant 0 : i32
    %c0_i32_0 = arith.constant 0 : i32
    %c0_i32_1 = arith.constant 0 : i32
    %c0_i32_2 = arith.constant 0 : i32
    return %arg0, %c0_i32, %c0_i32_0, %c0_i32_1 : i32, i32, i32, i32
  }
}

module attributes {stable_mosaic.version = 11 : i64} {
  func.func @_block56_mean_kernel(%arg0: i32, %arg1: memref<1x2x2x32xbf16, #tpu.memory_space<vmem>>, %arg2: memref<3x3x32x64xbf16, #tpu.memory_space<vmem>>, %arg3: memref<1x64xf32, #tpu.memory_space<vmem>>, %arg4: memref<3x3x64x64xbf16, #tpu.memory_space<vmem>>, %arg5: memref<1x64xf32, #tpu.memory_space<vmem>>, %arg6: memref<2x2x64xf32, #tpu.memory_space<vmem>>, %arg7: memref<2x2x64xf32, #tpu.memory_space<vmem>>, %arg8: memref<4x19x32xbf16, #tpu.memory_space<vmem>>, %arg9: memref<4x19x64xbf16, #tpu.memory_space<vmem>>) attributes {dimension_semantics = [#tpu.dimension_semantics<arbitrary>], iteration_bounds = array<i64: 2>, scalar_prefetch = 0 : i64, scratch_operands = 2 : i64, tpu.core_type = #tpu.core_type<tc>, window_params = [{transform_indices = @transform_0, window_bounds = array<i64: 1, 2, 2, 32>}, {pipeline_mode = #tpu.pipeline_mode<synchronous>, transform_indices = @transform_1, window_bounds = array<i64: 3, 3, 32, 64>}, {pipeline_mode = #tpu.pipeline_mode<synchronous>, transform_indices = @transform_2, window_bounds = array<i64: 1, 64>}, {pipeline_mode = #tpu.pipeline_mode<synchronous>, transform_indices = @transform_3, window_bounds = array<i64: 3, 3, 64, 64>}, {pipeline_mode = #tpu.pipeline_mode<synchronous>, transform_indices = @transform_4, window_bounds = array<i64: 1, 64>}, {pipeline_mode = #tpu.pipeline_mode<synchronous>, transform_indices = @transform_5, window_bounds = array<i64: 2, 2, 64>}, {pipeline_mode = #tpu.pipeline_mode<synchronous>, transform_indices = @transform_6, window_bounds = array<i64: 2, 2, 64>}]} {
    %c0_i32 = arith.constant 0 : i32
    %0 = arith.cmpi eq, %arg0, %c0_i32 : i32
    %1 = arith.extui %0 : i1 to i32
    %c0_i32_0 = arith.constant 0 : i32
    %2 = arith.cmpi ne, %1, %c0_i32_0 : i32
    scf.if %2 {
      %cst_176 = arith.constant 0.000000e+00 : f32
      %145 = vector.broadcast %cst_176 : f32 to vector<2x2x64xf32>
      %c0_177 = arith.constant 0 : index
      %c0_178 = arith.constant 0 : index
      %c0_179 = arith.constant 0 : index
      %146 = vector.load %arg6[%c0_177, %c0_178, %c0_179] : memref<2x2x64xf32, #tpu.memory_space<vmem>>, vector<2x2x64xf32>
      tpu.vector_store %arg6[%c0_177, %c0_178, %c0_179], %145 {strides = array<i32>} : memref<2x2x64xf32, #tpu.memory_space<vmem>>, vector<2x2x64xf32>,
      %cst_180 = arith.constant 0.000000e+00 : f32
      %147 = vector.broadcast %cst_180 : f32 to vector<2x2x64xf32>
      %c0_181 = arith.constant 0 : index
      %c0_182 = arith.constant 0 : index
      %c0_183 = arith.constant 0 : index
      %148 = vector.load %arg7[%c0_181, %c0_182, %c0_183] : memref<2x2x64xf32, #tpu.memory_space<vmem>>, vector<2x2x64xf32>
      tpu.vector_store %arg7[%c0_181, %c0_182, %c0_183], %147 {strides = array<i32>} : memref<2x2x64xf32, #tpu.memory_space<vmem>>, vector<2x2x64xf32>,
    } else {
    }
    %c0 = arith.constant 0 : index
    %c0_1 = arith.constant 0 : index
    %c0_2 = arith.constant 0 : index
    %c0_3 = arith.constant 0 : index
    %3 = vector.load %arg1[%c0, %c0_1, %c0_2, %c0_3] : memref<1x2x2x32xbf16, #tpu.memory_space<vmem>>, vector<1x2x2x32xbf16>
    %4 = vector.shape_cast %3 : vector<1x2x2x32xbf16> to vector<2x2x32xbf16>
    %cst = arith.constant 0.000000e+00 : bf16
    %5 = vector.broadcast %cst : bf16 to vector<4x19x32xbf16>
    %c0_4 = arith.constant 0 : index
    %c0_5 = arith.constant 0 : index
    %c0_6 = arith.constant 0 : index
    %6 = vector.load %arg8[%c0_4, %c0_5, %c0_6] : memref<4x19x32xbf16, #tpu.memory_space<vmem>>, vector<4x19x32xbf16>
    tpu.vector_store %arg8[%c0_4, %c0_5, %c0_6], %5 {strides = array<i32>} : memref<4x19x32xbf16, #tpu.memory_space<vmem>>, vector<4x19x32xbf16>,
    %c1 = arith.constant 1 : index
    %c16 = arith.constant 16 : index
    %c0_7 = arith.constant 0 : index
    %7 = vector.load %arg8[%c1, %c16, %c0_7] : memref<4x19x32xbf16, #tpu.memory_space<vmem>>, vector<2x2x32xbf16>
    tpu.vector_store %arg8[%c1, %c16, %c0_7], %4 {strides = array<i32>} : memref<4x19x32xbf16, #tpu.memory_space<vmem>>, vector<2x2x32xbf16>,
    %c0_8 = arith.constant 0 : index
    %c0_9 = arith.constant 0 : index
    %8 = vector.load %arg3[%c0_8, %c0_9] : memref<1x64xf32, #tpu.memory_space<vmem>>, vector<1x64xf32>
    %9 = vector.shape_cast %8 : vector<1x64xf32> to vector<64xf32>
    %cst_10 = arith.constant 0.000000e+00 : f32
    %10 = vector.broadcast %cst_10 : f32 to vector<4x64xf32>
    %c0_11 = arith.constant 0 : index
    %c15 = arith.constant 15 : index
    %c0_12 = arith.constant 0 : index
    %11 = vector.load %arg8[%c0_11, %c15, %c0_12] : memref<4x19x32xbf16, #tpu.memory_space<vmem>>, vector<2x2x32xbf16>
    %12 = vector.shape_cast %11 : vector<2x2x32xbf16> to vector<4x32xbf16>
    %c0_13 = arith.constant 0 : index
    %c0_14 = arith.constant 0 : index
    %c0_15 = arith.constant 0 : index
    %c0_16 = arith.constant 0 : index
    %13 = vector.load %arg2[%c0_13, %c0_14, %c0_15, %c0_16] : memref<3x3x32x64xbf16, #tpu.memory_space<vmem>>, vector<1x1x32x64xbf16>
    %14 = vector.shape_cast %13 : vector<1x1x32x64xbf16> to vector<32x64xbf16>
    %cst_17 = arith.constant dense<0.000000e+00> : vector<4x64xf32>
    %15 = tpu.matmul %12, %14, %cst_17 {dimension_numbers = #tpu.dot_dimension_numbers<[1], [0], [0], [1], [0, 0, 1, 1], [], []>} : vector<4x32xbf16>, vector<32x64xbf16>, vector<4x64xf32> -> vector<4x64xf32>
    %16 = arith.addf %10, %15 : vector<4x64xf32>
    %c0_18 = arith.constant 0 : index
    %c16_19 = arith.constant 16 : index
    %c0_20 = arith.constant 0 : index
    %17 = vector.load %arg8[%c0_18, %c16_19, %c0_20] : memref<4x19x32xbf16, #tpu.memory_space<vmem>>, vector<2x2x32xbf16>
    %18 = vector.shape_cast %17 : vector<2x2x32xbf16> to vector<4x32xbf16>
    %c0_21 = arith.constant 0 : index
    %c1_22 = arith.constant 1 : index
    %c0_23 = arith.constant 0 : index
    %c0_24 = arith.constant 0 : index
    %19 = vector.load %arg2[%c0_21, %c1_22, %c0_23, %c0_24] : memref<3x3x32x64xbf16, #tpu.memory_space<vmem>>, vector<1x1x32x64xbf16>
    %20 = vector.shape_cast %19 : vector<1x1x32x64xbf16> to vector<32x64xbf16>
    %cst_25 = arith.constant dense<0.000000e+00> : vector<4x64xf32>
    %21 = tpu.matmul %18, %20, %cst_25 {dimension_numbers = #tpu.dot_dimension_numbers<[1], [0], [0], [1], [0, 0, 1, 1], [], []>} : vector<4x32xbf16>, vector<32x64xbf16>, vector<4x64xf32> -> vector<4x64xf32>
    %22 = arith.addf %16, %21 : vector<4x64xf32>
    %c0_26 = arith.constant 0 : index
    %c17 = arith.constant 17 : index
    %c0_27 = arith.constant 0 : index
    %23 = vector.load %arg8[%c0_26, %c17, %c0_27] : memref<4x19x32xbf16, #tpu.memory_space<vmem>>, vector<2x2x32xbf16>
    %24 = vector.shape_cast %23 : vector<2x2x32xbf16> to vector<4x32xbf16>
    %c0_28 = arith.constant 0 : index
    %c2 = arith.constant 2 : index
    %c0_29 = arith.constant 0 : index
    %c0_30 = arith.constant 0 : index
    %25 = vector.load %arg2[%c0_28, %c2, %c0_29, %c0_30] : memref<3x3x32x64xbf16, #tpu.memory_space<vmem>>, vector<1x1x32x64xbf16>
    %26 = vector.shape_cast %25 : vector<1x1x32x64xbf16> to vector<32x64xbf16>
    %cst_31 = arith.constant dense<0.000000e+00> : vector<4x64xf32>
    %27 = tpu.matmul %24, %26, %cst_31 {dimension_numbers = #tpu.dot_dimension_numbers<[1], [0], [0], [1], [0, 0, 1, 1], [], []>} : vector<4x32xbf16>, vector<32x64xbf16>, vector<4x64xf32> -> vector<4x64xf32>
    %28 = arith.addf %22, %27 : vector<4x64xf32>
    %c1_32 = arith.constant 1 : index
    %c15_33 = arith.constant 15 : index
    %c0_34 = arith.constant 0 : index
    %29 = vector.load %arg8[%c1_32, %c15_33, %c0_34] : memref<4x19x32xbf16, #tpu.memory_space<vmem>>, vector<2x2x32xbf16>
    %30 = vector.shape_cast %29 : vector<2x2x32xbf16> to vector<4x32xbf16>
    %c1_35 = arith.constant 1 : index
    %c0_36 = arith.constant 0 : index
    %c0_37 = arith.constant 0 : index
    %c0_38 = arith.constant 0 : index
    %31 = vector.load %arg2[%c1_35, %c0_36, %c0_37, %c0_38] : memref<3x3x32x64xbf16, #tpu.memory_space<vmem>>, vector<1x1x32x64xbf16>
    %32 = vector.shape_cast %31 : vector<1x1x32x64xbf16> to vector<32x64xbf16>
    %cst_39 = arith.constant dense<0.000000e+00> : vector<4x64xf32>
    %33 = tpu.matmul %30, %32, %cst_39 {dimension_numbers = #tpu.dot_dimension_numbers<[1], [0], [0], [1], [0, 0, 1, 1], [], []>} : vector<4x32xbf16>, vector<32x64xbf16>, vector<4x64xf32> -> vector<4x64xf32>
    %34 = arith.addf %28, %33 : vector<4x64xf32>
    %c1_40 = arith.constant 1 : index
    %c16_41 = arith.constant 16 : index
    %c0_42 = arith.constant 0 : index
    %35 = vector.load %arg8[%c1_40, %c16_41, %c0_42] : memref<4x19x32xbf16, #tpu.memory_space<vmem>>, vector<2x2x32xbf16>
    %36 = vector.shape_cast %35 : vector<2x2x32xbf16> to vector<4x32xbf16>
    %c1_43 = arith.constant 1 : index
    %c1_44 = arith.constant 1 : index
    %c0_45 = arith.constant 0 : index
    %c0_46 = arith.constant 0 : index
    %37 = vector.load %arg2[%c1_43, %c1_44, %c0_45, %c0_46] : memref<3x3x32x64xbf16, #tpu.memory_space<vmem>>, vector<1x1x32x64xbf16>
    %38 = vector.shape_cast %37 : vector<1x1x32x64xbf16> to vector<32x64xbf16>
    %cst_47 = arith.constant dense<0.000000e+00> : vector<4x64xf32>
    %39 = tpu.matmul %36, %38, %cst_47 {dimension_numbers = #tpu.dot_dimension_numbers<[1], [0], [0], [1], [0, 0, 1, 1], [], []>} : vector<4x32xbf16>, vector<32x64xbf16>, vector<4x64xf32> -> vector<4x64xf32>
    %40 = arith.addf %34, %39 : vector<4x64xf32>
    %c1_48 = arith.constant 1 : index
    %c17_49 = arith.constant 17 : index
    %c0_50 = arith.constant 0 : index
    %41 = vector.load %arg8[%c1_48, %c17_49, %c0_50] : memref<4x19x32xbf16, #tpu.memory_space<vmem>>, vector<2x2x32xbf16>
    %42 = vector.shape_cast %41 : vector<2x2x32xbf16> to vector<4x32xbf16>
    %c1_51 = arith.constant 1 : index
    %c2_52 = arith.constant 2 : index
    %c0_53 = arith.constant 0 : index
    %c0_54 = arith.constant 0 : index
    %43 = vector.load %arg2[%c1_51, %c2_52, %c0_53, %c0_54] : memref<3x3x32x64xbf16, #tpu.memory_space<vmem>>, vector<1x1x32x64xbf16>
    %44 = vector.shape_cast %43 : vector<1x1x32x64xbf16> to vector<32x64xbf16>
    %cst_55 = arith.constant dense<0.000000e+00> : vector<4x64xf32>
    %45 = tpu.matmul %42, %44, %cst_55 {dimension_numbers = #tpu.dot_dimension_numbers<[1], [0], [0], [1], [0, 0, 1, 1], [], []>} : vector<4x32xbf16>, vector<32x64xbf16>, vector<4x64xf32> -> vector<4x64xf32>
    %46 = arith.addf %40, %45 : vector<4x64xf32>
    %c2_56 = arith.constant 2 : index
    %c15_57 = arith.constant 15 : index
    %c0_58 = arith.constant 0 : index
    %47 = vector.load %arg8[%c2_56, %c15_57, %c0_58] : memref<4x19x32xbf16, #tpu.memory_space<vmem>>, vector<2x2x32xbf16>
    %48 = vector.shape_cast %47 : vector<2x2x32xbf16> to vector<4x32xbf16>
    %c2_59 = arith.constant 2 : index
    %c0_60 = arith.constant 0 : index
    %c0_61 = arith.constant 0 : index
    %c0_62 = arith.constant 0 : index
    %49 = vector.load %arg2[%c2_59, %c0_60, %c0_61, %c0_62] : memref<3x3x32x64xbf16, #tpu.memory_space<vmem>>, vector<1x1x32x64xbf16>
    %50 = vector.shape_cast %49 : vector<1x1x32x64xbf16> to vector<32x64xbf16>
    %cst_63 = arith.constant dense<0.000000e+00> : vector<4x64xf32>
    %51 = tpu.matmul %48, %50, %cst_63 {dimension_numbers = #tpu.dot_dimension_numbers<[1], [0], [0], [1], [0, 0, 1, 1], [], []>} : vector<4x32xbf16>, vector<32x64xbf16>, vector<4x64xf32> -> vector<4x64xf32>
    %52 = arith.addf %46, %51 : vector<4x64xf32>
    %c2_64 = arith.constant 2 : index
    %c16_65 = arith.constant 16 : index
    %c0_66 = arith.constant 0 : index
    %53 = vector.load %arg8[%c2_64, %c16_65, %c0_66] : memref<4x19x32xbf16, #tpu.memory_space<vmem>>, vector<2x2x32xbf16>
    %54 = vector.shape_cast %53 : vector<2x2x32xbf16> to vector<4x32xbf16>
    %c2_67 = arith.constant 2 : index
    %c1_68 = arith.constant 1 : index
    %c0_69 = arith.constant 0 : index
    %c0_70 = arith.constant 0 : index
    %55 = vector.load %arg2[%c2_67, %c1_68, %c0_69, %c0_70] : memref<3x3x32x64xbf16, #tpu.memory_space<vmem>>, vector<1x1x32x64xbf16>
    %56 = vector.shape_cast %55 : vector<1x1x32x64xbf16> to vector<32x64xbf16>
    %cst_71 = arith.constant dense<0.000000e+00> : vector<4x64xf32>
    %57 = tpu.matmul %54, %56, %cst_71 {dimension_numbers = #tpu.dot_dimension_numbers<[1], [0], [0], [1], [0, 0, 1, 1], [], []>} : vector<4x32xbf16>, vector<32x64xbf16>, vector<4x64xf32> -> vector<4x64xf32>
    %58 = arith.addf %52, %57 : vector<4x64xf32>
    %c2_72 = arith.constant 2 : index
    %c17_73 = arith.constant 17 : index
    %c0_74 = arith.constant 0 : index
    %59 = vector.load %arg8[%c2_72, %c17_73, %c0_74] : memref<4x19x32xbf16, #tpu.memory_space<vmem>>, vector<2x2x32xbf16>
    %60 = vector.shape_cast %59 : vector<2x2x32xbf16> to vector<4x32xbf16>
    %c2_75 = arith.constant 2 : index
    %c2_76 = arith.constant 2 : index
    %c0_77 = arith.constant 0 : index
    %c0_78 = arith.constant 0 : index
    %61 = vector.load %arg2[%c2_75, %c2_76, %c0_77, %c0_78] : memref<3x3x32x64xbf16, #tpu.memory_space<vmem>>, vector<1x1x32x64xbf16>
    %62 = vector.shape_cast %61 : vector<1x1x32x64xbf16> to vector<32x64xbf16>
    %cst_79 = arith.constant dense<0.000000e+00> : vector<4x64xf32>
    %63 = tpu.matmul %60, %62, %cst_79 {dimension_numbers = #tpu.dot_dimension_numbers<[1], [0], [0], [1], [0, 0, 1, 1], [], []>} : vector<4x32xbf16>, vector<32x64xbf16>, vector<4x64xf32> -> vector<4x64xf32>
    %64 = arith.addf %58, %63 : vector<4x64xf32>
    %65 = vector.shape_cast %9 : vector<64xf32> to vector<1x64xf32>
    %66 = vector.broadcast %65 : vector<1x64xf32> to vector<4x64xf32>
    %67 = arith.addf %64, %66 : vector<4x64xf32>
    %68 = vector.shape_cast %67 : vector<4x64xf32> to vector<2x2x64xf32>
    %cst_80 = arith.constant 0.000000e+00 : f32
    %69 = vector.broadcast %cst_80 : f32 to vector<2x2x64xf32>
    %70 = arith.maximumf %68, %69 : vector<2x2x64xf32>
    %71 = arith.truncf %70 : vector<2x2x64xf32> to vector<2x2x64xbf16>
    %cst_81 = arith.constant 0.000000e+00 : bf16
    %72 = vector.broadcast %cst_81 : bf16 to vector<4x19x64xbf16>
    %c0_82 = arith.constant 0 : index
    %c0_83 = arith.constant 0 : index
    %c0_84 = arith.constant 0 : index
    %73 = vector.load %arg9[%c0_82, %c0_83, %c0_84] : memref<4x19x64xbf16, #tpu.memory_space<vmem>>, vector<4x19x64xbf16>
    tpu.vector_store %arg9[%c0_82, %c0_83, %c0_84], %72 {strides = array<i32>} : memref<4x19x64xbf16, #tpu.memory_space<vmem>>, vector<4x19x64xbf16>,
    %c1_85 = arith.constant 1 : index
    %c16_86 = arith.constant 16 : index
    %c0_87 = arith.constant 0 : index
    %74 = vector.load %arg9[%c1_85, %c16_86, %c0_87] : memref<4x19x64xbf16, #tpu.memory_space<vmem>>, vector<2x2x64xbf16>
    tpu.vector_store %arg9[%c1_85, %c16_86, %c0_87], %71 {strides = array<i32>} : memref<4x19x64xbf16, #tpu.memory_space<vmem>>, vector<2x2x64xbf16>,
    %c0_88 = arith.constant 0 : index
    %c0_89 = arith.constant 0 : index
    %75 = vector.load %arg5[%c0_88, %c0_89] : memref<1x64xf32, #tpu.memory_space<vmem>>, vector<1x64xf32>
    %76 = vector.shape_cast %75 : vector<1x64xf32> to vector<64xf32>
    %cst_90 = arith.constant 0.000000e+00 : f32
    %77 = vector.broadcast %cst_90 : f32 to vector<4x64xf32>
    %c0_91 = arith.constant 0 : index
    %c15_92 = arith.constant 15 : index
    %c0_93 = arith.constant 0 : index
    %78 = vector.load %arg9[%c0_91, %c15_92, %c0_93] : memref<4x19x64xbf16, #tpu.memory_space<vmem>>, vector<2x2x64xbf16>
    %79 = vector.shape_cast %78 : vector<2x2x64xbf16> to vector<4x64xbf16>
    %c0_94 = arith.constant 0 : index
    %c0_95 = arith.constant 0 : index
    %c0_96 = arith.constant 0 : index
    %c0_97 = arith.constant 0 : index
    %80 = vector.load %arg4[%c0_94, %c0_95, %c0_96, %c0_97] : memref<3x3x64x64xbf16, #tpu.memory_space<vmem>>, vector<1x1x64x64xbf16>
    %81 = vector.shape_cast %80 : vector<1x1x64x64xbf16> to vector<64x64xbf16>
    %cst_98 = arith.constant dense<0.000000e+00> : vector<4x64xf32>
    %82 = tpu.matmul %79, %81, %cst_98 {dimension_numbers = #tpu.dot_dimension_numbers<[1], [0], [0], [1], [0, 0, 1, 1], [], []>} : vector<4x64xbf16>, vector<64x64xbf16>, vector<4x64xf32> -> vector<4x64xf32>
    %83 = arith.addf %77, %82 : vector<4x64xf32>
    %c0_99 = arith.constant 0 : index
    %c16_100 = arith.constant 16 : index
    %c0_101 = arith.constant 0 : index
    %84 = vector.load %arg9[%c0_99, %c16_100, %c0_101] : memref<4x19x64xbf16, #tpu.memory_space<vmem>>, vector<2x2x64xbf16>
    %85 = vector.shape_cast %84 : vector<2x2x64xbf16> to vector<4x64xbf16>
    %c0_102 = arith.constant 0 : index
    %c1_103 = arith.constant 1 : index
    %c0_104 = arith.constant 0 : index
    %c0_105 = arith.constant 0 : index
    %86 = vector.load %arg4[%c0_102, %c1_103, %c0_104, %c0_105] : memref<3x3x64x64xbf16, #tpu.memory_space<vmem>>, vector<1x1x64x64xbf16>
    %87 = vector.shape_cast %86 : vector<1x1x64x64xbf16> to vector<64x64xbf16>
    %cst_106 = arith.constant dense<0.000000e+00> : vector<4x64xf32>
    %88 = tpu.matmul %85, %87, %cst_106 {dimension_numbers = #tpu.dot_dimension_numbers<[1], [0], [0], [1], [0, 0, 1, 1], [], []>} : vector<4x64xbf16>, vector<64x64xbf16>, vector<4x64xf32> -> vector<4x64xf32>
    %89 = arith.addf %83, %88 : vector<4x64xf32>
    %c0_107 = arith.constant 0 : index
    %c17_108 = arith.constant 17 : index
    %c0_109 = arith.constant 0 : index
    %90 = vector.load %arg9[%c0_107, %c17_108, %c0_109] : memref<4x19x64xbf16, #tpu.memory_space<vmem>>, vector<2x2x64xbf16>
    %91 = vector.shape_cast %90 : vector<2x2x64xbf16> to vector<4x64xbf16>
    %c0_110 = arith.constant 0 : index
    %c2_111 = arith.constant 2 : index
    %c0_112 = arith.constant 0 : index
    %c0_113 = arith.constant 0 : index
    %92 = vector.load %arg4[%c0_110, %c2_111, %c0_112, %c0_113] : memref<3x3x64x64xbf16, #tpu.memory_space<vmem>>, vector<1x1x64x64xbf16>
    %93 = vector.shape_cast %92 : vector<1x1x64x64xbf16> to vector<64x64xbf16>
    %cst_114 = arith.constant dense<0.000000e+00> : vector<4x64xf32>
    %94 = tpu.matmul %91, %93, %cst_114 {dimension_numbers = #tpu.dot_dimension_numbers<[1], [0], [0], [1], [0, 0, 1, 1], [], []>} : vector<4x64xbf16>, vector<64x64xbf16>, vector<4x64xf32> -> vector<4x64xf32>
    %95 = arith.addf %89, %94 : vector<4x64xf32>
    %c1_115 = arith.constant 1 : index
    %c15_116 = arith.constant 15 : index
    %c0_117 = arith.constant 0 : index
    %96 = vector.load %arg9[%c1_115, %c15_116, %c0_117] : memref<4x19x64xbf16, #tpu.memory_space<vmem>>, vector<2x2x64xbf16>
    %97 = vector.shape_cast %96 : vector<2x2x64xbf16> to vector<4x64xbf16>
    %c1_118 = arith.constant 1 : index
    %c0_119 = arith.constant 0 : index
    %c0_120 = arith.constant 0 : index
    %c0_121 = arith.constant 0 : index
    %98 = vector.load %arg4[%c1_118, %c0_119, %c0_120, %c0_121] : memref<3x3x64x64xbf16, #tpu.memory_space<vmem>>, vector<1x1x64x64xbf16>
    %99 = vector.shape_cast %98 : vector<1x1x64x64xbf16> to vector<64x64xbf16>
    %cst_122 = arith.constant dense<0.000000e+00> : vector<4x64xf32>
    %100 = tpu.matmul %97, %99, %cst_122 {dimension_numbers = #tpu.dot_dimension_numbers<[1], [0], [0], [1], [0, 0, 1, 1], [], []>} : vector<4x64xbf16>, vector<64x64xbf16>, vector<4x64xf32> -> vector<4x64xf32>
    %101 = arith.addf %95, %100 : vector<4x64xf32>
    %c1_123 = arith.constant 1 : index
    %c16_124 = arith.constant 16 : index
    %c0_125 = arith.constant 0 : index
    %102 = vector.load %arg9[%c1_123, %c16_124, %c0_125] : memref<4x19x64xbf16, #tpu.memory_space<vmem>>, vector<2x2x64xbf16>
    %103 = vector.shape_cast %102 : vector<2x2x64xbf16> to vector<4x64xbf16>
    %c1_126 = arith.constant 1 : index
    %c1_127 = arith.constant 1 : index
    %c0_128 = arith.constant 0 : index
    %c0_129 = arith.constant 0 : index
    %104 = vector.load %arg4[%c1_126, %c1_127, %c0_128, %c0_129] : memref<3x3x64x64xbf16, #tpu.memory_space<vmem>>, vector<1x1x64x64xbf16>
    %105 = vector.shape_cast %104 : vector<1x1x64x64xbf16> to vector<64x64xbf16>
    %cst_130 = arith.constant dense<0.000000e+00> : vector<4x64xf32>
    %106 = tpu.matmul %103, %105, %cst_130 {dimension_numbers = #tpu.dot_dimension_numbers<[1], [0], [0], [1], [0, 0, 1, 1], [], []>} : vector<4x64xbf16>, vector<64x64xbf16>, vector<4x64xf32> -> vector<4x64xf32>
    %107 = arith.addf %101, %106 : vector<4x64xf32>
    %c1_131 = arith.constant 1 : index
    %c17_132 = arith.constant 17 : index
    %c0_133 = arith.constant 0 : index
    %108 = vector.load %arg9[%c1_131, %c17_132, %c0_133] : memref<4x19x64xbf16, #tpu.memory_space<vmem>>, vector<2x2x64xbf16>
    %109 = vector.shape_cast %108 : vector<2x2x64xbf16> to vector<4x64xbf16>
    %c1_134 = arith.constant 1 : index
    %c2_135 = arith.constant 2 : index
    %c0_136 = arith.constant 0 : index
    %c0_137 = arith.constant 0 : index
    %110 = vector.load %arg4[%c1_134, %c2_135, %c0_136, %c0_137] : memref<3x3x64x64xbf16, #tpu.memory_space<vmem>>, vector<1x1x64x64xbf16>
    %111 = vector.shape_cast %110 : vector<1x1x64x64xbf16> to vector<64x64xbf16>
    %cst_138 = arith.constant dense<0.000000e+00> : vector<4x64xf32>
    %112 = tpu.matmul %109, %111, %cst_138 {dimension_numbers = #tpu.dot_dimension_numbers<[1], [0], [0], [1], [0, 0, 1, 1], [], []>} : vector<4x64xbf16>, vector<64x64xbf16>, vector<4x64xf32> -> vector<4x64xf32>
    %113 = arith.addf %107, %112 : vector<4x64xf32>
    %c2_139 = arith.constant 2 : index
    %c15_140 = arith.constant 15 : index
    %c0_141 = arith.constant 0 : index
    %114 = vector.load %arg9[%c2_139, %c15_140, %c0_141] : memref<4x19x64xbf16, #tpu.memory_space<vmem>>, vector<2x2x64xbf16>
    %115 = vector.shape_cast %114 : vector<2x2x64xbf16> to vector<4x64xbf16>
    %c2_142 = arith.constant 2 : index
    %c0_143 = arith.constant 0 : index
    %c0_144 = arith.constant 0 : index
    %c0_145 = arith.constant 0 : index
    %116 = vector.load %arg4[%c2_142, %c0_143, %c0_144, %c0_145] : memref<3x3x64x64xbf16, #tpu.memory_space<vmem>>, vector<1x1x64x64xbf16>
    %117 = vector.shape_cast %116 : vector<1x1x64x64xbf16> to vector<64x64xbf16>
    %cst_146 = arith.constant dense<0.000000e+00> : vector<4x64xf32>
    %118 = tpu.matmul %115, %117, %cst_146 {dimension_numbers = #tpu.dot_dimension_numbers<[1], [0], [0], [1], [0, 0, 1, 1], [], []>} : vector<4x64xbf16>, vector<64x64xbf16>, vector<4x64xf32> -> vector<4x64xf32>
    %119 = arith.addf %113, %118 : vector<4x64xf32>
    %c2_147 = arith.constant 2 : index
    %c16_148 = arith.constant 16 : index
    %c0_149 = arith.constant 0 : index
    %120 = vector.load %arg9[%c2_147, %c16_148, %c0_149] : memref<4x19x64xbf16, #tpu.memory_space<vmem>>, vector<2x2x64xbf16>
    %121 = vector.shape_cast %120 : vector<2x2x64xbf16> to vector<4x64xbf16>
    %c2_150 = arith.constant 2 : index
    %c1_151 = arith.constant 1 : index
    %c0_152 = arith.constant 0 : index
    %c0_153 = arith.constant 0 : index
    %122 = vector.load %arg4[%c2_150, %c1_151, %c0_152, %c0_153] : memref<3x3x64x64xbf16, #tpu.memory_space<vmem>>, vector<1x1x64x64xbf16>
    %123 = vector.shape_cast %122 : vector<1x1x64x64xbf16> to vector<64x64xbf16>
    %cst_154 = arith.constant dense<0.000000e+00> : vector<4x64xf32>
    %124 = tpu.matmul %121, %123, %cst_154 {dimension_numbers = #tpu.dot_dimension_numbers<[1], [0], [0], [1], [0, 0, 1, 1], [], []>} : vector<4x64xbf16>, vector<64x64xbf16>, vector<4x64xf32> -> vector<4x64xf32>
    %125 = arith.addf %119, %124 : vector<4x64xf32>
    %c2_155 = arith.constant 2 : index
    %c17_156 = arith.constant 17 : index
    %c0_157 = arith.constant 0 : index
    %126 = vector.load %arg9[%c2_155, %c17_156, %c0_157] : memref<4x19x64xbf16, #tpu.memory_space<vmem>>, vector<2x2x64xbf16>
    %127 = vector.shape_cast %126 : vector<2x2x64xbf16> to vector<4x64xbf16>
    %c2_158 = arith.constant 2 : index
    %c2_159 = arith.constant 2 : index
    %c0_160 = arith.constant 0 : index
    %c0_161 = arith.constant 0 : index
    %128 = vector.load %arg4[%c2_158, %c2_159, %c0_160, %c0_161] : memref<3x3x64x64xbf16, #tpu.memory_space<vmem>>, vector<1x1x64x64xbf16>
    %129 = vector.shape_cast %128 : vector<1x1x64x64xbf16> to vector<64x64xbf16>
    %cst_162 = arith.constant dense<0.000000e+00> : vector<4x64xf32>
    %130 = tpu.matmul %127, %129, %cst_162 {dimension_numbers = #tpu.dot_dimension_numbers<[1], [0], [0], [1], [0, 0, 1, 1], [], []>} : vector<4x64xbf16>, vector<64x64xbf16>, vector<4x64xf32> -> vector<4x64xf32>
    %131 = arith.addf %125, %130 : vector<4x64xf32>
    %132 = vector.shape_cast %76 : vector<64xf32> to vector<1x64xf32>
    %133 = vector.broadcast %132 : vector<1x64xf32> to vector<4x64xf32>
    %134 = arith.addf %131, %133 : vector<4x64xf32>
    %135 = vector.shape_cast %134 : vector<4x64xf32> to vector<2x2x64xf32>
    %c0_163 = arith.constant 0 : index
    %c0_164 = arith.constant 0 : index
    %c0_165 = arith.constant 0 : index
    %136 = vector.load %arg6[%c0_163, %c0_164, %c0_165] : memref<2x2x64xf32, #tpu.memory_space<vmem>>, vector<2x2x64xf32>
    %137 = arith.addf %136, %68 : vector<2x2x64xf32>
    %c0_166 = arith.constant 0 : index
    %c0_167 = arith.constant 0 : index
    %c0_168 = arith.constant 0 : index
    %138 = vector.load %arg6[%c0_166, %c0_167, %c0_168] : memref<2x2x64xf32, #tpu.memory_space<vmem>>, vector<2x2x64xf32>
    tpu.vector_store %arg6[%c0_166, %c0_167, %c0_168], %137 {strides = array<i32>} : memref<2x2x64xf32, #tpu.memory_space<vmem>>, vector<2x2x64xf32>,
    %c0_169 = arith.constant 0 : index
    %c0_170 = arith.constant 0 : index
    %c0_171 = arith.constant 0 : index
    %139 = vector.load %arg7[%c0_169, %c0_170, %c0_171] : memref<2x2x64xf32, #tpu.memory_space<vmem>>, vector<2x2x64xf32>
    %140 = arith.addf %139, %135 : vector<2x2x64xf32>
    %c0_172 = arith.constant 0 : index
    %c0_173 = arith.constant 0 : index
    %c0_174 = arith.constant 0 : index
    %141 = vector.load %arg7[%c0_172, %c0_173, %c0_174] : memref<2x2x64xf32, #tpu.memory_space<vmem>>, vector<2x2x64xf32>
    tpu.vector_store %arg7[%c0_172, %c0_173, %c0_174], %140 {strides = array<i32>} : memref<2x2x64xf32, #tpu.memory_space<vmem>>, vector<2x2x64xf32>,
    %c1_i32 = arith.constant 1 : i32
    %142 = arith.cmpi eq, %arg0, %c1_i32 : i32
    %143 = arith.extui %142 : i1 to i32
    %c0_i32_175 = arith.constant 0 : i32
    %144 = arith.cmpi ne, %143, %c0_i32_175 : i32
    scf.if %144 {
      %c0_176 = arith.constant 0 : index
      %c0_177 = arith.constant 0 : index
      %c0_178 = arith.constant 0 : index
      %145 = vector.load %arg6[%c0_176, %c0_177, %c0_178] : memref<2x2x64xf32, #tpu.memory_space<vmem>>, vector<2x2x64xf32>
      %cst_179 = arith.constant 5.000000e-01 : f32
      %146 = vector.broadcast %cst_179 : f32 to vector<2x2x64xf32>
      %147 = arith.mulf %145, %146 : vector<2x2x64xf32>
      %c0_180 = arith.constant 0 : index
      %c0_181 = arith.constant 0 : index
      %c0_182 = arith.constant 0 : index
      %148 = vector.load %arg6[%c0_180, %c0_181, %c0_182] : memref<2x2x64xf32, #tpu.memory_space<vmem>>, vector<2x2x64xf32>
      tpu.vector_store %arg6[%c0_180, %c0_181, %c0_182], %147 {strides = array<i32>} : memref<2x2x64xf32, #tpu.memory_space<vmem>>, vector<2x2x64xf32>,
      %c0_183 = arith.constant 0 : index
      %c0_184 = arith.constant 0 : index
      %c0_185 = arith.constant 0 : index
      %149 = vector.load %arg7[%c0_183, %c0_184, %c0_185] : memref<2x2x64xf32, #tpu.memory_space<vmem>>, vector<2x2x64xf32>
      %cst_186 = arith.constant 5.000000e-01 : f32
      %150 = vector.broadcast %cst_186 : f32 to vector<2x2x64xf32>
      %151 = arith.mulf %149, %150 : vector<2x2x64xf32>
      %c0_187 = arith.constant 0 : index
      %c0_188 = arith.constant 0 : index
      %c0_189 = arith.constant 0 : index
      %152 = vector.load %arg7[%c0_187, %c0_188, %c0_189] : memref<2x2x64xf32, #tpu.memory_space<vmem>>, vector<2x2x64xf32>
      tpu.vector_store %arg7[%c0_187, %c0_188, %c0_189], %151 {strides = array<i32>} : memref<2x2x64xf32, #tpu.memory_space<vmem>>, vector<2x2x64xf32>,
    } else {
    }
    return
  }
  func.func @transform_0(%arg0: i32) -> (i32, i32, i32, i32) {
    %c0_i32 = arith.constant 0 : i32
    %c0_i32_0 = arith.constant 0 : i32
    %c0_i32_1 = arith.constant 0 : i32
    %c0_i32_2 = arith.constant 0 : i32
    return %arg0, %c0_i32, %c0_i32_0, %c0_i32_1 : i32, i32, i32, i32
  }
  func.func @transform_1(%arg0: i32) -> (i32, i32, i32, i32) {
    %c0_i32 = arith.constant 0 : i32
    %c0_i32_0 = arith.constant 0 : i32
    %c0_i32_1 = arith.constant 0 : i32
    %c0_i32_2 = arith.constant 0 : i32
    %c0_i32_3 = arith.constant 0 : i32
    return %c0_i32, %c0_i32_0, %c0_i32_1, %c0_i32_2 : i32, i32, i32, i32
  }
  func.func @transform_2(%arg0: i32) -> (i32, i32) {
    %c0_i32 = arith.constant 0 : i32
    %c0_i32_0 = arith.constant 0 : i32
    %c0_i32_1 = arith.constant 0 : i32
    return %c0_i32, %c0_i32_0 : i32, i32
  }
  func.func @transform_3(%arg0: i32) -> (i32, i32, i32, i32) {
    %c0_i32 = arith.constant 0 : i32
    %c0_i32_0 = arith.constant 0 : i32
    %c0_i32_1 = arith.constant 0 : i32
    %c0_i32_2 = arith.constant 0 : i32
    %c0_i32_3 = arith.constant 0 : i32
    return %c0_i32, %c0_i32_0, %c0_i32_1, %c0_i32_2 : i32, i32, i32, i32
  }
  func.func @transform_4(%arg0: i32) -> (i32, i32) {
    %c0_i32 = arith.constant 0 : i32
    %c0_i32_0 = arith.constant 0 : i32
    %c0_i32_1 = arith.constant 0 : i32
    return %c0_i32, %c0_i32_0 : i32, i32
  }
  func.func @transform_5(%arg0: i32) -> (i32, i32, i32) {
    %c0_i32 = arith.constant 0 : i32
    %c0_i32_0 = arith.constant 0 : i32
    %c0_i32_1 = arith.constant 0 : i32
    %c0_i32_2 = arith.constant 0 : i32
    return %c0_i32, %c0_i32_0, %c0_i32_1 : i32, i32, i32
  }
  func.func @transform_6(%arg0: i32) -> (i32, i32, i32) {
    %c0_i32 = arith.constant 0 : i32
    %c0_i32_0 = arith.constant 0 : i32
    %c0_i32_1 = arith.constant 0 : i32
    %c0_i32_2 = arith.constant 0 : i32
    return %c0_i32, %c0_i32_0, %c0_i32_1 : i32, i32, i32
  }
}

</mosaic_0001>

<bundles_post_ra>
// kernel: m_vggish_forward.4
= control target key start
LH: loop header
LB: loop body
LE: loop exit
PB: predicated region body
PF: predicated region fallthrough
CT: control target
= control target key end

     0   :  { %s3751_s12 = smov 0   ;;  %s5839_s0 = inlined_call_operand.vmem [shape: f32[2,16,16,1], index: 0, kind: input, shape index: {}]   ;;  %s5840_s1 = inlined_call_operand.vmem [shape: bf16[3,3,1,8], index: 1, kind: input, shape index: {}]   ;;  %s5841_s2 = inlined_call_operand.vmem [shape: f32[1,8], index: 2, kind: input, shape index: {}]   ;;  %s5842_s3 = inlined_call_operand.vmem [shape: bf16[2,8,8,8], index: 3, kind: output, shape index: {}]  }
   0x1 LB: > { %s3681_s13 = sadd.s32 4294967295, %s3727_s12   ;;  %p3685_p0 = scmp.ge.s32.totalorder %s3727_s12, 1  ;;  %s3727_s12 = sphi %s3751_s12, %s13_s12  }
   0x2   : > { %p137_p1 = scmp.lt.s32.totalorder %s3727_s12, 3 }
   0x4   : > { %p138_p2 = pnand %p3685_p0, %p137_p1 }
   0x6   : > { %141 = sbr.rel (%p138_p2) target bundleno = 1099 (0x44b), region = 32 }
   0xb   : > { %vm203_vm0 = vcmask 7168   ;;  %v3729_v0 = vmov 0   ;;  %v3730_v1 = vmov 0.0   ;;  %p161_p3 = scmp.lt.s32.totalorder %s3681_s13, 1  ;;  %vm208_vm1 = vcmask 0  }
   0xc   : > { %3712 = vset.pattern.permute.xlu0 %v3729_v0  ;;  %205 = vst.msk [vmem:[#allocation2 + $0x8] sm:$0xff] %vm203_vm0, %v3730_v1  ;;  %3714 = vset.pattern.permute.xlu2 %v3729_v0  ;;  %vm2736_vm2 = vcmask 64512   ;;  %vm2897_vm3 = vcmask 58368   ;;  %vm3538_vm4 = vcmask 1041409   ;;  %vm3540_vm5 = vcmask 1042434  }
   0xd   : > { %206 = vst.msk [vmem:[#allocation2 + $0x10] sm:$0xff] %vm203_vm0, %v3730_v1  ;;  %3713 = vset.pattern.permute.xlu1 %v3729_v0  ;;  %s6227_s13 = smov (!%p161_p3, %s3681_s13), 1  ;;  %vm3542_vm6 = vcmask 1043459   ;;  %vm3544_vm7 = vcmask 1044484   ;;  %vm3546_vm8 = vcmask 1045509   ;;  %vm3548_vm9 = vcmask 1046534  }
   0xe   : > { %207 = vst.msk [vmem:[#allocation2 + $0x18] sm:$0xff] %vm203_vm0, %v3730_v1  ;;  %s3700_s14 = sshll.u32 %s6227_s13, 8  ;;  %vm3550_vm10 = vcmask 1047559   ;;  %s3701_s11 = sshll.u32 %s6227_s13, 5  ;;  %vm3617_vm11 = vcmask 60416  }
   0xf   : > { %211 = vst.msk [vmem:[#allocation2 + $0x30] sm:$0xff] %vm203_vm0, %v3730_v1  ;;  %s3869_s17 = scalar_lea.vmem %s5839_s0, %s3700_s14  ;;  %s5525_s13 = scalar_lea.vmem %s5842_s3, %s3701_s11 }
  0x10   : > { %212 = vst.msk [vmem:[#allocation2 + $0x38] sm:$0xff] %vm203_vm0, %v3730_v1  ;;  %v173_v4 = vld [vmem:[%s3869_s17 + $0x10] sm:$0xff]  ;;  %v171_v5 = vld [vmem:[%s3869_s17] sm:$0xff]  ;;  %v174_v6 = vld [vmem:[%s3869_s17 + $0x18] sm:$0xff] }
  0x11   : > { %213 = vst.msk [vmem:[#allocation2 + $0x40] sm:$0xff] %vm203_vm0, %v3730_v1  ;;  %v172_v7 = vld [vmem:[%s3869_s17 + $0x8] sm:$0xff]  ;;  %v175_v8 = vld [vmem:[%s3869_s17 + $0x20] sm:$0xff]  ;;  %v177_v9 = vld [vmem:[%s3869_s17 + $0x30] sm:$0xff] }
  0x12   : > { %216 = vst.msk [vmem:[#allocation2 + $0x58] sm:$0xff] %vm203_vm0, %v3730_v1  ;;  %v176_v10 = vld [vmem:[%s3869_s17 + $0x28] sm:$0xff]  ;;  %v178_v11 = vld [vmem:[%s3869_s17 + $0x38] sm:$0xff]  ;;  %v179_v12 = vld [vmem:[%s3869_s17 + $0x40] sm:$0xff] }
  0x13   : > { %217 = vst.msk [vmem:[#allocation2 + $0x60] sm:$0xff] %vm203_vm0, %v3730_v1  ;;  %v180_v13 = vld [vmem:[%s3869_s17 + $0x48] sm:$0xff]  ;;  %v181_v15 = vld [vmem:[%s3869_s17 + $0x50] sm:$0xff]  ;;  %v183_v17 = vld [vmem:[%s3869_s17 + $0x60] sm:$0xff] }
  0x14   : > { %v328_v2 = vld [vmem:[#allocation2 + $0xf] sm:$0xff]  ;;  %218 = vst.msk [vmem:[#allocation2 + $0x68] sm:$0xff] %vm203_vm0, %v3730_v1  ;;  %v182_v18 = vld [vmem:[%s3869_s17 + $0x58] sm:$0xff]  ;;  %v187_v24 = vld [vmem:[%s3869_s17 + $0x80] sm:$0xff] }
  0x15   : > { %364 = vperm.xlu0 %3712, %v328_v2   ;;  %221 = vst.msk [vmem:[#allocation2 + $0x80] sm:$0xff] %vm203_vm0, %v3730_v1  ;;  %v329_v3 = vld [vmem:[#allocation2 + $0x17] sm:$0xff]  ;;  %v184_v19 = vld [vmem:[%s3869_s17 + $0x68] sm:$0xff]  ;;  %v191_v32 = vld [vmem:[%s3869_s17 + $0xa0] sm:$0xff] }
  0x16   : > { %222 = vst.msk [vmem:[#allocation2 + $0x88] sm:$0xff] %vm203_vm0, %v3730_v1  ;;  %v185_v21 = vld [vmem:[%s3869_s17 + $0x70] sm:$0xff]  ;;  %v186_v22 = vld [vmem:[%s3869_s17 + $0x78] sm:$0xff]  ;;  %v188_v27 = vld [vmem:[%s3869_s17 + $0x88] sm:$0xff] }
  0x17   : > { %223 = vst.msk [vmem:[#allocation2 + $0x90] sm:$0xff] %vm203_vm0, %v3730_v1  ;;  %v189_v26 = vld [vmem:[%s3869_s17 + $0x90] sm:$0xff]  ;;  %v190_v29 = vld [vmem:[%s3869_s17 + $0x98] sm:$0xff]  ;;  %v192_v33 = vld [vmem:[%s3869_s17 + $0xa8] sm:$0xff] }
  0x18   : > { %226 = vst.msk [vmem:[#allocation2 + $0xa8] sm:$0xff] %vm203_vm0, %v3730_v1  ;;  %v193_v35 = vld [vmem:[%s3869_s17 + $0xb0] sm:$0xff]  ;;  %v195_v38 = vld [vmem:[%s3869_s17 + $0xc0] sm:$0xff]  ;;  %v194_v39 = vld [vmem:[%s3869_s17 + $0xb8] sm:$0xff] }
  0x19   : > { %227 = vst.msk [vmem:[#allocation2 + $0xb0] sm:$0xff] %vm203_vm0, %v3730_v1  ;;  %v196_v41 = vld [vmem:[%s3869_s17 + $0xc8] sm:$0xff]  ;;  %v197_v44 = vld [vmem:[%s3869_s17 + $0xd0] sm:$0xff]  ;;  %v198_v45 = vld [vmem:[%s3869_s17 + $0xd8] sm:$0xff] }
  0x1a   : > { %228 = vst.msk [vmem:[#allocation2 + $0xb8] sm:$0xff] %vm203_vm0, %v3730_v1  ;;  %v199_v47 = vld [vmem:[%s3869_s17 + $0xe0] sm:$0xff]  ;;  %v200_v50 = vld [vmem:[%s3869_s17 + $0xe8] sm:$0xff]  ;;  %v588_v63 = vld [vmem:[#allocation2 + $0x18] sm:$0xff] }
  0x1b   : > { %231 = vst.msk [vmem:[#allocation2 + $0xd0] sm:$0xff] %vm203_vm0, %v3730_v1  ;;  %v587_v0 = vld [vmem:[#allocation2 + $0x10] sm:$0xff] }
  0x1c   : > { %232 = vst.msk [vmem:[#allocation2 + $0xd8] sm:$0xff] %vm203_vm0, %v3730_v1 }
  0x1d   : > { %233 = vst.msk [vmem:[#allocation2 + $0xe0] sm:$0xff] %vm203_vm0, %v3730_v1  ;;  %369 = vperm.xlu0 %3712, %v329_v3  }
  0x1e   : > { %236 = vst.msk [vmem:[#allocation2 + $0xf8] sm:$0xff] %vm203_vm0, %v3730_v1 }
  0x1f   : > { %237 = vst.msk [vmem:[#allocation2 + $0x100] sm:$0xff] %vm203_vm0, %v3730_v1 }
  0x20   : > { %238 = vst.msk [vmem:[#allocation2 + $0x108] sm:$0xff] %vm203_vm0, %v3730_v1 }
  0x21   : > { %241 = vst.msk [vmem:[#allocation2 + $0x120] sm:$0xff] %vm203_vm0, %v3730_v1 }
  0x22   : > { %242 = vst.msk [vmem:[#allocation2 + $0x128] sm:$0xff] %vm203_vm0, %v3730_v1 }
  0x23   : > { %243 = vst.msk [vmem:[#allocation2 + $0x130] sm:$0xff] %vm203_vm0, %v3730_v1 }
  0x24   : > { %246 = vst.msk [vmem:[#allocation2 + $0x148] sm:$0xff] %vm203_vm0, %v3730_v1 }
  0x25   : > { %247 = vst.msk [vmem:[#allocation2 + $0x150] sm:$0xff] %vm203_vm0, %v3730_v1 }
  0x26   : > { %248 = vst.msk [vmem:[#allocation2 + $0x158] sm:$0xff] %vm203_vm0, %v3730_v1 }
  0x27   : > { %251 = vst.msk [vmem:[#allocation2 + $0x170] sm:$0xff] %vm203_vm0, %v3730_v1 }
  0x28   : > { %252 = vst.msk [vmem:[#allocation2 + $0x178] sm:$0xff] %vm203_vm0, %v3730_v1 }
  0x29   : > { %253 = vst.msk [vmem:[#allocation2 + $0x180] sm:$0xff] %vm203_vm0, %v3730_v1 }
  0x2a   : > { %256 = vst.msk [vmem:[#allocation2 + $0x198] sm:$0xff] %vm203_vm0, %v3730_v1 }
  0x2b   : > { %257 = vst.msk [vmem:[#allocation2 + $0x1a0] sm:$0xff] %vm203_vm0, %v3730_v1 }
  0x2c   : > { %258 = vst.msk [vmem:[#allocation2 + $0x1a8] sm:$0xff] %vm203_vm0, %v3730_v1 }
  0x2d   : > { %261 = vst.msk [vmem:[#allocation2 + $0x1c0] sm:$0xff] %vm203_vm0, %v3730_v1 }
  0x2e   : > { %262 = vst.msk [vmem:[#allocation2 + $0x1c8] sm:$0xff] %vm203_vm0, %v3730_v1 }
  0x2f   : > { %263 = vst.msk [vmem:[#allocation2 + $0x1d0] sm:$0xff] %vm203_vm0, %v3730_v1 }
  0x30   : > { %266 = vst.msk [vmem:[#allocation2 + $0x1e8] sm:$0xff] %vm203_vm0, %v3730_v1 }
  0x31   : > { %267 = vst.msk [vmem:[#allocation2 + $0x1f0] sm:$0xff] %vm203_vm0, %v3730_v1 }
  0x32   : > { %268 = vst.msk [vmem:[#allocation2 + $0x1f8] sm:$0xff] %vm203_vm0, %v3730_v1 }
  0x33   : > { %271 = vst.msk [vmem:[#allocation2 + $0x210] sm:$0xff] %vm203_vm0, %v3730_v1 }
  0x34   : > { %272 = vst.msk [vmem:[#allocation2 + $0x218] sm:$0xff] %vm203_vm0, %v3730_v1 }
  0x35   : > { %273 = vst.msk [vmem:[#allocation2 + $0x220] sm:$0xff] %vm203_vm0, %v3730_v1 }
  0x36   : > { %276 = vst.msk [vmem:[#allocation2 + $0x238] sm:$0xff] %vm203_vm0, %v3730_v1 }
  0x37   : > { %277 = vst.msk [vmem:[#allocation2 + $0x240] sm:$0xff] %vm203_vm0, %v3730_v1 }
  0x38   : > { %278 = vst.msk [vmem:[#allocation2 + $0x248] sm:$0xff] %vm203_vm0, %v3730_v1 }
  0x39   : > { %281 = vst.msk [vmem:[#allocation2 + $0x260] sm:$0xff] %vm203_vm0, %v3730_v1 }
  0x3a   : > { %282 = vst.msk [vmem:[#allocation2 + $0x268] sm:$0xff] %vm203_vm0, %v3730_v1 }
  0x3b   : > { %283 = vst.msk [vmem:[#allocation2 + $0x270] sm:$0xff] %vm203_vm0, %v3730_v1 }
  0x3c   : > { %286 = vst.msk [vmem:[#allocation2 + $0x288] sm:$0xff] %vm203_vm0, %v3730_v1 }
  0x3d   : > { %287 = vst.msk [vmem:[#allocation2 + $0x290] sm:$0xff] %vm203_vm0, %v3730_v1 }
  0x3e   : > { %288 = vst.msk [vmem:[#allocation2 + $0x298] sm:$0xff] %vm203_vm0, %v3730_v1 }
  0x3f   : > { %291 = vst.msk [vmem:[#allocation2 + $0x2b0] sm:$0xff] %vm203_vm0, %v3730_v1 }
  0x40   : > { %292 = vst.msk [vmem:[#allocation2 + $0x2b8] sm:$0xff] %vm203_vm0, %v3730_v1 }
  0x41   : > { %293 = vst.msk [vmem:[#allocation2 + $0x2c0] sm:$0xff] %vm203_vm0, %v3730_v1 }
  0x42   : > { %298 = vst.msk [vmem:[#allocation2 + $0x60] sm:$0xff] %vm203_vm0, %v173_v4 }
  0x43   : > { %296 = vst.msk [vmem:[#allocation2 + $0x38] sm:$0xff] %vm203_vm0, %v171_v5 }
  0x44   : > { %299 = vst.msk [vmem:[#allocation2 + $0x68] sm:$0xff] %vm203_vm0, %v174_v6 }
  0x45   : > { %297 = vst.msk [vmem:[#allocation2 + $0x40] sm:$0xff] %vm203_vm0, %v172_v7 }
  0x46   : > { %300 = vst.msk [vmem:[#allocation2 + $0x88] sm:$0xff] %vm203_vm0, %v175_v8 }
  0x47   : > { %302 = vst.msk [vmem:[#allocation2 + $0xb0] sm:$0xff] %vm203_vm0, %v177_v9 }
  0x48   : > { %301 = vst.msk [vmem:[#allocation2 + $0x90] sm:$0xff] %vm203_vm0, %v176_v10 }
  0x49   : > { %v3896_v14 = vld [vmem:[#allocation2 + $0x5f] sm:$0xff]  ;;  %303 = vst.msk [vmem:[#allocation2 + $0xb8] sm:$0xff] %vm203_vm0, %v178_v11 }
  0x4a   : > { %384 = vperm.xlu2 %3714, %v3896_v14   ;;  %v3901_v16 = vld [vmem:[#allocation2 + $0x37] sm:$0xff]  ;;  %304 = vst.msk [vmem:[#allocation2 + $0xd8] sm:$0xff] %vm203_vm0, %v179_v12  ;;  %v4029_v3 = vld [vmem:[#allocation2 + $0x60] sm:$0xff] }
  0x4b   : > { %374 = vperm.xlu1 %3713, %v3901_v16   ;;  %305 = vst.msk [vmem:[#allocation2 + $0xe0] sm:$0xff] %vm203_vm0, %v180_v13  ;;  %v3917_v23 = vld [vmem:[#allocation2 + $0x67] sm:$0xff]  ;;  %v4034_v5 = vld [vmem:[#allocation2 + $0x38] sm:$0xff] }
  0x4c   : > { %306 = vst.msk [vmem:[#allocation2 + $0x100] sm:$0xff] %vm203_vm0, %v181_v15  ;;  %v3921_v25 = vld [vmem:[#allocation2 + $0x3f] sm:$0xff]  ;;  %v4045_v9 = vld [vmem:[#allocation2 + $0x68] sm:$0xff] }
  0x4d   : > { %v3910_v20 = vld [vmem:[#allocation2 + $0x87] sm:$0xff]  ;;  %308 = vst.msk [vmem:[#allocation2 + $0x128] sm:$0xff] %vm203_vm0, %v183_v17 }
  0x4e   : > { %394 = vperm.xlu0 %3712, %v3910_v20   ;;  %307 = vst.msk [vmem:[#allocation2 + $0x108] sm:$0xff] %vm203_vm0, %v182_v18  ;;  %v3937_v30 = vld [vmem:[#allocation2 + $0xaf] sm:$0xff]  ;;  %v4032_v4 = vld [vmem:[#allocation2 + $0x40] sm:$0xff] }
  0x4f   : > { %309 = vst.msk [vmem:[#allocation2 + $0x130] sm:$0xff] %vm203_vm0, %v184_v19  ;;  %v3939_v31 = vld [vmem:[#allocation2 + $0x8f] sm:$0xff] }
  0x50   : > { %310 = vst.msk [vmem:[#allocation2 + $0x150] sm:$0xff] %vm203_vm0, %v185_v21  ;;  %v3930_v28 = vld [vmem:[#allocation2 + $0xb7] sm:$0xff]  ;;  %v4043_v8 = vld [vmem:[#allocation2 + $0x88] sm:$0xff] }
  0x51   : > { %311 = vst.msk [vmem:[#allocation2 + $0x158] sm:$0xff] %vm203_vm0, %v186_v22  ;;  %v3954_v37 = vld [vmem:[#allocation2 + $0xd7] sm:$0xff] }
  0x52   : > { %389 = vperm.xlu2 %3714, %v3917_v23   ;;  %312 = vst.msk [vmem:[#allocation2 + $0x178] sm:$0xff] %vm203_vm0, %v187_v24  ;;  %v3952_v36 = vld [vmem:[#allocation2 + $0xdf] sm:$0xff]  ;;  %v4038_v6 = vld [vmem:[#allocation2 + $0x90] sm:$0xff] }
  0x53   : > { %379 = vperm.xlu1 %3713, %v3921_v25   ;;  %314 = vst.msk [vmem:[#allocation2 + $0x1a0] sm:$0xff] %vm203_vm0, %v189_v26  ;;  %v3945_v34 = vld [vmem:[#allocation2 + $0xff] sm:$0xff]  ;;  %v4058_v15 = vld [vmem:[#allocation2 + $0xb0] sm:$0xff] }
  0x54   : > { %313 = vst.msk [vmem:[#allocation2 + $0x180] sm:$0xff] %vm203_vm0, %v188_v27  ;;  %v3967_v42 = vld [vmem:[#allocation2 + $0x127] sm:$0xff]  ;;  %v4049_v10 = vld [vmem:[#allocation2 + $0xd8] sm:$0xff] }
  0x55   : > { %315 = vst.msk [vmem:[#allocation2 + $0x1a8] sm:$0xff] %vm203_vm0, %v190_v29  ;;  %v3969_v43 = vld [vmem:[#allocation2 + $0x107] sm:$0xff]  ;;  %v4056_v13 = vld [vmem:[#allocation2 + $0xb8] sm:$0xff] }
  0x56   : > { %409 = vperm.xlu0 %3712, %v3930_v28   ;;  %316 = vst.msk [vmem:[#allocation2 + $0x1c8] sm:$0xff] %vm203_vm0, %v191_v32  ;;  %v3960_v40 = vld [vmem:[#allocation2 + $0x12f] sm:$0xff]  ;;  %v4069_v21 = vld [vmem:[#allocation2 + $0x100] sm:$0xff] }
  0x57   : > { %317 = vst.msk [vmem:[#allocation2 + $0x1d0] sm:$0xff] %vm203_vm0, %v192_v33  ;;  %v3984_v49 = vld [vmem:[#allocation2 + $0x14f] sm:$0xff]  ;;  %v4071_v22 = vld [vmem:[#allocation2 + $0xe0] sm:$0xff] }
  0x58   : > { %318 = vst.msk [vmem:[#allocation2 + $0x1f0] sm:$0xff] %vm203_vm0, %v193_v35  ;;  %v3982_v48 = vld [vmem:[#allocation2 + $0x157] sm:$0xff]  ;;  %v4062_v17 = vld [vmem:[#allocation2 + $0x108] sm:$0xff] }
  0x59   : > { %320 = vst.msk [vmem:[#allocation2 + $0x218] sm:$0xff] %vm203_vm0, %v195_v38  ;;  %v3975_v46 = vld [vmem:[#allocation2 + $0x177] sm:$0xff]  ;;  %v4084_v32 = vld [vmem:[#allocation2 + $0x128] sm:$0xff] }
  0x5a   : > { %404 = vperm.xlu2 %3714, %v3937_v30   ;;  %319 = vst.msk [vmem:[#allocation2 + $0x1f8] sm:$0xff] %vm203_vm0, %v194_v39  ;;  %v3993_v52 = vld [vmem:[#allocation2 + $0x19f] sm:$0xff]  ;;  %v4075_v24 = vld [vmem:[#allocation2 + $0x150] sm:$0xff] }
  0x5b   : > { %399 = vperm.xlu1 %3713, %v3939_v31   ;;  %321 = vst.msk [vmem:[#allocation2 + $0x220] sm:$0xff] %vm203_vm0, %v196_v41  ;;  %v3995_v53 = vld [vmem:[#allocation2 + $0x17f] sm:$0xff]  ;;  %v4082_v29 = vld [vmem:[#allocation2 + $0x130] sm:$0xff] }
  0x5c   : > { %322 = vst.msk [vmem:[#allocation2 + $0x240] sm:$0xff] %vm203_vm0, %v197_v44  ;;  %v3989_v51 = vld [vmem:[#allocation2 + $0x1a7] sm:$0xff]  ;;  %v4097_v41 = vld [vmem:[#allocation2 + $0x178] sm:$0xff] }
  0x5d   : > { %323 = vst.msk [vmem:[#allocation2 + $0x248] sm:$0xff] %vm203_vm0, %v198_v45  ;;  %v4004_v56 = vld [vmem:[#allocation2 + $0x1c7] sm:$0xff]  ;;  %v4099_v44 = vld [vmem:[#allocation2 + $0x158] sm:$0xff] }
  0x5e   : > { %424 = vperm.xlu0 %3712, %v3945_v34   ;;  %324 = vst.msk [vmem:[#allocation2 + $0x268] sm:$0xff] %vm203_vm0, %v199_v47  ;;  %v4002_v55 = vld [vmem:[#allocation2 + $0x1cf] sm:$0xff]  ;;  %v4090_v35 = vld [vmem:[#allocation2 + $0x180] sm:$0xff] }
  0x5f   : > { %325 = vst.msk [vmem:[#allocation2 + $0x270] sm:$0xff] %vm203_vm0, %v200_v50  ;;  %v3999_v54 = vld [vmem:[#allocation2 + $0x1ef] sm:$0xff] }
  0x60   : > { %v4011_v58 = vld [vmem:[#allocation2 + $0x217] sm:$0xff]  ;;  %v4105_v47 = vld [vmem:[#allocation2 + $0x1c8] sm:$0xff]  ;;  %209 = vst.msk [vmem:[#allocation2 + $0x20] sm:$0x1] %vm208_vm1, %v3730_v1 }
  0x61   : > { %v4013_v59 = vld [vmem:[#allocation2 + $0x1f7] sm:$0xff]  ;;  %214 = vst.msk [vmem:[#allocation2 + $0x48] sm:$0x1] %vm208_vm1, %v3730_v1 }
  0x62   : > { %419 = vperm.xlu2 %3714, %v3952_v36   ;;  %v4008_v57 = vld [vmem:[#allocation2 + $0x21f] sm:$0xff]  ;;  %219 = vst.msk [vmem:[#allocation2 + $0x70] sm:$0x1] %vm208_vm1, %v3730_v1 }
  0x63   : > { %414 = vperm.xlu1 %3713, %v3954_v37   ;;  %v4022_v62 = vld [vmem:[#allocation2 + $0x23f] sm:$0xff]  ;;  %224 = vst.msk [vmem:[#allocation2 + $0x98] sm:$0x1] %vm208_vm1, %v3730_v1 }
  0x64   : > { %v4020_v61 = vld [vmem:[#allocation2 + $0x247] sm:$0xff]  ;;  %229 = vst.msk [vmem:[#allocation2 + $0xc0] sm:$0x1] %vm208_vm1, %v3730_v1 }
  0x65   : > { %v4017_v60 = vld [vmem:[#allocation2 + $0x267] sm:$0xff]  ;;  %234 = vst.msk [vmem:[#allocation2 + $0xe8] sm:$0x1] %vm208_vm1, %v3730_v1 }
  0x66   : > { %439 = vperm.xlu0 %3712, %v3960_v40   ;;  %v4026_v2 = vld [vmem:[#allocation2 + $0x26f] sm:$0xff]  ;;  %239 = vst.msk [vmem:[#allocation2 + $0x110] sm:$0x1] %vm208_vm1, %v3730_v1 }
  0x67   : > { %244 = vst.msk [vmem:[#allocation2 + $0x138] sm:$0x1] %vm208_vm1, %v3730_v1 }
  0x68   : > { %249 = vst.msk [vmem:[#allocation2 + $0x160] sm:$0x1] %vm208_vm1, %v3730_v1 }
  0x69   : > { %254 = vst.msk [vmem:[#allocation2 + $0x188] sm:$0x1] %vm208_vm1, %v3730_v1 }
  0x6a   : > { %434 = vperm.xlu2 %3714, %v3967_v42   ;;  %259 = vst.msk [vmem:[#allocation2 + $0x1b0] sm:$0x1] %vm208_vm1, %v3730_v1 }
  0x6b   : > { %429 = vperm.xlu1 %3713, %v3969_v43   ;;  %264 = vst.msk [vmem:[#allocation2 + $0x1d8] sm:$0x1] %vm208_vm1, %v3730_v1 }
  0x6c   : > { %269 = vst.msk [vmem:[#allocation2 + $0x200] sm:$0x1] %vm208_vm1, %v3730_v1 }
  0x6d   : > { %274 = vst.msk [vmem:[#allocation2 + $0x228] sm:$0x1] %vm208_vm1, %v3730_v1 }
  0x6e   : > { %454 = vperm.xlu0 %3712, %v3975_v46   ;;  %279 = vst.msk [vmem:[#allocation2 + $0x250] sm:$0x1] %vm208_vm1, %v3730_v1 }
  0x6f   : > { %284 = vst.msk [vmem:[#allocation2 + $0x278] sm:$0x1] %vm208_vm1, %v3730_v1 }
  0x70   : > { %289 = vst.msk [vmem:[#allocation2 + $0x2a0] sm:$0x1] %vm208_vm1, %v3730_v1 }
  0x71   : > { %294 = vst.msk [vmem:[#allocation2 + $0x2c8] sm:$0x1] %vm208_vm1, %v3730_v1  ;;  %v4193_v1 = vld [vmem:[#allocation2 + $0x268] sm:$0xff] }
  0x72   : > { %449 = vperm.xlu2 %3714, %v3982_v48   ;;  %5901 = vst [vmem:[#allocation29_spill] sm:$0xff] %v4193_v1 }
  0x73   : > { %444 = vperm.xlu1 %3713, %v3984_v49  }
  0x76   : > { %469 = vperm.xlu0 %3712, %v3989_v51  }
  0x7a   : > { %464 = vperm.xlu2 %3714, %v3993_v52  }
  0x7b   : > { %459 = vperm.xlu1 %3713, %v3995_v53  }
  0x7e   : > { %484 = vperm.xlu0 %3712, %v3999_v54  }
  0x82   : > { %479 = vperm.xlu2 %3714, %v4002_v55  }
  0x83   : > { %474 = vperm.xlu1 %3713, %v4004_v56  }
  0x86   : > { %499 = vperm.xlu0 %3712, %v4008_v57  }
  0x87   : > { %v4053_v12 = vpop.permute.xlu0 %364 }
  0x88   : > { %5877 = vst [vmem:[#allocation5_spill] sm:$0xff] %v4053_v12 }
  0x8a   : > { %494 = vperm.xlu2 %3714, %v4011_v58  }
  0x8b   : > { %489 = vperm.xlu1 %3713, %v4013_v59  }
  0x8e   : > { %514 = vperm.xlu0 %3712, %v4017_v60  }
  0x8f   : > { %v4067_v19 = vpop.permute.xlu0 %369 }
  0x90   : > { %5879 = vst [vmem:[#allocation7_spill] sm:$0xff] %v4067_v19  ;;  %v4186_v19 = vld [vmem:[#allocation2 + $0x270] sm:$0xff] }
  0x91   : > { %5898 = vst [vmem:[#allocation26_spill] sm:$0xff] %v4186_v19 }
  0x92   : > { %509 = vperm.xlu2 %3714, %v4020_v61  }
  0x93   : > { %504 = vperm.xlu1 %3713, %v4022_v62  }
  0x96   : > { %629 = vperm.xlu0 %3712, %v588_v63  }
  0x9a   : > { %624 = vperm.xlu2 %3714, %v587_v0   ;;  %v4120_v0 = vld [vmem:[#allocation2 + $0x1a8] sm:$0xff] }
  0x9b   : > { %519 = vperm.xlu1 %3713, %v4026_v2  }
  0x9e   : > { %644 = vperm.xlu0 %3712, %v4029_v3  }
  0xa2   : > { %639 = vperm.xlu2 %3714, %v4032_v4  }
  0xa3   : > { %634 = vperm.xlu1 %3713, %v4034_v5  }
  0xa4   : > { %v4040_v7 = vpop.permute.xlu2 %384 }
  0xa5   : > { %5875 = vst [vmem:[#allocation3_spill] sm:$0xff] %v4040_v7 }
  0xa6   : > { %659 = vperm.xlu0 %3712, %v4038_v6  }
  0xaa   : > { %654 = vperm.xlu2 %3714, %v4043_v8  }
  0xab   : > { %649 = vperm.xlu1 %3713, %v4045_v9  }
  0xac   : > { %v4051_v11 = vpop.permute.xlu2 %389 }
  0xad   : > { %5876 = vst [vmem:[#allocation4_spill] sm:$0xff] %v4051_v11  ;;  %v4195_v11 = vld [vmem:[#allocation2 + $0x248] sm:$0xff] }
  0xae   : > { %674 = vperm.xlu0 %3712, %v4049_v10   ;;  %5902 = vst [vmem:[#allocation30_spill] sm:$0xff] %v4195_v11 }
  0xb2   : > { %669 = vperm.xlu2 %3714, %v4056_v13  }
  0xb3   : > { %664 = vperm.xlu1 %3713, %v4058_v15  }
  0xb4   : > { %v4064_v18 = vpop.permute.xlu2 %404 }
  0xb5   : > { %5878 = vst [vmem:[#allocation6_spill] sm:$0xff] %v4064_v18 }
  0xb6   : > { %689 = vperm.xlu0 %3712, %v4062_v17  }
  0xba   : > { %684 = vperm.xlu2 %3714, %v4069_v21  }
  0xbb   : > { %679 = vperm.xlu1 %3713, %v4071_v22  }
  0xbc   : > { %v4077_v26 = vpop.permute.xlu2 %419 }
  0xbd   : > { %5880 = vst [vmem:[#allocation8_spill] sm:$0xff] %v4077_v26  ;;  %v4079_v27 = vpop.permute.xlu1 %374  ;;  %v4180_v26 = vld [vmem:[#allocation2 + $0x218] sm:$0xff] }
  0xbe   : > { %5881 = vst [vmem:[#allocation9_spill] sm:$0xff] %v4079_v27  ;;  %704 = vperm.xlu0 %3712, %v4075_v24   ;;  %v4178_v27 = vld [vmem:[#allocation2 + $0x220] sm:$0xff] }
  0xbf   : > { %5896 = vst [vmem:[#allocation24_spill] sm:$0xff] %v4180_v26 }
  0xc0   : > { %v4086_v33 = vpop.permute.xlu0 %394 }
  0xc1   : > { %5882 = vst [vmem:[#allocation10_spill] sm:$0xff] %v4086_v33  ;;  %v4151_v33 = vld [vmem:[#allocation2 + $0x1f0] sm:$0xff] }
  0xc2   : > { %699 = vperm.xlu2 %3714, %v4082_v29  }
  0xc3   : > { %694 = vperm.xlu1 %3713, %v4084_v32  }
  0xc4   : > { %v4092_v38 = vpop.permute.xlu2 %434 }
  0xc5   : > { %5883 = vst [vmem:[#allocation11_spill] sm:$0xff] %v4092_v38  ;;  %v4094_v39 = vpop.permute.xlu1 %379 }
  0xc6   : > { %5884 = vst [vmem:[#allocation12_spill] sm:$0xff] %v4094_v39  ;;  %719 = vperm.xlu0 %3712, %v4090_v35   ;;  %v4155_v39 = vld [vmem:[#allocation2 + $0x1d0] sm:$0xff] }
  0xc8   : > { %v4101_v45 = vpop.permute.xlu0 %409 }
  0xc9   : > { %5885 = vst [vmem:[#allocation13_spill] sm:$0xff] %v4101_v45  ;;  %v4124_v45 = vld [vmem:[#allocation2 + $0x1a0] sm:$0xff] }
  0xca   : > { %714 = vperm.xlu2 %3714, %v4097_v41  }
  0xcb   : > { %709 = vperm.xlu1 %3713, %v4099_v44  }
  0xcc   : > { %v4109_v50 = vpop.permute.xlu2 %449 }
  0xcd   : > { %5886 = vst [vmem:[#allocation14_spill] sm:$0xff] %v4109_v50  ;;  %v4113_v63 = vpop.permute.xlu1 %399 }
  0xce   : > { %5887 = vst [vmem:[#allocation15_spill] sm:$0xff] %v4113_v63  ;;  %734 = vperm.xlu0 %3712, %v4105_v47   ;;  %v4136_v63 = vld [vmem:[#allocation2 + $0x1f8] sm:$0xff] }
  0xcf   : > { %5889 = vst [vmem:[#allocation17_spill] sm:$0xff] %v4136_v63 }
  0xd0   : > { %v4126_v7 = vpop.permute.xlu0 %424 }
  0xd1   : > { %5888 = vst [vmem:[#allocation16_spill] sm:$0xff] %v4126_v7 }
  0xd2   : > { %729 = vperm.xlu2 %3714, %v4120_v0  }
  0xd3   : > { %724 = vperm.xlu1 %3713, %v4124_v45  }
  0xd4   : > { %v4140_v50 = vpop.permute.xlu2 %464 }
  0xd5   : > { %5890 = vst [vmem:[#allocation18_spill] sm:$0xff] %v4140_v50  ;;  %v4144_v7 = vpop.permute.xlu1 %414 }
  0xd6   : > { %5891 = vst [vmem:[#allocation19_spill] sm:$0xff] %v4144_v7  ;;  %749 = vperm.xlu0 %3712, %v4136_v63   ;;  %v4167_v7 = vld [vmem:[#allocation2 + $0x240] sm:$0xff] }
  0xd7   : > { %5893 = vst [vmem:[#allocation21_spill] sm:$0xff] %v4167_v7 }
  0xd8   : > { %v4157_v50 = vpop.permute.xlu0 %439 }
  0xd9   : > { %5892 = vst [vmem:[#allocation20_spill] sm:$0xff] %v4157_v50 }
  0xda   : > { %744 = vperm.xlu2 %3714, %v4151_v33  }
  0xdb   : > { %739 = vperm.xlu1 %3713, %v4155_v39  }
  0xdc   : > { %v4171_v38 = vpop.permute.xlu2 %479 }
  0xdd   : > { %5894 = vst [vmem:[#allocation22_spill] sm:$0xff] %v4171_v38  ;;  %v4175_v50 = vpop.permute.xlu1 %429 }
  0xde   : > { %5895 = vst [vmem:[#allocation23_spill] sm:$0xff] %v4175_v50  ;;  %764 = vperm.xlu0 %3712, %v4167_v7  }
  0xe0   : > { %v4182_v18 = vpop.permute.xlu0 %454 }
  0xe1   : > { %5897 = vst [vmem:[#allocation25_spill] sm:$0xff] %v4182_v18  ;;  %v4201_v18 = vld [vmem:[#allocation2 + $0x39] sm:$0xff] }
  0xe2   : > { %759 = vperm.xlu2 %3714, %v4178_v27   ;;  %5904 = vst [vmem:[#allocation32_spill] sm:$0xff] %v4201_v18 }
  0xe3   : > { %754 = vperm.xlu1 %3713, %v4180_v26   ;;  %v4210_v26 = vld [vmem:[#allocation2 + $0x69] sm:$0xff] }
  0xe4   : > { %v4188_v38 = vpop.permute.xlu2 %494  ;;  %5908 = vst [vmem:[#allocation36_spill] sm:$0xff] %v4210_v26 }
  0xe5   : > { %5899 = vst [vmem:[#allocation27_spill] sm:$0xff] %v4188_v38  ;;  %v4190_v12 = vpop.permute.xlu1 %444  ;;  %v848_v38 = vld [vmem:[#allocation2 + $0x19] sm:$0xff] }
  0xe6   : > { %5900 = vst [vmem:[#allocation28_spill] sm:$0xff] %v4190_v12  ;;  %779 = vperm.xlu0 %3712, %v4186_v19   ;;  %v847_v12 = vld [vmem:[#allocation2 + $0x11] sm:$0xff] }
  0xe8   : > { %v4197_v50 = vpop.permute.xlu0 %469 }
  0xe9   : > { %5903 = vst [vmem:[#allocation31_spill] sm:$0xff] %v4197_v50 }
  0xea   : > { %774 = vperm.xlu2 %3714, %v4193_v1  }
  0xeb   : > { %769 = vperm.xlu1 %3713, %v4195_v11   ;;  %v4217_v11 = vld [vmem:[#allocation2 + $0x61] sm:$0xff] }
  0xec   : > { %v4203_v7 = vpop.permute.xlu2 %509 }
  0xed   : > { %5905 = vst [vmem:[#allocation33_spill] sm:$0xff] %v4203_v7  ;;  %v4205_v63 = vpop.permute.xlu1 %459  ;;  %v4219_v7 = vld [vmem:[#allocation2 + $0x41] sm:$0xff] }
  0xee   : > { %5906 = vst [vmem:[#allocation34_spill] sm:$0xff] %v4205_v63  ;;  %894 = vperm.xlu0 %3712, %v4201_v18  }
  0xef   : > { %5911 = vst [vmem:[#allocation39_spill] sm:$0xff] %v4219_v7 }
  0xf0   : > { %v4208_v19 = vpop.permute.xlu0 %484 }
  0xf1   : > { %5907 = vst [vmem:[#allocation35_spill] sm:$0xff] %v4208_v19 }
  0xf2   : > { %889 = vperm.xlu2 %3714, %v848_v38   ;;  %v4225_v38 = vld [vmem:[#allocation2 + $0xb1] sm:$0xff] }
  0xf3   : > { %884 = vperm.xlu1 %3713, %v847_v12   ;;  %5913 = vst [vmem:[#allocation41_spill] sm:$0xff] %v4225_v38 }
  0xf4   : > { %v4212_v50 = vpop.permute.xlu2 %624 }
  0xf5   : > { %5909 = vst [vmem:[#allocation37_spill] sm:$0xff] %v4212_v50  ;;  %v4214_v1 = vpop.permute.xlu1 %474  ;;  %v4234_v50 = vld [vmem:[#allocation2 + $0x89] sm:$0xff] }
  0xf6   : > { %5910 = vst [vmem:[#allocation38_spill] sm:$0xff] %v4214_v1  ;;  %909 = vperm.xlu0 %3712, %v4210_v26   ;;  %v4232_v1 = vld [vmem:[#allocation2 + $0x91] sm:$0xff] }
  0xf7   : > { %5916 = vst [vmem:[#allocation44_spill] sm:$0xff] %v4232_v1 }
  0xf8   : > { %v4221_v63 = vpop.permute.xlu0 %499  ;;  %5917 = vst [vmem:[#allocation45_spill] sm:$0xff] %v4234_v50 }
  0xf9   : > { %5912 = vst [vmem:[#allocation40_spill] sm:$0xff] %v4221_v63  ;;  %v4240_v63 = vld [vmem:[#allocation2 + $0xe1] sm:$0xff] }
  0xfa   : > { %904 = vperm.xlu2 %3714, %v4217_v11   ;;  %5919 = vst [vmem:[#allocation47_spill] sm:$0xff] %v4240_v63 }
  0xfb   : > { %899 = vperm.xlu1 %3713, %v4219_v7  }
  0xfc   : > { %v4227_v12 = vpop.permute.xlu2 %639 }
  0xfd   : > { %5914 = vst [vmem:[#allocation42_spill] sm:$0xff] %v4227_v12  ;;  %v4229_v19 = vpop.permute.xlu1 %489  ;;  %v4249_v12 = vld [vmem:[#allocation2 + $0xb9] sm:$0xff] }
  0xfe   : > { %5915 = vst [vmem:[#allocation43_spill] sm:$0xff] %v4229_v19  ;;  %924 = vperm.xlu0 %3712, %v4225_v38   ;;  %v4247_v19 = vld [vmem:[#allocation2 + $0xd9] sm:$0xff] }
  0xff   : > { %5922 = vst [vmem:[#allocation50_spill] sm:$0xff] %v4247_v19 }
 0x100   : > { %v4236_v26 = vpop.permute.xlu0 %514  ;;  %5923 = vst [vmem:[#allocation51_spill] sm:$0xff] %v4249_v12 }
 0x101   : > { %5918 = vst [vmem:[#allocation46_spill] sm:$0xff] %v4236_v26  ;;  %v4255_v26 = vld [vmem:[#allocation2 + $0x129] sm:$0xff] }
 0x102   : > { %919 = vperm.xlu2 %3714, %v4232_v1   ;;  %5925 = vst [vmem:[#allocation53_spill] sm:$0xff] %v4255_v26 }
 0x103   : > { %914 = vperm.xlu1 %3713, %v4234_v50  }
 0x104   : > { %v4242_v18 = vpop.permute.xlu2 %654 }
 0x105   : > { %5920 = vst [vmem:[#allocation48_spill] sm:$0xff] %v4242_v18  ;;  %v4244_v7 = vpop.permute.xlu1 %504  ;;  %v4264_v18 = vld [vmem:[#allocation2 + $0x101] sm:$0xff] }
 0x106   : > { %5921 = vst [vmem:[#allocation49_spill] sm:$0xff] %v4244_v7  ;;  %939 = vperm.xlu0 %3712, %v4240_v63   ;;  %v4262_v7 = vld [vmem:[#allocation2 + $0x109] sm:$0xff] }
 0x107   : > { %5928 = vst [vmem:[#allocation56_spill] sm:$0xff] %v4262_v7 }
 0x108   : > { %v4251_v38 = vpop.permute.xlu0 %629  ;;  %5929 = vst [vmem:[#allocation57_spill] sm:$0xff] %v4264_v18 }
 0x109   : > { %5924 = vst [vmem:[#allocation52_spill] sm:$0xff] %v4251_v38  ;;  %v4270_v38 = vld [vmem:[#allocation2 + $0x159] sm:$0xff] }
 0x10a   : > { %934 = vperm.xlu2 %3714, %v4247_v19   ;;  %5931 = vst [vmem:[#allocation59_spill] sm:$0xff] %v4270_v38 }
 0x10b   : > { %929 = vperm.xlu1 %3713, %v4249_v12  }
 0x10c   : > { %v4257_v50 = vpop.permute.xlu2 %669 }
 0x10d   : > { %5926 = vst [vmem:[#allocation54_spill] sm:$0xff] %v4257_v50  ;;  %v4259_v1 = vpop.permute.xlu1 %519  ;;  %v4277_v50 = vld [vmem:[#allocation2 + $0x151] sm:$0xff] }
 0x10e   : > { %5927 = vst [vmem:[#allocation55_spill] sm:$0xff] %v4259_v1  ;;  %954 = vperm.xlu0 %3712, %v4255_v26   ;;  %v4279_v1 = vld [vmem:[#allocation2 + $0x131] sm:$0xff] }
 0x10f   : > { %5934 = vst [vmem:[#allocation62_spill] sm:$0xff] %v4277_v50 }
 0x110   : > { %v4266_v63 = vpop.permute.xlu0 %644  ;;  %5935 = vst [vmem:[#allocation63_spill] sm:$0xff] %v4279_v1 }
 0x111   : > { %5930 = vst [vmem:[#allocation58_spill] sm:$0xff] %v4266_v63  ;;  %v4285_v63 = vld [vmem:[#allocation2 + $0x1a1] sm:$0xff] }
 0x112   : > { %949 = vperm.xlu2 %3714, %v4262_v7   ;;  %5937 = vst [vmem:[#allocation65_spill] sm:$0xff] %v4285_v63 }
 0x113   : > { %944 = vperm.xlu1 %3713, %v4264_v18  }
 0x114   : > { %v4272_v12 = vpop.permute.xlu2 %684 }
 0x115   : > { %5932 = vst [vmem:[#allocation60_spill] sm:$0xff] %v4272_v12  ;;  %v4274_v19 = vpop.permute.xlu1 %634  ;;  %v4292_v12 = vld [vmem:[#allocation2 + $0x181] sm:$0xff] }
 0x116   : > { %5933 = vst [vmem:[#allocation61_spill] sm:$0xff] %v4274_v19  ;;  %969 = vperm.xlu0 %3712, %v4270_v38   ;;  %v4294_v19 = vld [vmem:[#allocation2 + $0x179] sm:$0xff] }
 0x117   : > { %5940 = vst [vmem:[#allocation68_spill] sm:$0xff] %v4292_v12 }
 0x118   : > { %v4281_v26 = vpop.permute.xlu0 %659  ;;  %5941 = vst [vmem:[#allocation69_spill] sm:$0xff] %v4294_v19 }
 0x119   : > { %5936 = vst [vmem:[#allocation64_spill] sm:$0xff] %v4281_v26  ;;  %v4300_v26 = vld [vmem:[#allocation2 + $0x1d1] sm:$0xff] }
 0x11a   : > { %964 = vperm.xlu2 %3714, %v4277_v50   ;;  %5943 = vst [vmem:[#allocation71_spill] sm:$0xff] %v4300_v26 }
 0x11b   : > { %959 = vperm.xlu1 %3713, %v4279_v1  }
 0x11c   : > { %v4287_v18 = vpop.permute.xlu2 %699 }
 0x11d   : > { %5938 = vst [vmem:[#allocation66_spill] sm:$0xff] %v4287_v18  ;;  %v4289_v7 = vpop.permute.xlu1 %649  ;;  %v4309_v18 = vld [vmem:[#allocation2 + $0x1a9] sm:$0xff] }
 0x11e   : > { %5939 = vst [vmem:[#allocation67_spill] sm:$0xff] %v4289_v7  ;;  %984 = vperm.xlu0 %3712, %v4285_v63   ;;  %v4307_v7 = vld [vmem:[#allocation2 + $0x1c9] sm:$0xff] }
 0x11f   : > { %5946 = vst [vmem:[#allocation74_spill] sm:$0xff] %v4307_v7 }
 0x120   : > { %v4296_v38 = vpop.permute.xlu0 %674  ;;  %5947 = vst [vmem:[#allocation75_spill] sm:$0xff] %v4309_v18 }
 0x121   : > { %5942 = vst [vmem:[#allocation70_spill] sm:$0xff] %v4296_v38  ;;  %v4315_v38 = vld [vmem:[#allocation2 + $0x219] sm:$0xff] }
 0x122   : > { %979 = vperm.xlu2 %3714, %v4292_v12   ;;  %5949 = vst [vmem:[#allocation77_spill] sm:$0xff] %v4315_v38 }
 0x123   : > { %974 = vperm.xlu1 %3713, %v4294_v19  }
 0x124   : > { %v4302_v1 = vpop.permute.xlu2 %714 }
 0x125   : > { %5944 = vst [vmem:[#allocation72_spill] sm:$0xff] %v4302_v1  ;;  %v4304_v50 = vpop.permute.xlu1 %664  ;;  %v4324_v1 = vld [vmem:[#allocation2 + $0x1f1] sm:$0xff] }
 0x126   : > { %5945 = vst [vmem:[#allocation73_spill] sm:$0xff] %v4304_v50  ;;  %999 = vperm.xlu0 %3712, %v4300_v26   ;;  %v4322_v50 = vld [vmem:[#allocation2 + $0x1f9] sm:$0xff] }
 0x127   : > { %5952 = vst [vmem:[#allocation80_spill] sm:$0xff] %v4324_v1 }
 0x128   : > { %v4311_v63 = vpop.permute.xlu0 %689 }
 0x129   : > { %5948 = vst [vmem:[#allocation76_spill] sm:$0xff] %v4311_v63  ;;  %v4330_v63 = vld [vmem:[#allocation2 + $0x249] sm:$0xff] }
 0x12a   : > { %994 = vperm.xlu2 %3714, %v4307_v7   ;;  %5954 = vst [vmem:[#allocation82_spill] sm:$0xff] %v4330_v63 }
 0x12b   : > { %989 = vperm.xlu1 %3713, %v4309_v18  }
 0x12c   : > { %v4317_v19 = vpop.permute.xlu2 %729 }
 0x12d   : > { %5950 = vst [vmem:[#allocation78_spill] sm:$0xff] %v4317_v19  ;;  %v4319_v12 = vpop.permute.xlu1 %679  ;;  %v4339_v19 = vld [vmem:[#allocation2 + $0x221] sm:$0xff] }
 0x12e   : > { %5951 = vst [vmem:[#allocation79_spill] sm:$0xff] %v4319_v12  ;;  %1014 = vperm.xlu0 %3712, %v4315_v38   ;;  %v4337_v12 = vld [vmem:[#allocation2 + $0x241] sm:$0xff] }
 0x12f   : > { %5957 = vst [vmem:[#allocation85_spill] sm:$0xff] %v4337_v12 }
 0x130   : > { %v4326_v26 = vpop.permute.xlu0 %704 }
 0x131   : > { %5953 = vst [vmem:[#allocation81_spill] sm:$0xff] %v4326_v26 }
 0x132   : > { %1009 = vperm.xlu2 %3714, %v4322_v50  }
 0x133   : > { %1004 = vperm.xlu1 %3713, %v4324_v1  }
 0x134   : > { %v4332_v18 = vpop.permute.xlu2 %744 }
 0x135   : > { %5955 = vst [vmem:[#allocation83_spill] sm:$0xff] %v4332_v18  ;;  %v4334_v7 = vpop.permute.xlu1 %694  ;;  %v4350_v18 = vld [vmem:[#allocation2 + $0x271] sm:$0xff] }
 0x136   : > { %5956 = vst [vmem:[#allocation84_spill] sm:$0xff] %v4334_v7  ;;  %1029 = vperm.xlu0 %3712, %v4330_v63   ;;  %v4352_v7 = vld [vmem:[#allocation2 + $0x269] sm:$0xff] }
 0x138   : > { %v4341_v38 = vpop.permute.xlu0 %719 }
 0x139   : > { %5958 = vst [vmem:[#allocation86_spill] sm:$0xff] %v4341_v38 }
 0x13a   : > { %1024 = vperm.xlu2 %3714, %v4337_v12  }
 0x13b   : > { %1019 = vperm.xlu1 %3713, %v4339_v19  }
 0x13c   : > { %v4345_v26 = vpop.permute.xlu2 %759 }
 0x13d   : > { %5959 = vst [vmem:[#allocation87_spill] sm:$0xff] %v4345_v26  ;;  %v4347_v1 = vpop.permute.xlu1 %709 }
 0x13e   : > { %5960 = vst [vmem:[#allocation88_spill] sm:$0xff] %v4347_v1  ;;  %1144 = vperm.xlu0 %3712, %v3901_v16  }
 0x140   : > { %v4354_v63 = vpop.permute.xlu0 %734 }
 0x141   : > { %5961 = vst [vmem:[#allocation89_spill] sm:$0xff] %v4354_v63 }
 0x142   : > { %1039 = vperm.xlu2 %3714, %v4350_v18  }
 0x143   : > { %1034 = vperm.xlu1 %3713, %v4352_v7  }
 0x144   : > { %v4358_v38 = vpop.permute.xlu2 %774 }
 0x145   : > { %5962 = vst [vmem:[#allocation90_spill] sm:$0xff] %v4358_v38  ;;  %v4360_v12 = vpop.permute.xlu1 %724 }
 0x146   : > { %1159 = vperm.xlu0 %3712, %v3917_v23  }
 0x148   : > { %v4363_v26 = vpop.permute.xlu0 %749 }
 0x14a   : > { %1154 = vperm.xlu2 %3714, %v3896_v14  }
 0x14b   : > { %1149 = vperm.xlu1 %3713, %v3921_v25  }
 0x14c   : > { %v4367_v16 = vpop.permute.xlu2 %889 }
 0x14d   : > { %5963 = vst [vmem:[#allocation91_spill] sm:$0xff] %v4367_v16  ;;  %v4369_v1 = vpop.permute.xlu1 %739  ;;  %v6012_v16 = vld [vmem:[#allocation44_spill] sm:$0xff] }
 0x14e   : > { %1174 = vperm.xlu0 %3712, %v3937_v30  }
 0x150   : > { %v4372_v63 = vpop.permute.xlu0 %764 }
 0x152   : > { %1169 = vperm.xlu2 %3714, %v3939_v31  }
 0x153   : > { %1164 = vperm.xlu1 %3713, %v3910_v20  }
 0x154   : > { %v4376_v38 = vpop.permute.xlu2 %904 }
 0x155   : > { %5964 = vst [vmem:[#allocation92_spill] sm:$0xff] %v4376_v38  ;;  %v4378_v23 = vpop.permute.xlu1 %754 }
 0x156   : > { %5965 = vst [vmem:[#allocation93_spill] sm:$0xff] %v4378_v23  ;;  %1189 = vperm.xlu0 %3712, %v3952_v36  }
 0x158   : > { %v4381_v14 = vpop.permute.xlu0 %779 }
 0x15a   : > { %1184 = vperm.xlu2 %3714, %v3954_v37  }
 0x15b   : > { %1179 = vperm.xlu1 %3713, %v3930_v28  }
 0x15c   : > { %v4385_v25 = vpop.permute.xlu2 %919 }
 0x15d   : > { %5966 = vst [vmem:[#allocation94_spill] sm:$0xff] %v4385_v25  ;;  %v4387_v30 = vpop.permute.xlu1 %769 }
 0x15e   : > { %5967 = vst [vmem:[#allocation95_spill] sm:$0xff] %v4387_v30  ;;  %1204 = vperm.xlu0 %3712, %v3967_v42   ;;  %v201_v42 = vld [vmem:[%s3869_s17 + $0xf0] sm:$0xff] }
 0x15f   : > { %326 = vst.msk [vmem:[#allocation2 + $0x290] sm:$0xff] %vm203_vm0, %v201_v42 }
 0x160   : > { %v4390_v20 = vpop.permute.xlu0 %894 }
 0x161   : > { %5968 = vst [vmem:[#allocation96_spill] sm:$0xff] %v4390_v20 }
 0x162   : > { %1199 = vperm.xlu2 %3714, %v3969_v43   ;;  %v202_v43 = vld [vmem:[%s3869_s17 + $0xf8] sm:$0xff] }
 0x163   : > { %1194 = vperm.xlu1 %3713, %v3945_v34   ;;  %327 = vst.msk [vmem:[#allocation2 + $0x298] sm:$0xff] %vm203_vm0, %v202_v43 }
 0x164   : > { %v4394_v31 = vpop.permute.xlu2 %934 }
 0x165   : > { %5969 = vst [vmem:[#allocation97_spill] sm:$0xff] %v4394_v31  ;;  %v4396_v36 = vpop.permute.xlu1 %884 }
 0x166   : > { %5970 = vst [vmem:[#allocation98_spill] sm:$0xff] %v4396_v36  ;;  %1219 = vperm.xlu0 %3712, %v3982_v48  }
 0x168   : > { %v4399_v28 = vpop.permute.xlu0 %909 }
 0x169   : > { %5971 = vst [vmem:[#allocation99_spill] sm:$0xff] %v4399_v28 }
 0x16a   : > { %1214 = vperm.xlu2 %3714, %v3984_v49  }
 0x16b   : > { %1209 = vperm.xlu1 %3713, %v3960_v40  }
 0x16c   : > { %v4403_v37 = vpop.permute.xlu2 %949 }
 0x16d   : > { %v4406_v25 = vpop.permute.xlu1 %899 }
 0x16e   : > { %5972 = vst [vmem:[#allocation100_spill] sm:$0xff] %v4406_v25  ;;  %1234 = vperm.xlu0 %3712, %v3993_v52   ;;  %v6017_v25 = vld [vmem:[#allocation50_spill] sm:$0xff] }
 0x170   : > { %v4410_v34 = vpop.permute.xlu0 %924 }
 0x171   : > { %5973 = vst [vmem:[#allocation101_spill] sm:$0xff] %v4410_v34 }
 0x172   : > { %1229 = vperm.xlu2 %3714, %v3995_v53  }
 0x173   : > { %1224 = vperm.xlu1 %3713, %v3975_v46  }
 0x174   : > { %v4416_v48 = vpop.permute.xlu2 %964 }
 0x175   : > { %v4418_v40 = vpop.permute.xlu1 %914 }
 0x176   : > { %5974 = vst [vmem:[#allocation102_spill] sm:$0xff] %v4418_v40  ;;  %1249 = vperm.xlu0 %3712, %v4002_v55  }
 0x178   : > { %v4421_v49 = vpop.permute.xlu0 %939 }
 0x179   : > { %5975 = vst [vmem:[#allocation103_spill] sm:$0xff] %v4421_v49  ;;  %v6015_v49 = vld [vmem:[#allocation36_spill] sm:$0xff] }
 0x17a   : > { %1244 = vperm.xlu2 %3714, %v4004_v56  }
 0x17b   : > { %1239 = vperm.xlu1 %3713, %v3989_v51   ;;  %v4443_v51 = vld [vmem:[#allocation2 + $0x28f] sm:$0xff] }
 0x17c   : > { %v4425_v52 = vpop.permute.xlu2 %979  ;;  %5978 = vst [vmem:[#allocation106_spill] sm:$0xff] %v4443_v51 }
 0x17d   : > { %v4427_v53 = vpop.permute.xlu1 %929 }
 0x17e   : > { %5976 = vst [vmem:[#allocation104_spill] sm:$0xff] %v4427_v53  ;;  %1264 = vperm.xlu0 %3712, %v4011_v58  }
 0x180   : > { %v4430_v46 = vpop.permute.xlu0 %954 }
 0x182   : > { %1259 = vperm.xlu2 %3714, %v4013_v59  }
 0x183   : > { %1254 = vperm.xlu1 %3713, %v3999_v54  }
 0x184   : > { %v4434_v42 = vpop.permute.xlu2 %994 }
 0x185   : > { %v4436_v55 = vpop.permute.xlu1 %944 }
 0x186   : > { %5977 = vst [vmem:[#allocation105_spill] sm:$0xff] %v4436_v55  ;;  %1279 = vperm.xlu0 %3712, %v4020_v61  }
 0x188   : > { %v4439_v56 = vpop.permute.xlu0 %969 }
 0x18a   : > { %1274 = vperm.xlu2 %3714, %v4022_v62  }
 0x18b   : > { %1269 = vperm.xlu1 %3713, %v4008_v57   ;;  %v4459_v57 = vld [vmem:[#allocation2 + $0x297] sm:$0xff] }
 0x18c   : > { %v4445_v58 = vpop.permute.xlu2 %1009 }
 0x18d   : > { %v4447_v43 = vpop.permute.xlu1 %959 }
 0x18e   : > { %1294 = vperm.xlu0 %3712, %v4443_v51  }
 0x190   : > { %v4450_v54 = vpop.permute.xlu0 %984 }
 0x192   : > { %1289 = vperm.xlu2 %3714, %v4026_v2  }
 0x193   : > { %1284 = vperm.xlu1 %3713, %v4017_v60  }
 0x194   : > { %v4454_v59 = vpop.permute.xlu2 %1024 }
 0x195   : > { %v4456_v61 = vpop.permute.xlu1 %974 }
 0x196   : > { %1409 = vperm.xlu0 %3712, %v4032_v4  }
 0x198   : > { %v4461_v62 = vpop.permute.xlu0 %999 }
 0x19a   : > { %1404 = vperm.xlu2 %3714, %v4034_v5  }
 0x19b   : > { %1299 = vperm.xlu1 %3713, %v4459_v57  }
 0x19c   : > { %v4465_v31 = vpop.permute.xlu2 %1039 }
 0x19d   : > { %5979 = vst [vmem:[#allocation107_spill] sm:$0xff] %v4465_v31  ;;  %v4467_v55 = vpop.permute.xlu1 %989 }
 0x19e   : > { %5980 = vst [vmem:[#allocation108_spill] sm:$0xff] %v4467_v55  ;;  %1424 = vperm.xlu0 %3712, %v4043_v8   ;;  %v1902_v55 = vld [vmem:[#allocation2 + $0x177] sm:$0xff] }
 0x1a0   : > { %v4470_v60 = vpop.permute.xlu0 %1014 }
 0x1a1   : > { %5981 = vst [vmem:[#allocation109_spill] sm:$0xff] %v4470_v60  ;;  %v3694_v60 = vld [vmem:[%s5840_s1 + $0x5] sm:$0x1] }
 0x1a2   : > { %1419 = vperm.xlu2 %3714, %v4045_v9  }
 0x1a3   : > { %1414 = vperm.xlu1 %3713, %v4029_v3  }
 0x1a4   : > { %v4474_v2 = vpop.permute.xlu2 %1154 }
 0x1a5   : > { %5982 = vst [vmem:[#allocation110_spill] sm:$0xff] %v4474_v2  ;;  %v4476_v4 = vpop.permute.xlu1 %1004  ;;  %v1899_v2 = vld [vmem:[#allocation2 + $0x12f] sm:$0xff] }
 0x1a6   : > { %5983 = vst [vmem:[#allocation111_spill] sm:$0xff] %v4476_v4  ;;  %1439 = vperm.xlu0 %3712, %v4056_v13  }
 0x1a8   : > { %v4479_v5 = vpop.permute.xlu0 %1029 }
 0x1a9   : > { %5984 = vst [vmem:[#allocation112_spill] sm:$0xff] %v4479_v5 }
 0x1aa   : > { %1434 = vperm.xlu2 %3714, %v4058_v15  }
 0x1ab   : > { %1429 = vperm.xlu1 %3713, %v4038_v6  }
 0x1ac   : > { %v4483_v53 = vpop.permute.xlu2 %1169 }
 0x1ad   : > { %5985 = vst [vmem:[#allocation113_spill] sm:$0xff] %v4483_v53  ;;  %v4485_v8 = vpop.permute.xlu1 %1019 }
 0x1ae   : > { %5986 = vst [vmem:[#allocation114_spill] sm:$0xff] %v4485_v8  ;;  %1454 = vperm.xlu0 %3712, %v4069_v21  }
 0x1b0   : > { %v4488_v9 = vpop.permute.xlu0 %1144 }
 0x1b1   : > { %5987 = vst [vmem:[#allocation115_spill] sm:$0xff] %v4488_v9 }
 0x1b2   : > { %1449 = vperm.xlu2 %3714, %v4071_v22  }
 0x1b3   : > { %1444 = vperm.xlu1 %3713, %v4049_v10  }
 0x1b4   : > { %v4492_v3 = vpop.permute.xlu2 %1184 }
 0x1b5   : > { %5988 = vst [vmem:[#allocation116_spill] sm:$0xff] %v4492_v3  ;;  %v4494_v13 = vpop.permute.xlu1 %1034 }
 0x1b6   : > { %5989 = vst [vmem:[#allocation117_spill] sm:$0xff] %v4494_v13  ;;  %1469 = vperm.xlu0 %3712, %v4082_v29   ;;  %v6020_v13 = vld [vmem:[#allocation41_spill] sm:$0xff] }
 0x1b8   : > { %v4497_v15 = vpop.permute.xlu0 %1159 }
 0x1b9   : > { %5990 = vst [vmem:[#allocation118_spill] sm:$0xff] %v4497_v15 }
 0x1ba   : > { %1464 = vperm.xlu2 %3714, %v4084_v32  }
 0x1bb   : > { %1459 = vperm.xlu1 %3713, %v4062_v17  }
 0x1bc   : > { %v4501_v6 = vpop.permute.xlu2 %1199 }
 0x1bd   : > { %5991 = vst [vmem:[#allocation119_spill] sm:$0xff] %v4501_v6  ;;  %v4503_v21 = vpop.permute.xlu1 %1149 }
 0x1be   : > { %5992 = vst [vmem:[#allocation120_spill] sm:$0xff] %v4503_v21  ;;  %1484 = vperm.xlu0 %3712, %v4097_v41   ;;  %v6010_v21 = vld [vmem:[#allocation32_spill] sm:$0xff] }
 0x1c0   : > { %v4506_v22 = vpop.permute.xlu0 %1174 }
 0x1c1   : > { %5993 = vst [vmem:[#allocation121_spill] sm:$0xff] %v4506_v22  ;;  %v6006_v22 = vld [vmem:[#allocation26_spill] sm:$0xff] }
 0x1c2   : > { %1479 = vperm.xlu2 %3714, %v4099_v44  }
 0x1c3   : > { %1474 = vperm.xlu1 %3713, %v4075_v24  }
 0x1c4   : > { %v4510_v10 = vpop.permute.xlu2 %1214 }
 0x1c5   : > { %v4512_v29 = vpop.permute.xlu1 %1164 }
 0x1c6   : > { %5994 = vst [vmem:[#allocation122_spill] sm:$0xff] %v4512_v29  ;;  %1499 = vperm.xlu0 %3712, %v4120_v0   ;;  %v6003_v29 = vld [vmem:[#allocation21_spill] sm:$0xff] }
 0x1c8   : > { %v4515_v32 = vpop.permute.xlu0 %1189 }
 0x1c9   : > { %5995 = vst [vmem:[#allocation123_spill] sm:$0xff] %v4515_v32  ;;  %v6000_v32 = vld [vmem:[#allocation17_spill] sm:$0xff] }
 0x1ca   : > { %1494 = vperm.xlu2 %3714, %v4124_v45  }
 0x1cb   : > { %1489 = vperm.xlu1 %3713, %v4090_v35   ;;  %v5999_v35 = vld [vmem:[#allocation24_spill] sm:$0xff] }
 0x1cc   : > { %v4519_v17 = vpop.permute.xlu2 %1229 }
 0x1cd   : > { %v4521_v41 = vpop.permute.xlu1 %1179 }
 0x1ce   : > { %5996 = vst [vmem:[#allocation124_spill] sm:$0xff] %v4521_v41  ;;  %1514 = vperm.xlu0 %3712, %v4151_v33  }
 0x1d0   : > { %v4524_v44 = vpop.permute.xlu0 %1204 }
 0x1d1   : > { %5997 = vst [vmem:[#allocation125_spill] sm:$0xff] %v4524_v44  ;;  %v6001_v44 = vld [vmem:[#allocation29_spill] sm:$0xff] }
 0x1d2   : > { %1509 = vperm.xlu2 %3714, %v4155_v39  }
 0x1d3   : > { %1504 = vperm.xlu1 %3713, %v4105_v47   ;;  %v6002_v47 = vld [vmem:[#allocation30_spill] sm:$0xff] }
 0x1d4   : > { %v4528_v24 = vpop.permute.xlu2 %1244 }
 0x1d5   : > { %v4530_v0 = vpop.permute.xlu1 %1194 }
 0x1d6   : > { %5998 = vst [vmem:[#allocation126_spill] sm:$0xff] %v4530_v0  ;;  %1529 = vperm.xlu0 %3712, %v4178_v27   ;;  %v1398_v0 = vld [vmem:[#allocation2 + $0x298] sm:$0xff] }
 0x1d8   : > { %v4533_v45 = vpop.permute.xlu0 %1219 }
 0x1da   : > { %1524 = vperm.xlu2 %3714, %v5999_v35   ;;  %v1397_v35 = vld [vmem:[#allocation2 + $0x290] sm:$0xff] }
 0x1db   : > { %1519 = vperm.xlu1 %3713, %v6000_v32  }
 0x1dc   : > { %v4537_v41 = vpop.permute.xlu2 %1259 }
 0x1dd   : > { %v4539_v33 = vpop.permute.xlu1 %1209 }
 0x1de   : > { %1544 = vperm.xlu0 %3712, %v6001_v44  }
 0x1e0   : > { %v4542_v39 = vpop.permute.xlu0 %1234 }
 0x1e2   : > { %1539 = vperm.xlu2 %3714, %v6002_v47  }
 0x1e3   : > { %1534 = vperm.xlu1 %3713, %v6003_v29   ;;  %v6009_v29 = vld [vmem:[#allocation39_spill] sm:$0xff] }
 0x1e4   : > { %v4546_v27 = vpop.permute.xlu2 %1274 }
 0x1e5   : > { %6004 = vst [vmem:[#allocation24_spill] sm:$0xff] %v4546_v27  ;;  %v4548_v38 = vpop.permute.xlu1 %1224  ;;  %v3693_v27 = vld [vmem:[%s5840_s1 + $0x4] sm:$0x1] }
 0x1e6   : > { %1559 = vperm.xlu0 %3712, %v1398_v0  }
 0x1e8   : > { %v4550_v32 = vpop.permute.xlu0 %1249 }
 0x1e9   : > { %6005 = vst [vmem:[#allocation17_spill] sm:$0xff] %v4550_v32 }
 0x1ea   : > { %1554 = vperm.xlu2 %3714, %v1397_v35  }
 0x1eb   : > { %1549 = vperm.xlu1 %3713, %v6006_v22   ;;  %v6014_v22 = vld [vmem:[#allocation45_spill] sm:$0xff] }
 0x1ec   : > { %v4553_v40 = vpop.permute.xlu2 %1289 }
 0x1ed   : > { %6007 = vst [vmem:[#allocation29_spill] sm:$0xff] %v4553_v40  ;;  %v4555_v44 = vpop.permute.xlu1 %1239  ;;  %v1891_v40 = vld [vmem:[#allocation2 + $0x8f] sm:$0xff] }
 0x1ee   : > { %1674 = vperm.xlu0 %3712, %v4217_v11  }
 0x1f0   : > { %v4558_v47 = vpop.permute.xlu0 %1264 }
 0x1f1   : > { %6008 = vst [vmem:[#allocation30_spill] sm:$0xff] %v4558_v47 }
 0x1f2   : > { %1669 = vperm.xlu2 %3714, %v6009_v29  }
 0x1f3   : > { %1664 = vperm.xlu1 %3713, %v6010_v21   ;;  %v6019_v21 = vld [vmem:[#allocation51_spill] sm:$0xff] }
 0x1f4   : > { %v4562_v6 = vpop.permute.xlu2 %1404 }
 0x1f5   : > { %6011 = vst [vmem:[#allocation21_spill] sm:$0xff] %v4562_v6  ;;  %v4564_v0 = vpop.permute.xlu1 %1254  ;;  %v6022_v6 = vld [vmem:[#allocation56_spill] sm:$0xff] }
 0x1f6   : > { %1689 = vperm.xlu0 %3712, %v6012_v16  }
 0x1f8   : > { %v4567_v35 = vpop.permute.xlu0 %1279 }
 0x1f9   : > { %6013 = vst [vmem:[#allocation26_spill] sm:$0xff] %v4567_v35 }
 0x1fa   : > { %1684 = vperm.xlu2 %3714, %v6014_v22  }
 0x1fb   : > { %1679 = vperm.xlu1 %3713, %v6015_v49   ;;  %v6024_v49 = vld [vmem:[#allocation57_spill] sm:$0xff] }
 0x1fc   : > { %v4571_v15 = vpop.permute.xlu2 %1419 }
 0x1fd   : > { %6016 = vst [vmem:[#allocation39_spill] sm:$0xff] %v4571_v15  ;;  %v4573_v11 = vpop.permute.xlu1 %1269  ;;  %v6025_v15 = vld [vmem:[#allocation47_spill] sm:$0xff] }
 0x1fe   : > { %1704 = vperm.xlu0 %3712, %v6017_v25  }
 0x200   : > { %v4576_v29 = vpop.permute.xlu0 %1294 }
 0x201   : > { %6018 = vst [vmem:[#allocation32_spill] sm:$0xff] %v4576_v29  ;;  %v6028_v29 = vld [vmem:[#allocation62_spill] sm:$0xff] }
 0x202   : > { %1699 = vperm.xlu2 %3714, %v6019_v21  }
 0x203   : > { %1694 = vperm.xlu1 %3713, %v6020_v13   ;;  %v6030_v13 = vld [vmem:[#allocation63_spill] sm:$0xff] }
 0x204   : > { %v4580_v3 = vpop.permute.xlu2 %1434 }
 0x205   : > { %6021 = vst [vmem:[#allocation44_spill] sm:$0xff] %v4580_v3  ;;  %v4582_v16 = vpop.permute.xlu1 %1284  ;;  %v6031_v3 = vld [vmem:[#allocation53_spill] sm:$0xff] }
 0x206   : > { %1719 = vperm.xlu0 %3712, %v6022_v6  }
 0x208   : > { %v4585_v22 = vpop.permute.xlu0 %1409 }
 0x209   : > { %6023 = vst [vmem:[#allocation45_spill] sm:$0xff] %v4585_v22  ;;  %v6034_v22 = vld [vmem:[#allocation68_spill] sm:$0xff] }
 0x20a   : > { %1714 = vperm.xlu2 %3714, %v6024_v49  }
 0x20b   : > { %1709 = vperm.xlu1 %3713, %v6025_v15   ;;  %v6036_v15 = vld [vmem:[#allocation69_spill] sm:$0xff] }
 0x20c   : > { %v4589_v34 = vpop.permute.xlu2 %1449 }
 0x20d   : > { %6026 = vst [vmem:[#allocation36_spill] sm:$0xff] %v4589_v34  ;;  %v4591_v25 = vpop.permute.xlu1 %1299  ;;  %v6037_v34 = vld [vmem:[#allocation59_spill] sm:$0xff] }
 0x20e   : > { %6027 = vst [vmem:[#allocation50_spill] sm:$0xff] %v4591_v25  ;;  %1734 = vperm.xlu0 %3712, %v6028_v29  }
 0x210   : > { %v4594_v21 = vpop.permute.xlu0 %1424 }
 0x211   : > { %6029 = vst [vmem:[#allocation51_spill] sm:$0xff] %v4594_v21  ;;  %v6039_v21 = vld [vmem:[#allocation74_spill] sm:$0xff] }
 0x212   : > { %1729 = vperm.xlu2 %3714, %v6030_v13  }
 0x213   : > { %1724 = vperm.xlu1 %3713, %v6031_v3   ;;  %v6041_v3 = vld [vmem:[#allocation75_spill] sm:$0xff] }
 0x214   : > { %v4598_v9 = vpop.permute.xlu2 %1464 }
 0x215   : > { %6032 = vst [vmem:[#allocation41_spill] sm:$0xff] %v4598_v9  ;;  %v4600_v6 = vpop.permute.xlu1 %1414  ;;  %v6042_v9 = vld [vmem:[#allocation65_spill] sm:$0xff] }
 0x216   : > { %6033 = vst [vmem:[#allocation56_spill] sm:$0xff] %v4600_v6  ;;  %1749 = vperm.xlu0 %3712, %v6034_v22  }
 0x218   : > { %v4603_v49 = vpop.permute.xlu0 %1439 }
 0x219   : > { %6035 = vst [vmem:[#allocation57_spill] sm:$0xff] %v4603_v49  ;;  %v6045_v49 = vld [vmem:[#allocation71_spill] sm:$0xff] }
 0x21a   : > { %1744 = vperm.xlu2 %3714, %v6036_v15  }
 0x21b   : > { %1739 = vperm.xlu1 %3713, %v6037_v34   ;;  %v6044_v34 = vld [vmem:[#allocation80_spill] sm:$0xff] }
 0x21c   : > { %v4607_v35 = vpop.permute.xlu2 %1479 }
 0x21d   : > { %v4609_v29 = vpop.permute.xlu1 %1429 }
 0x21e   : > { %6038 = vst [vmem:[#allocation47_spill] sm:$0xff] %v4609_v29  ;;  %1764 = vperm.xlu0 %3712, %v6039_v21  }
 0x220   : > { %v4612_v13 = vpop.permute.xlu0 %1454 }
 0x221   : > { %6040 = vst [vmem:[#allocation62_spill] sm:$0xff] %v4612_v13  ;;  %v6048_v13 = vld [vmem:[#allocation85_spill] sm:$0xff] }
 0x222   : > { %1759 = vperm.xlu2 %3714, %v6041_v3  }
 0x223   : > { %1754 = vperm.xlu1 %3713, %v6042_v9   ;;  %v6049_v9 = vld [vmem:[#allocation77_spill] sm:$0xff] }
 0x224   : > { %v4616_v36 = vpop.permute.xlu2 %1494 }
 0x225   : > { %v4618_v22 = vpop.permute.xlu1 %1444 }
 0x226   : > { %6043 = vst [vmem:[#allocation63_spill] sm:$0xff] %v4618_v22  ;;  %1779 = vperm.xlu0 %3712, %v4322_v50  }
 0x228   : > { %v4621_v15 = vpop.permute.xlu0 %1469 }
 0x22a   : > { %1774 = vperm.xlu2 %3714, %v6044_v34  }
 0x22b   : > { %1769 = vperm.xlu1 %3713, %v6045_v49   ;;  %v6051_v49 = vld [vmem:[#allocation82_spill] sm:$0xff] }
 0x22c   : > { %v4625_v29 = vpop.permute.xlu2 %1509 }
 0x22d   : > { %6046 = vst [vmem:[#allocation53_spill] sm:$0xff] %v4625_v29  ;;  %v4627_v21 = vpop.permute.xlu1 %1459  ;;  %v1898_v29 = vld [vmem:[#allocation2 + $0x127] sm:$0xff] }
 0x22e   : > { %6047 = vst [vmem:[#allocation68_spill] sm:$0xff] %v4627_v21  ;;  %1794 = vperm.xlu0 %3712, %v6048_v13   ;;  %v1888_v21 = vld [vmem:[#allocation2 + $0x5f] sm:$0xff] }
 0x230   : > { %v4630_v3 = vpop.permute.xlu0 %1484 }
 0x232   : > { %1789 = vperm.xlu2 %3714, %v4339_v19   ;;  %v1658_v19 = vld [vmem:[#allocation2 + $0x299] sm:$0xff] }
 0x233   : > { %1784 = vperm.xlu1 %3713, %v6049_v9   ;;  %v1657_v9 = vld [vmem:[#allocation2 + $0x291] sm:$0xff] }
 0x234   : > { %v4634_v22 = vpop.permute.xlu2 %1524 }
 0x235   : > { %6050 = vst [vmem:[#allocation69_spill] sm:$0xff] %v4634_v22  ;;  %v4636_v50 = vpop.permute.xlu1 %1474 }
 0x236   : > { %1809 = vperm.xlu0 %3712, %v4350_v18  }
 0x238   : > { %v4639_v34 = vpop.permute.xlu0 %1499 }
 0x23a   : > { %1804 = vperm.xlu2 %3714, %v4352_v7   ;;  %v1890_v7 = vld [vmem:[#allocation2 + $0x87] sm:$0xff] }
 0x23b   : > { %1799 = vperm.xlu1 %3713, %v6051_v49   ;;  %v1889_v49 = vld [vmem:[#allocation2 + $0x67] sm:$0xff] }
 0x23c   : > { %v4643_v13 = vpop.permute.xlu2 %1539 }
 0x23d   : > { %6052 = vst [vmem:[#allocation59_spill] sm:$0xff] %v4643_v13  ;;  %v4645_v8 = vpop.permute.xlu1 %1489  ;;  %v1894_v13 = vld [vmem:[#allocation2 + $0xd7] sm:$0xff] }
 0x23e   : > { %1925 = vperm.xlu0 %3712, %v1888_v21  }
 0x240   : > { %v4647_v53 = vpop.permute.xlu0 %1514 }
 0x242   : > { %1819 = vperm.xlu2 %3714, %v1658_v19   ;;  %v1893_v19 = vld [vmem:[#allocation2 + $0xb7] sm:$0xff] }
 0x243   : > { %1814 = vperm.xlu1 %3713, %v1657_v9   ;;  %v1892_v9 = vld [vmem:[#allocation2 + $0xaf] sm:$0xff] }
 0x244   : > { %v4649_v18 = vpop.permute.xlu2 %1554 }
 0x245   : > { %6053 = vst [vmem:[#allocation74_spill] sm:$0xff] %v4649_v18  ;;  %v4651_v22 = vpop.permute.xlu1 %1504  ;;  %v1897_v18 = vld [vmem:[#allocation2 + $0x107] sm:$0xff] }
 0x246   : > { %1940 = vperm.xlu0 %3712, %v1891_v40  }
 0x248   : > { %v4653_v28 = vpop.permute.xlu0 %1529 }
 0x24a   : > { %1935 = vperm.xlu2 %3714, %v1890_v7   ;;  %v1896_v7 = vld [vmem:[#allocation2 + $0xff] sm:$0xff] }
 0x24b   : > { %1930 = vperm.xlu1 %3713, %v1889_v49   ;;  %v1895_v49 = vld [vmem:[#allocation2 + $0xdf] sm:$0xff] }
 0x24c   : > { %v4655_v21 = vpop.permute.xlu2 %1669 }
 0x24d   : > { %6054 = vst [vmem:[#allocation75_spill] sm:$0xff] %v4655_v21  ;;  %v4657_v47 = vpop.permute.xlu1 %1519  ;;  %v1900_v21 = vld [vmem:[#allocation2 + $0x14f] sm:$0xff] }
 0x24e   : > { %6055 = vst [vmem:[#allocation65_spill] sm:$0xff] %v4657_v47  ;;  %1955 = vperm.xlu0 %3712, %v1894_v13   ;;  %v3690_v13 = vld [vmem:[%s5840_s1 + $0x1] sm:$0x1] }
 0x24f   : > { %v6097_v47 = vld [vmem:[#allocation25_spill] sm:$0xff] }
 0x250   : > { %v4659_v5 = vpop.permute.xlu0 %1544 }
 0x252   : > { %1950 = vperm.xlu2 %3714, %v1893_v19   ;;  %v360_v19 = vld [vmem:[%s5840_s1] sm:$0x1] }
 0x253   : > { %1945 = vperm.xlu1 %3713, %v1892_v9   ;;  %v3691_v9 = vld [vmem:[%s5840_s1 + $0x2] sm:$0x1] }
 0x254   : > { %v4661_v40 = vpop.permute.xlu2 %1684 }
 0x255   : > { %6056 = vst [vmem:[#allocation80_spill] sm:$0xff] %v4661_v40  ;;  %v4663_v6 = vpop.permute.xlu1 %1534  ;;  %v621_v40 = vunpack.c.l.bf16 %v3690_v13 }
 0x256   : > { %6057 = vst [vmem:[#allocation71_spill] sm:$0xff] %v4663_v6  ;;  %1970 = vperm.xlu0 %3712, %v1897_v18   ;;  %v3692_v6 = vld [vmem:[%s5840_s1 + $0x3] sm:$0x1] }
 0x257   : > { %v1141_v13 = vunpack.c.l.bf16 %v3692_v6 }
 0x258   : > { %v4665_v30 = vpop.permute.xlu0 %1559 }
 0x259   : > { %6058 = vst [vmem:[#allocation85_spill] sm:$0xff] %v4665_v30  ;;  %v4688_v30 = vperm.slane %v621_v40, 0  ;;  %v6064_v40 = vld [vmem:[#allocation23_spill] sm:$0xff] }
 0x25a   : > { %1965 = vperm.xlu2 %3714, %v1896_v7   ;;  %v361_v7 = vunpack.c.l.bf16 %v360_v19  ;;  %v1401_v19 = vunpack.c.l.bf16 %v3693_v27 }
 0x25b   : > { %1960 = vperm.xlu1 %3713, %v1895_v49   ;;  %v881_v49 = vunpack.c.l.bf16 %v3691_v9  ;;  %v1903_v9 = vld [vmem:[#allocation2 + $0x17f] sm:$0xff] }
 0x25c   : > { %v4676_v18 = vpop.permute.xlu2 %1699 }
 0x25d   : > { %6059 = vst [vmem:[#allocation77_spill] sm:$0xff] %v4676_v18  ;;  %v4678_v4 = vpop.permute.xlu1 %1549  ;;  %v4690_v18 = vperm.slane %v361_v7, 0  ;;  %v4705_v7 = vperm.slane %v1141_v13, 0  ;;  %v6067_v13 = vld [vmem:[#allocation81_spill] sm:$0xff] }
 0x25e   : > { %6060 = vst [vmem:[#allocation82_spill] sm:$0xff] %v4678_v4  ;;  %1985 = vperm.xlu0 %3712, %v1900_v21   ;;  %v6062_v4 = vld [vmem:[#allocation76_spill] sm:$0xff]  ;;  %v4694_v21 = vperm.slane %v881_v49, 0  ;;  %v4711_v49 = vperm.slane %v1401_v19, 0 }
 0x25f   : > { %v796_v32 = vmul.f32 %v4688_v30, %v6062_v4  ;;  %v536_v6 = vmul.f32 %v4690_v18, %v6064_v40  ;;  %v4807_v31 = vmul.f32 %v4690_v18, %v6097_v47  ;;  %v6101_v47 = vld [vmem:[#allocation27_spill] sm:$0xff] }
 0x260   : > { %v4686_v20 = vpop.permute.xlu0 %1674  ;;  %v4822_v51 = vmul.f32 %v4690_v18, %v6101_v47  ;;  %v1911_v47 = vld [vmem:[#allocation2 + $0x21f] sm:$0xff] }
 0x261   : > { %6061 = vst [vmem:[#allocation127_spill] sm:$0xff] %v4686_v20  ;;  %v828_v27 = vadd.f32 %v796_v32, %v536_v6  ;;  %v1661_v20 = vunpack.c.l.bf16 %v3694_v60  ;;  %v6068_v6 = vld [vmem:[#allocation28_spill] sm:$0xff] }
 0x262   : > { %1980 = vperm.xlu2 %3714, %v1899_v2   ;;  %v1056_v2 = vmul.f32 %v4694_v21, %v4403_v37  ;;  %v1576_v37 = vmul.f32 %v4711_v49, %v4621_v15  ;;  %v539_v60 = vmul.f32 %v4690_v18, %v6068_v6 }
 0x263   : > { %1975 = vperm.xlu1 %3713, %v1898_v29   ;;  %v1316_v29 = vmul.f32 %v4705_v7, %v4539_v33  ;;  %v4719_v32 = vperm.slane %v1661_v20, 0  ;;  %v1906_v33 = vld [vmem:[#allocation2 + $0x1c7] sm:$0xff]  ;;  %v1319_v20 = vmul.f32 %v4705_v7, %v4548_v38 }
 0x264   : > { %v4699_v25 = vpop.permute.xlu2 %1714  ;;  %v1088_v40 = vadd.f32 %v1056_v2, %v828_v27 }
 0x265   : > { %6063 = vst [vmem:[#allocation76_spill] sm:$0xff] %v4699_v25  ;;  %v4707_v4 = vpop.permute.xlu1 %1664  ;;  %v1901_v25 = vld [vmem:[#allocation2 + $0x157] sm:$0xff] }
 0x266   : > { %6065 = vst [vmem:[#allocation23_spill] sm:$0xff] %v4707_v4  ;;  %2000 = vperm.xlu0 %3712, %v1903_v9   ;;  %v799_v4 = vmul.f32 %v4688_v30, %v6067_v13  ;;  %v1348_v9 = vadd.f32 %v1316_v29, %v1088_v40  ;;  %v1904_v40 = vld [vmem:[#allocation2 + $0x19f] sm:$0xff] }
 0x268   : > { %v4713_v23 = vpop.permute.xlu0 %1689  ;;  %v1608_v2 = vadd.f32 %v1576_v37, %v1348_v9  ;;  %v6072_v37 = vld [vmem:[#allocation86_spill] sm:$0xff] }
 0x269   : > { %6066 = vst [vmem:[#allocation128_spill] sm:$0xff] %v4713_v23  ;;  %v1059_v23 = vmul.f32 %v4694_v21, %v4416_v48  ;;  %v1579_v48 = vmul.f32 %v4711_v49, %v4630_v3  ;;  %v802_v9 = vmul.f32 %v4688_v30, %v6072_v37  ;;  %v6075_v3 = vld [vmem:[#allocation4_spill] sm:$0xff]  ;;  %v6077_v37 = vld [vmem:[#allocation5_spill] sm:$0xff] }
 0x26a   : > { %1995 = vperm.xlu2 %3714, %v1902_v55   ;;  %v831_v55 = vadd.f32 %v799_v4, %v539_v60  ;;  %v1909_v4 = vld [vmem:[#allocation2 + $0x1f7] sm:$0xff]  ;;  %v6073_v60 = vld [vmem:[#allocation34_spill] sm:$0xff] }
 0x26b   : > { %1990 = vperm.xlu1 %3713, %v1901_v25   ;;  %v1905_v25 = vld [vmem:[#allocation2 + $0x1a7] sm:$0xff]  ;;  %v542_v38 = vmul.f32 %v4690_v18, %v6073_v60  ;;  %v6080_v60 = vld [vmem:[#allocation84_spill] sm:$0xff] }
 0x26c   : > { %v1730_v19 = vpop.permute.xlu2 %1729  ;;  %v1091_v6 = vadd.f32 %v1059_v23, %v831_v55 }
 0x26d   : > { %v1836_v27 = vmul.f32 %v4719_v32, %v1730_v19  ;;  %v4726_v15 = vpop.permute.xlu1 %1679 }
 0x26e   : > { %6069 = vst [vmem:[#allocation81_spill] sm:$0xff] %v4726_v15  ;;  %2015 = vperm.xlu0 %3712, %v1906_v33   ;;  %v1351_v19 = vadd.f32 %v1319_v20, %v1091_v6  ;;  %v523_v20 = vmul.f32 %v4690_v18, %v6077_v37  ;;  %v6084_v37 = vld [vmem:[#allocation8_spill] sm:$0xff] }
 0x26f   : > { %v4730_v29 = vadd.f32 %v1836_v27, %v1608_v2  ;;  %v1062_v2 = vmul.f32 %v4694_v21, %v4425_v52  ;;  %v6081_v52 = vld [vmem:[#allocation6_spill] sm:$0xff]  ;;  %v4767_v15 = vmul.f32 %v4690_v18, %v6084_v37 }
 0x270   : > { %v4732_v13 = vpop.permute.xlu0 %1704  ;;  %v1611_v27 = vadd.f32 %v1579_v48, %v1351_v19  ;;  %v4759_v48 = vmul.f32 %v4690_v18, %v6081_v52  ;;  %v834_v19 = vadd.f32 %v802_v9, %v542_v38  ;;  %v1057_v9 = vmul.f32 %v4694_v21, %v4430_v46  ;;  %v1907_v38 = vld [vmem:[#allocation2 + $0x1cf] sm:$0xff] }
 0x271   : > { %6070 = vst [vmem:[#allocation28_spill] sm:$0xff] %v4730_v29  ;;  %v797_v29 = vmul.f32 %v4688_v30, %v6080_v60 }
 0x272   : > { %6071 = vst [vmem:[#allocation129_spill] sm:$0xff] %v4732_v13  ;;  %2010 = vperm.xlu2 %3714, %v1905_v25   ;;  %v4747_v25 = vmul.f32 %v4690_v18, %v6075_v3  ;;  %v6093_v13 = vld [vmem:[#allocation18_spill] sm:$0xff] }
 0x273   : > { %2005 = vperm.xlu1 %3713, %v1904_v40   ;;  %v6078_v40 = vld [vmem:[#allocation7_spill] sm:$0xff]  ;;  %6082 = vst [vmem:[#allocation5_spill] sm:$0xff] %v4759_v48  ;;  %v4791_v46 = vmul.f32 %v4690_v18, %v6093_v13  ;;  %v6094_v48 = vld [vmem:[#allocation20_spill] sm:$0xff] }
 0x274   : > { %v1745_v33 = vpop.permute.xlu2 %1744  ;;  %6076 = vst [vmem:[#allocation34_spill] sm:$0xff] %v4747_v25  ;;  %v4753_v6 = vmul.f32 %v4690_v18, %v6078_v40  ;;  %v6086_v40 = vld [vmem:[#allocation9_spill] sm:$0xff]  ;;  %v6095_v25 = vld [vmem:[#allocation22_spill] sm:$0xff] }
 0x275   : > { %v1839_v23 = vmul.f32 %v4719_v32, %v1745_v33  ;;  %v4743_v55 = vpop.permute.xlu1 %1694  ;;  %v1322_v33 = vmul.f32 %v4705_v7, %v4555_v44  ;;  %6085 = vst [vmem:[#allocation84_spill] sm:$0xff] %v4767_v15  ;;  %v6090_v44 = vld [vmem:[#allocation12_spill] sm:$0xff]  ;;  %v6092_v15 = vld [vmem:[#allocation14_spill] sm:$0xff] }
 0x276   : > { %6074 = vst [vmem:[#allocation86_spill] sm:$0xff] %v4743_v55  ;;  %2030 = vperm.xlu0 %3712, %v1909_v4   ;;  %v1908_v55 = vld [vmem:[#allocation2 + $0x1ef] sm:$0xff]  ;;  %v1912_v13 = vld [vmem:[#allocation2 + $0x23f] sm:$0xff] }
 0x277   : > { %6079 = vst [vmem:[#allocation4_spill] sm:$0xff] %v4753_v6  ;;  %v4763_v3 = vadd.f32 %v1839_v23, %v1611_v27  ;;  %v4771_v6 = vmul.f32 %v4690_v18, %v6086_v40  ;;  %v6088_v4 = vld [vmem:[#allocation11_spill] sm:$0xff]  ;;  %v526_v27 = vmul.f32 %v4690_v18, %v6090_v44  ;;  %v6091_v23 = vld [vmem:[#allocation10_spill] sm:$0xff]  ;;  %v1582_v40 = vmul.f32 %v4711_v49, %v4639_v34 }
 0x278   : > { %v537_v60 = vmul.f32 %v4690_v18, %v6088_v4  ;;  %v4777_v52 = vpop.permute.xlu0 %1719  ;;  %v4783_v37 = vmul.f32 %v4690_v18, %v6091_v23  ;;  %v540_v4 = vmul.f32 %v4690_v18, %v6092_v15  ;;  %v4799_v23 = vmul.f32 %v4690_v18, %v6095_v25  ;;  %6102 = vst [vmem:[#allocation11_spill] sm:$0xff] %v4822_v51 }
 0x279   : > { %6083 = vst [vmem:[#allocation7_spill] sm:$0xff] %v4763_v3  ;;  %v1094_v3 = vadd.f32 %v1062_v2, %v834_v19  ;;  %v6096_v2 = vld [vmem:[#allocation89_spill] sm:$0xff]  ;;  %v1317_v15 = vmul.f32 %v4705_v7, %v4510_v10  ;;  %v1577_v10 = vmul.f32 %v4711_v49, %v4636_v50 }
 0x27a   : > { %6087 = vst [vmem:[#allocation6_spill] sm:$0xff] %v4771_v6  ;;  %v829_v44 = vadd.f32 %v797_v29, %v537_v60  ;;  %2025 = vperm.xlu2 %3714, %v1908_v55   ;;  %v805_v34 = vmul.f32 %v4688_v30, %v6096_v2  ;;  %v6099_v55 = vld [vmem:[#allocation38_spill] sm:$0xff]  ;;  %v1065_v2 = vmul.f32 %v4694_v21, %v4434_v42  ;;  %v6107_v42 = vld [vmem:[#allocation88_spill] sm:$0xff] }
 0x27b   : > { %6089 = vst [vmem:[#allocation8_spill] sm:$0xff] %v4777_v52  ;;  %v4795_v52 = vmul.f32 %v4690_v18, %v6094_v48  ;;  %v1354_v19 = vadd.f32 %v1322_v33, %v1094_v3  ;;  %2020 = vperm.xlu1 %3713, %v1907_v38   ;;  %v6098_v48 = vld [vmem:[#allocation37_spill] sm:$0xff]  ;;  %v545_v25 = vmul.f32 %v4690_v18, %v6099_v55 }
 0x27c   : > { %v783_v29 = vmul.f32 %v4688_v30, %v6098_v48  ;;  %v1089_v60 = vadd.f32 %v1057_v9, %v829_v44  ;;  %v1760_v6 = vpop.permute.xlu2 %1759  ;;  %v6103_v48 = vld [vmem:[#allocation33_spill] sm:$0xff]  ;;  %v6105_v9 = vld [vmem:[#allocation31_spill] sm:$0xff]  ;;  %v800_v50 = vmul.f32 %v4688_v30, %v6107_v42 }
 0x27d   : > { %v1614_v33 = vadd.f32 %v1582_v40, %v1354_v19  ;;  %v1842_v3 = vmul.f32 %v4719_v32, %v1760_v6  ;;  %v4818_v38 = vpop.permute.xlu1 %1709  ;;  %v4826_v55 = vmul.f32 %v4690_v18, %v6103_v48  ;;  %v4830_v44 = vmul.f32 %v4690_v18, %v6105_v9  ;;  %v6108_v48 = vld [vmem:[#allocation35_spill] sm:$0xff]  ;;  %v6109_v9 = vld [vmem:[#allocation42_spill] sm:$0xff] }
 0x27e   : > { %6100 = vst [vmem:[#allocation9_spill] sm:$0xff] %v4818_v38  ;;  %2045 = vperm.xlu0 %3712, %v1912_v13   ;;  %v837_v40 = vadd.f32 %v805_v34, %v545_v25  ;;  %v1349_v6 = vadd.f32 %v1317_v15, %v1089_v60  ;;  %v1325_v19 = vmul.f32 %v4705_v7, %v4564_v0  ;;  %v1910_v34 = vld [vmem:[#allocation2 + $0x217] sm:$0xff] }
 0x27f   : > { %6104 = vst [vmem:[#allocation12_spill] sm:$0xff] %v4826_v55  ;;  %v4836_v38 = vadd.f32 %v1842_v3, %v1614_v33  ;;  %v4838_v51 = vadd.f32 %v783_v29, %v523_v20  ;;  %v4842_v55 = vmul.f32 %v4690_v18, %v6108_v48  ;;  %v1060_v13 = vmul.f32 %v4694_v21, %v4439_v56  ;;  %v6110_v29 = vld [vmem:[#allocation43_spill] sm:$0xff]  ;;  %v6111_v3 = vld [vmem:[#allocation40_spill] sm:$0xff] }
 0x280   : > { %6106 = vst [vmem:[#allocation10_spill] sm:$0xff] %v4830_v44  ;;  %v786_v44 = vmul.f32 %v4688_v30, %v6109_v9  ;;  %v1735_v15 = vpop.permute.xlu0 %1734  ;;  %v1097_v25 = vadd.f32 %v1065_v2, %v837_v40  ;;  %v1609_v60 = vadd.f32 %v1577_v10, %v1349_v6  ;;  %v1585_v0 = vmul.f32 %v4711_v49, %v4647_v53  ;;  %v6112_v48 = vld [vmem:[#allocation48_spill] sm:$0xff]  ;;  %v1915_v6 = vld [vmem:[#allocation2 + $0x26f] sm:$0xff] }
 0x281   : > { %v1837_v20 = vmul.f32 %v4719_v32, %v1735_v15  ;;  %v548_v33 = vmul.f32 %v4690_v18, %v6110_v29  ;;  %v4855_v42 = vmul.f32 %v4690_v18, %v6111_v3  ;;  %v789_v9 = vmul.f32 %v4688_v30, %v6112_v48  ;;  %v6113_v29 = vld [vmem:[#allocation46_spill] sm:$0xff] }
 0x282   : > { %v832_v56 = vadd.f32 %v800_v50, %v540_v4  ;;  %2040 = vperm.xlu2 %3714, %v1911_v47   ;;  %v808_v2 = vmul.f32 %v4688_v30, %v4363_v26  ;;  %v1320_v53 = vmul.f32 %v4705_v7, %v4519_v17  ;;  %v1357_v10 = vadd.f32 %v1325_v19, %v1097_v25  ;;  %v6114_v48 = vld [vmem:[#allocation66_spill] sm:$0xff]  ;;  %v6115_v25 = vld [vmem:[#allocation49_spill] sm:$0xff] }
 0x283   : > { %2035 = vperm.xlu1 %3713, %v1910_v34   ;;  %v4863_v40 = vadd.f32 %v1837_v20, %v1609_v60  ;;  %v4865_v15 = vadd.f32 %v786_v44, %v526_v27  ;;  %v4869_v3 = vmul.f32 %v4690_v18, %v6113_v29  ;;  %v798_v4 = vmul.f32 %v4688_v30, %v6114_v48 }
 0x284   : > { %v1092_v50 = vadd.f32 %v1060_v13, %v832_v56  ;;  %v1775_v47 = vpop.permute.xlu2 %1774  ;;  %v1068_v26 = vmul.f32 %v4694_v21, %v4445_v58  ;;  %v1580_v17 = vmul.f32 %v4711_v49, %v4645_v8  ;;  %v1617_v19 = vadd.f32 %v1585_v0, %v1357_v10  ;;  %v1914_v10 = vld [vmem:[#allocation2 + $0x267] sm:$0xff] }
 0x285   : > { %v1845_v34 = vmul.f32 %v4719_v32, %v1775_v47  ;;  %v4878_v27 = vpop.permute.xlu1 %1724  ;;  %v4881_v44 = vadd.f32 %v789_v9, %v4783_v37  ;;  %v551_v60 = vmul.f32 %v4690_v18, %v6115_v25  ;;  %v803_v13 = vmul.f32 %v4688_v30, %v4360_v12  ;;  %v6116_v9 = vld [vmem:[#allocation72_spill] sm:$0xff] }
 0x286   : > { %v1058_v58 = vmul.f32 %v4694_v21, %v4447_v43  ;;  %2060 = vperm.xlu0 %3712, %v1915_v6   ;;  %v840_v20 = vadd.f32 %v808_v2, %v548_v33  ;;  %v1352_v8 = vadd.f32 %v1320_v53, %v1092_v50  ;;  %v1328_v0 = vmul.f32 %v4705_v7, %v4573_v11  ;;  %v1913_v6 = vld [vmem:[#allocation2 + $0x247] sm:$0xff]  ;;  %v6117_v50 = vld [vmem:[#allocation52_spill] sm:$0xff] }
 0x287   : > { %v4891_v56 = vadd.f32 %v1845_v34, %v1617_v19  ;;  %v830_v37 = vadd.f32 %v798_v4, %v4795_v52  ;;  %v801_v29 = vmul.f32 %v4688_v30, %v6116_v9  ;;  %v1063_v12 = vmul.f32 %v4694_v21, %v4450_v54  ;;  %v1918_v19 = vld [vmem:[#allocation2 + $0x2b7] sm:$0xff]  ;;  %v6118_v34 = vld [vmem:[#allocation61_spill] sm:$0xff] }
 0x288   : > { %v1318_v43 = vmul.f32 %v4705_v7, %v4533_v45  ;;  %v1750_v33 = vpop.permute.xlu0 %1749  ;;  %v1100_v2 = vadd.f32 %v1068_v26, %v840_v20  ;;  %v1612_v53 = vadd.f32 %v1580_v17, %v1352_v8  ;;  %v1588_v11 = vmul.f32 %v4711_v49, %v4653_v28 }
 0x289   : > { %v1840_v48 = vmul.f32 %v4719_v32, %v1750_v33  ;;  %v4905_v52 = vmul.f32 %v4688_v30, %v6117_v50  ;;  %v835_v4 = vadd.f32 %v803_v13, %v4791_v46  ;;  %v1090_v47 = vadd.f32 %v1058_v58, %v830_v37 }
 0x28a   : > { %v1578_v54 = vmul.f32 %v4711_v49, %v4607_v35  ;;  %2055 = vperm.xlu2 %3714, %v1914_v10   ;;  %v811_v45 = vmul.f32 %v4688_v30, %v4372_v63  ;;  %v1323_v26 = vmul.f32 %v4705_v7, %v4528_v24  ;;  %v1360_v28 = vadd.f32 %v1328_v0, %v1100_v2 }
 0x28b   : > { %2050 = vperm.xlu1 %3713, %v1913_v6   ;;  %v4914_v17 = vadd.f32 %v1840_v48, %v1612_v53  ;;  %v785_v25 = vmul.f32 %v4688_v30, %v6118_v34  ;;  %v833_v46 = vadd.f32 %v801_v29, %v4807_v31  ;;  %v1095_v13 = vadd.f32 %v1063_v12, %v835_v4  ;;  %v6120_v48 = vld [vmem:[#allocation55_spill] sm:$0xff]  ;;  %v6123_v34 = vld [vmem:[#allocation10_spill] sm:$0xff] }
 0x28c   : > { %v1350_v58 = vadd.f32 %v1318_v43, %v1090_v47  ;;  %v1790_v35 = vpop.permute.xlu2 %1789  ;;  %v1071_v20 = vmul.f32 %v4694_v21, %v4454_v59  ;;  %v1583_v63 = vmul.f32 %v4711_v49, %v4651_v22  ;;  %v1620_v24 = vadd.f32 %v1588_v11, %v1360_v28  ;;  %v6119_v43 = vld [vmem:[#allocation78_spill] sm:$0xff] }
 0x28d   : > { %v1848_v8 = vmul.f32 %v4719_v32, %v1790_v35  ;;  %v1740_v0 = vpop.permute.xlu1 %1739  ;;  %v806_v10 = vmul.f32 %v4688_v30, %v4369_v1  ;;  %v1061_v37 = vmul.f32 %v4694_v21, %v4456_v61  ;;  %v843_v29 = vadd.f32 %v811_v45, %v551_v60  ;;  %v6121_v45 = vld [vmem:[#allocation106_spill] sm:$0xff] }
 0x28e   : > { %v1610_v31 = vadd.f32 %v1578_v54, %v1350_v58  ;;  %v1838_v9 = vmul.f32 %v4719_v32, %v1740_v0  ;;  %2075 = vperm.xlu0 %3712, %v1918_v19   ;;  %v1355_v12 = vadd.f32 %v1323_v26, %v1095_v13  ;;  %v1331_v59 = vmul.f32 %v4705_v7, %v4582_v16  ;;  %v2149_v28 = vld [vmem:[#allocation2 + $0x68] sm:$0xff] }
 0x28f   : > { %v4931_v22 = vadd.f32 %v1848_v8, %v1620_v24  ;;  %v804_v6 = vmul.f32 %v4688_v30, %v6119_v43  ;;  %v1066_v1 = vmul.f32 %v4694_v21, %v4461_v62  ;;  %v1321_v61 = vmul.f32 %v4705_v7, %v4542_v39  ;;  %v6122_v19 = vld [vmem:[#allocation6_spill] sm:$0xff]  ;;  %v6126_v8 = vld [vmem:[#allocation93_spill] sm:$0xff] }
 0x290   : > { %v4939_v33 = vadd.f32 %v1838_v9, %v1610_v31  ;;  %v1765_v2 = vpop.permute.xlu0 %1764  ;;  %v1103_v53 = vadd.f32 %v1071_v20, %v843_v29  ;;  %v1615_v60 = vadd.f32 %v1583_v63, %v1355_v12  ;;  %v1591_v11 = vmul.f32 %v4711_v49, %v4659_v5  ;;  %v6128_v12 = vld [vmem:[#allocation50_spill] sm:$0xff] }
 0x291   : > { %v1843_v16 = vmul.f32 %v4719_v32, %v1765_v2  ;;  %v554_v50 = vmul.f32 %v4690_v18, %v6120_v48  ;;  %v838_v4 = vadd.f32 %v806_v10, %v4799_v23  ;;  %v1093_v47 = vadd.f32 %v1061_v37, %v833_v46  ;;  %v6127_v10 = vld [vmem:[#allocation108_spill] sm:$0xff]  ;;  %v6130_v2 = vld [vmem:[#allocation109_spill] sm:$0xff] }
 0x292   : > { %v1581_v62 = vmul.f32 %v4711_v49, %v4616_v36  ;;  %2070 = vperm.xlu2 %3714, %v4459_v57   ;;  %v814_v39 = vmul.f32 %v4688_v30, %v4381_v14  ;;  %v1326_v54 = vmul.f32 %v4705_v7, %v4537_v41  ;;  %v1363_v5 = vadd.f32 %v1331_v59, %v1103_v53  ;;  %v6124_v57 = vld [vmem:[#allocation107_spill] sm:$0xff]  ;;  %v6125_v14 = vld [vmem:[#allocation65_spill] sm:$0xff] }
 0x293   : > { %2065 = vperm.xlu1 %3713, %v6121_v45   ;;  %v4955_v26 = vadd.f32 %v1843_v16, %v1615_v60  ;;  %v817_v23 = vadd.f32 %v785_v25, %v6122_v19  ;;  %v836_v46 = vadd.f32 %v804_v6, %v6123_v34  ;;  %v1098_v13 = vadd.f32 %v1066_v1, %v838_v4  ;;  %v2148_v6 = vld [vmem:[#allocation2 + $0x60] sm:$0xff]  ;;  %v6129_v1 = vld [vmem:[#allocation83_spill] sm:$0xff] }
 0x294   : > { %v1353_v36 = vadd.f32 %v1321_v61, %v1093_v47  ;;  %v1805_v58 = vpop.permute.xlu2 %1804  ;;  %v1074_v35 = vmul.f32 %v4694_v21, %v6124_v57  ;;  %v1586_v20 = vmul.f32 %v4711_v49, %v6125_v14  ;;  %v1623_v41 = vadd.f32 %v1591_v11, %v1363_v5  ;;  %v6131_v60 = vld [vmem:[#allocation17_spill] sm:$0xff]  ;;  %v6133_v5 = vld [vmem:[#allocation11_spill] sm:$0xff]  ;;  %v6137_v14 = vld [vmem:[#allocation24_spill] sm:$0xff] }
 0x295   : > { %v1851_v63 = vmul.f32 %v4719_v32, %v1805_v58  ;;  %v1755_v24 = vpop.permute.xlu1 %1754  ;;  %v809_v0 = vmul.f32 %v4688_v30, %v6126_v8  ;;  %v1064_v25 = vmul.f32 %v4694_v21, %v6127_v10  ;;  %v846_v9 = vadd.f32 %v814_v39, %v554_v50  ;;  %v1919_v48 = vld [vmem:[#allocation2 + $0x2bf] sm:$0xff]  ;;  %v6136_v57 = vld [vmem:[#allocation67_spill] sm:$0xff]  ;;  %v6138_v8 = vld [vmem:[#allocation110_spill] sm:$0xff] }
 0x296   : > { %v1613_v37 = vadd.f32 %v1581_v62, %v1353_v36  ;;  %v1841_v31 = vmul.f32 %v4719_v32, %v1755_v24  ;;  %2190 = vperm.xlu0 %3712, %v2149_v28   ;;  %v1358_v29 = vadd.f32 %v1326_v54, %v1098_v13  ;;  %v1334_v59 = vmul.f32 %v4705_v7, %v6128_v12  ;;  %v6132_v62 = vld [vmem:[#allocation85_spill] sm:$0xff]  ;;  %v6134_v28 = vld [vmem:[#allocation96_spill] sm:$0xff]  ;;  %v2152_v24 = vld [vmem:[#allocation2 + $0xb0] sm:$0xff] }
 0x297   : > { %v4971_v43 = vadd.f32 %v1851_v63, %v1623_v41  ;;  %v807_v61 = vmul.f32 %v4688_v30, %v6129_v1  ;;  %v1069_v53 = vmul.f32 %v4694_v21, %v6130_v2  ;;  %v1324_v11 = vmul.f32 %v4705_v7, %v6131_v60  ;;  %v6135_v13 = vld [vmem:[#allocation53_spill] sm:$0xff]  ;;  %v6140_v2 = vld [vmem:[#allocation111_spill] sm:$0xff] }
 0x298   : > { %v4979_v16 = vadd.f32 %v1841_v31, %v1613_v37  ;;  %v1780_v50 = vpop.permute.xlu0 %1779  ;;  %v1106_v4 = vadd.f32 %v1074_v35, %v846_v9  ;;  %v1618_v47 = vadd.f32 %v1586_v20, %v1358_v29  ;;  %v1594_v39 = vmul.f32 %v4711_v49, %v6132_v62  ;;  %v3695_v58 = vld [vmem:[%s5840_s1 + $0x6] sm:$0x1]  ;;  %v6139_v31 = vld [vmem:[#allocation71_spill] sm:$0xff] }
 0x299   : > { %v1846_v54 = vmul.f32 %v4719_v32, %v1780_v50  ;;  %v841_v45 = vadd.f32 %v809_v0, %v6133_v5  ;;  %v1045_v19 = vmul.f32 %v4694_v21, %v6134_v28  ;;  %v1096_v34 = vadd.f32 %v1064_v25, %v836_v46  ;;  %v6142_v50 = vld [vmem:[#allocation56_spill] sm:$0xff]  ;;  %v2151_v62 = vld [vmem:[#allocation2 + $0x90] sm:$0xff]  ;;  %v6144_v5 = vld [vmem:[#allocation30_spill] sm:$0xff] }
 0x29a   : > { %v1584_v36 = vmul.f32 %v4711_v49, %v6135_v13  ;;  %2185 = vperm.xlu2 %3714, %v2148_v6   ;;  %v788_v35 = vmul.f32 %v4688_v30, %v6136_v57  ;;  %v1329_v20 = vmul.f32 %v4705_v7, %v6137_v14  ;;  %v1366_v41 = vadd.f32 %v1334_v59, %v1106_v4 }
 0x29b   : > { %2080 = vperm.xlu1 %3713, %v1919_v48   ;;  %v4996_v63 = vadd.f32 %v1846_v54, %v1618_v47  ;;  %v839_v46 = vadd.f32 %v807_v61, %v4842_v55  ;;  %v1305_v0 = vmul.f32 %v4705_v7, %v6138_v8  ;;  %v1101_v10 = vadd.f32 %v1069_v53, %v841_v45  ;;  %v6141_v61 = vld [vmem:[#allocation95_spill] sm:$0xff]  ;;  %v6143_v54 = vld [vmem:[#allocation112_spill] sm:$0xff] }
 0x29c   : > { %v1356_v25 = vadd.f32 %v1324_v11, %v1096_v34  ;;  %v1820_v37 = vpop.permute.xlu2 %1819  ;;  %v1589_v9 = vmul.f32 %v4711_v49, %v6139_v31  ;;  %v1626_v29 = vadd.f32 %v1594_v39, %v1366_v41  ;;  %v1922_v59 = vunpack.c.l.bf16 %v3695_v58 }
 0x29d   : > { %v1854_v12 = vmul.f32 %v4719_v32, %v1820_v37  ;;  %v1770_v6 = vpop.permute.xlu1 %1769  ;;  %v1077_v1 = vadd.f32 %v1045_v19, %v817_v23  ;;  %v1067_v60 = vmul.f32 %v4694_v21, %v6140_v2  ;;  %v812_v53 = vmul.f32 %v4688_v30, %v6141_v61  ;;  %v2150_v19 = vld [vmem:[#allocation2 + $0x88] sm:$0xff]  ;;  %v6149_v37 = vld [vmem:[#allocation12_spill] sm:$0xff]  ;;  %v6152_v2 = vld [vmem:[#allocation87_spill] sm:$0xff] }
 0x29e   : > { %v1616_v48 = vadd.f32 %v1584_v36, %v1356_v25  ;;  %v1844_v55 = vmul.f32 %v4719_v32, %v1770_v6  ;;  %2205 = vperm.xlu0 %3712, %v2152_v24   ;;  %v1361_v11 = vadd.f32 %v1329_v20, %v1101_v10  ;;  %v1565_v4 = vmul.f32 %v4711_v49, %v6142_v50  ;;  %v6145_v36 = vld [vmem:[#allocation127_spill] sm:$0xff]  ;;  %v6146_v20 = vld [vmem:[#allocation34_spill] sm:$0xff]  ;;  %v6148_v10 = vld [vmem:[#allocation69_spill] sm:$0xff] }
 0x29f   : > { %v5011_v47 = vadd.f32 %v1854_v12, %v1626_v29  ;;  %v1337_v39 = vadd.f32 %v1305_v0, %v1077_v1  ;;  %v1072_v23 = vmul.f32 %v4694_v21, %v6143_v54  ;;  %v1327_v45 = vmul.f32 %v4705_v7, %v6144_v5  ;;  %v6147_v24 = vld [vmem:[#allocation99_spill] sm:$0xff]  ;;  %v6151_v1 = vld [vmem:[#allocation73_spill] sm:$0xff]  ;;  %v6155_v5 = vld [vmem:[#allocation114_spill] sm:$0xff] }
 0x2a0   : > { %v5017_v28 = vadd.f32 %v1844_v55, %v1616_v48  ;;  %v1795_v34 = vpop.permute.xlu0 %1794  ;;  %v1621_v13 = vadd.f32 %v1589_v9, %v1361_v11  ;;  %v1825_v58 = vmul.f32 %v4719_v32, %v6145_v36  ;;  %v5021_v57 = vperm.slane %v1922_v59, 0  ;;  %v6150_v9 = vld [vmem:[#allocation29_spill] sm:$0xff]  ;;  %v6154_v11 = vld [vmem:[#allocation82_spill] sm:$0xff] }
 0x2a1   : > { %v1849_v14 = vmul.f32 %v4719_v32, %v1795_v34  ;;  %v820_v41 = vadd.f32 %v788_v35, %v6146_v20  ;;  %v1048_v8 = vmul.f32 %v4694_v21, %v6147_v24  ;;  %v1099_v0 = vadd.f32 %v1067_v60, %v839_v46  ;;  %v2155_v59 = vld [vmem:[#allocation2 + $0xe0] sm:$0xff]  ;;  %v6156_v36 = vld [vmem:[#allocation98_spill] sm:$0xff] }
 0x2a2   : > { %v1587_v25 = vmul.f32 %v4711_v49, %v6148_v10  ;;  %2200 = vperm.xlu2 %3714, %v2151_v62   ;;  %v844_v31 = vadd.f32 %v812_v53, %v6149_v37  ;;  %v1332_v29 = vmul.f32 %v4705_v7, %v6150_v9  ;;  %v1597_v12 = vadd.f32 %v1565_v4, %v1337_v39  ;;  %v6153_v60 = vld [vmem:[#allocation113_spill] sm:$0xff]  ;;  %v2153_v37 = vld [vmem:[#allocation2 + $0xb8] sm:$0xff]  ;;  %v6159_v9 = vld [vmem:[#allocation115_spill] sm:$0xff] }
 0x2a3   : > { %2195 = vperm.xlu1 %3713, %v2150_v19   ;;  %v5032_v6 = vadd.f32 %v1849_v14, %v1621_v13  ;;  %v791_v35 = vmul.f32 %v4688_v30, %v6151_v1  ;;  %v810_v46 = vmul.f32 %v4688_v30, %v6152_v2  ;;  %v1308_v48 = vmul.f32 %v4705_v7, %v6153_v60  ;;  %v6161_v60 = vld [vmem:[#allocation5_spill] sm:$0xff] }
 0x2a4   : > { %v1359_v55 = vadd.f32 %v1327_v45, %v1099_v0  ;;  %v1936_v61 = vpop.permute.xlu2 %1935  ;;  %v1104_v53 = vadd.f32 %v1072_v23, %v844_v31  ;;  %v1592_v50 = vmul.f32 %v4711_v49, %v6154_v11  ;;  %v1857_v4 = vadd.f32 %v1825_v58, %v1597_v12  ;;  %v6157_v23 = vld [vmem:[#allocation47_spill] sm:$0xff]  ;;  %v2154_v58 = vld [vmem:[#allocation2 + $0xd8] sm:$0xff] }
 0x2a5   : > { %v2086_v62 = vmul.f32 %v5021_v57, %v1936_v61  ;;  %v1785_v39 = vpop.permute.xlu1 %1784  ;;  %v1080_v54 = vadd.f32 %v1048_v8, %v820_v41  ;;  %v1070_v19 = vmul.f32 %v4694_v21, %v6155_v5  ;;  %v1043_v45 = vmul.f32 %v4694_v21, %v6156_v36  ;;  %v6158_v8 = vld [vmem:[#allocation26_spill] sm:$0xff]  ;;  %v6163_v61 = vld [vmem:[#allocation59_spill] sm:$0xff] }
 0x2a6   : > { %v1619_v34 = vadd.f32 %v1587_v25, %v1359_v55  ;;  %v1847_v13 = vmul.f32 %v4719_v32, %v1785_v39  ;;  %2220 = vperm.xlu0 %3712, %v2155_v59   ;;  %v1364_v14 = vadd.f32 %v1332_v29, %v1104_v53  ;;  %v1568_v20 = vmul.f32 %v4711_v49, %v6157_v23  ;;  %v6160_v59 = vld [vmem:[#allocation128_spill] sm:$0xff]  ;;  %v6165_v5 = vld [vmem:[#allocation79_spill] sm:$0xff] }
 0x2a7   : > { %v5050_v24 = vadd.f32 %v2086_v62, %v1857_v4  ;;  %v842_v0 = vadd.f32 %v810_v46, %v4855_v42  ;;  %v1340_v41 = vadd.f32 %v1308_v48, %v1080_v54  ;;  %v1330_v10 = vmul.f32 %v4705_v7, %v6158_v8  ;;  %v6162_v42 = vld [vmem:[#allocation101_spill] sm:$0xff]  ;;  %v2158_v54 = vld [vmem:[#allocation2 + $0x128] sm:$0xff] }
 0x2a8   : > { %v5055_v25 = vadd.f32 %v1847_v13, %v1619_v34  ;;  %v1810_v31 = vpop.permute.xlu0 %1809  ;;  %v1303_v12 = vmul.f32 %v4705_v7, %v6159_v9  ;;  %v1624_v29 = vadd.f32 %v1592_v50, %v1364_v14  ;;  %v1828_v1 = vmul.f32 %v4719_v32, %v6160_v59  ;;  %v6164_v4 = vld [vmem:[#allocation21_spill] sm:$0xff]  ;;  %v6166_v34 = vld [vmem:[#allocation90_spill] sm:$0xff]  ;;  %v6167_v13 = vld [vmem:[#allocation116_spill] sm:$0xff] }
 0x2a9   : > { %v1852_v2 = vmul.f32 %v4719_v32, %v1810_v31  ;;  %v823_v55 = vadd.f32 %v791_v35, %v6161_v60  ;;  %v1051_v46 = vmul.f32 %v4694_v21, %v6162_v42  ;;  %v1102_v48 = vadd.f32 %v1070_v19, %v842_v0  ;;  %v6170_v59 = vld [vmem:[#allocation100_spill] sm:$0xff] }
 0x2aa   : > { %v1590_v53 = vmul.f32 %v4711_v49, %v6163_v61  ;;  %2215 = vperm.xlu2 %3714, %v2154_v58   ;;  %v1075_v11 = vadd.f32 %v1043_v45, %v4838_v51  ;;  %v1563_v50 = vmul.f32 %v4711_v49, %v6164_v4  ;;  %v1600_v62 = vadd.f32 %v1568_v20, %v1340_v41  ;;  %v6168_v45 = vld [vmem:[#allocation23_spill] sm:$0xff] }
 0x2ab   : > { %2210 = vperm.xlu1 %3713, %v2153_v37   ;;  %v5070_v39 = vadd.f32 %v1852_v2, %v1624_v29  ;;  %v794_v35 = vmul.f32 %v4688_v30, %v6165_v5  ;;  %v813_v19 = vmul.f32 %v4688_v30, %v6166_v34  ;;  %v1311_v36 = vmul.f32 %v4705_v7, %v6167_v13  ;;  %v6169_v37 = vld [vmem:[#allocation117_spill] sm:$0xff] }
 0x2ac   : > { %v1362_v14 = vadd.f32 %v1330_v10, %v1102_v48  ;;  %v1951_v23 = vpop.permute.xlu2 %1950  ;;  %v1335_v51 = vadd.f32 %v1303_v12, %v1075_v11  ;;  %v1823_v58 = vmul.f32 %v4719_v32, %v6168_v45  ;;  %v1860_v20 = vadd.f32 %v1828_v1, %v1600_v62  ;;  %v6171_v12 = vld [vmem:[#allocation63_spill] sm:$0xff]  ;;  %v2157_v1 = vld [vmem:[#allocation2 + $0x108] sm:$0xff]  ;;  %v2156_v11 = vld [vmem:[#allocation2 + $0x100] sm:$0xff] }
 0x2ad   : > { %v2089_v0 = vmul.f32 %v5021_v57, %v1951_v23  ;;  %v1800_v41 = vpop.permute.xlu1 %1799  ;;  %v1083_v8 = vadd.f32 %v1051_v46, %v823_v55  ;;  %v1073_v31 = vmul.f32 %v4694_v21, %v6169_v37  ;;  %v1046_v10 = vmul.f32 %v4694_v21, %v6170_v59  ;;  %v6172_v46 = vld [vmem:[#allocation32_spill] sm:$0xff]  ;;  %v6173_v62 = vld [vmem:[#allocation118_spill] sm:$0xff]  ;;  %v6174_v5 = vld [vmem:[#allocation129_spill] sm:$0xff] }
 0x2ae   : > { %v1622_v9 = vadd.f32 %v1590_v53, %v1362_v14  ;;  %v1850_v29 = vmul.f32 %v4719_v32, %v1800_v41  ;;  %2235 = vperm.xlu0 %3712, %v2158_v54   ;;  %v1595_v2 = vadd.f32 %v1563_v50, %v1335_v51  ;;  %v1571_v60 = vmul.f32 %v4711_v49, %v6171_v12  ;;  %v6175_v14 = vld [vmem:[#allocation4_spill] sm:$0xff]  ;;  %v6177_v51 = vld [vmem:[#allocation74_spill] sm:$0xff] }
 0x2af   : > { %v5088_v42 = vadd.f32 %v2089_v0, %v1860_v20  ;;  %v845_v48 = vadd.f32 %v813_v19, %v4869_v3  ;;  %v1343_v55 = vadd.f32 %v1311_v36, %v1083_v8  ;;  %v1333_v61 = vmul.f32 %v4705_v7, %v6172_v46  ;;  %v6176_v19 = vld [vmem:[#allocation103_spill] sm:$0xff]  ;;  %v2161_v37 = vld [vmem:[#allocation2 + $0x158] sm:$0xff] }
 0x2b0   : > { %v5093_v53 = vadd.f32 %v1850_v29, %v1622_v9  ;;  %v1926_v4 = vpop.permute.xlu0 %1925  ;;  %v1306_v54 = vmul.f32 %v4705_v7, %v6173_v62  ;;  %v1855_v50 = vadd.f32 %v1823_v58, %v1595_v2  ;;  %v1831_v34 = vmul.f32 %v4719_v32, %v6174_v5  ;;  %v6178_v0 = vld [vmem:[#allocation39_spill] sm:$0xff]  ;;  %v6179_v9 = vld [vmem:[#allocation84_spill] sm:$0xff]  ;;  %v6184_v5 = vld [vmem:[#allocation102_spill] sm:$0xff] }
 0x2b1   : > { %v2084_v13 = vmul.f32 %v5021_v57, %v1926_v4  ;;  %v816_v3 = vadd.f32 %v4905_v52, %v6175_v14  ;;  %v1054_v36 = vmul.f32 %v4694_v21, %v6176_v19  ;;  %v1105_v23 = vadd.f32 %v1073_v31, %v845_v48  ;;  %v6180_v29 = vld [vmem:[#allocation91_spill] sm:$0xff]  ;;  %v6183_v4 = vld [vmem:[#allocation120_spill] sm:$0xff] }
 0x2b2   : > { %v1593_v45 = vmul.f32 %v4711_v49, %v6177_v51  ;;  %2230 = vperm.xlu2 %3714, %v2157_v1   ;;  %v1078_v20 = vadd.f32 %v1046_v10, %v4865_v15  ;;  %v1566_v58 = vmul.f32 %v4711_v49, %v6178_v0  ;;  %v1603_v41 = vadd.f32 %v1571_v60, %v1343_v55  ;;  %v6181_v31 = vld [vmem:[#allocation119_spill] sm:$0xff]  ;;  %v6182_v15 = vld [vmem:[#allocation81_spill] sm:$0xff] }
 0x2b3   : > { %2225 = vperm.xlu1 %3713, %v2156_v11   ;;  %v5109_v8 = vadd.f32 %v2084_v13, %v1855_v50  ;;  %v826_v52 = vadd.f32 %v794_v35, %v6179_v9  ;;  %v1044_v59 = vmul.f32 %v4694_v21, %v6180_v29  ;;  %v1314_v2 = vmul.f32 %v4705_v7, %v6181_v31 }
 0x2b4   : > { %v1365_v12 = vadd.f32 %v1333_v61, %v1105_v23  ;;  %v1966_v1 = vpop.permute.xlu2 %1965  ;;  %v1338_v48 = vadd.f32 %v1306_v54, %v1078_v20  ;;  %v1826_v10 = vmul.f32 %v4719_v32, %v6182_v15  ;;  %v1863_v46 = vadd.f32 %v1831_v34, %v1603_v41  ;;  %v6185_v54 = vld [vmem:[#allocation68_spill] sm:$0xff]  ;;  %v2160_v34 = vld [vmem:[#allocation2 + $0x150] sm:$0xff] }
 0x2b5   : > { %v2092_v60 = vmul.f32 %v5021_v57, %v1966_v1  ;;  %v1815_v55 = vpop.permute.xlu1 %1814  ;;  %v1086_v11 = vadd.f32 %v1054_v36, %v826_v52  ;;  %v1304_v35 = vmul.f32 %v4705_v7, %v6183_v4  ;;  %v1049_v61 = vmul.f32 %v4694_v21, %v6184_v5  ;;  %v6186_v36 = vld [vmem:[#allocation45_spill] sm:$0xff]  ;;  %v6191_v15 = vld [vmem:[#allocation44_spill] sm:$0xff] }
 0x2b6   : > { %v1625_v62 = vadd.f32 %v1593_v45, %v1365_v12  ;;  %v1853_v50 = vmul.f32 %v4719_v32, %v1815_v55  ;;  %2250 = vperm.xlu0 %3712, %v2161_v37   ;;  %v1598_v13 = vadd.f32 %v1566_v58, %v1338_v48  ;;  %v1574_v14 = vmul.f32 %v4711_v49, %v6185_v54  ;;  %v2159_v45 = vld [vmem:[#allocation2 + $0x130] sm:$0xff]  ;;  %v6187_v37 = vld [vmem:[#allocation121_spill] sm:$0xff]  ;;  %v6188_v58 = vld [vmem:[#allocation8_spill] sm:$0xff] }
 0x2b7   : > { %v5126_v19 = vadd.f32 %v2092_v60, %v1863_v46  ;;  %v1076_v23 = vadd.f32 %v1044_v59, %v816_v3  ;;  %v1346_v51 = vadd.f32 %v1314_v2, %v1086_v11  ;;  %v1564_v20 = vmul.f32 %v4711_v49, %v6186_v36  ;;  %v6189_v12 = vld [vmem:[#allocation58_spill] sm:$0xff]  ;;  %v6190_v2 = vld [vmem:[#allocation75_spill] sm:$0xff]  ;;  %v2164_v55 = vld [vmem:[#allocation2 + $0x1a0] sm:$0xff] }
 0x2b8   : > { %v5130_v0 = vadd.f32 %v1853_v50, %v1625_v62  ;;  %v1941_v41 = vpop.permute.xlu0 %1940  ;;  %v1309_v9 = vmul.f32 %v4705_v7, %v6187_v37  ;;  %v1858_v52 = vadd.f32 %v1826_v10, %v1598_v13  ;;  %v1834_v29 = vmul.f32 %v4719_v32, %v6188_v58  ;;  %v6192_v11 = vld [vmem:[#allocation3_spill] sm:$0xff]  ;;  %v6193_v62 = vld [vmem:[#allocation54_spill] sm:$0xff]  ;;  %v6194_v50 = vld [vmem:[#allocation92_spill] sm:$0xff] }
 0x2b9   : > { %v2087_v31 = vmul.f32 %v5021_v57, %v1941_v41  ;;  %v787_v3 = vmul.f32 %v4688_v30, %v6189_v12  ;;  %v1336_v59 = vadd.f32 %v1304_v35, %v1076_v23  ;;  %v1824_v1 = vmul.f32 %v4719_v32, %v6190_v2  ;;  %v6197_v58 = vld [vmem:[#allocation13_spill] sm:$0xff] }
 0x2ba   : > { %2245 = vperm.xlu2 %3714, %v2160_v34   ;;  %v1081_v48 = vadd.f32 %v1049_v61, %v4881_v44  ;;  %v1569_v46 = vmul.f32 %v4711_v49, %v6191_v15  ;;  %v1606_v60 = vadd.f32 %v1574_v14, %v1346_v51  ;;  %v527_v4 = vmul.f32 %v4690_v18, %v6192_v11  ;;  %v6195_v61 = vld [vmem:[#allocation86_spill] sm:$0xff] }
 0x2bb   : > { %2240 = vperm.xlu1 %3713, %v2159_v45   ;;  %v5144_v10 = vadd.f32 %v2087_v31, %v1858_v52  ;;  %v792_v35 = vmul.f32 %v4688_v30, %v6193_v62  ;;  %v1047_v5 = vmul.f32 %v4694_v21, %v6194_v50  ;;  %v1596_v13 = vadd.f32 %v1564_v20, %v1336_v59  ;;  %v6196_v45 = vld [vmem:[#allocation122_spill] sm:$0xff]  ;;  %v6198_v31 = vld [vmem:[#allocation104_spill] sm:$0xff] }
 0x2bc   : > { %v1981_v54 = vpop.permute.xlu2 %1980  ;;  %v1341_v44 = vadd.f32 %v1309_v9, %v1081_v48  ;;  %v1829_v34 = vmul.f32 %v4719_v32, %v6195_v61  ;;  %v1866_v14 = vadd.f32 %v1834_v29, %v1606_v60  ;;  %v819_v36 = vadd.f32 %v787_v3, %v527_v4  ;;  %v2163_v29 = vld [vmem:[#allocation2 + $0x180] sm:$0xff]  ;;  %v6199_v48 = vld [vmem:[#allocation51_spill] sm:$0xff] }
 0x2bd   : > { %v2095_v23 = vmul.f32 %v5021_v57, %v1981_v54  ;;  %v1931_v51 = vpop.permute.xlu1 %1930  ;;  %v1307_v41 = vmul.f32 %v4705_v7, %v6196_v45  ;;  %v1856_v37 = vadd.f32 %v1824_v1, %v1596_v13  ;;  %v532_v20 = vmul.f32 %v4690_v18, %v6197_v58  ;;  %v2162_v1 = vld [vmem:[#allocation2 + $0x178] sm:$0xff]  ;;  %v6205_v45 = vld [vmem:[#allocation94_spill] sm:$0xff] }
 0x2be   : > { %v2085_v52 = vmul.f32 %v5021_v57, %v1931_v51  ;;  %2265 = vperm.xlu0 %3712, %v2164_v55   ;;  %v1052_v9 = vmul.f32 %v4694_v21, %v6198_v31  ;;  %v1601_v12 = vadd.f32 %v1569_v46, %v1341_v44  ;;  %v1079_v2 = vadd.f32 %v1047_v5, %v819_v36  ;;  %v6200_v55 = vld [vmem:[#allocation123_spill] sm:$0xff]  ;;  %v6201_v13 = vld [vmem:[#allocation64_spill] sm:$0xff] }
 0x2bf   : > { %v5162_v59 = vadd.f32 %v2095_v23, %v1866_v14  ;;  %v1567_v3 = vmul.f32 %v4711_v49, %v6199_v48  ;;  %v824_v11 = vadd.f32 %v792_v35, %v532_v20  ;;  %v1312_v4 = vmul.f32 %v4705_v7, %v6200_v55  ;;  %v6202_v44 = vld [vmem:[#allocation80_spill] sm:$0xff]  ;;  %v2167_v51 = vld [vmem:[#allocation2 + $0x1d0] sm:$0xff] }
 0x2c0   : > { %v5166_v15 = vadd.f32 %v2085_v52, %v1856_v37  ;;  %v1956_v60 = vpop.permute.xlu0 %1955  ;;  %v1861_v62 = vadd.f32 %v1829_v34, %v1601_v12  ;;  %v790_v46 = vmul.f32 %v4688_v30, %v6201_v13  ;;  %v1339_v54 = vadd.f32 %v1307_v41, %v1079_v2  ;;  %v6203_v14 = vld [vmem:[#allocation36_spill] sm:$0xff]  ;;  %v6204_v36 = vld [vmem:[#allocation15_spill] sm:$0xff] }
 0x2c1   : > { %v2090_v50 = vmul.f32 %v5021_v57, %v1956_v60  ;;  %v1827_v5 = vmul.f32 %v4719_v32, %v6202_v44  ;;  %v1084_v61 = vadd.f32 %v1052_v9, %v824_v11  ;;  %v1572_v23 = vmul.f32 %v4711_v49, %v6203_v14  ;;  %v6206_v58 = vld [vmem:[#allocation60_spill] sm:$0xff]  ;;  %v6207_v9 = vld [vmem:[#allocation9_spill] sm:$0xff]  ;;  %v2166_v44 = vld [vmem:[#allocation2 + $0x1c8] sm:$0xff] }
 0x2c2   : > { %2260 = vperm.xlu2 %3714, %v2163_v29   ;;  %v530_v34 = vmul.f32 %v4690_v18, %v6204_v36  ;;  %v1050_v37 = vmul.f32 %v4694_v21, %v6205_v45  ;;  %v1599_v52 = vadd.f32 %v1567_v3, %v1339_v54  ;;  %v795_v20 = vmul.f32 %v4688_v30, %v6206_v58  ;;  %v6209_v3 = vld [vmem:[#allocation16_spill] sm:$0xff]  ;;  %v6212_v45 = vld [vmem:[#allocation125_spill] sm:$0xff] }
 0x2c3   : > { %2255 = vperm.xlu1 %3713, %v2162_v1   ;;  %v5177_v35 = vadd.f32 %v2090_v50, %v1861_v62  ;;  %v1344_v31 = vadd.f32 %v1312_v4, %v1084_v61  ;;  %v1832_v12 = vmul.f32 %v4719_v32, %v6207_v9  ;;  %v6208_v1 = vld [vmem:[#allocation124_spill] sm:$0xff]  ;;  %v535_v62 = vmul.f32 %v4690_v18, %v6209_v3  ;;  %v6210_v50 = vld [vmem:[#allocation105_spill] sm:$0xff] }
 0x2c4   : > { %v1996_v41 = vpop.permute.xlu2 %1995  ;;  %v822_v48 = vadd.f32 %v790_v46, %v530_v34  ;;  %v1310_v60 = vmul.f32 %v4705_v7, %v6208_v1  ;;  %v1859_v11 = vadd.f32 %v1827_v5, %v1599_v52  ;;  %v1055_v4 = vmul.f32 %v4694_v21, %v6210_v50  ;;  %v6211_v46 = vld [vmem:[#allocation57_spill] sm:$0xff]  ;;  %v2165_v5 = vld [vmem:[#allocation2 + $0x1a8] sm:$0xff]  ;;  %v2170_v1 = vld [vmem:[#allocation2 + $0x218] sm:$0xff] }
 0x2c5   : > { %v2098_v29 = vmul.f32 %v5021_v57, %v1996_v41  ;;  %v1946_v2 = vpop.permute.xlu1 %1945  ;;  %v1604_v13 = vadd.f32 %v1572_v23, %v1344_v31  ;;  %v1570_v14 = vmul.f32 %v4711_v49, %v6211_v46  ;;  %v1315_v52 = vmul.f32 %v4705_v7, %v6212_v45  ;;  %v6213_v23 = vld [vmem:[#allocation70_spill] sm:$0xff]  ;;  %v6214_v9 = vld [vmem:[#allocation77_spill] sm:$0xff] }
 0x2c6   : > { %v2088_v55 = vmul.f32 %v5021_v57, %v1946_v2  ;;  %2280 = vperm.xlu0 %3712, %v2167_v51   ;;  %v1082_v61 = vadd.f32 %v1050_v37, %v822_v48  ;;  %v827_v51 = vadd.f32 %v795_v20, %v535_v62  ;;  %v1830_v37 = vmul.f32 %v4719_v32, %v6214_v9  ;;  %v6215_v2 = vld [vmem:[#allocation41_spill] sm:$0xff]  ;;  %v6219_v45 = vld [vmem:[#allocation62_spill] sm:$0xff] }
 0x2c7   : > { %v5196_v54 = vadd.f32 %v2098_v29, %v4863_v40  ;;  %v1864_v41 = vadd.f32 %v1832_v12, %v1604_v13  ;;  %v793_v40 = vmul.f32 %v4688_v30, %v6213_v23  ;;  %v1575_v48 = vmul.f32 %v4711_v49, %v6215_v2 }
 0x2c8   : > { %v5200_v36 = vadd.f32 %v2088_v55, %v1859_v11  ;;  %v1971_v34 = vpop.permute.xlu0 %1970  ;;  %v1342_v31 = vadd.f32 %v1310_v60, %v1082_v61  ;;  %v1087_v29 = vadd.f32 %v1055_v4, %v827_v51  ;;  %v6216_v11 = vld [vmem:[#allocation19_spill] sm:$0xff]  ;;  %v6217_v55 = vld [vmem:[#allocation97_spill] sm:$0xff]  ;;  %v1835_v50 = vmul.f32 %v4719_v32, %v4878_v27  ;;  %v6218_v61 = vld [vmem:[#allocation126_spill] sm:$0xff] }
 0x2c9   : > { %v2093_v58 = vmul.f32 %v5021_v57, %v1971_v34  ;;  %v533_v12 = vmul.f32 %v4690_v18, %v6216_v11  ;;  %v1053_v3 = vmul.f32 %v4694_v21, %v6217_v55  ;;  %v1313_v46 = vmul.f32 %v4705_v7, %v6218_v61  ;;  %v2172_v55 = vld [vmem:[#allocation2 + $0x240] sm:$0xff] }
 0x2ca   : > { %2275 = vperm.xlu2 %3714, %v2166_v44   ;;  %v1602_v30 = vadd.f32 %v1570_v14, %v1342_v31  ;;  %v1347_v62 = vadd.f32 %v1315_v52, %v1087_v29  ;;  %v2169_v14 = vld [vmem:[#allocation2 + $0x1f8] sm:$0xff]  ;;  %v1573_v27 = vmul.f32 %v4711_v49, %v6219_v45  ;;  %v2179_v45 = vld [vmem:[#allocation2 + $0x2c0] sm:$0xff] }
 0x2cb   : > { %2270 = vperm.xlu1 %3713, %v2165_v5   ;;  %v5211_v20 = vadd.f32 %v2093_v58, %v1864_v41  ;;  %v825_v44 = vadd.f32 %v793_v40, %v533_v12  ;;  %v2168_v41 = vld [vmem:[#allocation2 + $0x1f0] sm:$0xff]  ;;  %v6220_v31 = vld [vmem:[#allocation76_spill] sm:$0xff] }
 0x2cc   : > { %v2011_v60 = vpop.permute.xlu2 %2010  ;;  %v1862_v5 = vadd.f32 %v1830_v37, %v1602_v30  ;;  %v1607_v18 = vadd.f32 %v1575_v48, %v1347_v62  ;;  %v1833_v9 = vmul.f32 %v4719_v32, %v6220_v31  ;;  %v2173_v37 = vld [vmem:[#allocation2 + $0x248] sm:$0xff]  ;;  %v2171_v32 = vld [vmem:[#allocation2 + $0x220] sm:$0xff] }
 0x2cd   : > { %v2101_v4 = vmul.f32 %v5021_v57, %v2011_v60  ;;  %v1961_v13 = vpop.permute.xlu1 %1960  ;;  %v1085_v51 = vadd.f32 %v1053_v3, %v825_v44 }
 0x2ce   : > { %v2091_v34 = vmul.f32 %v5021_v57, %v1961_v13  ;;  %2295 = vperm.xlu0 %3712, %v2170_v1   ;;  %v1867_v23 = vadd.f32 %v1835_v50, %v1607_v18  ;;  %v2174_v18 = vld [vmem:[#allocation2 + $0x268] sm:$0xff] }
 0x2cf   : > { %v5224_v21 = vadd.f32 %v2101_v4, %v4914_v17  ;;  %v1345_v40 = vadd.f32 %v1313_v46, %v1085_v51  ;;  %v2175_v46 = vld [vmem:[#allocation2 + $0x270] sm:$0xff] }
 0x2d0   : > { %v5228_v52 = vadd.f32 %v2091_v34, %v1862_v5  ;;  %v1986_v58 = vpop.permute.xlu0 %1985  ;;  %v6221_v5 = vld [vmem:[#allocation28_spill] sm:$0xff] }
 0x2d1   : > { %v2096_v7 = vmul.f32 %v5021_v57, %v1986_v58  ;;  %v1605_v29 = vadd.f32 %v1573_v27, %v1345_v40  ;;  %v6222_v40 = vld [vmem:[#allocation7_spill] sm:$0xff] }
 0x2d2   : > { %2290 = vperm.xlu2 %3714, %v2169_v14  }
 0x2d3   : > { %2285 = vperm.xlu1 %3713, %v2168_v41   ;;  %v5233_v17 = vadd.f32 %v2096_v7, %v1867_v23  ;;  %v1865_v1 = vadd.f32 %v1833_v9, %v1605_v29  ;;  %v2178_v7 = vld [vmem:[#allocation2 + $0x2b8] sm:$0xff] }
 0x2d4   : > { %v2026_v2 = vpop.permute.xlu2 %2025  ;;  %v3717_v29 = vld [vmem:[#allocation2 + $0x298] sm:$0xff] }
 0x2d5   : > { %v2104_v49 = vmul.f32 %v5021_v57, %v2026_v2  ;;  %v1976_v48 = vpop.permute.xlu1 %1975 }
 0x2d6   : > { %v2094_v11 = vmul.f32 %v5021_v57, %v1976_v48  ;;  %2310 = vperm.xlu0 %3712, %v2173_v37  }
 0x2d7   : > { %v5238_v12 = vadd.f32 %v2104_v49, %v4955_v26  ;;  %v3716_v26 = vld [vmem:[#allocation2 + $0x290] sm:$0xff] }
 0x2d8   : > { %v5240_v3 = vadd.f32 %v2094_v11, %v1865_v1  ;;  %v2001_v30 = vpop.permute.xlu0 %2000  ;;  %v2410_v49 = vld [vmem:[#allocation2 + $0x89] sm:$0xff] }
 0x2d9   : > { %v2099_v60 = vmul.f32 %v5021_v57, %v2001_v30  ;;  %v2409_v30 = vld [vmem:[#allocation2 + $0x69] sm:$0xff] }
 0x2da   : > { %2305 = vperm.xlu2 %3714, %v2172_v55  }
 0x2db   : > { %2300 = vperm.xlu1 %3713, %v2171_v32   ;;  %v5244_v62 = vadd.f32 %v2099_v60, %v4939_v33 }
 0x2dc   : > { %v2041_v50 = vpop.permute.xlu2 %2040 }
 0x2dd   : > { %v2107_v4 = vmul.f32 %v5021_v57, %v2041_v50  ;;  %v1991_v13 = vpop.permute.xlu1 %1990  ;;  %v2408_v50 = vld [vmem:[#allocation2 + $0x61] sm:$0xff] }
 0x2de   : > { %v2097_v44 = vmul.f32 %v5021_v57, %v1991_v13  ;;  %2325 = vperm.xlu0 %3712, %v3716_v26   ;;  %v2413_v26 = vld [vmem:[#allocation2 + $0xb9] sm:$0xff] }
 0x2df   : > { %v5249_v61 = vadd.f32 %v2107_v4, %v4996_v63 }
 0x2e0   : > { %v5252_v34 = vadd.f32 %v2097_v44, %v6221_v5  ;;  %v2016_v14 = vpop.permute.xlu0 %2015 }
 0x2e1   : > { %v2102_v33 = vmul.f32 %v5021_v57, %v2016_v14  ;;  %v2412_v14 = vld [vmem:[#allocation2 + $0xb1] sm:$0xff] }
 0x2e2   : > { %2320 = vperm.xlu2 %3714, %v2175_v46  }
 0x2e3   : > { %2315 = vperm.xlu1 %3713, %v2174_v18   ;;  %v5256_v51 = vadd.f32 %v2102_v33, %v4979_v16  ;;  %v3696_v16 = vld [vmem:[%s5840_s1 + $0x7] sm:$0x1] }
 0x2e4   : > { %v2056_v27 = vpop.permute.xlu2 %2055  ;;  %v2182_v11 = vunpack.c.l.bf16 %v3696_v16  ;;  %v2414_v16 = vld [vmem:[#allocation2 + $0xd9] sm:$0xff] }
 0x2e5   : > { %v2110_v41 = vmul.f32 %v5021_v57, %v2056_v27  ;;  %v2006_v58 = vpop.permute.xlu1 %2005 }
 0x2e6   : > { %v2100_v63 = vmul.f32 %v5021_v57, %v2006_v58  ;;  %2340 = vperm.xlu0 %3712, %v2179_v45   ;;  %v2411_v45 = vld [vmem:[#allocation2 + $0x91] sm:$0xff]  ;;  %v2416_v58 = vld [vmem:[#allocation2 + $0x101] sm:$0xff] }
 0x2e7   : > { %v5261_v23 = vadd.f32 %v2110_v41, %v5032_v6 }
 0x2e8   : > { %v5264_v31 = vadd.f32 %v2100_v63, %v6222_v40  ;;  %v2031_v9 = vpop.permute.xlu0 %2030 }
 0x2e9   : > { %v2105_v37 = vmul.f32 %v5021_v57, %v2031_v9  ;;  %v2415_v9 = vld [vmem:[#allocation2 + $0xe1] sm:$0xff] }
 0x2ea   : > { %2335 = vperm.xlu2 %3714, %v2178_v7  }
 0x2eb   : > { %2330 = vperm.xlu1 %3713, %v3717_v29   ;;  %v5271_v2 = vadd.f32 %v2105_v37, %v5017_v28  ;;  %v5281_v28 = vperm.slane %v2182_v11, 0 }
 0x2ec   : > { %v2071_v6 = vpop.permute.xlu2 %2070 }
 0x2ed   : > { %v2113_v48 = vmul.f32 %v5021_v57, %v2071_v6  ;;  %v2021_v1 = vpop.permute.xlu1 %2020  ;;  %v2419_v6 = vld [vmem:[#allocation2 + $0x131] sm:$0xff] }
 0x2ee   : > { %v2103_v55 = vmul.f32 %v5021_v57, %v2021_v1  ;;  %2455 = vperm.xlu0 %3712, %v2410_v49  }
 0x2ef   : > { %v5276_v32 = vadd.f32 %v2113_v48, %v5070_v39 }
 0x2f0   : > { %v5279_v60 = vadd.f32 %v2103_v55, %v4836_v38  ;;  %v2046_v4 = vpop.permute.xlu0 %2045  ;;  %v2418_v55 = vld [vmem:[#allocation2 + $0x129] sm:$0xff] }
 0x2f1   : > { %v2108_v13 = vmul.f32 %v5021_v57, %v2046_v4 }
 0x2f2   : > { %2450 = vperm.xlu2 %3714, %v2409_v30  }
 0x2f3   : > { %2445 = vperm.xlu1 %3713, %v2408_v50   ;;  %v5285_v44 = vadd.f32 %v2108_v13, %v5055_v25  ;;  %v2417_v50 = vld [vmem:[#allocation2 + $0x109] sm:$0xff] }
 0x2f4   : > { %v2186_v46 = vpop.permute.xlu2 %2185 }
 0x2f5   : > { %v2344_v39 = vmul.f32 %v5281_v28, %v2186_v46  ;;  %v2036_v5 = vpop.permute.xlu1 %2035 }
 0x2f6   : > { %v2106_v18 = vmul.f32 %v5021_v57, %v2036_v5  ;;  %2470 = vperm.xlu0 %3712, %v2413_v26   ;;  %v2422_v26 = vld [vmem:[#allocation2 + $0x179] sm:$0xff] }
 0x2f7   : > { %v5290_v38 = vadd.f32 %v2344_v39, %v5109_v8 }
 0x2f8   : > { %v5293_v33 = vadd.f32 %v2106_v18, %v4891_v56  ;;  %v2061_v27 = vpop.permute.xlu0 %2060  ;;  %v2421_v18 = vld [vmem:[#allocation2 + $0x159] sm:$0xff] }
 0x2f9   : > { %v2111_v25 = vmul.f32 %v5021_v57, %v2061_v27 }
 0x2fa   : > { %2465 = vperm.xlu2 %3714, %v2412_v14  }
 0x2fb   : > { %2460 = vperm.xlu1 %3713, %v2411_v45   ;;  %v5297_v41 = vadd.f32 %v2111_v25, %v5093_v53  ;;  %v2420_v45 = vld [vmem:[#allocation2 + $0x151] sm:$0xff] }
 0x2fc   : > { %v2201_v63 = vpop.permute.xlu2 %2200 }
 0x2fd   : > { %v2347_v7 = vmul.f32 %v5281_v28, %v2201_v63  ;;  %v2051_v40 = vpop.permute.xlu1 %2050 }
 0x2fe   : > { %v2109_v8 = vmul.f32 %v5021_v57, %v2051_v40  ;;  %2485 = vperm.xlu0 %3712, %v2416_v58   ;;  %v2425_v58 = vld [vmem:[#allocation2 + $0x1a9] sm:$0xff]  ;;  %v2424_v40 = vld [vmem:[#allocation2 + $0x1a1] sm:$0xff] }
 0x2ff   : > { %v5302_v56 = vadd.f32 %v2347_v7, %v5144_v10 }
 0x300   : > { %v5305_v37 = vadd.f32 %v2109_v8, %v4931_v22  ;;  %v2076_v29 = vpop.permute.xlu0 %2075 }
 0x301   : > { %v2114_v53 = vmul.f32 %v5021_v57, %v2076_v29 }
 0x302   : > { %2480 = vperm.xlu2 %3714, %v2415_v9   ;;  %v2423_v9 = vld [vmem:[#allocation2 + $0x181] sm:$0xff] }
 0x303   : > { %2475 = vperm.xlu1 %3713, %v2414_v16   ;;  %v5309_v49 = vadd.f32 %v2114_v53, %v5130_v0  ;;  %v2430_v53 = vld [vmem:[#allocation2 + $0x219] sm:$0xff] }
 0x304   : > { %v2216_v48 = vpop.permute.xlu2 %2215 }
 0x305   : > { %v2350_v1 = vmul.f32 %v5281_v28, %v2216_v48  ;;  %v2066_v11 = vpop.permute.xlu1 %2065 }
 0x306   : > { %v2112_v10 = vmul.f32 %v5021_v57, %v2066_v11  ;;  %2500 = vperm.xlu0 %3712, %v2419_v6   ;;  %v2428_v11 = vld [vmem:[#allocation2 + $0x1f1] sm:$0xff] }
 0x307   : > { %v5314_v22 = vadd.f32 %v2350_v1, %v5177_v35 }
 0x308   : > { %v5317_v30 = vadd.f32 %v2112_v10, %v4971_v43  ;;  %v2191_v4 = vpop.permute.xlu0 %2190 }
 0x309   : > { %v2345_v0 = vmul.f32 %v5281_v28, %v2191_v4 }
 0x30a   : > { %2495 = vperm.xlu2 %3714, %v2418_v55   ;;  %v2426_v55 = vld [vmem:[#allocation2 + $0x1c9] sm:$0xff] }
 0x30b   : > { %2490 = vperm.xlu1 %3713, %v2417_v50   ;;  %v5321_v13 = vadd.f32 %v2345_v0, %v5166_v15 }
 0x30c   : > { %v2231_v46 = vpop.permute.xlu2 %2230 }
 0x30d   : > { %v2353_v39 = vmul.f32 %v5281_v28, %v2231_v46  ;;  %v2081_v5 = vpop.permute.xlu1 %2080 }
 0x30e   : > { %v2115_v35 = vmul.f32 %v5021_v57, %v2081_v5  ;;  %2515 = vperm.xlu0 %3712, %v2422_v26   ;;  %v2434_v5 = vld [vmem:[#allocation2 + $0x269] sm:$0xff] }
 0x30f   : > { %v5326_v43 = vadd.f32 %v2353_v39, %v5211_v20  ;;  %v3718_v39 = vld [vmem:[#allocation2 + $0x291] sm:$0xff] }
 0x310   : > { %v5329_v14 = vadd.f32 %v2115_v35, %v5011_v47  ;;  %v2206_v27 = vpop.permute.xlu0 %2205 }
 0x311   : > { %v2348_v15 = vmul.f32 %v5281_v28, %v2206_v27 }
 0x312   : > { %2510 = vperm.xlu2 %3714, %v2421_v18   ;;  %v2432_v18 = vld [vmem:[#allocation2 + $0x241] sm:$0xff] }
 0x313   : > { %2505 = vperm.xlu1 %3713, %v2420_v45   ;;  %v5333_v25 = vadd.f32 %v2348_v15, %v5200_v36  ;;  %v2429_v15 = vld [vmem:[#allocation2 + $0x1f9] sm:$0xff] }
 0x314   : > { %v2246_v63 = vpop.permute.xlu2 %2245 }
 0x315   : > { %v2356_v57 = vmul.f32 %v5281_v28, %v2246_v63  ;;  %v2196_v7 = vpop.permute.xlu1 %2195 }
 0x316   : > { %v2346_v20 = vmul.f32 %v5281_v28, %v2196_v7  ;;  %2530 = vperm.xlu0 %3712, %v2425_v58   ;;  %v2427_v7 = vld [vmem:[#allocation2 + $0x1d1] sm:$0xff] }
 0x317   : > { %v5338_v47 = vadd.f32 %v2356_v57, %v5233_v17 }
 0x318   : > { %v5341_v8 = vadd.f32 %v2346_v20, %v5050_v24  ;;  %v2221_v16 = vpop.permute.xlu0 %2220 }
 0x319   : > { %v2351_v36 = vmul.f32 %v5281_v28, %v2221_v16 }
 0x31a   : > { %2525 = vperm.xlu2 %3714, %v2424_v40   ;;  %v2438_v40 = vld [vmem:[#allocation2 + $0x2b9] sm:$0xff] }
 0x31b   : > { %2520 = vperm.xlu1 %3713, %v2423_v9   ;;  %v5345_v29 = vadd.f32 %v2351_v36, %v5228_v52  ;;  %v2435_v36 = vld [vmem:[#allocation2 + $0x271] sm:$0xff] }
 0x31c   : > { %v2261_v6 = vpop.permute.xlu2 %2260 }
 0x31d   : > { %v2359_v48 = vmul.f32 %v5281_v28, %v2261_v6  ;;  %v2211_v1 = vpop.permute.xlu1 %2210 }
 0x31e   : > { %v2349_v17 = vmul.f32 %v5281_v28, %v2211_v1  ;;  %2555 = vperm.xlu0 %3712, %v2430_v53   ;;  %v2433_v1 = vld [vmem:[#allocation2 + $0x249] sm:$0xff] }
 0x31f   : > { %v5350_v24 = vadd.f32 %v2359_v48, %v5244_v62 }
 0x320   : > { %v5353_v10 = vadd.f32 %v2349_v17, %v5088_v42  ;;  %v2236_v50 = vpop.permute.xlu0 %2235 }
 0x321   : > { %v2354_v52 = vmul.f32 %v5281_v28, %v2236_v50 }
 0x322   : > { %2545 = vperm.xlu2 %3714, %v2428_v11   ;;  %v2431_v11 = vld [vmem:[#allocation2 + $0x221] sm:$0xff] }
 0x323   : > { %2535 = vperm.xlu1 %3713, %v2426_v55   ;;  %v5357_v4 = vadd.f32 %v2354_v52, %v5240_v3 }
 0x324   : > { %v2276_v0 = vpop.permute.xlu2 %2275 }
 0x325   : > { %v2362_v26 = vmul.f32 %v5281_v28, %v2276_v0  ;;  %v2226_v46 = vpop.permute.xlu1 %2225 }
 0x326   : > { %v2352_v62 = vmul.f32 %v5281_v28, %v2226_v46  ;;  %2585 = vperm.xlu0 %3712, %v3718_v39  }
 0x327   : > { %v5362_v42 = vadd.f32 %v2362_v26, %v5256_v51 }
 0x328   : > { %v5365_v35 = vadd.f32 %v2352_v62, %v5126_v19  ;;  %v2251_v45 = vpop.permute.xlu0 %2250 }
 0x329   : > { %v2357_v3 = vmul.f32 %v5281_v28, %v2251_v45 }
 0x32a   : > { %2575 = vperm.xlu2 %3714, %v2434_v5  }
 0x32b   : > { %2565 = vperm.xlu1 %3713, %v2432_v18   ;;  %v5369_v27 = vadd.f32 %v2357_v3, %v5252_v34  ;;  %v3719_v18 = vld [vmem:[#allocation2 + $0x299] sm:$0xff] }
 0x32c   : > { %v2291_v58 = vpop.permute.xlu2 %2290 }
 0x32d   : > { %v2365_v63 = vmul.f32 %v5281_v28, %v2291_v58  ;;  %v2241_v57 = vpop.permute.xlu1 %2240 }
 0x32e   : > { %v2355_v51 = vmul.f32 %v5281_v28, %v2241_v57  ;;  %2550 = vperm.xlu0 %3712, %v2429_v15  }
 0x32f   : > { %v5374_v19 = vadd.f32 %v2365_v63, %v5271_v2 }
 0x330   : > { %v5377_v20 = vadd.f32 %v2355_v51, %v5162_v59  ;;  %v2266_v9 = vpop.permute.xlu0 %2265 }
 0x331   : > { %v2360_v34 = vmul.f32 %v5281_v28, %v2266_v9 }
 0x332   : > { %2540 = vperm.xlu2 %3714, %v2427_v7  }
 0x333   : > { %2595 = vperm.xlu1 %3713, %v2438_v40   ;;  %v5381_v16 = vadd.f32 %v2360_v34, %v5264_v31 }
 0x334   : > { %v2306_v53 = vpop.permute.xlu2 %2305 }
 0x335   : > { %v2368_v6 = vmul.f32 %v5281_v28, %v2306_v53  ;;  %v2256_v48 = vpop.permute.xlu1 %2255 }
 0x336   : > { %v2358_v2 = vmul.f32 %v5281_v28, %v2256_v48  ;;  %2580 = vperm.xlu0 %3712, %v2435_v36  }
 0x337   : > { %v5386_v59 = vadd.f32 %v2368_v6, %v5285_v44 }
 0x338   : > { %v5389_v17 = vadd.f32 %v2358_v2, %v5196_v54  ;;  %v2281_v55 = vpop.permute.xlu0 %2280  ;;  %v2439_v54 = vld [vmem:[#allocation2 + $0x2c1] sm:$0xff] }
 0x339   : > { %v2363_v31 = vmul.f32 %v5281_v28, %v2281_v55 }
 0x33a   : > { %2570 = vperm.xlu2 %3714, %v2433_v1  }
 0x33b   : > { %2560 = vperm.xlu1 %3713, %v2431_v11   ;;  %v5393_v50 = vadd.f32 %v2363_v31, %v5279_v60 }
 0x33c   : > { %v2321_v52 = vpop.permute.xlu2 %2320 }
 0x33d   : > { %v2371_v0 = vmul.f32 %v5281_v28, %v2321_v52  ;;  %v2271_v26 = vpop.permute.xlu1 %2270 }
 0x33e   : > { %v2361_v44 = vmul.f32 %v5281_v28, %v2271_v26 }
 0x33f   : > { %v5398_v46 = vadd.f32 %v2371_v0, %v5297_v41 }
 0x340   : > { %v5401_v62 = vadd.f32 %v2361_v44, %v5224_v21  ;;  %v2296_v39 = vpop.permute.xlu0 %2295 }
 0x341   : > { %v2366_v5 = vmul.f32 %v5281_v28, %v2296_v39  ;;  %v5450_v39 = vld [vmem:[%s5841_s2] ss:$0 sm:$0xff] }
 0x342   : > { %2600 = vperm.xlu2 %3714, %v2439_v54  }
 0x343   : > { %2590 = vperm.xlu1 %3713, %v3719_v18   ;;  %v5405_v60 = vadd.f32 %v2366_v5, %v5293_v33 }
 0x344   : > { %v2336_v45 = vpop.permute.xlu2 %2335 }
 0x345   : > { %v2374_v3 = vmul.f32 %v5281_v28, %v2336_v45  ;;  %v2286_v15 = vpop.permute.xlu1 %2285 }
 0x346   : > { %v2364_v41 = vmul.f32 %v5281_v28, %v2286_v15 }
 0x347   : > { %v5410_v58 = vadd.f32 %v2374_v3, %v5309_v49 }
 0x348   : > { %v5413_v21 = vadd.f32 %v2364_v41, %v5238_v12  ;;  %v2311_v63 = vpop.permute.xlu0 %2310  ;;  %v3697_v12 = vld [vmem:[%s5840_s1 + $0x8] sm:$0x1] }
 0x349   : > { %v2369_v57 = vmul.f32 %v5281_v28, %v2311_v63  ;;  %v2442_v48 = vunpack.c.l.bf16 %v3697_v12 }
 0x34b   : > { %v5417_v51 = vadd.f32 %v2369_v57, %v5305_v37  ;;  %v5435_v11 = vperm.slane %v2442_v48, 0 }
 0x34c   : > { %v2451_v33 = vpop.permute.xlu2 %2450 }
 0x34d   : > { %v2301_v7 = vpop.permute.xlu1 %2300  ;;  %v2605_v0 = vmul.f32 %v5435_v11, %v2451_v33 }
 0x34e   : > { %v2367_v40 = vmul.f32 %v5281_v28, %v2301_v7 }
 0x350   : > { %v5421_v9 = vadd.f32 %v2367_v40, %v5249_v61  ;;  %v2326_v34 = vpop.permute.xlu0 %2325 }
 0x351   : > { %v2372_v49 = vmul.f32 %v5281_v28, %v2326_v34 }
 0x353   : > { %v5425_v36 = vadd.f32 %v2372_v49, %v5317_v30 }
 0x354   : > { %v2466_v53 = vpop.permute.xlu2 %2465 }
 0x355   : > { %v2316_v37 = vpop.permute.xlu1 %2315  ;;  %v2608_v40 = vmul.f32 %v5435_v11, %v2466_v53 }
 0x356   : > { %v2370_v6 = vmul.f32 %v5281_v28, %v2316_v37 }
 0x358   : > { %v5432_v2 = vadd.f32 %v2370_v6, %v5261_v23  ;;  %v2341_v61 = vpop.permute.xlu0 %2340 }
 0x359   : > { %v2375_v1 = vmul.f32 %v5281_v28, %v2341_v61 }
 0x35b   : > { %v5438_v30 = vadd.f32 %v2375_v1, %v5329_v14  ;;  %v2637_v14 = vadd.f32 %v2605_v0, %v5321_v13 }
 0x35c   : > { %v2481_v55 = vpop.permute.xlu2 %2480 }
 0x35d   : > { %v2331_v31 = vpop.permute.xlu1 %2330  ;;  %v2611_v26 = vmul.f32 %v5435_v11, %v2481_v55  ;;  %v2673_v15 = vadd.f32 %v5450_v39, %v2637_v14 }
 0x35e   : > { %v2373_v52 = vmul.f32 %v5281_v28, %v2331_v31 }
 0x35f   : > { %v2643_v28 = vadd.f32 %v2611_v26, %v5345_v29  ;;  %v2705_v29 = vmax.f32 %v2673_v15, 0.0 }
 0x360   : > { %v5444_v44 = vadd.f32 %v2373_v52, %v5276_v32  ;;  %v2456_v23 = vpop.permute.xlu0 %2455 }
 0x361   : > { %v2606_v54 = vmul.f32 %v5435_v11, %v2456_v23  ;;  %v2679_v41 = vadd.f32 %v5450_v39, %v2643_v28  ;;  %v2740_v61 = vsel %vm2736_vm2, %v2705_v29, -inf }
 0x362   : > { %6223 = vst [vmem:[#allocation14_spill] sm:$0xff] %v5444_v44 }
 0x363   : > { %v2638_v5 = vadd.f32 %v2606_v54, %v5341_v8  ;;  %v2711_v34 = vmax.f32 %v2679_v41, 0.0 }
 0x364   : > { %v2496_v18 = vpop.permute.xlu2 %2495 }
 0x365   : > { %v2446_v45 = vpop.permute.xlu1 %2445  ;;  %v2674_v3 = vadd.f32 %v5450_v39, %v2638_v5  ;;  %v2747_v53 = vsel %vm2736_vm2, %v2711_v34, -inf  ;;  %v2614_v52 = vmul.f32 %v5435_v11, %v2496_v18 }
 0x366   : > { %v2604_v32 = vmul.f32 %v5435_v11, %v2446_v45 }
 0x367   : > { %v2706_v57 = vmax.f32 %v2674_v3, 0.0 }
 0x368   : > { %v2636_v63 = vadd.f32 %v2604_v32, %v5290_v38  ;;  %v2471_v33 = vpop.permute.xlu0 %2470 }
 0x369   : > { %v2609_v13 = vmul.f32 %v5435_v11, %v2471_v33  ;;  %v2738_v12 = vsel %vm2736_vm2, %v2706_v57, -inf }
 0x36a   : > { %v2672_v8 = vadd.f32 %v5450_v39, %v2636_v63 }
 0x36b   : > { %v2641_v7 = vadd.f32 %v2609_v13, %v5353_v10  ;;  %v2640_v10 = vadd.f32 %v2608_v40, %v5333_v25  ;;  %v5486_v13 = vadd.f32 %v2614_v52, %v5357_v4 }
 0x36c   : > { %v2704_v49 = vmax.f32 %v2672_v8, 0.0  ;;  %v2511_v55 = vpop.permute.xlu2 %2510 }
 0x36d   : > { %v2461_v37 = vpop.permute.xlu1 %2460  ;;  %v2677_v6 = vadd.f32 %v5450_v39, %v2641_v7  ;;  %v2617_v28 = vmul.f32 %v5435_v11, %v2511_v55  ;;  %v5483_v33 = vadd.f32 %v5450_v39, %v2640_v10 }
 0x36e   : > { %v2737_v38 = vsel %vm2736_vm2, %v2704_v49, -inf  ;;  %v2607_v48 = vmul.f32 %v5435_v11, %v2461_v37 }
 0x36f   : > { %v2739_v1 = vmax.f32 %v2737_v38, %v2738_v12  ;;  %v2709_v31 = vmax.f32 %v2677_v6, 0.0  ;;  %v5490_v12 = vadd.f32 %v2617_v28, %v5369_v27 }
 0x370   : > { %v2639_v0 = vadd.f32 %v2607_v48, %v5302_v56 }
 0x371   : > { %v2801_v26 = vrot.slane %v2739_v1, 2  ;;  %v2802_v23 = vrot.slane %v2739_v1, 4  ;;  %v2803_v54 = vrot.slane %v2739_v1, 6  ;;  %v2898_v14 = vsel %vm2897_vm3, %v2739_v1, -inf }
 0x372   : > { %v2899_v5 = vrot.slane %v2898_v14, 4  ;;  %v2675_v45 = vadd.f32 %v5450_v39, %v2639_v0  ;;  %v2746_v3 = vsel %vm2736_vm2, %v2709_v31, -inf }
 0x373   : > { %v2905_v25 = vsel %vm2897_vm3, %v2801_v26, -inf  ;;  %v2912_v32 = vsel %vm2897_vm3, %v2802_v23, -inf  ;;  %v2919_v18 = vsel %vm2897_vm3, %v2803_v54, -inf  ;;  %v5480_v15 = vmax.f32 %v2746_v3, %v2747_v53 }
 0x374   : > { %v2900_v56 = vmax.f32 %v2898_v14, %v2899_v5  ;;  %v2906_v41 = vrot.slane %v2905_v25, 4  ;;  %v2913_v63 = vrot.slane %v2912_v32, 4  ;;  %v2920_v57 = vrot.slane %v2919_v18, 4 }
 0x375   : > { %v2707_v8 = vmax.f32 %v2675_v45, 0.0  ;;  %v2810_v29 = vrot.slane %v5480_v15, 2  ;;  %v2811_v6 = vrot.slane %v5480_v15, 4  ;;  %v2982_v38 = vsel %vm2897_vm3, %v5480_v15, -inf }
 0x376   : > { %v2901_v7 = vrot.slane %v2900_v56, 2  ;;  %v2907_v40 = vmax.f32 %v2905_v25, %v2906_v41  ;;  %v2914_v34 = vmax.f32 %v2912_v32, %v2913_v63  ;;  %v2921_v49 = vmax.f32 %v2919_v18, %v2920_v57 }
 0x377   : > { %v2741_v37 = vsel %vm2736_vm2, %v2707_v8, -inf  ;;  %v2983_v53 = vrot.slane %v2982_v38, 4  ;;  %v2989_v52 = vsel %vm2897_vm3, %v2810_v29, -inf }
 0x378   : > { %v2902_v48 = vmax.f32 %v2900_v56, %v2901_v7  ;;  %v2908_v4 = vrot.slane %v2907_v40, 2  ;;  %v2915_v1 = vrot.slane %v2914_v34, 2  ;;  %v2922_v55 = vrot.slane %v2921_v49, 2 }
 0x379   : > { %v2742_v31 = vmax.f32 %v2740_v61, %v2741_v37 }
 0x37a   : > { %v2903_v27 = vrot.slane %v2902_v48, 1  ;;  %v2909_v0 = vmax.f32 %v2907_v40, %v2908_v4  ;;  %v2916_v26 = vmax.f32 %v2914_v34, %v2915_v1  ;;  %v2923_v23 = vmax.f32 %v2921_v49, %v2922_v55 }
 0x37b   : > { %v2804_v54 = vrot.slane %v2742_v31, 2  ;;  %v2805_v14 = vrot.slane %v2742_v31, 4  ;;  %v2806_v5 = vrot.slane %v2742_v31, 6  ;;  %v2926_v28 = vsel %vm2897_vm3, %v2742_v31, -inf }
 0x37c   : > { %v2904_v45 = vmax.f32 %v2902_v48, %v2903_v27  ;;  %v2910_v3 = vrot.slane %v2909_v0, 1  ;;  %v2917_v25 = vrot.slane %v2916_v26, 1  ;;  %v2924_v32 = vrot.slane %v2923_v23, 1 }
 0x37d   : > { %v2927_v61 = vrot.slane %v2926_v28, 4  ;;  %v2933_v18 = vsel %vm2897_vm3, %v2804_v54, -inf  ;;  %v2940_v56 = vsel %vm2897_vm3, %v2805_v14, -inf  ;;  %v2947_v41 = vsel %vm2897_vm3, %v2806_v5, -inf }
 0x37e   : > { %v2911_v63 = vmax.f32 %v2909_v0, %v2910_v3  ;;  %v2918_v57 = vmax.f32 %v2916_v26, %v2917_v25  ;;  %v2925_v8 = vmax.f32 %v2923_v23, %v2924_v32  ;;  %v3346_v29 = vpack.c.bf16 %v2904_v45, %v2904_v45  ;;  %v5503_v26 = vpop.permute.xlu2 %2525 }
 0x37f   : > { %v2928_v7 = vmax.f32 %v2926_v28, %v2927_v61  ;;  %v2934_v40 = vrot.slane %v2933_v18, 4  ;;  %v2941_v34 = vrot.slane %v2940_v56, 4  ;;  %v2948_v49 = vrot.slane %v2947_v41, 4 }
 0x380   : > { %v3347_v37 = vpack.c.bf16 %v2911_v63, %v2911_v63  ;;  %v3348_v48 = vpack.c.bf16 %v2918_v57, %v2918_v57  ;;  %v3349_v4 = vpack.c.bf16 %v2925_v8, %v2925_v8  ;;  %v2996_v1 = vsel %vm2897_vm3, %v2811_v6, -inf }
 0x381   : > { %v2929_v55 = vrot.slane %v2928_v7, 2  ;;  %v2935_v31 = vmax.f32 %v2933_v18, %v2934_v40  ;;  %v2942_v27 = vmax.f32 %v2940_v56, %v2941_v34  ;;  %v2949_v54 = vmax.f32 %v2947_v41, %v2948_v49 }
 0x382   : > { %v3474_v14 = vunpack.c.l.b16 %v3346_v29  ;;  %v3475_v10 = vunpack.c.l.b16 %v3347_v37  ;;  %v3476_v5 = vunpack.c.l.b16 %v3348_v48  ;;  %v2984_v0 = vmax.f32 %v2982_v38, %v2983_v53 }
 0x383   : > { %v2930_v23 = vmax.f32 %v2928_v7, %v2929_v55  ;;  %v2936_v28 = vrot.slane %v2935_v31, 2  ;;  %v2943_v45 = vrot.slane %v2942_v27, 2  ;;  %v2950_v3 = vrot.slane %v2949_v54, 2 }
 0x384   : > { %v3539_v25 = vsel %vm3538_vm4, %v3475_v10, %v3474_v14  ;;  %v2985_v32 = vrot.slane %v2984_v0, 2  ;;  %v2990_v6 = vrot.slane %v2989_v52, 4  ;;  %v2997_v61 = vrot.slane %v2996_v1, 4  ;;  %v2476_v10 = vpop.permute.xlu1 %2475 }
 0x385   : > { %v3541_v18 = vsel %vm3540_vm5, %v3476_v5, %v3539_v25  ;;  %v2931_v56 = vrot.slane %v2930_v23, 1  ;;  %v2937_v41 = vmax.f32 %v2935_v31, %v2936_v28  ;;  %v2944_v63 = vmax.f32 %v2942_v27, %v2943_v45  ;;  %v2486_v31 = vpop.permute.xlu0 %2485 }
 0x386   : > { %v3477_v57 = vunpack.c.l.b16 %v3349_v4  ;;  %v2951_v38 = vmax.f32 %v2949_v54, %v2950_v3  ;;  %v2986_v53 = vmax.f32 %v2984_v0, %v2985_v32  ;;  %v2991_v8 = vmax.f32 %v2989_v52, %v2990_v6 }
 0x387   : > { %v2932_v29 = vmax.f32 %v2930_v23, %v2931_v56  ;;  %v2938_v7 = vrot.slane %v2937_v41, 1  ;;  %v2945_v40 = vrot.slane %v2944_v63, 1  ;;  %v2998_v34 = vmax.f32 %v2996_v1, %v2997_v61 }
 0x388   : > { %v3543_v49 = vsel %vm3542_vm6, %v3477_v57, %v3541_v18  ;;  %v2952_v37 = vrot.slane %v2951_v38, 1  ;;  %v2992_v48 = vrot.slane %v2991_v8, 2  ;;  %v6224_v55 = vrot.slane %v5480_v15, 6  ;;  %v2546_v18 = vpop.permute.xlu2 %2545 }
 0x389   : > { %v2939_v27 = vmax.f32 %v2937_v41, %v2938_v7  ;;  %v2946_v4 = vmax.f32 %v2944_v63, %v2945_v40  ;;  %v3350_v5 = vpack.c.bf16 %v2932_v29, %v2932_v29  ;;  %v2999_v54 = vrot.slane %v2998_v34, 2 }
 0x38a   : > { %v3003_v14 = vsel %vm2897_vm3, %v6224_v55, -inf  ;;  %v2953_v0 = vmax.f32 %v2951_v38, %v2952_v37  ;;  %v2987_v52 = vrot.slane %v2986_v53, 1  ;;  %v2993_v23 = vmax.f32 %v2991_v8, %v2992_v48 }
 0x38b   : > { %v3004_v28 = vrot.slane %v3003_v14, 4  ;;  %v3351_v1 = vpack.c.bf16 %v2939_v27, %v2939_v27  ;;  %v3352_v45 = vpack.c.bf16 %v2946_v4, %v2946_v4  ;;  %v3478_v3 = vunpack.c.l.b16 %v3350_v5 }
 0x38c   : > { %v3000_v25 = vmax.f32 %v2998_v34, %v2999_v54  ;;  %v2682_v32 = vadd.f32 %v5450_v39, %v5486_v13  ;;  %v3353_v15 = vpack.c.bf16 %v2953_v0, %v2953_v0  ;;  %v2994_v6 = vrot.slane %v2993_v23, 1 }
 0x38d   : > { %v3005_v61 = vmax.f32 %v3003_v14, %v3004_v28  ;;  %v3479_v56 = vunpack.c.l.b16 %v3351_v1  ;;  %v3480_v41 = vunpack.c.l.b16 %v3352_v45  ;;  %v3545_v63 = vsel %vm3544_vm7, %v3478_v3, %v3543_v49  ;;  %v2501_v0 = vpop.permute.xlu0 %2500 }
 0x38e   : > { %v3001_v57 = vrot.slane %v3000_v25, 1  ;;  %v2685_v38 = vadd.f32 %v5450_v39, %v5490_v12  ;;  %v3481_v8 = vunpack.c.l.b16 %v3353_v15  ;;  %v2988_v29 = vmax.f32 %v2986_v53, %v2987_v52 }
 0x38f   : > { %v3006_v7 = vrot.slane %v3005_v61, 2  ;;  %v3547_v40 = vsel %vm3546_vm8, %v3479_v56, %v3545_v63  ;;  %v2995_v34 = vmax.f32 %v2993_v23, %v2994_v6  ;;  %v2610_v37 = vmul.f32 %v5435_v11, %v2476_v10  ;;  %v2491_v10 = vpop.permute.xlu1 %2490 }
 0x390   : > { %v3002_v13 = vmax.f32 %v3000_v25, %v3001_v57  ;;  %v2708_v48 = vmax.f32 %v5483_v33, 0.0  ;;  %v3549_v55 = vsel %vm3548_vm9, %v3480_v41, %v3547_v40  ;;  %v2612_v49 = vmul.f32 %v5435_v11, %v2486_v31  ;;  %v2576_v56 = vpop.permute.xlu2 %2575 }
 0x391   : > { %v3007_v14 = vmax.f32 %v3005_v61, %v3006_v7  ;;  %v2714_v27 = vmax.f32 %v2682_v32, 0.0  ;;  %v3551_v12 = vsel %vm3550_vm10, %v3481_v8, %v3549_v55  ;;  %v2642_v53 = vadd.f32 %v2610_v37, %v5314_v22 }
 0x392   : > { %v2717_v4 = vmax.f32 %v2685_v38, 0.0  ;;  %v3601_v33 = vpack.c.b16 %v3551_v12, %v3551_v12  ;;  %v3358_v5 = vpack.c.bf16 %v2988_v29, %v2988_v29  ;;  %v2644_v54 = vadd.f32 %v2612_v49, %v5365_v35 }
 0x393   : > { %v3359_v31 = vpack.c.bf16 %v2995_v34, %v2995_v34  ;;  %v3360_v52 = vpack.c.bf16 %v3002_v13, %v3002_v13  ;;  %v2620_v23 = vmul.f32 %v5435_v11, %v5503_v26  ;;  %v2678_v28 = vadd.f32 %v5450_v39, %v2642_v53 }
 0x394   : > { %3618 = vst.msk [vmem:[%s5525_s13] sm:$0xf] %vm3617_vm11, %v3601_v33  ;;  %v3008_v1 = vrot.slane %v3007_v14, 1  ;;  %v2680_v45 = vadd.f32 %v5450_v39, %v2644_v54  ;;  %v2613_v22 = vmul.f32 %v5435_v11, %v2491_v10  ;;  %v2743_v3 = vsel %vm2736_vm2, %v2708_v48, -inf }
 0x395   : > { %v2750_v25 = vsel %vm2736_vm2, %v2714_v27, -inf  ;;  %v2710_v35 = vmax.f32 %v2678_v28, 0.0  ;;  %v2615_v32 = vmul.f32 %v5435_v11, %v2501_v0  ;;  %v5541_v15 = vsel %vm2736_vm2, %v2717_v4, -inf }
 0x396   : > { %v5543_v26 = vunpack.c.l.b16 %v3358_v5  ;;  %v2712_v6 = vmax.f32 %v2680_v45, 0.0  ;;  %v2645_v61 = vadd.f32 %v2613_v22, %v5326_v43  ;;  %v5546_v41 = vunpack.c.l.b16 %v3359_v31 }
 0x397   : > { %v5548_v63 = vunpack.c.l.b16 %v3360_v52  ;;  %v5551_v57 = vadd.f32 %v2620_v23, %v5381_v16  ;;  %v2744_v38 = vsel %vm2736_vm2, %v2710_v35, -inf  ;;  %v5554_v8 = vmax.f32 %v3007_v14, %v3008_v1 }
 0x398   : > { %v2745_v29 = vmax.f32 %v2743_v3, %v2744_v38  ;;  %v2749_v7 = vsel %vm2736_vm2, %v2712_v6, -inf  ;;  %v5558_v40 = vmul.f32 %v5435_v11, %v2546_v18  ;;  %v5561_v43 = vadd.f32 %v5450_v39, %v2645_v61 }
 0x399   : > { %v2751_v34 = vmax.f32 %v2749_v7, %v2750_v25  ;;  %v5564_v13 = vadd.f32 %v2615_v32, %v5377_v20  ;;  %v5567_v16 = vmul.f32 %v5435_v11, %v2576_v56 }
 0x39a   : > { %v2807_v37 = vrot.slane %v2745_v29, 2  ;;  %v2808_v48 = vrot.slane %v2745_v29, 4  ;;  %v2809_v55 = vrot.slane %v2745_v29, 6  ;;  %v2954_v14 = vsel %vm2897_vm3, %v2745_v29, -inf }
 0x39b   : > { %v2955_v49 = vrot.slane %v2954_v14, 4  ;;  %v2813_v27 = vrot.slane %v2751_v34, 2  ;;  %v2814_v12 = vrot.slane %v2751_v34, 4  ;;  %v2815_v18 = vrot.slane %v2751_v34, 6 }
 0x39c   : > { %v2961_v53 = vsel %vm2897_vm3, %v2807_v37, -inf  ;;  %v2968_v10 = vsel %vm2897_vm3, %v2808_v48, -inf  ;;  %v2975_v4 = vsel %vm2897_vm3, %v2809_v55, -inf  ;;  %v3010_v20 = vsel %vm2897_vm3, %v2751_v34, -inf }
 0x39d   : > { %v2956_v33 = vmax.f32 %v2954_v14, %v2955_v49  ;;  %v2962_v5 = vrot.slane %v2961_v53, 4  ;;  %v2969_v54 = vrot.slane %v2968_v10, 4  ;;  %v2976_v0 = vrot.slane %v2975_v4, 4 }
 0x39e   : > { %v3011_v31 = vrot.slane %v3010_v20, 4  ;;  %v3017_v52 = vsel %vm2897_vm3, %v2813_v27, -inf  ;;  %v3024_v23 = vsel %vm2897_vm3, %v2814_v12, -inf  ;;  %v3031_v28 = vsel %vm2897_vm3, %v2815_v18, -inf }
 0x39f   : > { %v2957_v1 = vrot.slane %v2956_v33, 2  ;;  %v2963_v45 = vmax.f32 %v2961_v53, %v2962_v5  ;;  %v2970_v22 = vmax.f32 %v2968_v10, %v2969_v54  ;;  %v2977_v3 = vmax.f32 %v2975_v4, %v2976_v0 }
 0x3a0   : > { %v3012_v25 = vmax.f32 %v3010_v20, %v3011_v31  ;;  %v3018_v35 = vrot.slane %v3017_v52, 4  ;;  %v3025_v32 = vrot.slane %v3024_v23, 4  ;;  %v3032_v6 = vrot.slane %v3031_v28, 4 }
 0x3a1   : > { %v2958_v61 = vmax.f32 %v2956_v33, %v2957_v1  ;;  %v2964_v56 = vrot.slane %v2963_v45, 2  ;;  %v2971_v38 = vrot.slane %v2970_v22, 2  ;;  %v2978_v29 = vrot.slane %v2977_v3, 2 }
 0x3a2   : > { %v3013_v7 = vrot.slane %v3012_v25, 2  ;;  %v3019_v34 = vmax.f32 %v3017_v52, %v3018_v35  ;;  %v3026_v37 = vmax.f32 %v3024_v23, %v3025_v32  ;;  %v3033_v48 = vmax.f32 %v3031_v28, %v3032_v6 }
 0x3a3   : > { %v2959_v55 = vrot.slane %v2958_v61, 1  ;;  %v2965_v14 = vmax.f32 %v2963_v45, %v2964_v56  ;;  %v2972_v49 = vmax.f32 %v2970_v22, %v2971_v38  ;;  %v2979_v27 = vmax.f32 %v2977_v3, %v2978_v29 }
 0x3a4   : > { %v3014_v12 = vmax.f32 %v3012_v25, %v3013_v7  ;;  %v3020_v18 = vrot.slane %v3019_v34, 2  ;;  %v3027_v53 = vrot.slane %v3026_v37, 2  ;;  %v3034_v10 = vrot.slane %v3033_v48, 2 }
 0x3a5   : > { %v2960_v4 = vmax.f32 %v2958_v61, %v2959_v55  ;;  %v2966_v20 = vrot.slane %v2965_v14, 1  ;;  %v2973_v5 = vrot.slane %v2972_v49, 1  ;;  %v2980_v54 = vrot.slane %v2979_v27, 1 }
 0x3a6   : > { %v3015_v33 = vrot.slane %v3014_v12, 1  ;;  %v3021_v0 = vmax.f32 %v3019_v34, %v3020_v18  ;;  %v3028_v31 = vmax.f32 %v3026_v37, %v3027_v53  ;;  %v3035_v1 = vmax.f32 %v3033_v48, %v3034_v10  ;;  %v2506_v34 = vpop.permute.xlu1 %2505 }
 0x3a7   : > { %v2967_v44 = vmax.f32 %v2965_v14, %v2966_v20  ;;  %v2974_v52 = vmax.f32 %v2972_v49, %v2973_v5  ;;  %v2981_v23 = vmax.f32 %v2979_v27, %v2980_v54  ;;  %v3354_v28 = vpack.c.bf16 %v2960_v4, %v2960_v4  ;;  %v2516_v54 = vpop.permute.xlu0 %2515 }
 0x3a8   : > { %v3016_v35 = vmax.f32 %v3014_v12, %v3015_v33  ;;  %v3022_v45 = vrot.slane %v3021_v0, 1  ;;  %v3029_v22 = vrot.slane %v3028_v31, 1  ;;  %v3036_v3 = vrot.slane %v3035_v1, 1 }
 0x3a9   : > { %v3355_v25 = vpack.c.bf16 %v2967_v44, %v2967_v44  ;;  %v3356_v32 = vpack.c.bf16 %v2974_v52, %v2974_v52  ;;  %v3357_v6 = vpack.c.bf16 %v2981_v23, %v2981_v23  ;;  %v2683_v61 = vadd.f32 %v5450_v39, %v5564_v13 }
 0x3aa   : > { %v3361_v56 = vpack.c.bf16 %v5554_v8, %v5554_v8  ;;  %v3023_v38 = vmax.f32 %v3021_v0, %v3022_v45  ;;  %v3030_v29 = vmax.f32 %v3028_v31, %v3029_v22  ;;  %v3037_v7 = vmax.f32 %v3035_v1, %v3036_v3  ;;  %v2541_v31 = vpop.permute.xlu2 %2540 }
 0x3ab   : > { %v3482_v37 = vunpack.c.l.b16 %v3354_v28  ;;  %v3483_v48 = vunpack.c.l.b16 %v3355_v25  ;;  %v3484_v55 = vunpack.c.l.b16 %v3356_v32  ;;  %v3362_v14 = vpack.c.bf16 %v3016_v35, %v3016_v35 }
 0x3ac   : > { %v3485_v49 = vunpack.c.l.b16 %v3357_v6  ;;  %v3363_v27 = vpack.c.bf16 %v3023_v38, %v3023_v38  ;;  %v3364_v12 = vpack.c.bf16 %v3030_v29, %v3030_v29  ;;  %v5583_v44 = vadd.f32 %v5558_v40, %v5413_v21 }
 0x3ad   : > { %v3552_v13 = vsel %vm3538_vm4, %v3483_v48, %v3482_v37  ;;  %v3365_v18 = vpack.c.bf16 %v3037_v7, %v3037_v7  ;;  %v2713_v8 = vmax.f32 %v5561_v43, 0.0  ;;  %v2715_v53 = vmax.f32 %v2683_v61, 0.0 }
 0x3ae   : > { %v3489_v10 = vunpack.c.l.b16 %v3361_v56  ;;  %v3553_v4 = vsel %vm3540_vm5, %v3484_v55, %v3552_v13  ;;  %v3491_v20 = vunpack.c.l.b16 %v3363_v27  ;;  %v5590_v5 = vadd.f32 %v5567_v16, %v5432_v2  ;;  %v2521_v7 = vpop.permute.xlu1 %2520 }
 0x3af   : > { %v3554_v33 = vsel %vm3542_vm6, %v3485_v49, %v3553_v4  ;;  %v3490_v0 = vunpack.c.l.b16 %v3362_v14  ;;  %v2752_v21 = vsel %vm2736_vm2, %v2713_v8, -inf  ;;  %v2753_v40 = vsel %vm2736_vm2, %v2715_v53, -inf }
 0x3b0   : > { %v3555_v43 = vsel %vm3544_vm7, %v5543_v26, %v3554_v33  ;;  %v3492_v1 = vunpack.c.l.b16 %v3364_v12  ;;  %v2754_v52 = vmax.f32 %v2752_v21, %v2753_v40  ;;  %v2616_v23 = vmul.f32 %v5435_v11, %v2506_v34 }
 0x3b1   : > { %v3556_v2 = vsel %vm3546_vm8, %v5546_v41, %v3555_v43  ;;  %v3493_v16 = vunpack.c.l.b16 %v3365_v18  ;;  %v3559_v28 = vsel %vm3538_vm4, %v3491_v20, %v3490_v0  ;;  %v2618_v35 = vmul.f32 %v5435_v11, %v2516_v54  ;;  %v2531_v20 = vpop.permute.xlu0 %2530 }
 0x3b2   : > { %v3557_v45 = vsel %vm3548_vm9, %v5548_v63, %v3556_v2  ;;  %v2816_v22 = vrot.slane %v2754_v52, 2  ;;  %v2817_v3 = vrot.slane %v2754_v52, 4  ;;  %v2623_v26 = vmul.f32 %v5435_v11, %v2541_v31 }
 0x3b3   : > { %v3558_v25 = vsel %vm3550_vm10, %v3489_v10, %v3557_v45  ;;  %v2818_v32 = vrot.slane %v2754_v52, 6  ;;  %v3038_v6 = vsel %vm2897_vm3, %v2754_v52, -inf  ;;  %v2648_v41 = vadd.f32 %v2616_v23, %v5338_v47 }
 0x3b4   : > { %v3602_v61 = vpack.c.b16 %v3558_v25, %v3558_v25  ;;  %v3039_v56 = vrot.slane %v3038_v6, 4  ;;  %v3045_v38 = vsel %vm2897_vm3, %v2816_v22, -inf  ;;  %v3052_v29 = vsel %vm2897_vm3, %v2817_v3, -inf }
 0x3b5   : > { %v3046_v63 = vrot.slane %v3045_v38, 4  ;;  %v3053_v34 = vrot.slane %v3052_v29, 4  ;;  %v3059_v37 = vsel %vm2897_vm3, %v2818_v32, -inf  ;;  %v2684_v48 = vadd.f32 %v5450_v39, %v2648_v41 }
 0x3b6   : > { %3619 = vst.msk [vmem:[%s5525_s13 + $0x4] sm:$0xf] %vm3617_vm11, %v3602_v61  ;;  %v3040_v55 = vmax.f32 %v3038_v6, %v3039_v56  ;;  %v3060_v14 = vrot.slane %v3059_v37, 4  ;;  %v2650_v49 = vadd.f32 %v2618_v35, %v5389_v17  ;;  %v2655_v47 = vadd.f32 %v2623_v26, %v5393_v50 }
 0x3b7   : > { %v3560_v27 = vsel %vm3540_vm5, %v3492_v1, %v3559_v28  ;;  %v3047_v12 = vmax.f32 %v3045_v38, %v3046_v63  ;;  %v3054_v13 = vmax.f32 %v3052_v29, %v3053_v34  ;;  %v2619_v18 = vmul.f32 %v5435_v11, %v2521_v7 }
 0x3b8   : > { %v3041_v8 = vrot.slane %v3040_v55, 2  ;;  %v3061_v53 = vmax.f32 %v3059_v37, %v3060_v14  ;;  %v2716_v10 = vmax.f32 %v2684_v48, 0.0  ;;  %v2686_v4 = vadd.f32 %v5450_v39, %v2650_v49 }
 0x3b9   : > { %v3048_v54 = vrot.slane %v3047_v12, 2  ;;  %v3055_v33 = vrot.slane %v3054_v13, 2  ;;  %v2691_v0 = vadd.f32 %v5450_v39, %v2655_v47  ;;  %v2651_v17 = vadd.f32 %v2619_v18, %v5350_v24 }
 0x3ba   : > { %v3561_v50 = vsel %vm3542_vm6, %v3493_v16, %v3560_v27  ;;  %v3042_v21 = vmax.f32 %v3040_v55, %v3041_v8  ;;  %v3062_v40 = vrot.slane %v3061_v53, 2  ;;  %v2718_v31 = vmax.f32 %v2686_v4, 0.0 }
 0x3bb   : > { %v3049_v43 = vmax.f32 %v3047_v12, %v3048_v54  ;;  %v3056_v1 = vmax.f32 %v3054_v13, %v3055_v33  ;;  %v2687_v52 = vadd.f32 %v5450_v39, %v2651_v17  ;;  %v2621_v23 = vmul.f32 %v5435_v11, %v2531_v20 }
 0x3bc   : > { %v3043_v2 = vrot.slane %v3042_v21, 1  ;;  %v3063_v28 = vmax.f32 %v3061_v53, %v3062_v40  ;;  %v2755_v35 = vsel %vm2736_vm2, %v2716_v10, -inf  ;;  %v2756_v45 = vsel %vm2736_vm2, %v2718_v31, -inf }
 0x3bd   : > { %v3050_v22 = vrot.slane %v3049_v43, 1  ;;  %v3057_v3 = vrot.slane %v3056_v1, 1  ;;  %v2757_v24 = vmax.f32 %v2755_v35, %v2756_v45  ;;  %v2723_v26 = vmax.f32 %v2691_v0, 0.0 }
 0x3be   : > { %v3044_v16 = vmax.f32 %v3042_v21, %v3043_v2  ;;  %v3064_v25 = vrot.slane %v3063_v28, 1  ;;  %v2719_v32 = vmax.f32 %v2687_v52, 0.0  ;;  %v2653_v6 = vadd.f32 %v2621_v23, %v5401_v62 }
 0x3bf   : > { %v3051_v41 = vmax.f32 %v3049_v43, %v3050_v22  ;;  %v3058_v61 = vmax.f32 %v3056_v1, %v3057_v3  ;;  %v2819_v56 = vrot.slane %v2757_v24, 2  ;;  %v2820_v38 = vrot.slane %v2757_v24, 4 }
 0x3c0   : > { %v3065_v29 = vmax.f32 %v3063_v28, %v3064_v25  ;;  %v3366_v7 = vpack.c.bf16 %v3044_v16, %v3044_v16  ;;  %v2821_v63 = vrot.slane %v2757_v24, 6  ;;  %v3066_v34 = vsel %vm2897_vm3, %v2757_v24, -inf }
 0x3c1   : > { %v3367_v37 = vpack.c.bf16 %v3051_v41, %v3051_v41  ;;  %v3368_v48 = vpack.c.bf16 %v3058_v61, %v3058_v61  ;;  %v3067_v55 = vrot.slane %v3066_v34, 4  ;;  %v3073_v14 = vsel %vm2897_vm3, %v2819_v56, -inf }
 0x3c2   : > { %v3369_v49 = vpack.c.bf16 %v3065_v29, %v3065_v29  ;;  %v3494_v47 = vunpack.c.l.b16 %v3366_v7  ;;  %v3074_v27 = vrot.slane %v3073_v14, 4  ;;  %v3080_v12 = vsel %vm2897_vm3, %v2820_v38, -inf }
 0x3c3   : > { %v3495_v62 = vunpack.c.l.b16 %v3367_v37  ;;  %v3496_v13 = vunpack.c.l.b16 %v3368_v48  ;;  %v3068_v18 = vmax.f32 %v3066_v34, %v3067_v55  ;;  %v3081_v8 = vrot.slane %v3080_v12, 4 }
 0x3c4   : > { %v3497_v53 = vunpack.c.l.b16 %v3369_v49  ;;  %v3562_v10 = vsel %vm3544_vm7, %v3494_v47, %v3561_v50  ;;  %v3075_v4 = vmax.f32 %v3073_v14, %v3074_v27  ;;  %v3087_v20 = vsel %vm2897_vm3, %v2821_v63, -inf }
 0x3c5   : > { %v3563_v54 = vsel %vm3546_vm8, %v3495_v62, %v3562_v10  ;;  %v3069_v33 = vrot.slane %v3068_v18, 2  ;;  %v3082_v0 = vmax.f32 %v3080_v12, %v3081_v8  ;;  %v3088_v17 = vrot.slane %v3087_v20, 4 }
 0x3c6   : > { %v3564_v21 = vsel %vm3548_vm9, %v3496_v13, %v3563_v54  ;;  %v3076_v40 = vrot.slane %v3075_v4, 2  ;;  %v2759_v31 = vsel %vm2736_vm2, %v2719_v32, -inf  ;;  %v2689_v43 = vadd.f32 %v5450_v39, %v2653_v6 }
 0x3c7   : > { %v3565_v1 = vsel %vm3550_vm10, %v3497_v53, %v3564_v21  ;;  %v3070_v52 = vmax.f32 %v3068_v18, %v3069_v33  ;;  %v3083_v50 = vrot.slane %v3082_v0, 2  ;;  %v3089_v23 = vmax.f32 %v3087_v20, %v3088_v17  ;;  %v2571_v17 = vpop.permute.xlu2 %2570 }
 0x3c8   : > { %v3603_v2 = vpack.c.b16 %v3565_v1, %v3565_v1  ;;  %v3077_v28 = vmax.f32 %v3075_v4, %v3076_v40  ;;  %v2765_v35 = vsel %vm2736_vm2, %v2723_v26, -inf  ;;  %v2760_v45 = vmax.f32 %v5541_v15, %v2759_v31 }
 0x3c9   : > { %v3071_v22 = vrot.slane %v3070_v52, 1  ;;  %v3084_v3 = vmax.f32 %v3082_v0, %v3083_v50  ;;  %v3090_v24 = vrot.slane %v3089_v23, 2  ;;  %v2721_v16 = vmax.f32 %v2689_v43, 0.0 }
 0x3ca   : > { %3620 = vst.msk [vmem:[%s5525_s13 + $0x8] sm:$0xf] %vm3617_vm11, %v3603_v2  ;;  %v3078_v25 = vrot.slane %v3077_v28, 1  ;;  %v2822_v32 = vrot.slane %v2760_v45, 2  ;;  %v2823_v6 = vrot.slane %v2760_v45, 4  ;;  %v2824_v41 = vrot.slane %v2760_v45, 6 }
 0x3cb   : > { %v3072_v61 = vmax.f32 %v3070_v52, %v3071_v22  ;;  %v3085_v56 = vrot.slane %v3084_v3, 1  ;;  %v3091_v38 = vmax.f32 %v3089_v23, %v3090_v24  ;;  %v3094_v29 = vsel %vm2897_vm3, %v2760_v45, -inf }
 0x3cc   : > { %v3079_v7 = vmax.f32 %v3077_v28, %v3078_v25  ;;  %v3095_v63 = vrot.slane %v3094_v29, 4  ;;  %v3101_v26 = vsel %vm2897_vm3, %v2822_v32, -inf  ;;  %v3108_v15 = vsel %vm2897_vm3, %v2823_v6, -inf }
 0x3cd   : > { %v3086_v34 = vmax.f32 %v3084_v3, %v3085_v56  ;;  %v3092_v37 = vrot.slane %v3091_v38, 1  ;;  %v3370_v48 = vpack.c.bf16 %v3072_v61, %v3072_v61  ;;  %v3102_v55 = vrot.slane %v3101_v26, 4 }
 0x3ce   : > { %v3371_v14 = vpack.c.bf16 %v3079_v7, %v3079_v7  ;;  %v3096_v49 = vmax.f32 %v3094_v29, %v3095_v63  ;;  %v3109_v47 = vrot.slane %v3108_v15, 4  ;;  %v3115_v27 = vsel %vm2897_vm3, %v2824_v41, -inf }
 0x3cf   : > { %v3093_v12 = vmax.f32 %v3091_v38, %v3092_v37  ;;  %v3372_v62 = vpack.c.bf16 %v3086_v34, %v3086_v34  ;;  %v3498_v13 = vunpack.c.l.b16 %v3370_v48  ;;  %v3103_v18 = vmax.f32 %v3101_v26, %v3102_v55 }
 0x3d0   : > { %v3499_v8 = vunpack.c.l.b16 %v3371_v14  ;;  %v3097_v53 = vrot.slane %v3096_v49, 2  ;;  %v3110_v10 = vmax.f32 %v3108_v15, %v3109_v47  ;;  %v3116_v4 = vrot.slane %v3115_v27, 4  ;;  %v2536_v14 = vpop.permute.xlu1 %2535 }
 0x3d1   : > { %v3373_v20 = vpack.c.bf16 %v3093_v12, %v3093_v12  ;;  %v3500_v54 = vunpack.c.l.b16 %v3372_v62  ;;  %v3104_v33 = vrot.slane %v3103_v18, 2  ;;  %v2764_v0 = vsel %vm2736_vm2, %v2721_v16, -inf }
 0x3d2   : > { %v3566_v21 = vsel %vm3538_vm4, %v3499_v8, %v3498_v13  ;;  %v3098_v40 = vmax.f32 %v3096_v49, %v3097_v53  ;;  %v3111_v31 = vrot.slane %v3110_v10, 2  ;;  %v3117_v43 = vmax.f32 %v3115_v27, %v3116_v4 }
 0x3d3   : > { %v3501_v1 = vunpack.c.l.b16 %v3373_v20  ;;  %v3567_v52 = vsel %vm3540_vm5, %v3500_v54, %v3566_v21  ;;  %v3105_v50 = vmax.f32 %v3103_v18, %v3104_v33  ;;  %v2766_v23 = vmax.f32 %v2764_v0, %v2765_v35  ;;  %v2556_v21 = vpop.permute.xlu0 %2555 }
 0x3d4   : > { %v3099_v2 = vrot.slane %v3098_v40, 1  ;;  %v3112_v28 = vmax.f32 %v3110_v10, %v3111_v31  ;;  %v3118_v45 = vrot.slane %v3117_v43, 2  ;;  %v2629_v22 = vmul.f32 %v5435_v11, %v2571_v17 }
 0x3d5   : > { %v3568_v3 = vsel %vm3542_vm6, %v3501_v1, %v3567_v52  ;;  %v3106_v24 = vrot.slane %v3105_v50, 1  ;;  %v2828_v16 = vrot.slane %v2766_v23, 2  ;;  %v2829_v25 = vrot.slane %v2766_v23, 4 }
 0x3d6   : > { %v3100_v32 = vmax.f32 %v3098_v40, %v3099_v2  ;;  %v3113_v6 = vrot.slane %v3112_v28, 1  ;;  %v3119_v41 = vmax.f32 %v3117_v43, %v3118_v45  ;;  %v2830_v61 = vrot.slane %v2766_v23, 6 }
 0x3d7   : > { %v3107_v56 = vmax.f32 %v3105_v50, %v3106_v24  ;;  %v3150_v38 = vsel %vm2897_vm3, %v2766_v23, -inf  ;;  %v3157_v29 = vsel %vm2897_vm3, %v2828_v16, -inf  ;;  %v3164_v35 = vsel %vm2897_vm3, %v2829_v25, -inf }
 0x3d8   : > { %v3114_v7 = vmax.f32 %v3112_v28, %v3113_v6  ;;  %v3120_v63 = vrot.slane %v3119_v41, 1  ;;  %v3374_v26 = vpack.c.bf16 %v3100_v32, %v3100_v32  ;;  %v3151_v15 = vrot.slane %v3150_v38, 4 }
 0x3d9   : > { %v3375_v34 = vpack.c.bf16 %v3107_v56, %v3107_v56  ;;  %v3158_v37 = vrot.slane %v3157_v29, 4  ;;  %v3165_v48 = vrot.slane %v3164_v35, 4  ;;  %v3171_v55 = vsel %vm2897_vm3, %v2830_v61, -inf  ;;  %v2601_v61 = vpop.permute.xlu2 %2600 }
 0x3da   : > { %v3121_v49 = vmax.f32 %v3119_v41, %v3120_v63  ;;  %v3376_v47 = vpack.c.bf16 %v3114_v7, %v3114_v7  ;;  %v3502_v27 = vunpack.c.l.b16 %v3374_v26  ;;  %v3152_v12 = vmax.f32 %v3150_v38, %v3151_v15 }
 0x3db   : > { %v3503_v62 = vunpack.c.l.b16 %v3375_v34  ;;  %v3159_v13 = vmax.f32 %v3157_v29, %v3158_v37  ;;  %v3166_v18 = vmax.f32 %v3164_v35, %v3165_v48  ;;  %v3172_v8 = vrot.slane %v3171_v55, 4 }
 0x3dc   : > { %v3377_v53 = vpack.c.bf16 %v3121_v49, %v3121_v49  ;;  %v3504_v10 = vunpack.c.l.b16 %v3376_v47  ;;  %v3569_v4 = vsel %vm3544_vm7, %v3502_v27, %v3568_v3  ;;  %v3153_v20 = vrot.slane %v3152_v12, 2 }
 0x3dd   : > { %v3570_v54 = vsel %vm3546_vm8, %v3503_v62, %v3569_v4  ;;  %v3160_v33 = vrot.slane %v3159_v13, 2  ;;  %v3167_v0 = vrot.slane %v3166_v18, 2  ;;  %v3173_v17 = vmax.f32 %v3171_v55, %v3172_v8 }
 0x3de   : > { %v2688_v40 = vadd.f32 %v5450_v39, %v5551_v57  ;;  %v3505_v31 = vunpack.c.l.b16 %v3377_v53  ;;  %v3571_v43 = vsel %vm3548_vm9, %v3504_v10, %v3570_v54  ;;  %v3154_v1 = vmax.f32 %v3152_v12, %v3153_v20 }
 0x3df   : > { %v2692_v52 = vadd.f32 %v5450_v39, %v5583_v44  ;;  %v3161_v50 = vmax.f32 %v3159_v13, %v3160_v33  ;;  %v3174_v23 = vrot.slane %v3173_v17, 2  ;;  %v2622_v2 = vmul.f32 %v5435_v11, %v2536_v14 }
 0x3e0   : > { %v2698_v28 = vadd.f32 %v5450_v39, %v5590_v5  ;;  %v3572_v45 = vsel %vm3550_vm10, %v3505_v31, %v3571_v43  ;;  %v2661_v3 = vadd.f32 %v2629_v22, %v5417_v51  ;;  %v2626_v57 = vmul.f32 %v5435_v11, %v2556_v21  ;;  %v2566_v39 = vpop.permute.xlu1 %2565  ;;  %v5674_v51 = vld [vmem:[%s5841_s2] ss:$0 sm:$0xff] }
 0x3e1   : > { %v3604_v24 = vpack.c.b16 %v3572_v45, %v3572_v45  ;;  %v3155_v16 = vrot.slane %v3154_v1, 1  ;;  %v3162_v25 = vrot.slane %v3161_v50, 1  ;;  %v3168_v32 = vmax.f32 %v3166_v18, %v3167_v0 }
 0x3e2   : > { %v3175_v6 = vmax.f32 %v3173_v17, %v3174_v23  ;;  %v2654_v44 = vadd.f32 %v2622_v2, %v5362_v42  ;;  %v2658_v41 = vadd.f32 %v2626_v57, %v5405_v60  ;;  %v2720_v56 = vmax.f32 %v2688_v40, 0.0 }
 0x3e3   : > { %v2724_v38 = vmax.f32 %v2692_v52, 0.0  ;;  %3621 = vst.msk [vmem:[%s5525_s13 + $0xc] sm:$0xf] %vm3617_vm11, %v3604_v24  ;;  %v2730_v5 = vmax.f32 %v2698_v28, 0.0  ;;  %v5677_v22 = vadd.f32 %v5674_v51, %v2661_v3  ;;  %v5681_v60 = vmax.f32 %v3154_v1, %v3155_v16 }
 0x3e4   : > { %v2690_v29 = vadd.f32 %v5674_v51, %v2654_v44  ;;  %v2694_v42 = vadd.f32 %v5674_v51, %v2658_v41  ;;  %v5683_v35 = vmax.f32 %v3161_v50, %v3162_v25  ;;  %v3169_v7 = vrot.slane %v3168_v32, 1 }
 0x3e5   : > { %v2635_v63 = vmul.f32 %v5435_v11, %v2601_v61  ;;  %v3176_v26 = vrot.slane %v3175_v6, 1  ;;  %v2628_v37 = vmul.f32 %v5435_v11, %v2566_v39  ;;  %v2761_v48 = vsel %vm2736_vm2, %v2720_v56, -inf  ;;  %v2586_v56 = vpop.permute.xlu0 %2585 }
 0x3e6   : > { %v2722_v15 = vmax.f32 %v2690_v29, 0.0  ;;  %v2726_v34 = vmax.f32 %v2694_v42, 0.0  ;;  %v2767_v55 = vsel %vm2736_vm2, %v2724_v38, -inf  ;;  %v5690_v14 = vsel %vm2736_vm2, %v2730_v5, -inf }
 0x3e7   : > { %v2729_v49 = vmax.f32 %v5677_v22, 0.0  ;;  %v5695_v12 = vmax.f32 %v3168_v32, %v3169_v7  ;;  %v3382_v62 = vpack.c.bf16 %v5681_v60, %v5681_v60  ;;  %v5699_v8 = vmax.f32 %v3175_v6, %v3176_v26 }
 0x3e8   : > { %v2762_v47 = vsel %vm2736_vm2, %v2722_v15, -inf  ;;  %v2768_v27 = vsel %vm2736_vm2, %v2726_v34, -inf  ;;  %v3383_v53 = vpack.c.bf16 %v5683_v35, %v5683_v35  ;;  %v2667_v10 = vadd.f32 %v2635_v63, %v5438_v30 }
 0x3e9   : > { %v2763_v13 = vmax.f32 %v2761_v48, %v2762_v47  ;;  %v2769_v18 = vmax.f32 %v2767_v55, %v2768_v27  ;;  %v2660_v4 = vadd.f32 %v2628_v37, %v5386_v59  ;;  %v3384_v37 = vpack.c.bf16 %v5695_v12, %v5695_v12 }
 0x3ea   : > { %v3510_v48 = vunpack.c.l.b16 %v3382_v62  ;;  %v5717_v47 = vadd.f32 %v5674_v51, %v2667_v10  ;;  %v3385_v12 = vpack.c.bf16 %v5699_v8, %v5699_v8  ;;  %v3511_v62 = vunpack.c.l.b16 %v3383_v53 }
 0x3eb   : > { %v2825_v20 = vrot.slane %v2763_v13, 2  ;;  %v2826_v54 = vrot.slane %v2763_v13, 4  ;;  %v2827_v33 = vrot.slane %v2763_v13, 6  ;;  %v3122_v0 = vsel %vm2897_vm3, %v2763_v13, -inf }
 0x3ec   : > { %v3123_v17 = vrot.slane %v3122_v0, 4  ;;  %v2831_v21 = vrot.slane %v2769_v18, 2  ;;  %v2832_v40 = vrot.slane %v2769_v18, 4  ;;  %v2833_v31 = vrot.slane %v2769_v18, 6 }
 0x3ed   : > { %v3129_v43 = vsel %vm2897_vm3, %v2825_v20, -inf  ;;  %v3136_v1 = vsel %vm2897_vm3, %v2826_v54, -inf  ;;  %v3143_v52 = vsel %vm2897_vm3, %v2827_v33, -inf  ;;  %v3178_v50 = vsel %vm2897_vm3, %v2769_v18, -inf }
 0x3ee   : > { %v3124_v30 = vmax.f32 %v3122_v0, %v3123_v17  ;;  %v3130_v23 = vrot.slane %v3129_v43, 4  ;;  %v3137_v59 = vrot.slane %v3136_v1, 4  ;;  %v3144_v2 = vrot.slane %v3143_v52, 4 }
 0x3ef   : > { %v3179_v28 = vrot.slane %v3178_v50, 4  ;;  %v3185_v45 = vsel %vm2897_vm3, %v2831_v21, -inf  ;;  %v3192_v3 = vsel %vm2897_vm3, %v2832_v40, -inf  ;;  %v3199_v57 = vsel %vm2897_vm3, %v2833_v31, -inf }
 0x3f0   : > { %v3125_v24 = vrot.slane %v3124_v30, 2  ;;  %v3131_v16 = vmax.f32 %v3129_v43, %v3130_v23  ;;  %v3138_v25 = vmax.f32 %v3136_v1, %v3137_v59  ;;  %v3145_v32 = vmax.f32 %v3143_v52, %v3144_v2  ;;  %v2596_v23 = vpop.permute.xlu1 %2595 }
 0x3f1   : > { %v3180_v6 = vmax.f32 %v3178_v50, %v3179_v28  ;;  %v3186_v44 = vrot.slane %v3185_v45, 4  ;;  %v3193_v41 = vrot.slane %v3192_v3, 4  ;;  %v3200_v61 = vrot.slane %v3199_v57, 4 }
 0x3f2   : > { %v3126_v38 = vmax.f32 %v3124_v30, %v3125_v24  ;;  %v3132_v39 = vrot.slane %v3131_v16, 2  ;;  %v3139_v5 = vrot.slane %v3138_v25, 2  ;;  %v3146_v29 = vrot.slane %v3145_v32, 2 }
 0x3f3   : > { %v3181_v42 = vrot.slane %v3180_v6, 2  ;;  %v3187_v60 = vmax.f32 %v3185_v45, %v3186_v44  ;;  %v3194_v35 = vmax.f32 %v3192_v3, %v3193_v41  ;;  %v2696_v7 = vadd.f32 %v5674_v51, %v2660_v4  ;;  %v2551_v3 = vpop.permute.xlu0 %2550 }
 0x3f4   : > { %v3127_v63 = vrot.slane %v3126_v38, 1  ;;  %v3133_v26 = vmax.f32 %v3131_v16, %v3132_v39  ;;  %v3140_v15 = vmax.f32 %v3138_v25, %v3139_v5  ;;  %v3147_v34 = vmax.f32 %v3145_v32, %v3146_v29 }
 0x3f5   : > { %v3201_v55 = vmax.f32 %v3199_v57, %v3200_v61  ;;  %v3182_v54 = vmax.f32 %v3180_v6, %v3181_v42  ;;  %v3188_v33 = vrot.slane %v3187_v60, 2  ;;  %v3195_v0 = vrot.slane %v3194_v35, 2 }
 0x3f6   : > { %v3128_v27 = vmax.f32 %v3126_v38, %v3127_v63  ;;  %v3134_v13 = vrot.slane %v3133_v26, 1  ;;  %v3141_v18 = vrot.slane %v3140_v15, 1  ;;  %v3148_v20 = vrot.slane %v3147_v34, 1 }
 0x3f7   : > { %v2728_v4 = vmax.f32 %v2696_v7, 0.0  ;;  %v3202_v43 = vrot.slane %v3201_v55, 2  ;;  %v2632_v10 = vmul.f32 %v5435_v11, %v2586_v56  ;;  %v3512_v1 = vunpack.c.l.b16 %v3384_v37 }
 0x3f8   : > { %v3135_v17 = vmax.f32 %v3133_v26, %v3134_v13  ;;  %v3142_v21 = vmax.f32 %v3140_v15, %v3141_v18  ;;  %v3149_v40 = vmax.f32 %v3147_v34, %v3148_v20  ;;  %v3378_v31 = vpack.c.bf16 %v3128_v27, %v3128_v27 }
 0x3f9   : > { %v3183_v59 = vrot.slane %v3182_v54, 1  ;;  %v3189_v2 = vmax.f32 %v3187_v60, %v3188_v33  ;;  %v3196_v28 = vmax.f32 %v3194_v35, %v3195_v0  ;;  %v2735_v45 = vmax.f32 %v5717_v47, 0.0 }
 0x3fa   : > { %v3379_v52 = vpack.c.bf16 %v3135_v17, %v3135_v17  ;;  %v3380_v50 = vpack.c.bf16 %v3142_v21, %v3142_v21  ;;  %v3381_v30 = vpack.c.bf16 %v3149_v40, %v3149_v40  ;;  %v3506_v57 = vunpack.c.l.b16 %v3378_v31 }
 0x3fb   : > { %v2773_v8 = vsel %vm2736_vm2, %v2728_v4, -inf  ;;  %v3513_v53 = vunpack.c.l.b16 %v3385_v12  ;;  %v3203_v25 = vmax.f32 %v3201_v55, %v3202_v43  ;;  %v2664_v32 = vadd.f32 %v2632_v10, %v5425_v36  ;;  %v2561_v4 = vpop.permute.xlu1 %2560 }
 0x3fc   : > { %v3507_v24 = vunpack.c.l.b16 %v3379_v52  ;;  %v3508_v16 = vunpack.c.l.b16 %v3380_v50  ;;  %v2634_v6 = vmul.f32 %v5435_v11, %v2596_v23  ;;  %v3509_v44 = vunpack.c.l.b16 %v3381_v30 }
 0x3fd   : > { %v2775_v61 = vmax.f32 %v2773_v8, %v5690_v14  ;;  %v2625_v56 = vmul.f32 %v5435_v11, %v2551_v3  ;;  %v5730_v39 = vmax.f32 %v3182_v54, %v3183_v59  ;;  %v3190_v5 = vrot.slane %v3189_v2, 1 }
 0x3fe   : > { %v3573_v41 = vsel %vm3538_vm4, %v3507_v24, %v3506_v57  ;;  %v3197_v29 = vrot.slane %v3196_v28, 1  ;;  %v3204_v63 = vrot.slane %v3203_v25, 1  ;;  %v2700_v14 = vadd.f32 %v5674_v51, %v2664_v32 }
 0x3ff   : > { %v3574_v38 = vsel %vm3540_vm5, %v3508_v16, %v3573_v41  ;;  %v2837_v60 = vrot.slane %v2775_v61, 2  ;;  %v2838_v35 = vrot.slane %v2775_v61, 4  ;;  %v2839_v36 = vrot.slane %v2775_v61, 6 }
 0x400   : > { %v3575_v42 = vsel %vm3542_vm6, %v3509_v44, %v3574_v38  ;;  %v3234_v26 = vsel %vm2897_vm3, %v2775_v61, -inf  ;;  %v2666_v55 = vadd.f32 %v2634_v6, %v5410_v58  ;;  %v3191_v13 = vmax.f32 %v3189_v2, %v3190_v5  ;;  %v2581_v6 = vpop.permute.xlu0 %2580 }
 0x401   : > { %v3576_v7 = vsel %vm3544_vm7, %v3510_v48, %v3575_v42  ;;  %v3235_v34 = vrot.slane %v3234_v26, 4  ;;  %v3241_v37 = vsel %vm2897_vm3, %v2837_v60, -inf  ;;  %v3248_v20 = vsel %vm2897_vm3, %v2838_v35, -inf }
 0x402   : > { %v3577_v15 = vsel %vm3546_vm8, %v3511_v62, %v3576_v7  ;;  %v3242_v18 = vrot.slane %v3241_v37, 4  ;;  %v3249_v33 = vrot.slane %v3248_v20, 4  ;;  %v3255_v0 = vsel %vm2897_vm3, %v2839_v36, -inf }
 0x403   : > { %v3578_v27 = vsel %vm3548_vm9, %v3512_v1, %v3577_v15  ;;  %v3236_v54 = vmax.f32 %v3234_v26, %v3235_v34  ;;  %v3198_v21 = vmax.f32 %v3196_v28, %v3197_v29  ;;  %v3256_v31 = vrot.slane %v3255_v0, 4 }
 0x404   : > { %v3579_v48 = vsel %vm3550_vm10, %v3513_v53, %v3578_v27  ;;  %v3243_v40 = vmax.f32 %v3241_v37, %v3242_v18  ;;  %v3250_v58 = vmax.f32 %v3248_v20, %v3249_v33  ;;  %v2732_v62 = vmax.f32 %v2700_v14, 0.0 }
 0x405   : > { %v3605_v17 = vpack.c.b16 %v3579_v48, %v3579_v48  ;;  %v3237_v12 = vrot.slane %v3236_v54, 2  ;;  %v2702_v43 = vadd.f32 %v5674_v51, %v2666_v55  ;;  %v3387_v10 = vpack.c.bf16 %v3191_v13, %v3191_v13 }
 0x406   : > { %v3244_v1 = vrot.slane %v3243_v40, 2  ;;  %v3257_v52 = vmax.f32 %v3255_v0, %v3256_v31  ;;  %v2627_v50 = vmul.f32 %v5435_v11, %v2561_v4  ;;  %v3251_v23 = vrot.slane %v3250_v58, 2 }
 0x407   : > { %3622 = vst.msk [vmem:[%s5525_s13 + $0x10] sm:$0xf] %vm3617_vm11, %v3605_v17  ;;  %v3238_v30 = vmax.f32 %v3236_v54, %v3237_v12  ;;  %v2734_v59 = vmax.f32 %v2702_v43, 0.0  ;;  %v2657_v2 = vadd.f32 %v2625_v56, %v5374_v19  ;;  %v3205_v28 = vmax.f32 %v3203_v25, %v3204_v63 }
 0x408   : > { %v3386_v3 = vpack.c.bf16 %v5730_v39, %v5730_v39  ;;  %v3245_v57 = vmax.f32 %v3243_v40, %v3244_v1  ;;  %v3258_v24 = vrot.slane %v3257_v52, 2  ;;  %v3252_v16 = vmax.f32 %v3250_v58, %v3251_v23 }
 0x409   : > { %v2779_v8 = vsel %vm2736_vm2, %v2732_v62, -inf  ;;  %v2780_v53 = vsel %vm2736_vm2, %v2734_v59, -inf  ;;  %v2659_v32 = vadd.f32 %v2627_v50, %v5421_v9  ;;  %v3239_v44 = vrot.slane %v3238_v30, 1 }
 0x40a   : > { %v3246_v41 = vrot.slane %v3245_v57, 1  ;;  %v3259_v61 = vmax.f32 %v3257_v52, %v3258_v24  ;;  %v2781_v38 = vmax.f32 %v2779_v8, %v2780_v53  ;;  %v3388_v5 = vpack.c.bf16 %v3198_v21, %v3198_v21 }
 0x40b   : > { %v3515_v19 = vunpack.c.l.b16 %v3387_v10  ;;  %v3253_v25 = vrot.slane %v3252_v16, 1  ;;  %v2693_v56 = vadd.f32 %v5674_v51, %v2657_v2  ;;  %v2631_v60 = vmul.f32 %v5435_v11, %v2581_v6 }
 0x40c   : > { %v3247_v39 = vmax.f32 %v3245_v57, %v3246_v41  ;;  %v2843_v29 = vrot.slane %v2781_v38, 2  ;;  %v2844_v42 = vrot.slane %v2781_v38, 4  ;;  %v3389_v35 = vpack.c.bf16 %v3205_v28, %v3205_v28 }
 0x40d   : > { %v3514_v36 = vunpack.c.l.b16 %v3386_v3  ;;  %v3290_v7 = vsel %vm2897_vm3, %v2781_v38, -inf  ;;  %v2695_v9 = vadd.f32 %v5674_v51, %v2659_v32  ;;  %v3240_v63 = vmax.f32 %v3238_v30, %v3239_v44 }
 0x40e   : > { %v3260_v26 = vrot.slane %v3259_v61, 1  ;;  %v3291_v14 = vrot.slane %v3290_v7, 4  ;;  %v3297_v15 = vsel %vm2897_vm3, %v2843_v29, -inf  ;;  %v3254_v34 = vmax.f32 %v3252_v16, %v3253_v25 }
 0x40f   : > { %v3298_v37 = vrot.slane %v3297_v15, 4  ;;  %v3304_v55 = vsel %vm2897_vm3, %v2844_v42, -inf  ;;  %v2725_v27 = vmax.f32 %v2693_v56, 0.0  ;;  %v3516_v13 = vunpack.c.l.b16 %v3388_v5 }
 0x410   : > { %v3580_v18 = vsel %vm3538_vm4, %v3515_v19, %v3514_v36  ;;  %v3395_v20 = vpack.c.bf16 %v3247_v39, %v3247_v39  ;;  %v2663_v48 = vadd.f32 %v2631_v60, %v5398_v46  ;;  %v2845_v54 = vrot.slane %v2781_v38, 6 }
 0x411   : > { %v3292_v33 = vmax.f32 %v3290_v7, %v3291_v14  ;;  %v3305_v0 = vrot.slane %v3304_v55, 4  ;;  %v2727_v4 = vmax.f32 %v2695_v9, 0.0  ;;  %v2776_v17 = vsel %vm2736_vm2, %v2729_v49, -inf  ;;  %v2591_v7 = vpop.permute.xlu1 %2590 }
 0x412   : > { %v5767_v21 = vsel %vm2736_vm2, %v2735_v45, -inf  ;;  %v3261_v40 = vmax.f32 %v3259_v61, %v3260_v26  ;;  %v3394_v31 = vpack.c.bf16 %v3240_v63, %v3240_v63  ;;  %v3396_v12 = vpack.c.bf16 %v3254_v34, %v3254_v34 }
 0x413   : > { %v3299_v58 = vmax.f32 %v3297_v15, %v3298_v37  ;;  %v2770_v62 = vsel %vm2736_vm2, %v2725_v27, -inf  ;;  %v2771_v46 = vsel %vm2736_vm2, %v2727_v4, -inf  ;;  %v3517_v43 = vunpack.c.l.b16 %v3389_v35 }
 0x414   : > { %v3581_v10 = vsel %vm3540_vm5, %v3516_v13, %v3580_v18  ;;  %v3523_v1 = vunpack.c.l.b16 %v3395_v20  ;;  %v2772_v22 = vmax.f32 %v2770_v62, %v2771_v46  ;;  %v3293_v52 = vrot.slane %v3292_v33, 2 }
 0x415   : > { %v3306_v49 = vmax.f32 %v3304_v55, %v3305_v0  ;;  %v3311_v47 = vsel %vm2897_vm3, %v2845_v54, -inf  ;;  %v2699_v45 = vadd.f32 %v5674_v51, %v2663_v48  ;;  %v3397_v50 = vpack.c.bf16 %v3261_v40, %v3261_v40 }
 0x416   : > { %v3522_v30 = vunpack.c.l.b16 %v3394_v31  ;;  %v2834_v23 = vrot.slane %v2772_v22, 2  ;;  %v2835_v59 = vrot.slane %v2772_v22, 4  ;;  %v3524_v2 = vunpack.c.l.b16 %v3396_v12 }
 0x417   : > { %v3300_v28 = vrot.slane %v3299_v58, 2  ;;  %v2836_v3 = vrot.slane %v2772_v22, 6  ;;  %v3206_v57 = vsel %vm2897_vm3, %v2772_v22, -inf  ;;  %v3312_v16 = vrot.slane %v3311_v47, 4 }
 0x418   : > { %v3587_v24 = vsel %vm3538_vm4, %v3523_v1, %v3522_v30  ;;  %v3207_v8 = vrot.slane %v3206_v57, 4  ;;  %v3213_v53 = vsel %vm2897_vm3, %v2834_v23, -inf  ;;  %v3294_v32 = vmax.f32 %v3292_v33, %v3293_v52  ;;  %v6225_v52 = vld [vmem:[#allocation14_spill] sm:$0xff] }
 0x419   : > { %v3307_v6 = vrot.slane %v3306_v49, 2  ;;  %v3214_v44 = vrot.slane %v3213_v53, 4  ;;  %v3220_v41 = vsel %vm2897_vm3, %v2835_v59, -inf  ;;  %v3582_v61 = vsel %vm3542_vm6, %v3517_v43, %v3581_v10 }
 0x41a   : > { %v3208_v38 = vmax.f32 %v3206_v57, %v3207_v8  ;;  %v3221_v5 = vrot.slane %v3220_v41, 4  ;;  %v2731_v19 = vmax.f32 %v2699_v45, 0.0  ;;  %v3588_v25 = vsel %vm3540_vm5, %v3524_v2, %v3587_v24 }
 0x41b   : > { %v5780_v56 = vmax.f32 %v3299_v58, %v3300_v28  ;;  %v3215_v39 = vmax.f32 %v3213_v53, %v3214_v44  ;;  %v3227_v29 = vsel %vm2897_vm3, %v2836_v3, -inf  ;;  %v3525_v42 = vunpack.c.l.b16 %v3397_v50 }
 0x41c   : > { %v5783_v60 = vmax.f32 %v3311_v47, %v3312_v16  ;;  %v3209_v35 = vrot.slane %v3208_v38, 2  ;;  %v3222_v36 = vmax.f32 %v3220_v41, %v3221_v5  ;;  %v3295_v9 = vrot.slane %v3294_v32, 1 }
 0x41d   : > { %v5785_v63 = vmax.f32 %v3306_v49, %v3307_v6  ;;  %v3216_v26 = vrot.slane %v3215_v39, 2  ;;  %v3228_v14 = vrot.slane %v3227_v29, 4  ;;  %v5788_v15 = vsel %vm3542_vm6, %v3525_v42, %v3588_v25 }
 0x41e   : > { %v3210_v34 = vmax.f32 %v3208_v38, %v3209_v35  ;;  %v3223_v37 = vrot.slane %v3222_v36, 2  ;;  %v2777_v55 = vsel %vm2736_vm2, %v2731_v19, -inf  ;;  %v3302_v27 = vrot.slane %v5780_v56, 1 }
 0x41f   : > { %v3217_v13 = vmax.f32 %v3215_v39, %v3216_v26  ;;  %v3229_v18 = vmax.f32 %v3227_v29, %v3228_v14  ;;  %v2633_v20 = vmul.f32 %v5435_v11, %v2591_v7  ;;  %v3314_v48 = vrot.slane %v5783_v60, 2 }
 0x420   : > { %v3211_v54 = vrot.slane %v3210_v34, 1  ;;  %v3224_v33 = vmax.f32 %v3222_v36, %v3223_v37  ;;  %v2778_v0 = vmax.f32 %v2776_v17, %v2777_v55  ;;  %v5794_v4 = vmax.f32 %v3294_v32, %v3295_v9 }
 0x421   : > { %v3309_v40 = vrot.slane %v5785_v63, 1  ;;  %v3218_v31 = vrot.slane %v3217_v13, 1  ;;  %v3230_v12 = vrot.slane %v3229_v18, 2  ;;  %v2665_v11 = vadd.f32 %v2633_v20, %v6225_v52 }
 0x422   : > { %v3212_v58 = vmax.f32 %v3210_v34, %v3211_v54  ;;  %v3225_v62 = vrot.slane %v3224_v33, 1  ;;  %v2840_v46 = vrot.slane %v2778_v0, 2  ;;  %v2841_v43 = vrot.slane %v2778_v0, 4 }
 0x423   : > { %v3219_v10 = vmax.f32 %v3217_v13, %v3218_v31  ;;  %v3231_v1 = vmax.f32 %v3229_v18, %v3230_v12  ;;  %v2842_v22 = vrot.slane %v2778_v0, 6  ;;  %v3262_v45 = vsel %vm2897_vm3, %v2778_v0, -inf }
 0x424   : > { %v3226_v49 = vmax.f32 %v3224_v33, %v3225_v62  ;;  %v3390_v47 = vpack.c.bf16 %v3212_v58, %v3212_v58  ;;  %v3269_v17 = vsel %vm2897_vm3, %v2840_v46, -inf  ;;  %v3263_v23 = vrot.slane %v3262_v45, 4 }
 0x425   : > { %v3232_v50 = vrot.slane %v3231_v1, 1  ;;  %v3391_v30 = vpack.c.bf16 %v3219_v10, %v3219_v10  ;;  %v3270_v59 = vrot.slane %v3269_v17, 4  ;;  %v3276_v3 = vsel %vm2897_vm3, %v2841_v43, -inf }
 0x426   : > { %v3392_v2 = vpack.c.bf16 %v3226_v49, %v3226_v49  ;;  %v3518_v28 = vunpack.c.l.b16 %v3390_v47  ;;  %v3283_v57 = vsel %vm2897_vm3, %v2842_v22, -inf  ;;  %v3264_v8 = vmax.f32 %v3262_v45, %v3263_v23 }
 0x427   : > { %v3233_v24 = vmax.f32 %v3231_v1, %v3232_v50  ;;  %v3519_v16 = vunpack.c.l.b16 %v3391_v30  ;;  %v3271_v53 = vmax.f32 %v3269_v17, %v3270_v59  ;;  %v3277_v44 = vrot.slane %v3276_v3, 4 }
 0x428   : > { %v3520_v32 = vunpack.c.l.b16 %v3392_v2  ;;  %v3583_v6 = vsel %vm3544_vm7, %v3518_v28, %v3582_v61  ;;  %v3284_v41 = vrot.slane %v3283_v57, 4  ;;  %v3265_v19 = vrot.slane %v3264_v8, 2 }
 0x429   : > { %v3393_v38 = vpack.c.bf16 %v3233_v24, %v3233_v24  ;;  %v3584_v5 = vsel %vm3546_vm8, %v3519_v16, %v3583_v6  ;;  %v3272_v25 = vrot.slane %v3271_v53, 2  ;;  %v3278_v29 = vmax.f32 %v3276_v3, %v3277_v44 }
 0x42a   : > { %v3585_v39 = vsel %vm3548_vm9, %v3520_v32, %v3584_v5  ;;  %v3285_v42 = vmax.f32 %v3283_v57, %v3284_v41  ;;  %v2701_v35 = vadd.f32 %v5674_v51, %v2665_v11  ;;  %v3303_v36 = vmax.f32 %v5780_v56, %v3302_v27 }
 0x42b   : > { %v3521_v7 = vunpack.c.l.b16 %v3393_v38  ;;  %v3266_v9 = vmax.f32 %v3264_v8, %v3265_v19  ;;  %v3273_v26 = vmax.f32 %v3271_v53, %v3272_v25  ;;  %v3315_v61 = vmax.f32 %v5783_v60, %v3314_v48 }
 0x42c   : > { %v3279_v14 = vrot.slane %v3278_v29, 2  ;;  %v3286_v34 = vrot.slane %v3285_v42, 2  ;;  %v2733_v37 = vmax.f32 %v2701_v35, 0.0  ;;  %v3310_v55 = vmax.f32 %v5785_v63, %v3309_v40 }
 0x42d   : > { %v3586_v13 = vsel %vm3550_vm10, %v3521_v7, %v3585_v39  ;;  %v3267_v18 = vrot.slane %v3266_v9, 1  ;;  %v3274_v20 = vrot.slane %v3273_v26, 1  ;;  %v3402_v27 = vpack.c.bf16 %v5794_v4, %v5794_v4 }
 0x42e   : > { %v3606_v54 = vpack.c.b16 %v3586_v13, %v3586_v13  ;;  %v3280_v33 = vmax.f32 %v3278_v29, %v3279_v14  ;;  %v3287_v51 = vmax.f32 %v3285_v42, %v3286_v34  ;;  %v2782_v56 = vsel %vm2736_vm2, %v2733_v37, -inf }
 0x42f   : > { %v3268_v0 = vmax.f32 %v3266_v9, %v3267_v18  ;;  %v3275_v60 = vmax.f32 %v3273_v26, %v3274_v20  ;;  %v2784_v48 = vmax.f32 %v2782_v56, %v5767_v21  ;;  %v3316_v31 = vrot.slane %v3315_v61, 1 }
 0x430   : > { %v3403_v12 = vpack.c.bf16 %v3303_v36, %v3303_v36  ;;  %3623 = vst.msk [vmem:[%s5525_s13 + $0x14] sm:$0xf] %vm3617_vm11, %v3606_v54  ;;  %v3281_v63 = vrot.slane %v3280_v33, 1  ;;  %v3288_v40 = vrot.slane %v3287_v51, 1  ;;  %v3404_v28 = vpack.c.bf16 %v3310_v55, %v3310_v55 }
 0x431   : > { %v3398_v58 = vpack.c.bf16 %v3268_v0, %v3268_v0  ;;  %v3399_v62 = vpack.c.bf16 %v3275_v60, %v3275_v60  ;;  %v2846_v46 = vrot.slane %v2784_v48, 2  ;;  %v2847_v43 = vrot.slane %v2784_v48, 4 }
 0x432   : > { %v3282_v10 = vmax.f32 %v3280_v33, %v3281_v63  ;;  %v3289_v1 = vmax.f32 %v3287_v51, %v3288_v40  ;;  %v2848_v22 = vrot.slane %v2784_v48, 6  ;;  %v3318_v52 = vsel %vm2897_vm3, %v2784_v48, -inf }
 0x433   : > { %v3526_v4 = vunpack.c.l.b16 %v3398_v58  ;;  %v3527_v11 = vunpack.c.l.b16 %v3399_v62  ;;  %v3319_v49 = vrot.slane %v3318_v52, 4  ;;  %v3325_v21 = vsel %vm2897_vm3, %v2846_v46, -inf }
 0x434   : > { %v3400_v47 = vpack.c.bf16 %v3282_v10, %v3282_v10  ;;  %v3401_v45 = vpack.c.bf16 %v3289_v1, %v3289_v1  ;;  %v3326_v17 = vrot.slane %v3325_v21, 4  ;;  %v3332_v50 = vsel %vm2897_vm3, %v2847_v43, -inf }
 0x435   : > { %v3590_v30 = vsel %vm3544_vm7, %v3526_v4, %v5788_v15  ;;  %v3320_v23 = vmax.f32 %v3318_v52, %v3319_v49  ;;  %v3333_v59 = vrot.slane %v3332_v50, 4  ;;  %v3339_v2 = vsel %vm2897_vm3, %v2848_v22, -inf }
 0x436   : > { %v3528_v3 = vunpack.c.l.b16 %v3400_v47  ;;  %v3591_v57 = vsel %vm3546_vm8, %v3527_v11, %v3590_v30  ;;  %v3327_v24 = vmax.f32 %v3325_v21, %v3326_v17  ;;  %v3529_v16 = vunpack.c.l.b16 %v3401_v45 }
 0x437   : > { %v3321_v8 = vrot.slane %v3320_v23, 2  ;;  %v3334_v53 = vmax.f32 %v3332_v50, %v3333_v59  ;;  %v3340_v32 = vrot.slane %v3339_v2, 4  ;;  %v3317_v6 = vmax.f32 %v3315_v61, %v3316_v31 }
 0x438   : > { %v3531_v44 = vunpack.c.l.b16 %v3403_v12  ;;  %v3592_v41 = vsel %vm3548_vm9, %v3528_v3, %v3591_v57  ;;  %v3328_v38 = vrot.slane %v3327_v24, 2  ;;  %v3530_v39 = vunpack.c.l.b16 %v3402_v27 }
 0x439   : > { %v3593_v15 = vsel %vm3550_vm10, %v3529_v16, %v3592_v41  ;;  %v3322_v5 = vmax.f32 %v3320_v23, %v3321_v8  ;;  %v3335_v19 = vrot.slane %v3334_v53, 2  ;;  %v3341_v25 = vmax.f32 %v3339_v2, %v3340_v32 }
 0x43a   : > { %v3607_v29 = vpack.c.b16 %v3593_v15, %v3593_v15  ;;  %v3329_v42 = vmax.f32 %v3327_v24, %v3328_v38  ;;  %v3532_v35 = vunpack.c.l.b16 %v3404_v28  ;;  %v3405_v26 = vpack.c.bf16 %v3317_v6, %v3317_v6 }
 0x43b   : > { %v3323_v36 = vrot.slane %v3322_v5, 1  ;;  %v3336_v7 = vmax.f32 %v3334_v53, %v3335_v19  ;;  %v3342_v9 = vrot.slane %v3341_v25, 2  ;;  %v3594_v61 = vsel %vm3538_vm4, %v3531_v44, %v3530_v39 }
 0x43c   : > { %3624 = vst.msk [vmem:[%s5525_s13 + $0x18] sm:$0xf] %vm3617_vm11, %v3607_v29  ;;  %v3330_v14 = vrot.slane %v3329_v42, 1  ;;  %v3595_v18 = vsel %vm3540_vm5, %v3532_v35, %v3594_v61  ;;  %v3533_v51 = vunpack.c.l.b16 %v3405_v26 }
 0x43d   : > { %v3324_v34 = vmax.f32 %v3322_v5, %v3323_v36  ;;  %v3337_v37 = vrot.slane %v3336_v7, 1  ;;  %v3343_v55 = vmax.f32 %v3341_v25, %v3342_v9 }
 0x43e   : > { %v3331_v13 = vmax.f32 %v3329_v42, %v3330_v14  ;;  %v3596_v48 = vsel %vm3542_vm6, %v3533_v51, %v3595_v18 }
 0x43f   : > { %v3338_v20 = vmax.f32 %v3336_v7, %v3337_v37  ;;  %v3344_v54 = vrot.slane %v3343_v55, 1  ;;  %v3406_v33 = vpack.c.bf16 %v3324_v34, %v3324_v34 }
 0x440   : > { %v3407_v56 = vpack.c.bf16 %v3331_v13, %v3331_v13 }
 0x441   : > { %v3345_v27 = vmax.f32 %v3343_v55, %v3344_v54  ;;  %v3408_v0 = vpack.c.bf16 %v3338_v20, %v3338_v20  ;;  %v3534_v60 = vunpack.c.l.b16 %v3406_v33 }
 0x442   : > { %v3535_v31 = vunpack.c.l.b16 %v3407_v56 }
 0x443   : > { %v3409_v12 = vpack.c.bf16 %v3345_v27, %v3345_v27  ;;  %v3536_v63 = vunpack.c.l.b16 %v3408_v0  ;;  %v3597_v40 = vsel %vm3544_vm7, %v3534_v60, %v3596_v48 }
 0x444   : > { %v3598_v58 = vsel %vm3546_vm8, %v3535_v31, %v3597_v40 }
 0x445   : > { %v3537_v62 = vunpack.c.l.b16 %v3409_v12  ;;  %v3599_v46 = vsel %vm3548_vm9, %v3536_v63, %v3598_v58 }
 0x447   : > { %v3600_v43 = vsel %vm3550_vm10, %v3537_v62, %v3599_v46 }
 0x448   : > { %v3608_v10 = vpack.c.b16 %v3600_v43, %v3600_v43 }
 0x44a   : > { %3625 = vst.msk [vmem:[%s5525_s13 + $0x1c] sm:$0xf] %vm3617_vm11, %v3608_v10 }
 0x44b PF: > { %s13_s12 = sadd.s32 1, %s3727_s12  }
 0x44c   : > { %p10_p4 = scmp.ge.s32.totalorder %s13_s12, 4  }
 0x44e   :  { %12 = sbr.rel (!%p10_p4) target bundleno = 1 (0x1), region = 72 }

// kernel: m_vggish_forward.5
= control target key start
LH: loop header
LB: loop body
LE: loop exit
PB: predicated region body
PF: predicated region fallthrough
CT: control target
= control target key end

     0   :  { %s2237_s12 = smov 0   ;;  %s2719_s0 = inlined_call_operand.vmem [shape: bf16[2,8,8,8], index: 0, kind: input, shape index: {}]   ;;  %s2720_s1 = inlined_call_operand.vmem [shape: bf16[3,3,8,16], index: 1, kind: input, shape index: {}]   ;;  %s2721_s2 = inlined_call_operand.vmem [shape: f32[1,16], index: 2, kind: input, shape index: {}]   ;;  %s2722_s3 = inlined_call_operand.vmem [shape: bf16[2,4,4,16], index: 3, kind: output, shape index: {}]  }
   0x1 LB: > { %s2054_s13 = sadd.s32 4294967295, %s2214_s12   ;;  %p2058_p0 = scmp.ge.s32.totalorder %s2214_s12, 1  ;;  %s2214_s12 = sphi %s2237_s12, %s13_s12  }
   0x2   : > { %p137_p1 = scmp.lt.s32.totalorder %s2214_s12, 3 }
   0x4   : > { %p138_p2 = pnand %p2058_p0, %p137_p1 }
   0x5   : > { %p161_p3 = scmp.lt.s32.totalorder (!%p138_p2), %s2054_s13, 1 }
   0x6   : > { %141 = sbr.rel (%p138_p2) target bundleno = 374 (0x176), region = 32 }
   0xb   : > { %v2071_v0 = vld [vmem:[%s2720_s1 + $0x4] sm:$0xf]  ;;  %vm412_vm0 = vcmask 1043456   ;;  %vm180_vm1 = vcmask 60416   ;;  %s2730_s13 = smov (!%p161_p3, %s2054_s13), 1  ;;  %v2216_v2 = vmov 0  }
   0xc   : > { %v414_v1 = vsel %vm412_vm0, %v2071_v0, 0  ;;  %s2181_s16 = sshll.u32 %s2730_s13, 5  ;;  %198 = vst.msk [vmem:[#allocation2 + $0x28] sm:$0xf] %vm180_vm1, %v2216_v2  ;;  %v2096_v5 = vld [vmem:[%s2720_s1 + $0x8] sm:$0xf] }
   0xd   : > { %2195 = vmatpush.bf16.msra.mxu1 %v414_v1  ;;  %2196 = vmatpush.bf16.msra.mxu2 %v414_v1  ;;  %204 = vst.msk [vmem:[#allocation2 + $0x38] sm:$0xf] %vm180_vm1, %v2216_v2  ;;  %s2259_s19 = scalar_lea.vmem %s2719_s0, %s2181_s16  ;;  %v659_v6 = vsel %vm412_vm0, %v2096_v5, 0  ;;  %v2109_v7 = vld [vmem:[%s2720_s1 + $0xc] sm:$0xf]  ;;  %vm399_vm3 = vcmask 64512  }
   0xe   : > { %2197 = vmatpush.bf16.msra.mxu3 %v414_v1  ;;  %423 = vmatpush.bf16.msra.mxu0 %v414_v1  ;;  %v173_v3 = vld [vmem:[%s2259_s19 + $0x4] sm:$0xf]  ;;  %v174_v4 = vld [vmem:[%s2259_s19 + $0x8] sm:$0xf]  ;;  %182 = vst.msk [vmem:[#allocation2 + $0x4] sm:$0xf] %vm180_vm1, %v2216_v2 }
   0xf   : > { %246 = vst.msk [vmem:[#allocation2 + $0x28] sm:$0xf] %vm180_vm1, %v173_v3  ;;  %v845_v8 = vsel %vm412_vm0, %v2109_v7, 0  ;;  %v376_v9 = vld [vmem:[%s2720_s1] sm:$0xf]  ;;  %vm184_vm4 = vcmask 57344  }
  0x10   : > { %247 = vst.msk [vmem:[#allocation2 + $0x38] sm:$0xf] %vm180_vm1, %v174_v4  ;;  %v470_v10 = vsel %vm412_vm0, %v376_v9, 0  ;;  %v2114_v11 = vld [vmem:[%s2720_s1 + $0x10] sm:$0xf]  ;;  %vm1626_vm11 = vcmask 130048  }
  0x11   : > { %183 = vst.msk [vmem:[#allocation2 + $0x8] sm:$0xf] %vm180_vm1, %v2216_v2  ;;  %668 = vmatpush.bf16.msrb.mxu2 %v659_v6  ;;  %479 = vmatpush.bf16.msrb.mxu1 %v470_v10  ;;  %v919_v12 = vsel %vm412_vm0, %v2114_v11, 0  ;;  %vm185_vm2 = vsmask.f32 256  ;;  %vm1667_vm12 = vcmask 123904  }
  0x12   : > { %191 = vst.msk [vmem:[#allocation2 + $0x14] sm:$0xf] %vm180_vm1, %v2216_v2  ;;  %854 = vmatpush.bf16.msrb.mxu3 %v845_v8  ;;  %928 = vmatpush.bf16.msrb.mxu0 %v919_v12  ;;  %v2299_v16 = vld [vmem:[#allocation2 + $0xc] sm:$0x1]  ;;  %v2301_v17 = vld [vmem:[#allocation2 + $0x1c] sm:$0x1]  ;;  %vm2309_vm5 = vmand %vm184_vm4, %vm185_vm2 }
  0x13   : > { %192 = vst.msk [vmem:[#allocation2 + $0x18] sm:$0xf] %vm180_vm1, %v2216_v2  ;;  %v188_v26 = vsel %vm2309_vm5, 0, %v2299_v16  ;;  %v194_v27 = vsel %vm2309_vm5, 0, %v2301_v17  ;;  %v175_v28 = vld [vmem:[%s2259_s19 + $0xc] sm:$0xf] }
  0x14   : > { %197 = vst.msk [vmem:[#allocation2 + $0x24] sm:$0xf] %vm180_vm1, %v2216_v2  ;;  %v176_v32 = vld [vmem:[%s2259_s19 + $0x10] sm:$0xf]  ;;  %v177_v36 = vld [vmem:[%s2259_s19 + $0x14] sm:$0xf] }
  0x15   : > { %203 = vst.msk [vmem:[#allocation2 + $0x34] sm:$0xf] %vm180_vm1, %v2216_v2  ;;  %v254_v18 = vld [vmem:[#allocation2 + $0x4] sm:$0x8]  ;;  %vm270_vm6 = vsmask.f32 4368 }
  0x16   : > { %v2078_v13 = vld [vmem:[#allocation2 + $0x28] sm:$0xf]  ;;  %209 = vst.msk [vmem:[#allocation2 + $0x44] sm:$0xf] %vm180_vm1, %v2216_v2  ;;  %v273_v24 = vshrl.u32 %v254_v18, 16  ;;  %vm2376_vm9 = vmor %vm185_vm2, %vm270_vm6  ;;  %vm1828_vm13 = vcmask 1041408  }
  0x17   : > { %v2184_v14 = vld [vmem:[#allocation2 + $0x34] sm:$0xf0]  ;;  %210 = vst.msk [vmem:[#allocation2 + $0x48] sm:$0xf] %vm180_vm1, %v2216_v2  ;;  %v2315_v22 = vld [vmem:[#allocation2 + $0x28] sm:$0xf] }
  0x18   : > { %v2079_v15 = vor.u32 %v2184_v14, %v2078_v13  ;;  %215 = vst.msk [vmem:[#allocation2 + $0x54] sm:$0xf] %vm180_vm1, %v2216_v2  ;;  %v2306_v19 = vld [vmem:[#allocation2 + $0x8] sm:$0xf]  ;;  %v733_v31 = vshrl.u32 %v2315_v22, 16  ;;  %v736_v38 = vshll.u32 %v2315_v22, 16 }
  0x19   : > { %216 = vst.msk [vmem:[#allocation2 + $0x58] sm:$0xf] %vm180_vm1, %v2216_v2  ;;  %v256_v21 = vld [vmem:[#allocation2 + $0x14] sm:$0x8]  ;;  %v501_v23 = vld [vmem:[#allocation2 + $0x8] sm:$0xf] }
  0x1a   : > { %2089 = vmatmul.msk.bf16.vlgmr.msra.gmra.mxu1 %vm399_vm3, %v2079_v15  ;;  %221 = vst.msk [vmem:[#allocation2 + $0x64] sm:$0xf] %vm180_vm1, %v2216_v2  ;;  %v278_v25 = vshrl.u32 %v2306_v19, 16  ;;  %v286_v29 = vshrl.u32 %v256_v21, 16  ;;  %v698_v30 = vld [vmem:[#allocation2 + $0x14] sm:$0x8] }
  0x1b   : > { %222 = vst.msk [vmem:[#allocation2 + $0x68] sm:$0xf] %vm180_vm1, %v2216_v2  ;;  %v521_v33 = vshrl.u32 %v501_v23, 16  ;;  %v524_v34 = vshll.u32 %v501_v23, 16  ;;  %v700_v35 = vld [vmem:[#allocation2 + $0x24] sm:$0x8] }
  0x1c   : > { %227 = vst.msk [vmem:[#allocation2 + $0x74] sm:$0xf] %vm180_vm1, %v2216_v2  ;;  %v715_v37 = vshrl.u32 %v698_v30, 16  ;;  %v178_v39 = vld [vmem:[%s2259_s19 + $0x18] sm:$0xf]  ;;  %v2342_v40 = vrot.slane %v273_v24, 11 }
  0x1d   : > { %228 = vst.msk [vmem:[#allocation2 + $0x78] sm:$0xf] %vm180_vm1, %v2216_v2  ;;  %v280_v41 = vrot.slane %v278_v25, 7  ;;  %v281_v42 = vshll.u32 %v2306_v19, 16  ;;  %v728_v43 = vshrl.u32 %v700_v35, 16  ;;  %v2348_v45 = vrot.slane %v286_v29, 11 }
  0x1e   : > { %233 = vst.msk [vmem:[#allocation2 + $0x84] sm:$0xf] %vm180_vm1, %v2216_v2  ;;  %v172_v44 = vld [vmem:[%s2259_s19] sm:$0xf]  ;;  %v735_v46 = vrot.slane %v733_v31, 7  ;;  %v523_v48 = vrot.slane %v521_v33, 4 }
  0x1f   : > { %234 = vst.msk [vmem:[#allocation2 + $0x88] sm:$0xf] %vm180_vm1, %v2216_v2  ;;  %v2148_v47 = vld [vmem:[%s2720_s1 + $0x18] sm:$0xf]  ;;  %v526_v49 = vrot.slane %v524_v34, 5  ;;  %v2358_v51 = vrot.slane %v715_v37, 11 }
  0x20   : > { %239 = vst.msk [vmem:[#allocation2 + $0x94] sm:$0xf] %vm180_vm1, %v2216_v2  ;;  %v2135_v50 = vld [vmem:[%s2720_s1 + $0x14] sm:$0xf]  ;;  %v2153_v52 = vld [vmem:[%s2720_s1 + $0x1c] sm:$0xf]  ;;  %v738_v3 = vor.u32 %v736_v38, %v735_v46 }
  0x21   : > { %240 = vst.msk [vmem:[#allocation2 + $0x98] sm:$0xf] %vm180_vm1, %v2216_v2  ;;  %v1113_v53 = vsel %vm412_vm0, %v2135_v50, 0  ;;  %v2365_v54 = vrot.slane %v728_v43, 11  ;;  %v1300_v55 = vsel %vm412_vm0, %v2148_v47, 0  ;;  %v1374_v59 = vsel %vm412_vm0, %v2153_v52, 0 }
  0x22   : > { %248 = vst.msk [vmem:[#allocation2 + $0x48] sm:$0xf] %vm180_vm1, %v175_v28  ;;  %1122 = vmatpush.bf16.msra.mxu1 %v1113_v53  ;;  %v258_v56 = vld [vmem:[#allocation2 + $0x24] sm:$0x8]  ;;  %vm517_vm7 = vsmask.f32 3328  ;;  %v527_v62 = vor.u32 %v526_v49, %v523_v48  ;;  %v283_v2 = vor.u32 %v281_v42, %v280_v41 }
  0x23   : > { %249 = vst.msk [vmem:[#allocation2 + $0x58] sm:$0xf] %vm180_vm1, %v176_v32  ;;  %vm518_vm8 = vsmask.f32 7440  ;;  %v259_v57 = vld [vmem:[#allocation2 + $0x28] sm:$0xf]  ;;  %v739_v24 = vsel %vm2376_vm9, %v2365_v54, %v738_v3 }
  0x24   : > { %250 = vst.msk [vmem:[#allocation2 + $0x68] sm:$0xf] %vm180_vm1, %v177_v36  ;;  %v260_v58 = vld [vmem:[#allocation2 + $0x34] sm:$0x8]  ;;  %v261_v60 = vld [vmem:[#allocation2 + $0x38] sm:$0xf]  ;;  %v284_v23 = vsel %vm2376_vm9, %v2342_v40, %v283_v2  ;;  %v2397_v43 = vunpack.c.l.b16 %v739_v24  ;;  %vm2402_vm10 = vmor %vm517_vm7, %vm518_vm8 }
  0x25   : > { %251 = vst.msk [vmem:[#allocation2 + $0x78] sm:$0xf] %vm180_vm1, %v178_v39  ;;  %v304_v61 = vshrl.u32 %v259_v57, 16  ;;  %v2174_v63 = vld [vmem:[%s2720_s1 + $0x20] sm:$0xf]  ;;  %v299_v0 = vshrl.u32 %v258_v56, 16  ;;  %v445_v38 = vunpack.c.l.b16 %v284_v23 }
  0x26   : > { %245 = vst.msk [vmem:[#allocation2 + $0x18] sm:$0xf] %vm180_vm1, %v172_v44  ;;  %v317_v1 = vshrl.u32 %v261_v60, 16  ;;  %v307_v4 = vshll.u32 %v259_v57, 16  ;;  %v312_v5 = vshrl.u32 %v260_v58, 16  ;;  %v320_v12 = vshll.u32 %v261_v60, 16 }
  0x27   : > { %189 = vst [vmem:[#allocation2 + $0xc] sm:$0x1] %v188_v26  ;;  %v199_v6 = vld [vmem:[#allocation2 + $0x2c] sm:$0x1]  ;;  %v2074_v8 = vld [vmem:[#allocation2 + $0x8] sm:$0xf] }
  0x28   : > { %195 = vst [vmem:[#allocation2 + $0x1c] sm:$0x1] %v194_v27  ;;  %v306_v10 = vrot.slane %v304_v61, 7  ;;  %v319_v11 = vrot.slane %v317_v1, 7  ;;  %v200_v13 = vsel %vm2309_vm5, 0, %v199_v6  ;;  %v528_v18 = vrot.slane %v527_v62, 4 }
  0x29   : > { %v2082_v7 = vld [vmem:[#allocation2 + $0x48] sm:$0xf]  ;;  %201 = vst [vmem:[#allocation2 + $0x2c] sm:$0x1] %v200_v13  ;;  %v205_v15 = vld [vmem:[#allocation2 + $0x3c] sm:$0x1] }
  0x2a   : > { %v2185_v14 = vld [vmem:[#allocation2 + $0x54] sm:$0xf0]  ;;  %v1568_v19 = vsel %vm412_vm0, %v2174_v63, 0  ;;  %v206_v21 = vsel %vm2309_vm5, 0, %v205_v15  ;;  %v2065_v25 = vrot.slane %v299_v0, 11  ;;  %v2391_v26 = vrot.slane %v312_v5, 11 }
  0x2b   : > { %v2083_v16 = vor.u32 %v2185_v14, %v2082_v7  ;;  %v2086_v17 = vld [vmem:[#allocation2 + $0x68] sm:$0xf]  ;;  %207 = vst [vmem:[#allocation2 + $0x3c] sm:$0x1] %v206_v21  ;;  %v309_v31 = vor.u32 %v307_v4, %v306_v10  ;;  %v2394_v32 = vor.u32 %v320_v12, %v319_v11  ;;  %v507_v63 = vld [vmem:[#allocation2 + $0x38] sm:$0xf] }
  0x2c   : > { %v2186_v22 = vld [vmem:[#allocation2 + $0x74] sm:$0xf0]  ;;  %v505_v50 = vld [vmem:[#allocation2 + $0x28] sm:$0xf]  ;;  %v563_v14 = vshrl.u32 %v507_v63, 16  ;;  %v566_v15 = vshll.u32 %v507_v63, 16 }
  0x2d   : > { %2090 = vmatmul.msk.bf16.vlgmr.msra.gmra.mxu2 %vm399_vm3, %v2083_v16  ;;  %v2087_v27 = vor.u32 %v2186_v22, %v2086_v17  ;;  %v2183_v28 = vld [vmem:[#allocation2 + $0x14] sm:$0xf0]  ;;  %v323_v61 = vsel %vm2376_vm9, %v2391_v26, %v2394_v32  ;;  %v549_v0 = vshrl.u32 %v505_v50, 16  ;;  %v552_v1 = vshll.u32 %v505_v50, 16  ;;  %v702_v16 = vld [vmem:[#allocation2 + $0x34] sm:$0x8] }
  0x2e   : > { %v257_v29 = vld [vmem:[#allocation2 + $0x18] sm:$0xf]  ;;  %v2075_v33 = vor.u32 %v2183_v28, %v2074_v8  ;;  %v502_v36 = vld [vmem:[#allocation2 + $0xc] sm:$0x1]  ;;  %1309 = vmatpush.bf16.msra.mxu2 %v1300_v55  ;;  %v310_v55 = vsel %vm2376_vm9, %v2065_v25, %v309_v31  ;;  %v2187_v22 = vld [vmem:[#allocation2 + $0x24] sm:$0xf0] }
  0x2f   : > { %v503_v30 = vld [vmem:[#allocation2 + $0x18] sm:$0xf]  ;;  %v291_v34 = vshrl.u32 %v257_v29, 16  ;;  %v294_v35 = vshll.u32 %v257_v29, 16  ;;  %2091 = vmatmul.msk.bf16.vlgmr.msra.gmra.mxu3 %vm399_vm3, %v2087_v27  ;;  %v504_v39 = vld [vmem:[#allocation2 + $0x1c] sm:$0x1]  ;;  %v2417_v4 = vunpack.c.l.b16 %v310_v55 }
  0x30   : > { %v535_v37 = vshrl.u32 %v503_v30, 16  ;;  %v530_v40 = vshll.u32 %v502_v36, 16  ;;  %v538_v41 = vshll.u32 %v503_v30, 16  ;;  %v699_v42 = vld [vmem:[#allocation2 + $0x18] sm:$0xf]  ;;  %2088 = vmatmul.msk.bf16.vlgmr.msra.gmra.mxu0 %vm399_vm3, %v2075_v33  ;;  %v544_v48 = vshll.u32 %v504_v39, 16  ;;  %1383 = vmatpush.bf16.msra.mxu3 %v1374_v59 }
  0x31   : > { %v293_v44 = vrot.slane %v291_v34, 7  ;;  %v720_v49 = vshrl.u32 %v699_v42, 16  ;;  %v723_v54 = vshll.u32 %v699_v42, 16  ;;  %1577 = vmatpush.bf16.msra.mxu0 %v1568_v19  ;;  %v506_v56 = vld [vmem:[#allocation2 + $0x2c] sm:$0x1]  ;;  %v551_v10 = vrot.slane %v549_v0, 4 }
  0x32   : > { %v537_v47 = vrot.slane %v535_v37, 4  ;;  %v532_v52 = vrot.slane %v530_v40, 5  ;;  %v540_v53 = vrot.slane %v538_v41, 5  ;;  %v546_v58 = vrot.slane %v544_v48, 5  ;;  %v508_v8 = vld [vmem:[#allocation2 + $0x3c] sm:$0x1] }
  0x33   : > { %v296_v57 = vor.u32 %v294_v35, %v293_v44  ;;  %v722_v60 = vrot.slane %v720_v49, 7  ;;  %v558_v5 = vshll.u32 %v506_v56, 16  ;;  %v554_v11 = vrot.slane %v552_v1, 5  ;;  %v703_v17 = vld [vmem:[#allocation2 + $0x38] sm:$0xf]  ;;  %s2182_s11 = sshll.u32 %s2730_s13, 3 }
  0x34   : > { %v533_v59 = vsel %vm2402_vm10, %v528_v18, %v532_v52  ;;  %v541_v62 = vor.u32 %v540_v53, %v537_v47  ;;  %v2117_v21 = vld [vmem:[#allocation2 + $0x18] sm:$0xf]  ;;  %v565_v25 = vrot.slane %v563_v14, 4  ;;  %v568_v26 = vrot.slane %v566_v15, 5  ;;  %v704_v28 = vld [vmem:[#allocation2 + $0x44] sm:$0x8]  ;;  %s2677_s15 = scalar_lea.vmem %s2722_s3, %s2182_s11 }
  0x35   : > { %v297_v2 = vsel %vm2376_vm9, %v2348_v45, %v296_v57  ;;  %v725_v3 = vor.u32 %v723_v54, %v722_v60  ;;  %v634_v12 = vunpack.c.l.b16 %v533_v59  ;;  %v555_v23 = vor.u32 %v554_v11, %v551_v10  ;;  %v705_v30 = vld [vmem:[#allocation2 + $0x48] sm:$0xf]  ;;  %v262_v49 = vld [vmem:[#allocation2 + $0x44] sm:$0x8]  ;;  %v264_v53 = vld [vmem:[#allocation2 + $0x54] sm:$0x8] }
  0x36   : > { %v446_v6 = vunpack.c.l.b16 %v297_v2  ;;  %v542_v7 = vrot.slane %v541_v62, 4  ;;  %v572_v27 = vshll.u32 %v508_v8, 16  ;;  %v560_v29 = vrot.slane %v558_v5, 5  ;;  %v263_v41 = vld [vmem:[#allocation2 + $0x48] sm:$0xf] }
  0x37   : > { %v726_v13 = vsel %vm2376_vm9, %v2358_v51, %v725_v3  ;;  %v2425_v51 = vunpack.c.l.b16 %v323_v61  ;;  %v741_v31 = vshrl.u32 %v702_v16, 16  ;;  %v746_v32 = vshrl.u32 %v703_v17, 16  ;;  %v265_v54 = vld [vmem:[#allocation2 + $0x58] sm:$0xf]  ;;  %v217_v62 = vld [vmem:[#allocation2 + $0x5c] sm:$0x1] }
  0x38   : > { %v453_v18 = vpack.c.b16 %v446_v6, %v445_v38  ;;  %v547_v45 = vsel %vm2402_vm10, %v542_v7, %v546_v58  ;;  %v820_v19 = vunpack.c.l.b16 %v726_v13  ;;  %v556_v34 = vrot.slane %v555_v23, 4  ;;  %v211_v58 = vld [vmem:[#allocation2 + $0x4c] sm:$0x1]  ;;  %v509_v63 = vld [vmem:[#allocation2 + $0x48] sm:$0xf] }
  0x39   : > { %v635_v24 = vunpack.c.l.b16 %v547_v45  ;;  %v569_v35 = vor.u32 %v568_v26, %v565_v25  ;;  %v749_v36 = vshll.u32 %v703_v17, 16  ;;  %v574_v38 = vrot.slane %v572_v27, 5  ;;  %v511_v5 = vld [vmem:[#allocation2 + $0x58] sm:$0xf]  ;;  %v706_v10 = vld [vmem:[#allocation2 + $0x54] sm:$0x8] }
  0x3a   : > { %2092 = vmatmul.msk.bf16.vlgmr.msrb.gmra.mxu1 %vm399_vm3, %v453_v18  ;;  %v828_v37 = vpack.c.b16 %v2397_v43, %v820_v19  ;;  %v748_v39 = vrot.slane %v746_v32, 7  ;;  %v754_v40 = vshrl.u32 %v704_v28, 16  ;;  %v2118_v42 = vor.u32 %v2187_v22, %v2117_v21  ;;  %v707_v15 = vld [vmem:[#allocation2 + $0x58] sm:$0xf]  ;;  %v709_v25 = vld [vmem:[#allocation2 + $0x68] sm:$0xf] }
  0x3b   : > { %v642_v33 = vpack.c.b16 %v635_v24, %v634_v12  ;;  %v570_v44 = vrot.slane %v569_v35, 4  ;;  %v759_v47 = vshrl.u32 %v705_v30, 16  ;;  %v762_v48 = vshll.u32 %v705_v30, 16  ;;  %v708_v24 = vld [vmem:[#allocation2 + $0x64] sm:$0x8] }
  0x3c   : > { %v2103_v50 = vrot.slane %v741_v31, 11  ;;  %v751_v52 = vor.u32 %v749_v36, %v748_v39  ;;  %v561_v55 = vsel %vm2402_vm10, %v556_v34, %v560_v29  ;;  %v2104_v56 = vrot.slane %v754_v40, 11  ;;  %v179_v29 = vld [vmem:[%s2259_s19 + $0x1c] sm:$0xf]  ;;  %v2121_v35 = vld [vmem:[#allocation2 + $0x38] sm:$0xf] }
  0x3d   : > { %2097 = vmatmul.msk.bf16.vlgmr.msrb.gmra.mxu2 %vm399_vm3, %v642_v33  ;;  %v761_v43 = vrot.slane %v759_v47, 7  ;;  %v330_v57 = vshrl.u32 %v263_v41, 16  ;;  %v454_v60 = vpack.c.b16 %v2425_v51, %v2417_v4  ;;  %v575_v61 = vsel %vm2402_vm10, %v570_v44, %v574_v38  ;;  %252 = vst.msk [vmem:[#allocation2 + $0x88] sm:$0xf] %vm180_vm1, %v179_v29  ;;  %v2188_v36 = vld [vmem:[#allocation2 + $0x44] sm:$0xf0] }
  0x3e   : > { %v325_v59 = vshrl.u32 %v262_v49, 16  ;;  %v333_v2 = vshll.u32 %v263_v41, 16  ;;  %v343_v3 = vshrl.u32 %v265_v54, 16  ;;  %v2437_v6 = vunpack.c.l.b16 %v561_v55  ;;  %v267_v47 = vld [vmem:[#allocation2 + $0x68] sm:$0xf] }
  0x3f   : > { %2110 = vmatmul.msk.bf16.vlgmr.msrb.gmra.mxu3 %vm399_vm3, %v828_v37  ;;  %v764_v0 = vor.u32 %v762_v48, %v761_v43  ;;  %v332_v1 = vrot.slane %v330_v57, 7  ;;  %v752_v7 = vsel %vm2376_vm9, %v2103_v50, %v751_v52  ;;  %v338_v8 = vshrl.u32 %v264_v53, 16 }
  0x40   : > { %2131 = vmatmul.msk.bf16.vlgmr.msrb.gmra.mxu0 %vm399_vm3, %v2118_v42  ;;  %v212_v4 = vsel %vm2309_vm5, 0, %v211_v58  ;;  %v345_v12 = vrot.slane %v343_v3, 7  ;;  %v346_v13 = vshll.u32 %v265_v54, 16  ;;  %v218_v14 = vsel %vm2309_vm5, 0, %v217_v62  ;;  %v266_v54 = vld [vmem:[#allocation2 + $0x64] sm:$0x8] }
  0x41   : > { %v765_v11 = vsel %vm2376_vm9, %v2104_v56, %v764_v0  ;;  %213 = vst [vmem:[#allocation2 + $0x4c] sm:$0x1] %v212_v4  ;;  %v637_v16 = vunpack.c.l.b16 %v575_v61  ;;  %v577_v17 = vshrl.u32 %v509_v63, 16  ;;  %v580_v18 = vshll.u32 %v509_v63, 16  ;;  %v223_v4 = vld [vmem:[#allocation2 + $0x6c] sm:$0x1] }
  0x42   : > { %219 = vst [vmem:[#allocation2 + $0x5c] sm:$0x1] %v218_v14  ;;  %v591_v45 = vshrl.u32 %v511_v5, 16  ;;  %v822_v19 = vunpack.c.l.b16 %v752_v7  ;;  %v2067_v21 = vrot.slane %v325_v59, 11  ;;  %v335_v22 = vor.u32 %v333_v2, %v332_v1  ;;  %v268_v2 = vld [vmem:[#allocation2 + $0x74] sm:$0x8] }
  0x43   : > { %v594_v23 = vshll.u32 %v511_v5, 16  ;;  %v823_v26 = vunpack.c.l.b16 %v765_v11  ;;  %v579_v27 = vrot.slane %v577_v17, 4  ;;  %v582_v28 = vrot.slane %v580_v18, 5  ;;  %v513_v14 = vld [vmem:[#allocation2 + $0x68] sm:$0xf] }
  0x44   : > { %v767_v51 = vshrl.u32 %v706_v10, 16  ;;  %v2068_v30 = vrot.slane %v338_v8, 11  ;;  %v348_v31 = vor.u32 %v346_v13, %v345_v12  ;;  %v593_v32 = vrot.slane %v591_v45, 4  ;;  %v269_v8 = vld [vmem:[#allocation2 + $0x78] sm:$0xf] }
  0x45   : > { %v596_v33 = vrot.slane %v594_v23, 5  ;;  %v643_v34 = vpack.c.b16 %v637_v16, %v2437_v6  ;;  %v583_v37 = vor.u32 %v582_v28, %v579_v27  ;;  %v772_v38 = vshrl.u32 %v707_v15, 16  ;;  %v229_v13 = vld [vmem:[#allocation2 + $0x7c] sm:$0x1]  ;;  %v515_v45 = vld [vmem:[#allocation2 + $0x78] sm:$0xf] }
  0x46   : > { %v775_v39 = vshll.u32 %v707_v15, 16  ;;  %v336_v40 = vsel %vm2376_vm9, %v2067_v21, %v335_v22  ;;  %v780_v41 = vshrl.u32 %v708_v24, 16  ;;  %v785_v42 = vshrl.u32 %v709_v25, 16  ;;  %v710_v24 = vld [vmem:[#allocation2 + $0x74] sm:$0x8] }
  0x47   : > { %v788_v44 = vshll.u32 %v709_v25, 16  ;;  %v829_v48 = vpack.c.b16 %v823_v26, %v822_v19  ;;  %v597_v50 = vor.u32 %v596_v33, %v593_v32  ;;  %v2105_v52 = vrot.slane %v767_v51, 11  ;;  %v711_v51 = vld [vmem:[#allocation2 + $0x78] sm:$0xf] }
  0x48   : > { %v510_v49 = vld [vmem:[#allocation2 + $0x4c] sm:$0x1]  ;;  %v774_v53 = vrot.slane %v772_v38, 7  ;;  %v349_v55 = vsel %vm2376_vm9, %v2068_v30, %v348_v31  ;;  %v584_v43 = vrot.slane %v583_v37, 4  ;;  %v787_v58 = vrot.slane %v785_v42, 7 }
  0x49   : > { %v512_v56 = vld [vmem:[#allocation2 + $0x5c] sm:$0x1]  ;;  %v586_v57 = vshll.u32 %v510_v49, 16  ;;  %v2106_v62 = vrot.slane %v780_v41, 11  ;;  %v356_v63 = vshrl.u32 %v267_v47, 16  ;;  %v2122_v0 = vor.u32 %v2188_v36, %v2121_v35 }
  0x4a   : > { %2093 = vmatmul.msk.bf16.gmra.mxu1 %vm399_vm3, %v454_v60  ;;  %v600_v61 = vshll.u32 %v512_v56, 16  ;;  %v777_v59 = vor.u32 %v775_v39, %v774_v53  ;;  %v790_v60 = vor.u32 %v788_v44, %v787_v58  ;;  %v351_v3 = vshrl.u32 %v266_v54, 16  ;;  %v2474_v30 = vld [vmem:[#allocation2 + $0x58] sm:$0xf]  ;;  %v713_v38 = vld [vmem:[#allocation2 + $0x88] sm:$0xf] }
  0x4b   : > { %v588_v1 = vrot.slane %v586_v57, 5  ;;  %v598_v5 = vrot.slane %v597_v50, 4  ;;  %v449_v10 = vunpack.c.l.b16 %v336_v40  ;;  %v450_v11 = vunpack.c.l.b16 %v349_v55  ;;  %v2189_v40 = vld [vmem:[#allocation2 + $0x64] sm:$0xf0] }
  0x4c   : > { %v602_v6 = vrot.slane %v600_v61, 5  ;;  %v778_v7 = vsel %vm2376_vm9, %v2105_v52, %v777_v59  ;;  %v791_v15 = vsel %vm2376_vm9, %v2106_v62, %v790_v60  ;;  %v358_v16 = vrot.slane %v356_v63, 7  ;;  %v712_v52 = vld [vmem:[#allocation2 + $0x84] sm:$0x8] }
  0x4d   : > { %2098 = vmatmul.msk.bf16.gmra.mxu2 %vm399_vm3, %v643_v34  ;;  %v589_v12 = vsel %vm2402_vm10, %v584_v43, %v588_v1  ;;  %v359_v17 = vshll.u32 %v267_v47, 16  ;;  %v364_v18 = vshrl.u32 %v268_v2, 16  ;;  %v2464_v19 = vunpack.c.l.b16 %v778_v7  ;;  %v958_v43 = vld [vmem:[#allocation2 + $0x18] sm:$0xf]  ;;  %v960_v2 = vld [vmem:[#allocation2 + $0x28] sm:$0xf] }
  0x4e   : > { %v2069_v21 = vrot.slane %v351_v3, 11  ;;  %v369_v22 = vshrl.u32 %v269_v8, 16  ;;  %v224_v23 = vsel %vm2309_vm5, 0, %v223_v4  ;;  %v603_v25 = vsel %vm2402_vm10, %v598_v5, %v602_v6 }
  0x4f   : > { %2111 = vmatmul.msk.bf16.gmra.mxu3 %vm399_vm3, %v829_v48  ;;  %v638_v26 = vunpack.c.l.b16 %v589_v12  ;;  %225 = vst [vmem:[#allocation2 + $0x6c] sm:$0x1] %v224_v23  ;;  %v230_v27 = vsel %vm2309_vm5, 0, %v229_v13  ;;  %v605_v28 = vshrl.u32 %v513_v14, 16  ;;  %v2472_v29 = vunpack.c.l.b16 %v791_v15 }
  0x50   : > { %2132 = vmatmul.msk.bf16.gmra.mxu0 %vm399_vm3, %v2122_v0  ;;  %v371_v31 = vrot.slane %v369_v22, 7  ;;  %v372_v32 = vshll.u32 %v269_v8, 16  ;;  %231 = vst [vmem:[#allocation2 + $0x7c] sm:$0x1] %v230_v27  ;;  %v608_v33 = vshll.u32 %v513_v14, 16  ;;  %v361_v34 = vor.u32 %v359_v17, %v358_v16 }
  0x51   : > { %v607_v35 = vrot.slane %v605_v28, 4  ;;  %v619_v36 = vshrl.u32 %v515_v45, 16  ;;  %v622_v37 = vshll.u32 %v515_v45, 16  ;;  %v639_v39 = vunpack.c.l.b16 %v603_v25  ;;  %v959_v16 = vld [vmem:[#allocation2 + $0x1c] sm:$0x1] }
  0x52   : > { %v610_v41 = vrot.slane %v608_v33, 5  ;;  %v793_v42 = vshrl.u32 %v710_v24, 16  ;;  %v798_v44 = vshrl.u32 %v711_v51, 16  ;;  %v455_v47 = vpack.c.b16 %v450_v11, %v449_v10  ;;  %v2489_v28 = vld [vmem:[#allocation2 + $0x78] sm:$0xf] }
  0x53   : > { %v2070_v48 = vrot.slane %v364_v18, 11  ;;  %v621_v49 = vrot.slane %v619_v36, 4  ;;  %v624_v50 = vrot.slane %v622_v37, 5  ;;  %v374_v53 = vor.u32 %v372_v32, %v371_v31  ;;  %v961_v31 = vld [vmem:[#allocation2 + $0x2c] sm:$0x1] }
  0x54   : > { %v800_v54 = vrot.slane %v798_v44, 7  ;;  %v801_v55 = vshll.u32 %v711_v51, 16  ;;  %v811_v56 = vshrl.u32 %v713_v38, 16  ;;  %v830_v57 = vpack.c.b16 %v2472_v29, %v2464_v19  ;;  %v2491_v51 = vld [vmem:[#allocation2 + $0x84] sm:$0xf0] }
  0x55   : > { %v2126_v58 = vor.u32 %v2189_v40, %v2474_v30  ;;  %v611_v61 = vor.u32 %v610_v41, %v607_v35  ;;  %v625_v59 = vor.u32 %v624_v50, %v621_v49  ;;  %v644_v62 = vpack.c.b16 %v639_v39, %v638_v26  ;;  %v1154_v26 = vld [vmem:[#allocation2 + $0x28] sm:$0xf]  ;;  %v1153_v37 = vld [vmem:[#allocation2 + $0x24] sm:$0x8]  ;;  %v1155_v44 = vld [vmem:[#allocation2 + $0x34] sm:$0x8] }
  0x56   : > { %v362_v63 = vsel %vm2376_vm9, %v2069_v21, %v361_v34  ;;  %v514_v0 = vld [vmem:[#allocation2 + $0x6c] sm:$0x1]  ;;  %v2107_v1 = vrot.slane %v793_v42, 11  ;;  %v806_v60 = vshrl.u32 %v712_v52, 16  ;;  %v813_v6 = vrot.slane %v811_v56, 7 }
  0x57   : > { %v516_v3 = vld [vmem:[#allocation2 + $0x7c] sm:$0x1]  ;;  %v614_v5 = vshll.u32 %v514_v0, 16  ;;  %v814_v7 = vshll.u32 %v713_v38, 16  ;;  %v975_v8 = vshrl.u32 %v958_v43, 16  ;;  %v375_v4 = vsel %vm2376_vm9, %v2070_v48, %v374_v53 }
  0x58   : > { %v628_v10 = vshll.u32 %v516_v3, 16  ;;  %v803_v11 = vor.u32 %v801_v55, %v800_v54  ;;  %v978_v12 = vshll.u32 %v958_v43, 16  ;;  %v2484_v13 = vunpack.c.l.b16 %v362_v63  ;;  %v1156_v34 = vld [vmem:[#allocation2 + $0x38] sm:$0xf]  ;;  %v1414_v0 = vld [vmem:[#allocation2 + $0x2c] sm:$0x1] }
  0x59   : > { %v612_v14 = vrot.slane %v611_v61, 4  ;;  %v626_v15 = vrot.slane %v625_v59, 4  ;;  %v977_v17 = vrot.slane %v975_v8, 4  ;;  %v616_v18 = vrot.slane %v614_v5, 5  ;;  %v1415_v53 = vld [vmem:[#allocation2 + $0x38] sm:$0xf] }
  0x5a   : > { %2094 = vmatmul.msk.bf16.gmra.mxu1 %vm399_vm3, %v455_v47  ;;  %v630_v45 = vrot.slane %v628_v10, 5  ;;  %v980_v19 = vrot.slane %v978_v12, 5  ;;  %v989_v21 = vshrl.u32 %v960_v2, 16  ;;  %v452_v22 = vunpack.c.l.b16 %v375_v4  ;;  %v1413_v47 = vld [vmem:[#allocation2 + $0x28] sm:$0xf] }
  0x5b   : > { %v2108_v23 = vrot.slane %v806_v60, 11  ;;  %v816_v24 = vor.u32 %v814_v7, %v813_v6  ;;  %v992_v25 = vshll.u32 %v960_v2, 16  ;;  %v804_v27 = vsel %vm2376_vm9, %v2107_v1, %v803_v11  ;;  %v962_v7 = vld [vmem:[#allocation2 + $0x38] sm:$0xf]  ;;  %v964_v12 = vld [vmem:[#allocation2 + $0x48] sm:$0xf] }
  0x5c   : > { %v984_v29 = vshll.u32 %v959_v16, 16  ;;  %v991_v30 = vrot.slane %v989_v21, 4  ;;  %v981_v32 = vor.u32 %v980_v19, %v977_v17  ;;  %v617_v35 = vsel %vm2402_vm10, %v612_v14, %v616_v18  ;;  %v1416_v18 = vld [vmem:[#allocation2 + $0x3c] sm:$0x1] }
  0x5d   : > { %2099 = vmatmul.msk.bf16.gmra.mxu2 %vm399_vm3, %v644_v62  ;;  %v994_v33 = vrot.slane %v992_v25, 5  ;;  %v631_v36 = vsel %vm2402_vm10, %v626_v15, %v630_v45  ;;  %v1175_v38 = vshrl.u32 %v1154_v26, 16  ;;  %v456_v39 = vpack.c.b16 %v452_v22, %v2484_v13 }
  0x5e   : > { %v817_v40 = vsel %vm2376_vm9, %v2108_v23, %v816_v24  ;;  %v2502_v41 = vunpack.c.l.b16 %v804_v27  ;;  %v2130_v42 = vor.u32 %v2491_v51, %v2489_v28  ;;  %v986_v48 = vrot.slane %v984_v29, 5  ;;  %v963_v29 = vld [vmem:[#allocation2 + $0x3c] sm:$0x1] }
  0x5f   : > { %2112 = vmatmul.msk.bf16.gmra.mxu3 %vm399_vm3, %v830_v57  ;;  %v995_v49 = vor.u32 %v994_v33, %v991_v30  ;;  %v998_v50 = vshll.u32 %v961_v31, 16  ;;  %v1188_v52 = vshrl.u32 %v1156_v34, 16  ;;  %v640_v54 = vunpack.c.l.b16 %v617_v35 }
  0x60   : > { %2133 = vmatmul.msk.bf16.gmra.mxu0 %vm399_vm3, %v2126_v58  ;;  %v641_v55 = vunpack.c.l.b16 %v631_v36  ;;  %v982_v56 = vrot.slane %v981_v32, 4  ;;  %v1170_v43 = vshrl.u32 %v1153_v37, 16  ;;  %v1177_v57 = vrot.slane %v1175_v38, 7 }
  0x61   : > { %v1178_v58 = vshll.u32 %v1154_v26, 16  ;;  %v1183_v61 = vshrl.u32 %v1155_v44, 16  ;;  %v1430_v59 = vshrl.u32 %v1413_v47, 16  ;;  %v1190_v62 = vrot.slane %v1188_v52, 7 }
  0x62   : > { %v1191_v63 = vshll.u32 %v1156_v34, 16  ;;  %v1433_v1 = vshll.u32 %v1413_v47, 16  ;;  %v1444_v60 = vshrl.u32 %v1415_v53, 16  ;;  %v827_v2 = vunpack.c.l.b16 %v817_v40  ;;  %v965_v34 = vld [vmem:[#allocation2 + $0x4c] sm:$0x1] }
  0x63   : > { %v996_v3 = vrot.slane %v995_v49, 4  ;;  %v1000_v5 = vrot.slane %v998_v50, 5  ;;  %v1432_v6 = vrot.slane %v1430_v59, 4  ;;  %v645_v8 = vpack.c.b16 %v641_v55, %v640_v54  ;;  %v1157_v50 = vld [vmem:[#allocation2 + $0x44] sm:$0x8] }
  0x64   : > { %v987_v4 = vsel %vm2402_vm10, %v982_v56, %v986_v48  ;;  %v2140_v10 = vrot.slane %v1170_v43, 11  ;;  %v1435_v11 = vrot.slane %v1433_v1, 5  ;;  %v1180_v13 = vor.u32 %v1178_v58, %v1177_v57  ;;  %v1417_v57 = vld [vmem:[#allocation2 + $0x48] sm:$0xf] }
  0x65   : > { %v2141_v14 = vrot.slane %v1183_v61, 11  ;;  %v1446_v15 = vrot.slane %v1444_v60, 4  ;;  %v1447_v16 = vshll.u32 %v1415_v53, 16  ;;  %v1193_v17 = vor.u32 %v1191_v63, %v1190_v62  ;;  %v1160_v53 = vld [vmem:[#allocation2 + $0x58] sm:$0xf] }
  0x66   : > { %v1439_v45 = vshll.u32 %v1414_v0, 16  ;;  %v1003_v19 = vshrl.u32 %v962_v7, 16  ;;  %v1006_v21 = vshll.u32 %v962_v7, 16  ;;  %v1001_v22 = vsel %vm2402_vm10, %v996_v3, %v1000_v5  ;;  %v1159_v60 = vld [vmem:[#allocation2 + $0x54] sm:$0x8] }
  0x67   : > { %v1436_v23 = vor.u32 %v1435_v11, %v1432_v6  ;;  %v1449_v24 = vrot.slane %v1447_v16, 5  ;;  %v1017_v25 = vshrl.u32 %v964_v12, 16  ;;  %v831_v26 = vpack.c.b16 %v827_v2, %v2502_v41  ;;  %v1158_v41 = vld [vmem:[#allocation2 + $0x48] sm:$0xf] }
  0x68   : > { %v2512_v27 = vunpack.c.l.b16 %v987_v4  ;;  %v1005_v30 = vrot.slane %v1003_v19, 4  ;;  %v1008_v31 = vrot.slane %v1006_v21, 5  ;;  %v1453_v33 = vshll.u32 %v1416_v18, 16  ;;  %v966_v18 = vld [vmem:[#allocation2 + $0x58] sm:$0xf] }
  0x69   : > { %v1450_v32 = vor.u32 %v1449_v24, %v1446_v15  ;;  %v1019_v35 = vrot.slane %v1017_v25, 4  ;;  %v1020_v36 = vshll.u32 %v964_v12, 16  ;;  %v1089_v37 = vunpack.c.l.b16 %v1001_v22  ;;  %v1418_v12 = vld [vmem:[#allocation2 + $0x4c] sm:$0x1]  ;;  %v968_v24 = vld [vmem:[#allocation2 + $0x68] sm:$0xf] }
  0x6a   : > { %2095 = vmatmul.msk.bf16.gmra.mxu1 %vm399_vm3, %v456_v39  ;;  %v1181_v38 = vsel %vm2376_vm9, %v2140_v10, %v1180_v13  ;;  %v1194_v39 = vsel %vm2376_vm9, %v2141_v14, %v1193_v17  ;;  %v1441_v40 = vrot.slane %v1439_v45, 5  ;;  %v1437_v44 = vrot.slane %v1436_v23, 4  ;;  %v1420_v23 = vld [vmem:[#allocation2 + $0x5c] sm:$0x1]  ;;  %v2156_v25 = vld [vmem:[#allocation2 + $0x28] sm:$0xf] }
  0x6b   : > { %v1009_v47 = vor.u32 %v1008_v31, %v1005_v30  ;;  %v1012_v48 = vshll.u32 %v963_v29, 16  ;;  %v1022_v49 = vrot.slane %v1020_v36, 5  ;;  %v1026_v52 = vshll.u32 %v965_v34, 16 }
  0x6c   : > { %v1451_v54 = vrot.slane %v1450_v32, 4  ;;  %v1455_v55 = vrot.slane %v1453_v33, 5  ;;  %v1201_v43 = vshrl.u32 %v1158_v41, 16  ;;  %v1275_v58 = vunpack.c.l.b16 %v1181_v38 }
  0x6d   : > { %2100 = vmatmul.msk.bf16.gmra.mxu2 %vm399_vm3, %v645_v8  ;;  %v1023_v56 = vor.u32 %v1022_v49, %v1019_v35  ;;  %v1276_v61 = vunpack.c.l.b16 %v1194_v39  ;;  %v1196_v59 = vshrl.u32 %v1157_v50, 16  ;;  %v1096_v62 = vpack.c.b16 %v1089_v37, %v2512_v27 }
  0x6e   : > { %v1442_v63 = vsel %vm2402_vm10, %v1437_v44, %v1441_v40  ;;  %v1010_v0 = vrot.slane %v1009_v47, 4  ;;  %v1014_v1 = vrot.slane %v1012_v48, 5  ;;  %v1028_v2 = vrot.slane %v1026_v52, 5  ;;  %v967_v52 = vld [vmem:[#allocation2 + $0x5c] sm:$0x1] }
  0x6f   : > { %2113 = vmatmul.msk.bf16.gmra.mxu3 %vm399_vm3, %v831_v26  ;;  %v1204_v28 = vshll.u32 %v1158_v41, 16  ;;  %v1214_v51 = vshrl.u32 %v1160_v53, 16  ;;  %v1458_v3 = vshrl.u32 %v1417_v57, 16  ;;  %v1456_v5 = vsel %vm2402_vm10, %v1451_v54, %v1455_v55  ;;  %v2191_v26 = vld [vmem:[#allocation2 + $0x34] sm:$0xf0] }
  0x70   : > { %2134 = vmatmul.msk.bf16.gmra.mxu0 %vm399_vm3, %v2130_v42  ;;  %v1419_v42 = vld [vmem:[#allocation2 + $0x58] sm:$0xf]  ;;  %v1024_v6 = vrot.slane %v1023_v56, 4  ;;  %v1203_v7 = vrot.slane %v1201_v43, 7  ;;  %v1461_v8 = vshll.u32 %v1417_v57, 16  ;;  %v1283_v4 = vpack.c.b16 %v1276_v61, %v1275_v58 }
  0x71   : > { %v1543_v10 = vunpack.c.l.b16 %v1442_v63  ;;  %v2142_v11 = vrot.slane %v1196_v59, 11  ;;  %v1460_v13 = vrot.slane %v1458_v3, 4  ;;  %v1209_v14 = vshrl.u32 %v1159_v60, 16  ;;  %v969_v55 = vld [vmem:[#allocation2 + $0x6c] sm:$0x1] }
  0x72   : > { %v1463_v15 = vrot.slane %v1461_v8, 5  ;;  %v1472_v16 = vshrl.u32 %v1419_v42, 16  ;;  %v1475_v17 = vshll.u32 %v1419_v42, 16  ;;  %v1544_v45 = vunpack.c.l.b16 %v1456_v5  ;;  %v1164_v60 = vld [vmem:[#allocation2 + $0x78] sm:$0xf] }
  0x73   : > { %v1015_v19 = vsel %vm2402_vm10, %v1010_v0, %v1014_v1  ;;  %v1216_v21 = vrot.slane %v1214_v51, 7  ;;  %v1217_v22 = vshll.u32 %v1160_v53, 16  ;;  %v1029_v27 = vsel %vm2402_vm10, %v1024_v6, %v1028_v2  ;;  %v1162_v0 = vld [vmem:[#allocation2 + $0x68] sm:$0xf]  ;;  %v1161_v5 = vld [vmem:[#allocation2 + $0x64] sm:$0x8] }
  0x74   : > { %v1206_v29 = vor.u32 %v1204_v28, %v1203_v7  ;;  %v1474_v30 = vrot.slane %v1472_v16, 4  ;;  %v1477_v31 = vrot.slane %v1475_v17, 5  ;;  %v1464_v32 = vor.u32 %v1463_v15, %v1460_v13  ;;  %v1421_v2 = vld [vmem:[#allocation2 + $0x68] sm:$0xf]  ;;  %v1423_v6 = vld [vmem:[#allocation2 + $0x78] sm:$0xf] }
  0x75   : > { %v1467_v33 = vshll.u32 %v1418_v12, 16  ;;  %v1031_v34 = vshrl.u32 %v966_v18, 16  ;;  %v1034_v35 = vshll.u32 %v966_v18, 16  ;;  %v1481_v37 = vshll.u32 %v1420_v23, 16  ;;  %v2160_v12 = vld [vmem:[#allocation2 + $0x48] sm:$0xf] }
  0x76   : > { %v1478_v36 = vor.u32 %v1477_v31, %v1474_v30  ;;  %v1045_v38 = vshrl.u32 %v968_v24, 16  ;;  %v2157_v39 = vor.u32 %v2191_v26, %v2156_v25  ;;  %v2143_v40 = vrot.slane %v1209_v14, 11  ;;  %v1422_v31 = vld [vmem:[#allocation2 + $0x6c] sm:$0x1] }
  0x77   : > { %v1219_v41 = vor.u32 %v1217_v22, %v1216_v21  ;;  %v1048_v44 = vshll.u32 %v968_v24, 16  ;;  %v1551_v47 = vpack.c.b16 %v1544_v45, %v1543_v10  ;;  %v2534_v48 = vunpack.c.l.b16 %v1015_v19  ;;  %v1163_v10 = vld [vmem:[#allocation2 + $0x74] sm:$0x8]  ;;  %v235_v21 = vld [vmem:[#allocation2 + $0x8c] sm:$0x1] }
  0x78   : > { %v2536_v49 = vunpack.c.l.b16 %v1029_v27  ;;  %v1207_v50 = vsel %vm2376_vm9, %v2142_v11, %v1206_v29  ;;  %v1465_v53 = vrot.slane %v1464_v32, 4  ;;  %v1469_v54 = vrot.slane %v1467_v33, 5  ;;  %v2192_v22 = vld [vmem:[#allocation2 + $0x54] sm:$0xf0] }
  0x79   : > { %v1033_v56 = vrot.slane %v1031_v34, 4  ;;  %v1036_v43 = vrot.slane %v1034_v35, 5  ;;  %v1479_v57 = vrot.slane %v1478_v36, 4  ;;  %v1483_v58 = vrot.slane %v1481_v37, 5  ;;  %v1424_v34 = vld [vmem:[#allocation2 + $0x7c] sm:$0x1] }
  0x7a   : > { %2136 = vmatmul.msk.bf16.vlgmr.msra.gmra.mxu1 %vm399_vm3, %v1096_v62  ;;  %v1047_v61 = vrot.slane %v1045_v38, 4  ;;  %v1050_v59 = vrot.slane %v1048_v44, 5  ;;  %v1220_v62 = vsel %vm2376_vm9, %v2143_v40, %v1219_v41  ;;  %v1040_v63 = vshll.u32 %v967_v52, 16  ;;  %v970_v41 = vld [vmem:[#allocation2 + $0x78] sm:$0xf] }
  0x7b   : > { %v1054_v1 = vshll.u32 %v969_v55, 16  ;;  %v1097_v28 = vpack.c.b16 %v2536_v49, %v2534_v48  ;;  %v1277_v51 = vunpack.c.l.b16 %v1207_v50  ;;  %v1470_v42 = vsel %vm2402_vm10, %v1465_v53, %v1469_v54  ;;  %v972_v50 = vld [vmem:[#allocation2 + $0x88] sm:$0xf] }
  0x7c   : > { %v1037_v3 = vor.u32 %v1036_v43, %v1033_v56  ;;  %v1278_v7 = vunpack.c.l.b16 %v1220_v62  ;;  %v1484_v8 = vsel %vm2402_vm10, %v1479_v57, %v1483_v58  ;;  %v1227_v11 = vshrl.u32 %v1162_v0, 16 }
  0x7d   : > { %2149 = vmatmul.msk.bf16.vlgmr.msra.gmra.mxu2 %vm399_vm3, %v1283_v4  ;;  %v1051_v4 = vor.u32 %v1050_v59, %v1047_v61  ;;  %v1042_v13 = vrot.slane %v1040_v63, 5  ;;  %v1240_v14 = vshrl.u32 %v1164_v60, 16  ;;  %v1486_v15 = vshrl.u32 %v1421_v2, 16 }
  0x7e   : > { %v1489_v16 = vshll.u32 %v1421_v2, 16  ;;  %v1545_v17 = vunpack.c.l.b16 %v1470_v42  ;;  %v1056_v18 = vrot.slane %v1054_v1, 5  ;;  %v1222_v45 = vshrl.u32 %v1161_v5, 16  ;;  %v971_v5 = vld [vmem:[#allocation2 + $0x7c] sm:$0x1] }
  0x7f   : > { %2170 = vmatmul.msk.bf16.vlgmr.msra.gmra.mxu3 %vm399_vm3, %v2157_v39  ;;  %v1500_v19 = vshrl.u32 %v1423_v6, 16  ;;  %v1546_v23 = vunpack.c.l.b16 %v1484_v8  ;;  %v1038_v24 = vrot.slane %v1037_v3, 4  ;;  %v1230_v25 = vshll.u32 %v1162_v0, 16 }
  0x80   : > { %2175 = vmatmul.msk.bf16.vlgmr.msra.gmra.mxu0 %vm399_vm3, %v1551_v47  ;;  %v1235_v26 = vshrl.u32 %v1163_v10, 16  ;;  %v1052_v27 = vrot.slane %v1051_v4, 4  ;;  %v1229_v29 = vrot.slane %v1227_v11, 7  ;;  %v1243_v30 = vshll.u32 %v1164_v60, 16  ;;  %v1166_v11 = vld [vmem:[#allocation2 + $0x88] sm:$0xf] }
  0x81   : > { %v1503_v32 = vshll.u32 %v1423_v6, 16  ;;  %v1242_v33 = vrot.slane %v1240_v14, 7  ;;  %v1488_v35 = vrot.slane %v1486_v15, 4  ;;  %v1491_v36 = vrot.slane %v1489_v16, 5 }
  0x82   : > { %v236_v37 = vsel %vm2309_vm5, 0, %v235_v21  ;;  %v2161_v38 = vor.u32 %v2192_v22, %v2160_v12  ;;  %v1502_v39 = vrot.slane %v1500_v19, 4  ;;  %v1284_v44 = vpack.c.b16 %v1278_v7, %v1277_v51  ;;  %v1168_v21 = vld [vmem:[#allocation2 + $0x98] sm:$0xf] }
  0x83   : > { %v1505_v40 = vrot.slane %v1503_v32, 5  ;;  %237 = vst [vmem:[#allocation2 + $0x8c] sm:$0x1] %v236_v37  ;;  %v1552_v47 = vpack.c.b16 %v1546_v23, %v1545_v17  ;;  %v1043_v48 = vsel %vm2402_vm10, %v1038_v24, %v1042_v13  ;;  %v2144_v49 = vrot.slane %v1222_v45, 11  ;;  %v1425_v17 = vld [vmem:[#allocation2 + $0x88] sm:$0xf] }
  0x84   : > { %v1057_v52 = vsel %vm2402_vm10, %v1052_v27, %v1056_v18  ;;  %v1232_v53 = vor.u32 %v1230_v25, %v1229_v29  ;;  %v2145_v54 = vrot.slane %v1235_v26, 11  ;;  %v1495_v55 = vshll.u32 %v1422_v31, 16  ;;  %v1427_v18 = vld [vmem:[#allocation2 + $0x98] sm:$0xf]  ;;  %v1165_v27 = vld [vmem:[#allocation2 + $0x84] sm:$0x8] }
  0x85   : > { %v1245_v56 = vor.u32 %v1243_v30, %v1242_v33  ;;  %v1492_v43 = vor.u32 %v1491_v36, %v1488_v35  ;;  %v1509_v57 = vshll.u32 %v1424_v34, 16  ;;  %v1059_v58 = vshrl.u32 %v970_v41, 16  ;;  %v2164_v33 = vld [vmem:[#allocation2 + $0x68] sm:$0xf]  ;;  %v1167_v37 = vld [vmem:[#allocation2 + $0x94] sm:$0x8] }
  0x86   : > { %v1506_v61 = vor.u32 %v1505_v40, %v1502_v39  ;;  %v1062_v59 = vshll.u32 %v970_v41, 16  ;;  %v1073_v62 = vshrl.u32 %v972_v50, 16  ;;  %v1076_v63 = vshll.u32 %v972_v50, 16  ;;  %v2193_v41 = vld [vmem:[#allocation2 + $0x74] sm:$0xf0] }
  0x87   : > { %v1092_v0 = vunpack.c.l.b16 %v1043_v48  ;;  %v1093_v1 = vunpack.c.l.b16 %v1057_v52  ;;  %v1233_v60 = vsel %vm2376_vm9, %v2144_v49, %v1232_v53  ;;  %v1497_v2 = vrot.slane %v1495_v55, 5 }
  0x88   : > { %v1246_v51 = vsel %vm2376_vm9, %v2145_v54, %v1245_v56  ;;  %v1493_v42 = vrot.slane %v1492_v43, 4  ;;  %v1511_v3 = vrot.slane %v1509_v57, 5  ;;  %v1061_v6 = vrot.slane %v1059_v58, 4 }
  0x89   : > { %v1507_v7 = vrot.slane %v1506_v61, 4  ;;  %v1064_v8 = vrot.slane %v1062_v59, 5  ;;  %v1075_v4 = vrot.slane %v1073_v62, 4  ;;  %v1078_v10 = vrot.slane %v1076_v63, 5 }
  0x8a   : > { %2137 = vmatmul.msk.bf16.gmra.mxu1 %vm399_vm3, %v1097_v28  ;;  %v241_v28 = vld [vmem:[#allocation2 + $0x9c] sm:$0x1]  ;;  %v973_v12 = vld [vmem:[#allocation2 + $0x8c] sm:$0x1]  ;;  %v1279_v13 = vunpack.c.l.b16 %v1233_v60  ;;  %v1280_v14 = vunpack.c.l.b16 %v1246_v51  ;;  %v1068_v15 = vshll.u32 %v971_v5, 16  ;;  %v1098_v45 = vpack.c.b16 %v1093_v1, %v1092_v0 }
  0x8b   : > { %v242_v16 = vsel %vm2309_vm5, 0, %v241_v28  ;;  %v1498_v19 = vsel %vm2402_vm10, %v1493_v42, %v1497_v2  ;;  %v1253_v22 = vshrl.u32 %v1166_v11, 16  ;;  %v1512_v23 = vsel %vm2402_vm10, %v1507_v7, %v1511_v3  ;;  %v1426_v50 = vld [vmem:[#allocation2 + $0x8c] sm:$0x1] }
  0x8c   : > { %243 = vst [vmem:[#allocation2 + $0x9c] sm:$0x1] %v242_v16  ;;  %v1065_v24 = vor.u32 %v1064_v8, %v1061_v6  ;;  %v1079_v25 = vor.u32 %v1078_v10, %v1075_v4  ;;  %v1082_v26 = vshll.u32 %v973_v12, 16  ;;  %v1514_v29 = vshrl.u32 %v1425_v17, 16 }
  0x8d   : > { %2150 = vmatmul.msk.bf16.gmra.mxu2 %vm399_vm3, %v1284_v44  ;;  %v1517_v30 = vshll.u32 %v1425_v17, 16  ;;  %v1528_v20 = vshrl.u32 %v1427_v18, 16  ;;  %v1531_v31 = vshll.u32 %v1427_v18, 16  ;;  %v1285_v32 = vpack.c.b16 %v1280_v14, %v1279_v13 }
  0x8e   : > { %v1070_v34 = vrot.slane %v1068_v15, 5  ;;  %v1266_v35 = vshrl.u32 %v1168_v21, 16  ;;  %v1547_v36 = vunpack.c.l.b16 %v1498_v19  ;;  %v1255_v39 = vrot.slane %v1253_v22, 7  ;;  %v2194_v19 = vld [vmem:[#allocation2 + $0x94] sm:$0xf0] }
  0x8f   : > { %2171 = vmatmul.msk.bf16.gmra.mxu3 %vm399_vm3, %v2161_v38  ;;  %v1248_v38 = vshrl.u32 %v1165_v27, 16  ;;  %v1256_v40 = vshll.u32 %v1166_v11, 16  ;;  %v1548_v44 = vunpack.c.l.b16 %v1512_v23  ;;  %v1080_v48 = vrot.slane %v1079_v25, 4 }
  0x90   : > { %2176 = vmatmul.msk.bf16.gmra.mxu0 %vm399_vm3, %v1552_v47  ;;  %v1066_v47 = vrot.slane %v1065_v24, 4  ;;  %v1084_v49 = vrot.slane %v1082_v26, 5  ;;  %v1516_v52 = vrot.slane %v1514_v29, 4  ;;  %v1519_v53 = vrot.slane %v1517_v30, 5 }
  0x91   : > { %v1530_v54 = vrot.slane %v1528_v20, 4  ;;  %v1533_v55 = vrot.slane %v1531_v31, 5  ;;  %v1261_v56 = vshrl.u32 %v1167_v37, 16  ;;  %v1268_v43 = vrot.slane %v1266_v35, 7 }
  0x92   : > { %v1269_v57 = vshll.u32 %v1168_v21, 16  ;;  %v2165_v61 = vor.u32 %v2193_v41, %v2164_v33  ;;  %v2146_v59 = vrot.slane %v1248_v38, 11  ;;  %v1553_v62 = vpack.c.b16 %v1548_v44, %v1547_v36 }
  0x93   : > { %v1428_v58 = vld [vmem:[#allocation2 + $0x9c] sm:$0x1]  ;;  %v1071_v63 = vsel %vm2402_vm10, %v1066_v47, %v1070_v34  ;;  %v1258_v0 = vor.u32 %v1256_v40, %v1255_v39  ;;  %v1523_v1 = vshll.u32 %v1426_v50, 16  ;;  %v1085_v60 = vsel %vm2402_vm10, %v1080_v48, %v1084_v49 }
  0x94   : > { %v1520_v2 = vor.u32 %v1519_v53, %v1516_v52  ;;  %v1534_v28 = vor.u32 %v1533_v55, %v1530_v54  ;;  %v1537_v51 = vshll.u32 %v1428_v58, 16  ;;  %v2147_v42 = vrot.slane %v1261_v56, 11 }
  0x95   : > { %v1271_v3 = vor.u32 %v1269_v57, %v1268_v43  ;;  %v1094_v5 = vunpack.c.l.b16 %v1071_v63  ;;  %v1095_v6 = vunpack.c.l.b16 %v1085_v60  ;;  %v1259_v7 = vsel %vm2376_vm9, %v2146_v59, %v1258_v0 }
  0x96   : > { %v1521_v8 = vrot.slane %v1520_v2, 4  ;;  %v1525_v4 = vrot.slane %v1523_v1, 5  ;;  %v1535_v10 = vrot.slane %v1534_v28, 4  ;;  %v1539_v11 = vrot.slane %v1537_v51, 5 }
  0x97   : > { %v430_v12 = vpop.f32.mrf.mxu1  ;;  %v1272_v13 = vsel %vm2376_vm9, %v2147_v42, %v1271_v3  ;;  %v1281_v14 = vunpack.c.l.b16 %v1259_v7  ;;  %v1099_v15 = vpack.c.b16 %v1095_v6, %v1094_v5  ;;  %vm1945_vm14 = vcmask 1041409  }
  0x98   : > { %v1282_v16 = vunpack.c.l.b16 %v1272_v13  ;;  %v1526_v17 = vsel %vm2402_vm10, %v1521_v8, %v1525_v4  ;;  %v1540_v18 = vsel %vm2402_vm10, %v1535_v10, %v1539_v11  ;;  %vm1948_vm15 = vcmask 1042434  }
  0x99   : > { %v1549_v21 = vunpack.c.l.b16 %v1526_v17  ;;  %v1550_v22 = vunpack.c.l.b16 %v1540_v18  ;;  %vm1951_vm0 = vcmask 1043459  }
  0x9a   : > { %2138 = vmatmul.msk.bf16.gmra.mxu1 %vm399_vm3, %v1098_v45  ;;  %v2168_v45 = vld [vmem:[#allocation2 + $0x88] sm:$0xf]  ;;  %v1286_v23 = vpack.c.b16 %v1282_v16, %v1281_v14 }
  0x9b   : > { %v2169_v24 = vor.u32 %v2194_v19, %v2168_v45  ;;  %v1554_v25 = vpack.c.b16 %v1550_v22, %v1549_v21 }
  0x9d   : > { %2151 = vmatmul.msk.bf16.gmra.mxu2 %vm399_vm3, %v1285_v32 }
  0x9f   : > { %2172 = vmatmul.msk.bf16.gmra.mxu3 %vm399_vm3, %v2165_v61  ;;  %v2588_v9 = vpop.f32.mrf.mxu1 }
  0xa0   : > { %2177 = vmatmul.msk.bf16.gmra.mxu0 %vm399_vm3, %v1553_v62 }
  0xaa   : > { %2139 = vmatmul.msk.bf16.gmra.mxu1 %vm399_vm3, %v1099_v15 }
  0xad   : > { %v425_v26 = vpop.f32.mrf.mxu0  ;;  %2152 = vmatmul.msk.bf16.gmra.mxu2 %vm399_vm3, %v1286_v23 }
  0xaf   : > { %2173 = vmatmul.msk.bf16.gmra.mxu3 %vm399_vm3, %v2169_v24 }
  0xb0   : > { %2178 = vmatmul.msk.bf16.gmra.mxu0 %vm399_vm3, %v1554_v25  ;;  %v435_v46 = vpop.f32.mrf.mxu2 }
  0xb2   : > { %v440_v27 = vpop.f32.mrf.mxu3 }
  0xb5   : > { %v427_v29 = vpop.f32.mrf.mxu0 }
  0xb7   : > { %v481_v30 = vpop.f32.mrf.mxu1 }
  0xb8   : > { %v482_v20 = vadd.f32 %v481_v30, %v425_v26  ;;  %v2593_v31 = vpop.f32.mrf.mxu2 }
  0xba   : > { %v2595_v32 = vpop.f32.mrf.mxu3 }
  0xbd   : > { %v930_v33 = vpop.f32.mrf.mxu0 }
  0xbf   : > { %v483_v34 = vpop.f32.mrf.mxu1 }
  0xc0   : > { %v670_v35 = vpop.f32.mrf.mxu2  ;;  %v484_v18 = vadd.f32 %v483_v34, %v427_v29 }
  0xc1   : > { %v690_v36 = vadd.f32 %v670_v35, %v482_v20  ;;  %v2622_v35 = vld [vmem:[%s2721_s2] ss:$0 sm:$0xff] }
  0xc2   : > { %v856_v37 = vpop.f32.mrf.mxu3 }
  0xc3   : > { %v876_v38 = vadd.f32 %v856_v37, %v690_v36 }
  0xc5   : > { %v932_v39 = vpop.f32.mrf.mxu0  ;;  %v950_v40 = vadd.f32 %v930_v33, %v876_v38 }
  0xc7   : > { %v486_v41 = vpop.f32.mrf.mxu1 }
  0xc8   : > { %v487_v44 = vadd.f32 %v486_v41, %v430_v12  ;;  %v672_v47 = vpop.f32.mrf.mxu2 }
  0xc9   : > { %v691_v45 = vadd.f32 %v672_v47, %v484_v18 }
  0xca   : > { %v858_v48 = vpop.f32.mrf.mxu3 }
  0xcb   : > { %v877_v24 = vadd.f32 %v858_v48, %v691_v45 }
  0xcd   : > { %v935_v49 = vpop.f32.mrf.mxu0 }
  0xcf   : > { %v488_v50 = vpop.f32.mrf.mxu1 }
  0xd0   : > { %v675_v52 = vpop.f32.mrf.mxu2  ;;  %v489_v38 = vadd.f32 %v488_v50, %v2588_v9 }
  0xd1   : > { %v692_v53 = vadd.f32 %v675_v52, %v487_v44 }
  0xd2   : > { %v861_v54 = vpop.f32.mrf.mxu3 }
  0xd3   : > { %v878_v55 = vadd.f32 %v861_v54, %v692_v53 }
  0xd5   : > { %v2597_v56 = vpop.f32.mrf.mxu0  ;;  %v952_v43 = vadd.f32 %v935_v49, %v878_v55 }
  0xd7   : > { %v491_v57 = vpop.f32.mrf.mxu1 }
  0xd8   : > { %v492_v58 = vadd.f32 %v491_v57, %v435_v46  ;;  %v677_v61 = vpop.f32.mrf.mxu2 }
  0xd9   : > { %v693_v44 = vadd.f32 %v677_v61, %v489_v38 }
  0xda   : > { %v863_v59 = vpop.f32.mrf.mxu3 }
  0xdb   : > { %v879_v55 = vadd.f32 %v863_v59, %v693_v44 }
  0xdd   : > { %v940_v62 = vpop.f32.mrf.mxu0 }
  0xdf   : > { %v2599_v63 = vpop.f32.mrf.mxu1 }
  0xe0   : > { %v680_v0 = vpop.f32.mrf.mxu2  ;;  %v494_v59 = vadd.f32 %v2599_v63, %v2593_v31 }
  0xe1   : > { %v694_v1 = vadd.f32 %v680_v0, %v492_v58 }
  0xe2   : > { %v866_v60 = vpop.f32.mrf.mxu3 }
  0xe3   : > { %v880_v2 = vadd.f32 %v866_v60, %v694_v1  ;;  %v953_v1 = vadd.f32 %v2597_v56, %v879_v55 }
  0xe5   : > { %v2601_v28 = vpop.f32.mrf.mxu0  ;;  %v2603_v51 = vadd.f32 %v940_v62, %v880_v2 }
  0xe7   : > { %v496_v42 = vpop.f32.mrf.mxu1 }
  0xe8   : > { %v497_v3 = vadd.f32 %v496_v42, %v440_v27  ;;  %v2605_v5 = vpop.f32.mrf.mxu2  ;;  %v951_v27 = vadd.f32 %v932_v39, %v877_v24 }
  0xea   : > { %v2607_v6 = vpop.f32.mrf.mxu3 }
  0xed   : > { %v945_v7 = vpop.f32.mrf.mxu0 }
  0xef   : > { %v2609_v8 = vpop.f32.mrf.mxu1 }
  0xf0   : > { %v685_v4 = vpop.f32.mrf.mxu2 }
  0xf1   : > { %v696_v10 = vadd.f32 %v685_v4, %v497_v3 }
  0xf2   : > { %v871_v11 = vpop.f32.mrf.mxu3 }
  0xf3   : > { %v882_v12 = vadd.f32 %v871_v11, %v696_v10 }
  0xf5   : > { %v2611_v13 = vpop.f32.mrf.mxu0  ;;  %v2613_v14 = vadd.f32 %v945_v7, %v882_v12 }
  0xf7   : > { %v1124_v15 = vpop.f32.mrf.mxu1 }
  0xf8   : > { %v2615_v16 = vpop.f32.mrf.mxu2  ;;  %v1144_v22 = vadd.f32 %v1124_v15, %v950_v40 }
  0xfa   : > { %v2617_v17 = vpop.f32.mrf.mxu3 }
  0xfd   : > { %v1579_v19 = vpop.f32.mrf.mxu0 }
  0xff   : > { %v1126_v21 = vpop.f32.mrf.mxu1 }
 0x100   : > { %v1311_v23 = vpop.f32.mrf.mxu2  ;;  %v1145_v36 = vadd.f32 %v1126_v21, %v951_v27 }
 0x101   : > { %v1331_v25 = vadd.f32 %v1311_v23, %v1144_v22  ;;  %v695_v23 = vadd.f32 %v2605_v5, %v494_v59 }
 0x102   : > { %v1385_v26 = vpop.f32.mrf.mxu3 }
 0x103   : > { %v1405_v46 = vadd.f32 %v1385_v26, %v1331_v25 }
 0x105   : > { %v1581_v30 = vpop.f32.mrf.mxu0  ;;  %v1599_v33 = vadd.f32 %v1579_v19, %v1405_v46 }
 0x107   : > { %v1129_v20 = vpop.f32.mrf.mxu1  ;;  %v1610_v40 = vadd.f32 %v2622_v35, %v1599_v33 }
 0x108   : > { %v1313_v29 = vpop.f32.mrf.mxu2  ;;  %v1146_v52 = vadd.f32 %v1129_v20, %v952_v43 }
 0x109   : > { %v1332_v34 = vadd.f32 %v1313_v29, %v1145_v36  ;;  %v1618_v48 = vmax.f32 %v1610_v40, 0.0 }
 0x10a   : > { %v1387_v37 = vpop.f32.mrf.mxu3 }
 0x10b   : > { %v1406_v41 = vadd.f32 %v1387_v37, %v1332_v34  ;;  %v1627_v0 = vsel %vm1626_vm11, %v1618_v48, -inf  ;;  %v881_v34 = vadd.f32 %v2607_v6, %v695_v23 }
 0x10d   : > { %v1600_v47 = vadd.f32 %v1581_v30, %v1406_v41  ;;  %v1584_v53 = vpop.f32.mrf.mxu0 }
 0x10f   : > { %v1131_v39 = vpop.f32.mrf.mxu1  ;;  %v1611_v49 = vadd.f32 %v2622_v35, %v1600_v47  ;;  %v499_v47 = vadd.f32 %v2609_v8, %v2595_v32 }
 0x110   : > { %v1316_v54 = vpop.f32.mrf.mxu2  ;;  %v1147_v4 = vadd.f32 %v1131_v39, %v953_v1 }
 0x111   : > { %v1619_v57 = vmax.f32 %v1611_v49, 0.0  ;;  %v1333_v58 = vadd.f32 %v1316_v54, %v1146_v52  ;;  %v697_v6 = vadd.f32 %v2615_v16, %v499_v47 }
 0x112   : > { %v1390_v62 = vpop.f32.mrf.mxu3 }
 0x113   : > { %v1628_v9 = vsel %vm1626_vm11, %v1619_v57, -inf  ;;  %v1407_v61 = vadd.f32 %v1390_v62, %v1333_v58  ;;  %v883_v59 = vadd.f32 %v2617_v17, %v697_v6 }
 0x114   : > { %v1629_v50 = vmax.f32 %v1627_v0, %v1628_v9  ;;  %v955_v9 = vadd.f32 %v2601_v28, %v881_v34 }
 0x115   : > { %v1601_v15 = vadd.f32 %v1584_v53, %v1407_v61  ;;  %v1586_v22 = vpop.f32.mrf.mxu0  ;;  %v957_v47 = vadd.f32 %v2611_v13, %v883_v59 }
 0x116   : > { %v1643_v60 = vrot.slane %v1629_v50, 2  ;;  %v1644_v2 = vrot.slane %v1629_v50, 4  ;;  %v1645_v42 = vrot.slane %v1629_v50, 6  ;;  %v1668_v43 = vsel %vm1667_vm12, %v1629_v50, -inf }
 0x117   : > { %v1134_v3 = vpop.f32.mrf.mxu1  ;;  %v1669_v7 = vrot.slane %v1668_v43, 4  ;;  %v1612_v27 = vadd.f32 %v2622_v35, %v1601_v15 }
 0x118   : > { %v1675_v10 = vsel %vm1667_vm12, %v1643_v60, -inf  ;;  %v1682_v11 = vsel %vm1667_vm12, %v1644_v2, -inf  ;;  %v1689_v12 = vsel %vm1667_vm12, %v1645_v42, -inf  ;;  %v1318_v18 = vpop.f32.mrf.mxu2  ;;  %v1148_v49 = vadd.f32 %v1134_v3, %v2603_v51 }
 0x119   : > { %v1670_v56 = vmax.f32 %v1668_v43, %v1669_v7  ;;  %v1676_v45 = vrot.slane %v1675_v10, 4  ;;  %v1683_v19 = vrot.slane %v1682_v11, 4  ;;  %v1690_v21 = vrot.slane %v1689_v12, 4 }
 0x11a   : > { %v1334_v24 = vadd.f32 %v1318_v18, %v1147_v4  ;;  %v1392_v25 = vpop.f32.mrf.mxu3  ;;  %v1620_v39 = vmax.f32 %v1612_v27, 0.0 }
 0x11b   : > { %v1671_v31 = vrot.slane %v1670_v56, 2  ;;  %v1677_v63 = vmax.f32 %v1675_v10, %v1676_v45  ;;  %v1684_v26 = vmax.f32 %v1682_v11, %v1683_v19  ;;  %v1691_v46 = vmax.f32 %v1689_v12, %v1690_v21 }
 0x11c   : > { %v1408_v30 = vadd.f32 %v1392_v25, %v1334_v24  ;;  %v1630_v51 = vsel %vm1626_vm11, %v1620_v39, -inf }
 0x11d   : > { %v1672_v20 = vmax.f32 %v1670_v56, %v1671_v31  ;;  %v1678_v33 = vrot.slane %v1677_v63, 2  ;;  %v1685_v36 = vrot.slane %v1684_v26, 2  ;;  %v1692_v29 = vrot.slane %v1691_v46, 2  ;;  %v1589_v1 = vpop.f32.mrf.mxu0 }
 0x11e   : > { %v1602_v37 = vadd.f32 %v1586_v22, %v1408_v30 }
 0x11f   : > { %v1673_v38 = vrot.slane %v1672_v20, 1  ;;  %v1679_v40 = vmax.f32 %v1677_v63, %v1678_v33  ;;  %v1686_v41 = vmax.f32 %v1684_v26, %v1685_v36  ;;  %v1693_v5 = vmax.f32 %v1691_v46, %v1692_v29  ;;  %v1136_v44 = vpop.f32.mrf.mxu1 }
 0x120   : > { %v1613_v48 = vadd.f32 %v2622_v35, %v1602_v37  ;;  %v1321_v52 = vpop.f32.mrf.mxu2  ;;  %v1149_v28 = vadd.f32 %v1136_v44, %v955_v9 }
 0x121   : > { %v1674_v53 = vmax.f32 %v1672_v20, %v1673_v38  ;;  %v1680_v54 = vrot.slane %v1679_v40, 1  ;;  %v1687_v55 = vrot.slane %v1686_v41, 1  ;;  %v1694_v57 = vrot.slane %v1693_v5, 1 }
 0x122   : > { %v1621_v58 = vmax.f32 %v1613_v48, 0.0  ;;  %v1335_v62 = vadd.f32 %v1321_v52, %v1148_v49  ;;  %v1395_v0 = vpop.f32.mrf.mxu3 }
 0x123   : > { %v1681_v50 = vmax.f32 %v1679_v40, %v1680_v54  ;;  %v1688_v61 = vmax.f32 %v1686_v41, %v1687_v55  ;;  %v1695_v32 = vmax.f32 %v1693_v5, %v1694_v57  ;;  %v1780_v8 = vpack.c.bf16 %v1674_v53, %v1674_v53 }
 0x124   : > { %v1631_v60 = vsel %vm1626_vm11, %v1621_v58, -inf  ;;  %v1409_v2 = vadd.f32 %v1395_v0, %v1335_v62 }
 0x125   : > { %v1781_v42 = vpack.c.bf16 %v1681_v50, %v1681_v50  ;;  %v1782_v43 = vpack.c.bf16 %v1688_v61, %v1688_v61  ;;  %v1783_v3 = vpack.c.bf16 %v1695_v32, %v1695_v32  ;;  %v1812_v16 = vrot.slane %v1780_v8, 2  ;;  %v1591_v5 = vpop.f32.mrf.mxu0 }
 0x126   : > { %v1632_v7 = vmax.f32 %v1630_v51, %v1631_v60  ;;  %v1603_v4 = vadd.f32 %v1589_v1, %v1409_v2 }
 0x127   : > { %v1813_v10 = vrot.slane %v1781_v42, 2  ;;  %v1814_v11 = vrot.slane %v1782_v43, 2  ;;  %v1815_v12 = vrot.slane %v1783_v3, 2  ;;  %v1831_v15 = vsel %vm1828_vm13, %v1780_v8, %v1812_v16  ;;  %v1139_v25 = vpop.f32.mrf.mxu1 }
 0x128   : > { %1877 = vst [vmem:[#allocation1] ss:$2 sm:$0xff] %v1831_v15  ;;  %v1646_v18 = vrot.slane %v1632_v7, 2  ;;  %v1647_v56 = vrot.slane %v1632_v7, 4  ;;  %v1648_v45 = vrot.slane %v1632_v7, 6  ;;  %v1696_v19 = vsel %vm1667_vm12, %v1632_v7, -inf  ;;  %v1323_v21 = vpop.f32.mrf.mxu2 }
 0x129   : > { %v1834_v22 = vsel %vm1828_vm13, %v1781_v42, %v1813_v10  ;;  %v1837_v23 = vsel %vm1828_vm13, %v1782_v43, %v1814_v11  ;;  %v1840_v17 = vsel %vm1828_vm13, %v1783_v3, %v1815_v12  ;;  %v1697_v24 = vrot.slane %v1696_v19, 4 }
 0x12a   : > { %1881 = vst [vmem:[#allocation1 + $0x10] ss:$2 sm:$0xff] %v1834_v22  ;;  %v1703_v31 = vsel %vm1667_vm12, %v1646_v18, -inf  ;;  %v1710_v63 = vsel %vm1667_vm12, %v1647_v56, -inf  ;;  %v1717_v26 = vsel %vm1667_vm12, %v1648_v45, -inf  ;;  %v1614_v46 = vadd.f32 %v2622_v35, %v1603_v4  ;;  %v1397_v36 = vpop.f32.mrf.mxu3 }
 0x12b   : > { %1885 = vst [vmem:[#allocation1 + $0x20] ss:$2 sm:$0xff] %v1837_v23  ;;  %v1698_v27 = vmax.f32 %v1696_v19, %v1697_v24  ;;  %v1704_v30 = vrot.slane %v1703_v31, 4  ;;  %v1711_v20 = vrot.slane %v1710_v63, 4  ;;  %v1718_v33 = vrot.slane %v1717_v26, 4 }
 0x12c   : > { %1889 = vst [vmem:[#allocation1 + $0x30] ss:$2 sm:$0xff] %v1840_v17  ;;  %v1622_v29 = vmax.f32 %v1614_v46, 0.0  ;;  %v1336_v34 = vadd.f32 %v1323_v21, %v1149_v28  ;;  %v1150_v57 = vadd.f32 %v1139_v25, %v2613_v14 }
 0x12d   : > { %v1699_v37 = vrot.slane %v1698_v27, 2  ;;  %v1705_v38 = vmax.f32 %v1703_v31, %v1704_v30  ;;  %v1712_v40 = vmax.f32 %v1710_v63, %v1711_v20  ;;  %v1719_v41 = vmax.f32 %v1717_v26, %v1718_v33  ;;  %v1594_v17 = vpop.f32.mrf.mxu0 }
 0x12e   : > { %v1410_v44 = vadd.f32 %v1397_v36, %v1336_v34  ;;  %v1633_v54 = vsel %vm1626_vm11, %v1622_v29, -inf }
 0x12f   : > { %v1700_v39 = vmax.f32 %v1698_v27, %v1699_v37  ;;  %v1706_v48 = vrot.slane %v1705_v38, 2  ;;  %v1713_v49 = vrot.slane %v1712_v40, 2  ;;  %v1720_v52 = vrot.slane %v1719_v41, 2  ;;  %v1878_v53 = vld.sshfl [vmem:[#allocation1] sm:$0xff pattern:$0x75643120]  ;;  %v1141_v3 = vpop.f32.mrf.mxu1 }
 0x130   : > { %v1604_v55 = vadd.f32 %v1591_v5, %v1410_v44  ;;  %v1326_v6 = vpop.f32.mrf.mxu2  ;;  %v1928_v32 = vunpack.c.l.b16 %v1878_v53  ;;  %v1151_v45 = vadd.f32 %v1141_v3, %v957_v47 }
 0x131   : > { %v1701_v58 = vrot.slane %v1700_v39, 1  ;;  %v1707_v62 = vmax.f32 %v1705_v38, %v1706_v48  ;;  %v1714_v0 = vmax.f32 %v1712_v40, %v1713_v49  ;;  %v1721_v9 = vmax.f32 %v1719_v41, %v1720_v52  ;;  %v1882_v50 = vld.sshfl [vmem:[#allocation1 + $0x10] sm:$0xff pattern:$0x75643120] }
 0x132   : > { %v1886_v61 = vld.sshfl [vmem:[#allocation1 + $0x20] sm:$0xff pattern:$0x75643120]  ;;  %v1929_v13 = vunpack.c.l.b16 %v1882_v50  ;;  %v1615_v8 = vadd.f32 %v2622_v35, %v1604_v55  ;;  %v1337_v1 = vadd.f32 %v1326_v6, %v1150_v57  ;;  %v1400_v12 = vpop.f32.mrf.mxu3 }
 0x133   : > { %v1702_v51 = vmax.f32 %v1700_v39, %v1701_v58  ;;  %v1708_v60 = vrot.slane %v1707_v62, 1  ;;  %v1715_v2 = vrot.slane %v1714_v0, 1  ;;  %v1722_v42 = vrot.slane %v1721_v9, 1  ;;  %v1890_v43 = vld.sshfl [vmem:[#allocation1 + $0x30] sm:$0xff pattern:$0x75643120] }
 0x134   : > { %v1930_v16 = vunpack.c.l.b16 %v1886_v61  ;;  %v1931_v14 = vunpack.c.l.b16 %v1890_v43  ;;  %v1944_v59 = vrot.slane %v1929_v13, 7  ;;  %v1623_v7 = vmax.f32 %v1615_v8, 0.0 }
 0x135   : > { %v1709_v4 = vmax.f32 %v1707_v62, %v1708_v60  ;;  %v1716_v28 = vmax.f32 %v1714_v0, %v1715_v2  ;;  %v1723_v10 = vmax.f32 %v1721_v9, %v1722_v42  ;;  %v1784_v11 = vpack.c.bf16 %v1702_v51, %v1702_v51  ;;  %v1596_v60 = vpop.f32.mrf.mxu0 }
 0x136   : > { %v1946_v15 = vsel %vm1945_vm14, %v1944_v59, %v1928_v32  ;;  %v1947_v18 = vrot.slane %v1930_v16, 6  ;;  %v1634_v56 = vsel %vm1626_vm11, %v1623_v7, -inf  ;;  %v1950_v25 = vrot.slane %v1931_v14, 5 }
 0x137   : > { %v1785_v19 = vpack.c.bf16 %v1709_v4, %v1709_v4  ;;  %v1786_v21 = vpack.c.bf16 %v1716_v28, %v1716_v28  ;;  %v1787_v22 = vpack.c.bf16 %v1723_v10, %v1723_v10  ;;  %v1816_v23 = vrot.slane %v1784_v11, 2 }
 0x138   : > { %v1949_v24 = vsel %vm1948_vm15, %v1947_v18, %v1946_v15  ;;  %v1635_v31 = vmax.f32 %v1633_v54, %v1634_v56  ;;  %v1411_v63 = vadd.f32 %v1400_v12, %v1337_v1  ;;  %v1328_v41 = vpop.f32.mrf.mxu2 }
 0x139   : > { %v1817_v26 = vrot.slane %v1785_v19, 2  ;;  %v1818_v46 = vrot.slane %v1786_v21, 2  ;;  %v1819_v27 = vrot.slane %v1787_v22, 2  ;;  %v1843_v30 = vsel %vm1828_vm13, %v1784_v11, %v1816_v23 }
 0x13a   : > { %1892 = vst [vmem:[#allocation1] ss:$2 sm:$0xff] %v1843_v30  ;;  %v1952_v20 = vsel %vm1951_vm0, %v1950_v25, %v1949_v24  ;;  %v1649_v33 = vrot.slane %v1635_v31, 2  ;;  %v1650_v36 = vrot.slane %v1635_v31, 4  ;;  %v1651_v29 = vrot.slane %v1635_v31, 6  ;;  %v1402_v9 = vpop.f32.mrf.mxu3 }
 0x13b   : > { %v1846_v34 = vsel %vm1828_vm13, %v1785_v19, %v1817_v26  ;;  %v1849_v37 = vsel %vm1828_vm13, %v1786_v21, %v1818_v46  ;;  %v1852_v38 = vsel %vm1828_vm13, %v1787_v22, %v1819_v27  ;;  %v1971_v40 = vpack.c.b16 %v1952_v20, %v1952_v20 }
 0x13c   : > { %1895 = vst [vmem:[#allocation1 + $0x10] ss:$2 sm:$0xff] %v1846_v34  ;;  %v1724_v5 = vsel %vm1667_vm12, %v1635_v31, -inf  ;;  %v1731_v44 = vsel %vm1667_vm12, %v1649_v33, -inf  ;;  %v1738_v47 = vsel %vm1667_vm12, %v1650_v36, -inf  ;;  %v1745_v39 = vsel %vm1667_vm12, %v1651_v29, -inf }
 0x13d   : > { %1898 = vst [vmem:[#allocation1 + $0x20] ss:$2 sm:$0xff] %v1849_v37  ;;  %v1975_v48 = vrot.slane %v1971_v40, 2  ;;  %v1725_v49 = vrot.slane %v1724_v5, 4  ;;  %v1732_v52 = vrot.slane %v1731_v44, 4  ;;  %v1739_v53 = vrot.slane %v1738_v47, 4 }
 0x13e   : > { %1901 = vst [vmem:[#allocation1 + $0x30] ss:$2 sm:$0xff] %v1852_v38  ;;  %v1746_v54 = vrot.slane %v1745_v39, 4  ;;  %v1605_v55 = vadd.f32 %v1594_v17, %v1411_v63  ;;  %v1338_v57 = vadd.f32 %v1328_v41, %v1151_v45 }
 0x13f   : > { %v1981_v6 = vsel %vm1828_vm13, %v1971_v40, %v1975_v48  ;;  %v1726_v58 = vmax.f32 %v1724_v5, %v1725_v49  ;;  %v1733_v62 = vmax.f32 %v1731_v44, %v1732_v52  ;;  %v1740_v0 = vmax.f32 %v1738_v47, %v1739_v53 }
 0x140   : > { %1995 = vst.msk [vmem:[%s2677_s15] sm:$0x3] %vm1667_vm12, %v1981_v6  ;;  %v1747_v50 = vmax.f32 %v1745_v39, %v1746_v54  ;;  %v1616_v61 = vadd.f32 %v2622_v35, %v1605_v55  ;;  %v1412_v32 = vadd.f32 %v1402_v9, %v1338_v57 }
 0x141   : > { %v1727_v13 = vrot.slane %v1726_v58, 2  ;;  %v1734_v8 = vrot.slane %v1733_v62, 2  ;;  %v1741_v1 = vrot.slane %v1740_v0, 2  ;;  %v1893_v51 = vld.sshfl [vmem:[#allocation1] sm:$0xff pattern:$0x75643120] }
 0x142   : > { %v1748_v2 = vrot.slane %v1747_v50, 2  ;;  %v1624_v42 = vmax.f32 %v1616_v61, 0.0  ;;  %v1606_v43 = vadd.f32 %v1596_v60, %v1412_v32  ;;  %v1932_v7 = vunpack.c.l.b16 %v1893_v51 }
 0x143   : > { %v1728_v3 = vmax.f32 %v1726_v58, %v1727_v13  ;;  %v1735_v16 = vmax.f32 %v1733_v62, %v1734_v8  ;;  %v1742_v14 = vmax.f32 %v1740_v0, %v1741_v1  ;;  %v1896_v59 = vld.sshfl [vmem:[#allocation1 + $0x10] sm:$0xff pattern:$0x75643120] }
 0x144   : > { %v1749_v4 = vmax.f32 %v1747_v50, %v1748_v2  ;;  %v1899_v28 = vld.sshfl [vmem:[#allocation1 + $0x20] sm:$0xff pattern:$0x75643120]  ;;  %v1933_v10 = vunpack.c.l.b16 %v1896_v59  ;;  %v1636_v11 = vsel %vm1626_vm11, %v1624_v42, -inf  ;;  %v1617_v12 = vadd.f32 %v2622_v35, %v1606_v43 }
 0x145   : > { %v1729_v15 = vrot.slane %v1728_v3, 1  ;;  %v1736_v18 = vrot.slane %v1735_v16, 1  ;;  %v1743_v56 = vrot.slane %v1742_v14, 1  ;;  %v1902_v45 = vld.sshfl [vmem:[#allocation1 + $0x30] sm:$0xff pattern:$0x75643120]  ;;  %v1934_v19 = vunpack.c.l.b16 %v1899_v28 }
 0x146   : > { %v1750_v21 = vrot.slane %v1749_v4, 1  ;;  %v1935_v22 = vunpack.c.l.b16 %v1902_v45  ;;  %v1953_v23 = vrot.slane %v1933_v10, 7  ;;  %v1625_v17 = vmax.f32 %v1617_v12, 0.0 }
 0x147   : > { %v1730_v24 = vmax.f32 %v1728_v3, %v1729_v15  ;;  %v1737_v25 = vmax.f32 %v1735_v16, %v1736_v18  ;;  %v1744_v31 = vmax.f32 %v1742_v14, %v1743_v56  ;;  %v1955_v63 = vrot.slane %v1934_v19, 6 }
 0x148   : > { %v1751_v26 = vmax.f32 %v1749_v4, %v1750_v21  ;;  %v1954_v46 = vsel %vm1945_vm14, %v1953_v23, %v1932_v7  ;;  %v1957_v27 = vrot.slane %v1935_v22, 5  ;;  %v1637_v30 = vsel %vm1626_vm11, %v1625_v17, -inf }
 0x149   : > { %v1788_v35 = vpack.c.bf16 %v1730_v24, %v1730_v24  ;;  %v1789_v20 = vpack.c.bf16 %v1737_v25, %v1737_v25  ;;  %v1790_v33 = vpack.c.bf16 %v1744_v31, %v1744_v31  ;;  %v1956_v36 = vsel %vm1948_vm15, %v1955_v63, %v1954_v46 }
 0x14a   : > { %v1791_v29 = vpack.c.bf16 %v1751_v26, %v1751_v26  ;;  %v1958_v34 = vsel %vm1951_vm0, %v1957_v27, %v1956_v36  ;;  %v1638_v37 = vmax.f32 %v1636_v11, %v1637_v30 }
 0x14b   : > { %v1820_v38 = vrot.slane %v1788_v35, 2  ;;  %v1821_v40 = vrot.slane %v1789_v20, 2  ;;  %v1822_v41 = vrot.slane %v1790_v33, 2  ;;  %v1972_v5 = vpack.c.b16 %v1958_v34, %v1958_v34 }
 0x14c   : > { %v1823_v44 = vrot.slane %v1791_v29, 2  ;;  %v1652_v47 = vrot.slane %v1638_v37, 2  ;;  %v1653_v39 = vrot.slane %v1638_v37, 4  ;;  %v1654_v48 = vrot.slane %v1638_v37, 6 }
 0x14d   : > { %v1855_v49 = vsel %vm1828_vm13, %v1788_v35, %v1820_v38  ;;  %v1858_v52 = vsel %vm1828_vm13, %v1789_v20, %v1821_v40  ;;  %v1861_v53 = vsel %vm1828_vm13, %v1790_v33, %v1822_v41  ;;  %v1976_v54 = vrot.slane %v1972_v5, 2 }
 0x14e   : > { %v1864_v55 = vsel %vm1828_vm13, %v1791_v29, %v1823_v44  ;;  %1904 = vst [vmem:[#allocation1] ss:$2 sm:$0xff] %v1855_v49  ;;  %v1752_v57 = vsel %vm1667_vm12, %v1638_v37, -inf  ;;  %v1759_v6 = vsel %vm1667_vm12, %v1652_v47, -inf  ;;  %v1766_v58 = vsel %vm1667_vm12, %v1653_v39, -inf }
 0x14f   : > { %1907 = vst [vmem:[#allocation1 + $0x10] ss:$2 sm:$0xff] %v1858_v52  ;;  %v1984_v62 = vsel %vm1828_vm13, %v1972_v5, %v1976_v54  ;;  %v1753_v0 = vrot.slane %v1752_v57, 4  ;;  %v1760_v9 = vrot.slane %v1759_v6, 4  ;;  %v1767_v50 = vrot.slane %v1766_v58, 4 }
 0x150   : > { %1910 = vst [vmem:[#allocation1 + $0x20] ss:$2 sm:$0xff] %v1861_v53  ;;  %v1773_v61 = vsel %vm1667_vm12, %v1654_v48, -inf }
 0x151   : > { %1913 = vst [vmem:[#allocation1 + $0x30] ss:$2 sm:$0xff] %v1864_v55  ;;  %v1754_v32 = vmax.f32 %v1752_v57, %v1753_v0  ;;  %v1761_v13 = vmax.f32 %v1759_v6, %v1760_v9  ;;  %v1768_v8 = vmax.f32 %v1766_v58, %v1767_v50  ;;  %v1774_v1 = vrot.slane %v1773_v61, 4 }
 0x152   : > { %1996 = vst.msk [vmem:[%s2677_s15 + $0x2] sm:$0x3] %vm1667_vm12, %v1984_v62 }
 0x153   : > { %v1755_v51 = vrot.slane %v1754_v32, 2  ;;  %v1762_v60 = vrot.slane %v1761_v13, 2  ;;  %v1769_v2 = vrot.slane %v1768_v8, 2  ;;  %v1775_v42 = vmax.f32 %v1773_v61, %v1774_v1 }
 0x155   : > { %v1756_v43 = vmax.f32 %v1754_v32, %v1755_v51  ;;  %v1763_v3 = vmax.f32 %v1761_v13, %v1762_v60  ;;  %v1770_v16 = vmax.f32 %v1768_v8, %v1769_v2  ;;  %v1776_v14 = vrot.slane %v1775_v42, 2  ;;  %v1905_v59 = vld.sshfl [vmem:[#allocation1] sm:$0xff pattern:$0x75643120] }
 0x156   : > { %v1908_v7 = vld.sshfl [vmem:[#allocation1 + $0x10] sm:$0xff pattern:$0x75643120]  ;;  %v1936_v23 = vunpack.c.l.b16 %v1905_v59 }
 0x157   : > { %v1757_v4 = vrot.slane %v1756_v43, 1  ;;  %v1764_v28 = vrot.slane %v1763_v3, 1  ;;  %v1771_v10 = vrot.slane %v1770_v16, 1  ;;  %v1777_v11 = vmax.f32 %v1775_v42, %v1776_v14  ;;  %v1911_v12 = vld.sshfl [vmem:[#allocation1 + $0x20] sm:$0xff pattern:$0x75643120] }
 0x158   : > { %v1914_v15 = vld.sshfl [vmem:[#allocation1 + $0x30] sm:$0xff pattern:$0x75643120]  ;;  %v1937_v18 = vunpack.c.l.b16 %v1908_v7  ;;  %v1938_v56 = vunpack.c.l.b16 %v1911_v12 }
 0x159   : > { %v1758_v45 = vmax.f32 %v1756_v43, %v1757_v4  ;;  %v1765_v19 = vmax.f32 %v1763_v3, %v1764_v28  ;;  %v1772_v21 = vmax.f32 %v1770_v16, %v1771_v10  ;;  %v1778_v22 = vrot.slane %v1777_v11, 1 }
 0x15a   : > { %v1939_v17 = vunpack.c.l.b16 %v1914_v15  ;;  %v1959_v24 = vrot.slane %v1937_v18, 7  ;;  %v1961_v25 = vrot.slane %v1938_v56, 6 }
 0x15b   : > { %v1779_v31 = vmax.f32 %v1777_v11, %v1778_v22  ;;  %v1792_v63 = vpack.c.bf16 %v1758_v45, %v1758_v45  ;;  %v1793_v26 = vpack.c.bf16 %v1765_v19, %v1765_v19  ;;  %v1794_v46 = vpack.c.bf16 %v1772_v21, %v1772_v21 }
 0x15c   : > { %v1960_v27 = vsel %vm1945_vm14, %v1959_v24, %v1936_v23  ;;  %v1963_v29 = vrot.slane %v1939_v17, 5 }
 0x15d   : > { %v1795_v30 = vpack.c.bf16 %v1779_v31, %v1779_v31  ;;  %v1824_v35 = vrot.slane %v1792_v63, 2  ;;  %v1825_v20 = vrot.slane %v1793_v26, 2  ;;  %v1826_v33 = vrot.slane %v1794_v46, 2 }
 0x15e   : > { %v1962_v36 = vsel %vm1948_vm15, %v1961_v25, %v1960_v27 }
 0x15f   : > { %v1827_v34 = vrot.slane %v1795_v30, 2  ;;  %v1867_v37 = vsel %vm1828_vm13, %v1792_v63, %v1824_v35  ;;  %v1870_v38 = vsel %vm1828_vm13, %v1793_v26, %v1825_v20  ;;  %v1873_v40 = vsel %vm1828_vm13, %v1794_v46, %v1826_v33 }
 0x160   : > { %1916 = vst [vmem:[#allocation1] ss:$2 sm:$0xff] %v1867_v37  ;;  %v1964_v41 = vsel %vm1951_vm0, %v1963_v29, %v1962_v36 }
 0x161   : > { %v1876_v5 = vsel %vm1828_vm13, %v1795_v30, %v1827_v34  ;;  %1919 = vst [vmem:[#allocation1 + $0x10] ss:$2 sm:$0xff] %v1870_v38  ;;  %v1973_v44 = vpack.c.b16 %v1964_v41, %v1964_v41 }
 0x162   : > { %1922 = vst [vmem:[#allocation1 + $0x20] ss:$2 sm:$0xff] %v1873_v40 }
 0x163   : > { %1925 = vst [vmem:[#allocation1 + $0x30] ss:$2 sm:$0xff] %v1876_v5  ;;  %v1977_v47 = vrot.slane %v1973_v44, 2 }
 0x165   : > { %v1987_v39 = vsel %vm1828_vm13, %v1973_v44, %v1977_v47 }
 0x166   : > { %1997 = vst.msk [vmem:[%s2677_s15 + $0x4] sm:$0x3] %vm1667_vm12, %v1987_v39 }
 0x167   : > { %v1917_v48 = vld.sshfl [vmem:[#allocation1] sm:$0xff pattern:$0x75643120] }
 0x168   : > { %v1920_v49 = vld.sshfl [vmem:[#allocation1 + $0x10] sm:$0xff pattern:$0x75643120]  ;;  %v1940_v57 = vunpack.c.l.b16 %v1917_v48 }
 0x169   : > { %v1923_v52 = vld.sshfl [vmem:[#allocation1 + $0x20] sm:$0xff pattern:$0x75643120]  ;;  %v1941_v53 = vunpack.c.l.b16 %v1920_v49 }
 0x16a   : > { %v1926_v54 = vld.sshfl [vmem:[#allocation1 + $0x30] sm:$0xff pattern:$0x75643120]  ;;  %v1942_v55 = vunpack.c.l.b16 %v1923_v52 }
 0x16b   : > { %v1943_v6 = vunpack.c.l.b16 %v1926_v54  ;;  %v1965_v58 = vrot.slane %v1941_v53, 7 }
 0x16c   : > { %v1967_v62 = vrot.slane %v1942_v55, 6 }
 0x16d   : > { %v1966_v0 = vsel %vm1945_vm14, %v1965_v58, %v1940_v57  ;;  %v1969_v9 = vrot.slane %v1943_v6, 5 }
 0x16e   : > { %v1968_v50 = vsel %vm1948_vm15, %v1967_v62, %v1966_v0 }
 0x16f   : > { %v1970_v61 = vsel %vm1951_vm0, %v1969_v9, %v1968_v50 }
 0x170   : > { %v1974_v32 = vpack.c.b16 %v1970_v61, %v1970_v61 }
 0x172   : > { %v1978_v13 = vrot.slane %v1974_v32, 2 }
 0x174   : > { %v1990_v8 = vsel %vm1828_vm13, %v1974_v32, %v1978_v13 }
 0x175   : > { %1998 = vst.msk [vmem:[%s2677_s15 + $0x6] sm:$0x3] %vm1667_vm12, %v1990_v8 }
 0x176 PF: > { %s13_s12 = sadd.s32 1, %s2214_s12  }
 0x177   : > { %p10_p4 = scmp.ge.s32.totalorder %s13_s12, 4  }
 0x179   :  { %12 = sbr.rel (!%p10_p4) target bundleno = 1 (0x1), region = 75 }

// kernel: m_vggish_forward.6
= control target key start
LH: loop header
LB: loop body
LE: loop exit
PB: predicated region body
PF: predicated region fallthrough
CT: control target
= control target key end

     0   :  { %s2604_s18 = smov 0   ;;  %s3066_s0 = inlined_call_operand.vmem [shape: bf16[2,4,4,16], index: 0, kind: input, shape index: {}]   ;;  %s3067_s1 = inlined_call_operand.vmem [shape: bf16[3,3,16,32], index: 1, kind: input, shape index: {}]   ;;  %s3068_s2 = inlined_call_operand.vmem [shape: f32[1,32], index: 2, kind: input, shape index: {}]   ;;  %s3069_s3 = inlined_call_operand.vmem [shape: bf16[3,3,32,32], index: 3, kind: input, shape index: {}]   ;;  %s3070_s4 = inlined_call_operand.vmem [shape: f32[1,32], index: 4, kind: input, shape index: {}]   ;;  %s3071_s5 = inlined_call_operand.vmem [shape: bf16[2,2,2,32], index: 5, kind: output, shape index: {}]  }
   0x1 LB: > { %s2318_s19 = sadd.s32 4294967295, %s2571_s18   ;;  %p2322_p0 = scmp.ge.s32.totalorder %s2571_s18, 1  ;;  %s2571_s18 = sphi %s2604_s18, %s15_s18  }
   0x2   : > { %p187_p1 = scmp.lt.s32.totalorder %s2571_s18, 3 }
   0x4   : > { %p188_p2 = pnand %p2322_p0, %p187_p1 }
   0x5   : > { %p214_p3 = scmp.lt.s32.totalorder (!%p188_p2), %s2318_s19, 1 }
   0x6   : > { %191 = sbr.rel (%p188_p2) target bundleno = 654 (0x28e), region = 40 }
   0xb   : > { %v2528_v0 = vld [vmem:[%s3067_s1 + $0x8] sm:$0xff]  ;;  %v2527_v1 = vld [vmem:[%s3067_s1] sm:$0xff]  ;;  %vm228_vm0 = vcmask 125952   ;;  %vm231_vm1 = vcmask 124928   ;;  %vm232_vm2 = vsmask.f32 2304 }
   0xc   : > { %v234_v2 = vld [vmem:[#allocation2 + $0x8] sm:$0x7]  ;;  %393 = vmatpush.bf16.msra.mxu0 %v2528_v0  ;;  %427 = vmatpush.bf16.msra.mxu1 %v2527_v1  ;;  %s3085_s19 = smov (!%p214_p3, %s2318_s19), 1  ;;  %v2573_v3 = vmov 0   ;;  %vm2623_vm3 = vmand %vm231_vm1, %vm232_vm2  ;;  %v239_v5 = vld [vmem:[#allocation2 + $0x14] sm:$0x7] }
   0xd   : > { %230 = vst.msk [vmem:[#allocation2 + $0x4] sm:$0xf] %vm228_vm0, %v2573_v3  ;;  %v235_v6 = vsel %vm2623_vm3, 0, %v234_v2  ;;  %v240_v7 = vsel %vm2623_vm3, 0, %v239_v5  ;;  %v244_v8 = vld [vmem:[#allocation2 + $0x20] sm:$0x7] }
   0xe   : > { %236 = vst [vmem:[#allocation2 + $0x8] sm:$0x7] %v235_v6  ;;  %v249_v9 = vld [vmem:[#allocation2 + $0x2c] sm:$0x7]  ;;  %v245_v10 = vsel %vm2623_vm3, 0, %v244_v8  ;;  %s2526_s24 = sshll.u32 %s3085_s19, 3 }
   0xf   : > { %241 = vst [vmem:[#allocation2 + $0x14] sm:$0x7] %v240_v7  ;;  %v254_v11 = vld [vmem:[#allocation2 + $0x38] sm:$0x7]  ;;  %v250_v12 = vsel %vm2623_vm3, 0, %v249_v9  ;;  %s218_s27 = scalar_lea.vmem %s3066_s0, %s2526_s24  ;;  %vm263_vm4 = vcmask 123904  }
  0x10   : > { %243 = vst.msk [vmem:[#allocation2 + $0x1c] sm:$0xf] %vm228_vm0, %v2573_v3  ;;  %v259_v13 = vld [vmem:[#allocation2 + $0x44] sm:$0x7]  ;;  %v255_v14 = vsel %vm2623_vm3, 0, %v254_v11  ;;  %vm446_vm7 = vcmask 1041408  }
  0x11   : > { %246 = vst [vmem:[#allocation2 + $0x20] sm:$0x7] %v245_v10  ;;  %v260_v15 = vsel %vm2623_vm3, 0, %v259_v13  ;;  %v224_v16 = vld [vmem:[%s218_s27] sm:$0x3]  ;;  %vm450_vm8 = vcmask 1043458  }
  0x12   : > { %251 = vst [vmem:[#allocation2 + $0x2c] sm:$0x7] %v250_v12  ;;  %v225_v17 = vld [vmem:[%s218_s27 + $0x2] sm:$0x3]  ;;  %v226_v18 = vld [vmem:[%s218_s27 + $0x4] sm:$0x3] }
  0x13   : > { %256 = vst [vmem:[#allocation2 + $0x38] sm:$0x7] %v255_v14  ;;  %v227_v19 = vld [vmem:[%s218_s27 + $0x6] sm:$0x3]  ;;  %vm305_vm5 = vsmask.f32 256 }
  0x14   : > { %261 = vst [vmem:[#allocation2 + $0x44] sm:$0x7] %v260_v15  ;;  %v269_v20 = vld [vmem:[#allocation2 + $0x4] sm:$0x8]  ;;  %vm306_vm6 = vsmask.f32 2312 }
  0x15   : > { %264 = vst.msk [vmem:[#allocation2 + $0x14] sm:$0x3] %vm263_vm4, %v224_v16  ;;  %v270_v21 = vld [vmem:[#allocation2 + $0x8] sm:$0x3]  ;;  %vm308_vm9 = vsmask.f32 4368  ;;  %vm2664_vm11 = vmor %vm305_vm5, %vm306_vm6 }
  0x16   : > { %265 = vst.msk [vmem:[#allocation2 + $0x20] sm:$0x3] %vm263_vm4, %v225_v17  ;;  %v434_v22 = vld [vmem:[#allocation2 + $0x8] sm:$0x7]  ;;  %vm310_vm10 = vsmask.f32 6424  ;;  %vm309_vm13 = vmor %vm2664_vm11, %vm308_vm9 }
  0x17   : > { %266 = vst.msk [vmem:[#allocation2 + $0x2c] sm:$0x3] %vm263_vm4, %v226_v18  ;;  %v273_v23 = vld [vmem:[#allocation2 + $0x1c] sm:$0x8]  ;;  %v442_v25 = vrot.slane %v434_v22, 2  ;;  %vm383_vm12 = vcmask 130048   ;;  %vm2674_vm14 = vmor %vm309_vm13, %vm310_vm10 }
  0x18   : > { %267 = vst.msk [vmem:[#allocation2 + $0x38] sm:$0x3] %vm263_vm4, %v227_v19  ;;  %v358_v36 = vld [vmem:[#allocation2 + $0x8] sm:$0x3]  ;;  %vm472_vm15 = vsmask.f32 1280 }
  0x19   : > { %278 = vst.sshfl [vmem:[#allocation1] sm:$0xff pattern:$0x75643120] %v269_v20  ;;  %v2654_v30 = vsel %vm446_vm7, %v434_v22, %v442_v25  ;;  %v2657_v33 = vsel %vm450_vm8, %v434_v22, %v442_v25  ;;  %vm475_vm1 = vsmask.f32 5392  ;;  %vm1166_vm9 = vcmask 257024  }
  0x1a   : > { %280 = vst.sshfl [vmem:[#allocation1 + $0x10] sm:$0xff pattern:$0x75643120] %v270_v21  ;;  %v479_v35 = vshrl.u32 %v2654_v30, 16  ;;  %v453_v39 = vrot.slane %v2657_v33, 2  ;;  %v482_v40 = vshll.u32 %v2654_v30, 16 }
  0x1b   : > { %238 = vst.msk [vmem:[#allocation2 + $0x10] sm:$0xf] %vm228_vm0, %v2573_v3  ;;  %vm477_vm5 = vsmask.f32 7448  ;;  %vm1169_vm10 = vcmask 256000   ;;  %vm2215_vm13 = vcmask 1040384  }
  0x1c   : > { %248 = vst.msk [vmem:[#allocation2 + $0x28] sm:$0xf] %vm228_vm0, %v2573_v3  ;;  %v272_v24 = vld [vmem:[#allocation2 + $0x14] sm:$0x3]  ;;  %v2680_v6 = vrot.slane %v479_v35, 6  ;;  %vm2824_vm11 = vmand %vm1169_vm10, %vm232_vm2  ;;  %vm1200_vm2 = vcmask 254976  }
  0x1d   : > { %253 = vst.msk [vmem:[#allocation2 + $0x34] sm:$0xf] %vm228_vm0, %v2573_v3  ;;  %v274_v26 = vld [vmem:[#allocation2 + $0x20] sm:$0x3]  ;;  %v435_v34 = vld [vmem:[#allocation2 + $0x14] sm:$0x7] }
  0x1e   : > { %258 = vst.msk [vmem:[#allocation2 + $0x40] sm:$0xf] %vm228_vm0, %v2573_v3  ;;  %v359_v37 = vld [vmem:[#allocation2 + $0x14] sm:$0x3]  ;;  %v276_v38 = vld [vmem:[#allocation2 + $0x2c] sm:$0x3] }
  0x1f   : > { %288 = vst.sshfl [vmem:[#allocation1 + $0x30] sm:$0xff pattern:$0x75643120] %v272_v24  ;;  %v360_v41 = vld [vmem:[#allocation2 + $0x20] sm:$0x3]  ;;  %v443_v50 = vrot.slane %v435_v34, 2 }
  0x20   : > { %v282_v27 = vld [vmem:[#allocation1 + $0x1] ss:$2 sm:$0xff]  ;;  %v361_v46 = vld [vmem:[#allocation2 + $0x2c] sm:$0x3]  ;;  %vm473_vm0 = vsmask.f32 3336 }
  0x21   : > { %v284_v28 = vld [vmem:[#allocation1 + $0x10] ss:$2 sm:$0xff]  ;;  %294 = vst.sshfl [vmem:[#allocation1] sm:$0xff pattern:$0x75643120] %v273_v23  ;;  %v312_v29 = vshrl.u32 %v282_v27, 16  ;;  %v456_v4 = vsel %vm446_vm7, %v435_v34, %v443_v50  ;;  %v457_v5 = vsel %vm450_vm8, %v435_v34, %v443_v50  ;;  %vm2698_vm3 = vmor %vm472_vm15, %vm473_vm0 }
  0x22   : > { %296 = vst.sshfl [vmem:[#allocation1 + $0x10] sm:$0xff pattern:$0x75643120] %v274_v26  ;;  %v271_v31 = vld [vmem:[#allocation2 + $0x10] sm:$0x8]  ;;  %v316_v32 = vshrl.u32 %v284_v28, 16  ;;  %vm476_vm4 = vmor %vm2698_vm3, %vm475_vm1 }
  0x23   : > { %286 = vst.sshfl [vmem:[#allocation1 + $0x20] sm:$0xff pattern:$0x75643120] %v271_v31  ;;  %v2668_v43 = vrot.slane %v312_v29, 9  ;;  %v436_v45 = vld [vmem:[#allocation2 + $0x20] sm:$0x7]  ;;  %vm2716_vm6 = vmor %vm476_vm4, %vm477_vm5 }
  0x24   : > { %v318_v44 = vrot.slane %v316_v32, 7  ;;  %v319_v48 = vshll.u32 %v284_v28, 16  ;;  %v437_v49 = vld [vmem:[#allocation2 + $0x2c] sm:$0x7]  ;;  %v275_v52 = vld [vmem:[#allocation2 + $0x28] sm:$0x8] }
  0x25   : > { %v444_v56 = vrot.slane %v436_v45, 2  ;;  %v445_v2 = vrot.slane %v437_v49, 2  ;;  %v492_v18 = vshrl.u32 %v456_v4, 16  ;;  %v495_v19 = vshll.u32 %v456_v4, 16  ;;  %v572_v28 = vld [vmem:[#allocation2 + $0x1c] sm:$0x8] }
  0x26   : > { %v292_v47 = vld [vmem:[#allocation1 + $0x30] ss:$2 sm:$0xff]  ;;  %v321_v60 = vor.u32 %v319_v48, %v318_v44  ;;  %v459_v21 = vrot.slane %v457_v5, 2  ;;  %v573_v31 = vld [vmem:[#allocation2 + $0x20] sm:$0x3]  ;;  %v484_v34 = vrot.slane %v482_v40, 7 }
  0x27   : > { %302 = vst.sshfl [vmem:[#allocation1 + $0x30] sm:$0xff pattern:$0x75643120] %v276_v38  ;;  %v327_v53 = vshrl.u32 %v292_v47, 16  ;;  %v330_v55 = vshll.u32 %v292_v47, 16  ;;  %v462_v9 = vsel %vm446_vm7, %v436_v45, %v444_v56  ;;  %v463_v10 = vsel %vm450_vm8, %v436_v45, %v444_v56  ;;  %v2529_v47 = vld [vmem:[%s3067_s1 + $0x10] sm:$0xff] }
  0x28   : > { %v297_v51 = vld [vmem:[#allocation1 + $0x1] ss:$2 sm:$0xff]  ;;  %v322_v12 = vsel %vm2674_vm14, %v2668_v43, %v321_v60  ;;  %v469_v15 = vsel %vm450_vm8, %v437_v49, %v445_v2  ;;  %v468_v17 = vsel %vm446_vm7, %v437_v49, %v445_v2  ;;  %v465_v22 = vrot.slane %v463_v10, 2  ;;  %v2530_v48 = vld [vmem:[%s3067_s1 + $0x18] sm:$0xff]  ;;  %561 = vmatpush.bf16.msra.mxu2 %v2529_v47  ;;  %1175 = vst.msk [vmem:[#allocation3 + $0x10] sm:$0xf] %vm1166_vm9, %v2573_v3 }
  0x29   : > { %v298_v54 = vld [vmem:[#allocation1 + $0x10] ss:$2 sm:$0xff]  ;;  %369 = vst [vmem:[#allocation1 + $0x1] ss:$4 sm:$0xff] %v359_v37  ;;  %v329_v58 = vrot.slane %v327_v53, 7  ;;  %v334_v62 = vshrl.u32 %v297_v51, 16  ;;  %v485_v50 = vor.u32 %v484_v34, %v2680_v6  ;;  %680 = vmatpush.bf16.msra.mxu3 %v2530_v48 }
  0x2a   : > { %366 = vst [vmem:[#allocation1] ss:$4 sm:$0xff] %v358_v36  ;;  %v290_v57 = vld [vmem:[#allocation1 + $0x21] ss:$2 sm:$0xff]  ;;  %v338_v59 = vshrl.u32 %v298_v54, 16  ;;  %v341_v63 = vshll.u32 %v298_v54, 16 }
  0x2b   : > { %372 = vst [vmem:[#allocation1 + $0x2] ss:$4 sm:$0xff] %v360_v41  ;;  %v323_v61 = vshrl.u32 %v290_v57, 16  ;;  %v332_v8 = vor.u32 %v330_v55, %v329_v58  ;;  %v2328_v13 = vrot.slane %v334_v62, 9  ;;  %v505_v23 = vshrl.u32 %v462_v9, 16  ;;  %s2325_s11 = sshll.u32 %s3085_s19, 1 }
  0x2c   : > { %375 = vst [vmem:[#allocation1 + $0x3] ss:$4 sm:$0xff] %v361_v46  ;;  %v340_v1 = vrot.slane %v338_v59, 7  ;;  %v471_v26 = vrot.slane %v469_v15, 2  ;;  %v508_v27 = vshll.u32 %v462_v9, 16  ;;  %v518_v35 = vshrl.u32 %v468_v17, 16  ;;  %s222_s14 = scalar_lea.vmem %s3071_s5, %s2325_s11 }
  0x2d   : > { %300 = vst.sshfl [vmem:[#allocation1 + $0x20] sm:$0xff pattern:$0x75643120] %v275_v52  ;;  %v2327_v7 = vrot.slane %v323_v61, 9  ;;  %v521_v36 = vshll.u32 %v468_v17, 16  ;;  %v494_v38 = vrot.slane %v492_v18, 6 }
  0x2e   : > { %v304_v11 = vld [vmem:[#allocation1 + $0x30] ss:$2 sm:$0xff]  ;;  %v343_v14 = vor.u32 %v341_v63, %v340_v1  ;;  %v497_v41 = vrot.slane %v495_v19, 7  ;;  %v507_v44 = vrot.slane %v505_v23, 6  ;;  %v510_v45 = vrot.slane %v508_v27, 7  ;;  %v2531_v19 = vld [vmem:[%s3067_s1 + $0x20] sm:$0xff] }
  0x2f   : > { %v349_v16 = vshrl.u32 %v304_v11, 16  ;;  %v352_v20 = vshll.u32 %v304_v11, 16  ;;  %v333_v24 = vsel %vm2674_vm14, %v2327_v7, %v332_v8  ;;  %v520_v30 = vrot.slane %v518_v35, 6  ;;  %589 = vst.sshfl [vmem:[#allocation1 + $0x30] sm:$0xff pattern:$0x75643120] %v573_v31  ;;  %723 = vmatpush.bf16.msrb.mxu0 %v2531_v19 }
  0x30   : > { %v344_v32 = vsel %vm2674_vm14, %v2328_v13, %v343_v14  ;;  %v523_v40 = vrot.slane %v521_v36, 7  ;;  %v488_v51 = vshll.u32 %v453_v39, 16  ;;  %v498_v52 = vor.u32 %v497_v41, %v494_v38  ;;  %v576_v62 = vld [vmem:[#allocation2 + $0x34] sm:$0x8]  ;;  %v577_v63 = vld [vmem:[#allocation2 + $0x38] sm:$0x3] }
  0x31   : > { %v351_v25 = vrot.slane %v349_v16, 7  ;;  %v501_v53 = vshll.u32 %v459_v21, 16  ;;  %v511_v55 = vor.u32 %v510_v45, %v507_v44  ;;  %v514_v56 = vshll.u32 %v465_v22, 16  ;;  %v571_v13 = vld [vmem:[#allocation2 + $0x14] sm:$0x3] }
  0x32   : > { %v524_v57 = vor.u32 %v523_v40, %v520_v30  ;;  %v527_v33 = vshll.u32 %v471_v26, 16  ;;  %v486_v39 = vrot.slane %v485_v50, 2  ;;  %v490_v58 = vrot.slane %v488_v51, 7  ;;  %v862_v14 = vld [vmem:[#allocation2 + $0x28] sm:$0x8] }
  0x33   : > { %v376_v29 = vld.sshfl [vmem:[#allocation1] sm:$0xff pattern:$0x73625140]  ;;  %v354_v43 = vor.u32 %v352_v20, %v351_v25  ;;  %v499_v60 = vrot.slane %v498_v52, 2  ;;  %v503_v61 = vrot.slane %v501_v53, 7  ;;  %v512_v1 = vrot.slane %v511_v55, 2 }
  0x34   : > { %2336 = vmatmul.msk.bf16.vlgmr.msra.gmra.mxu0 %vm383_vm12, %v376_v29  ;;  %v303_v37 = vld [vmem:[#allocation1 + $0x21] ss:$2 sm:$0xff]  ;;  %401 = vst [vmem:[#allocation1] ss:$4 sm:$0xff] %v322_v12  ;;  %v516_v2 = vrot.slane %v514_v56, 7  ;;  %v525_v4 = vrot.slane %v524_v57, 2  ;;  %v491_v7 = vsel %vm2716_vm6, %v486_v39, %v490_v58 }
  0x35   : > { %v345_v42 = vshrl.u32 %v303_v37, 16  ;;  %404 = vst [vmem:[#allocation1 + $0x1] ss:$4 sm:$0xff] %v333_v24  ;;  %v529_v5 = vrot.slane %v527_v33, 7  ;;  %v504_v9 = vsel %vm2716_vm6, %v499_v60, %v503_v61  ;;  %v863_v15 = vld [vmem:[#allocation2 + $0x2c] sm:$0x3] }
  0x36   : > { %407 = vst [vmem:[#allocation1 + $0x2] ss:$4 sm:$0xff] %v344_v32  ;;  %v593_v8 = vld [vmem:[#allocation1 + $0x30] ss:$2 sm:$0xff]  ;;  %v517_v11 = vsel %vm2716_vm6, %v512_v1, %v516_v2  ;;  %v570_v18 = vld [vmem:[#allocation2 + $0x10] sm:$0x8] }
  0x37   : > { %v2329_v49 = vrot.slane %v345_v42, 9  ;;  %587 = vst.sshfl [vmem:[#allocation1 + $0x20] sm:$0xff pattern:$0x75643120] %v572_v28  ;;  %v530_v12 = vsel %vm2716_vm6, %v525_v4, %v529_v5  ;;  %v2532_v20 = vld [vmem:[%s3067_s1 + $0x28] sm:$0xff]  ;;  %v621_v26 = vshrl.u32 %v593_v8, 16 }
  0x38   : > { %603 = vst.sshfl [vmem:[#allocation1 + $0x30] sm:$0xff pattern:$0x75643120] %v577_v63  ;;  %v575_v21 = vld [vmem:[#allocation2 + $0x2c] sm:$0x3]  ;;  %850 = vmatpush.bf16.msrb.mxu1 %v2532_v20  ;;  %v624_v36 = vshll.u32 %v593_v8, 16 }
  0x39   : > { %v355_v54 = vsel %vm2674_vm14, %v2329_v49, %v354_v43  ;;  %v866_v22 = vld [vmem:[#allocation2 + $0x40] sm:$0x8]  ;;  %v574_v29 = vld [vmem:[#allocation2 + $0x28] sm:$0x8]  ;;  %v623_v35 = vrot.slane %v621_v26, 7 }
  0x3a   : > { %410 = vst [vmem:[#allocation1 + $0x3] ss:$4 sm:$0xff] %v355_v54  ;;  %v1208_v43 = vld [vmem:[#allocation3 + $0x10] sm:$0x8]  ;;  %v732_v52 = vld [vmem:[#allocation2 + $0x14] sm:$0x7] }
  0x3b   : > { %1168 = vst.msk [vmem:[#allocation3 + $0x4] sm:$0xf] %vm1166_vm9, %v2573_v3  ;;  %v626_v40 = vor.u32 %v624_v36, %v623_v35  ;;  %v733_v56 = vld [vmem:[#allocation2 + $0x20] sm:$0x7]  ;;  %v734_v33 = vld [vmem:[#allocation2 + $0x2c] sm:$0x7] }
  0x3c   : > { %1180 = vst.msk [vmem:[#allocation3 + $0x1c] sm:$0xf] %vm1166_vm9, %v2573_v3  ;;  %v735_v58 = vld [vmem:[#allocation2 + $0x38] sm:$0x7]  ;;  %v740_v60 = vrot.slane %v732_v52, 2  ;;  %v742_v2 = vrot.slane %v734_v33, 2 }
  0x3d   : > { %1185 = vst.msk [vmem:[#allocation3 + $0x28] sm:$0xf] %vm1166_vm9, %v2573_v3  ;;  %v743_v4 = vrot.slane %v735_v58, 2  ;;  %v689_v19 = vld [vmem:[#allocation2 + $0x14] sm:$0x3] }
  0x3e   : > { %v591_v6 = vld [vmem:[#allocation1 + $0x21] ss:$2 sm:$0xff]  ;;  %1190 = vst.msk [vmem:[#allocation3 + $0x34] sm:$0xf] %vm1166_vm9, %v2573_v3  ;;  %v746_v5 = vsel %vm446_vm7, %v732_v52, %v740_v60  ;;  %v758_v8 = vsel %vm446_vm7, %v734_v33, %v742_v2  ;;  %v759_v20 = vsel %vm450_vm8, %v734_v33, %v742_v2  ;;  %v691_v35 = vld [vmem:[#allocation2 + $0x2c] sm:$0x3] }
  0x3f   : > { %601 = vst.sshfl [vmem:[#allocation1 + $0x20] sm:$0xff pattern:$0x75643120] %v576_v62  ;;  %v605_v17 = vld [vmem:[#allocation1 + $0x30] ss:$2 sm:$0xff]  ;;  %v617_v34 = vshrl.u32 %v591_v6, 16 }
  0x40   : > { %879 = vst.sshfl [vmem:[#allocation1 + $0x30] sm:$0xff pattern:$0x75643120] %v863_v15  ;;  %v643_v27 = vshrl.u32 %v605_v17, 16  ;;  %v646_v41 = vshll.u32 %v605_v17, 16  ;;  %v741_v62 = vrot.slane %v733_v56, 2 }
  0x41   : > { %v411_v10 = vld.sshfl [vmem:[#allocation1] sm:$0xff pattern:$0x73625140]  ;;  %v2350_v30 = vrot.slane %v617_v34, 9  ;;  %1195 = vst.msk [vmem:[#allocation3 + $0x40] sm:$0xf] %vm1166_vm9, %v2573_v3 }
  0x42   : > { %2341 = vmatmul.msk.bf16.vlgmr.msra.gmra.mxu1 %vm383_vm12, %v411_v10  ;;  %535 = vst [vmem:[#allocation1] ss:$4 sm:$0xff] %v491_v7  ;;  %v645_v38 = vrot.slane %v643_v27, 7  ;;  %v752_v6 = vsel %vm446_vm7, %v733_v56, %v741_v62  ;;  %v768_v10 = vshrl.u32 %v746_v5, 16  ;;  %v794_v17 = vshrl.u32 %v758_v8, 16  ;;  %v2534_v33 = vld [vmem:[%s3067_s1 + $0x38] sm:$0xff] }
  0x43   : > { %538 = vst [vmem:[#allocation1 + $0x1] ss:$4 sm:$0xff] %v504_v9  ;;  %v627_v57 = vsel %vm2674_vm14, %v2350_v30, %v626_v40  ;;  %v764_v9 = vsel %vm446_vm7, %v735_v58, %v743_v4  ;;  %v784_v15 = vshll.u32 %v752_v6, 16  ;;  %v761_v36 = vrot.slane %v759_v20, 2  ;;  %1013 = vmatpush.bf16.msrb.mxu3 %v2534_v33 }
  0x44   : > { %541 = vst [vmem:[#allocation1 + $0x2] ss:$4 sm:$0xff] %v517_v11  ;;  %v648_v50 = vor.u32 %v646_v41, %v645_v38  ;;  %v771_v11 = vshll.u32 %v746_v5, 16  ;;  %v770_v26 = vrot.slane %v768_v10, 6  ;;  %v860_v5 = vld [vmem:[#allocation2 + $0x1c] sm:$0x8] }
  0x45   : > { %544 = vst [vmem:[#allocation1 + $0x3] ss:$4 sm:$0xff] %v530_v12  ;;  %v867_v12 = vld [vmem:[#allocation2 + $0x44] sm:$0x3]  ;;  %v786_v34 = vrot.slane %v784_v15, 7 }
  0x46   : > { %581 = vst.sshfl [vmem:[#allocation1 + $0x10] sm:$0xff pattern:$0x75643120] %v571_v13  ;;  %v604_v16 = vld [vmem:[#allocation1 + $0x21] ss:$2 sm:$0xff]  ;;  %v747_v13 = vsel %vm450_vm8, %v732_v52, %v740_v60  ;;  %v773_v27 = vrot.slane %v771_v11, 7 }
  0x47   : > { %877 = vst.sshfl [vmem:[#allocation1 + $0x20] sm:$0xff pattern:$0x75643120] %v862_v14  ;;  %v639_v37 = vshrl.u32 %v604_v16, 16  ;;  %v781_v14 = vshrl.u32 %v752_v6, 16  ;;  %v753_v16 = vsel %vm450_vm8, %v733_v56, %v741_v62  ;;  %v2535_v6 = vld [vmem:[%s3067_s1 + $0x40] sm:$0xff] }
  0x48   : > { %1140 = vmatpush.bf16.msra.mxu0 %v2535_v6 }
  0x49   : > { %v2352_v49 = vrot.slane %v639_v37, 9  ;;  %v796_v37 = vrot.slane %v794_v17, 6 }
  0x4b   : > { %v649_v39 = vsel %vm2674_vm14, %v2352_v49, %v648_v50  ;;  %v803_v49 = vshll.u32 %v761_v36, 16 }
  0x4c   : > { %v545_v23 = vld.sshfl [vmem:[#allocation1] sm:$0xff pattern:$0x73625140] }
  0x4d   : > { %v585_v24 = vld [vmem:[#allocation1 + $0x10] ss:$2 sm:$0xff]  ;;  %2348 = vmatmul.msk.bf16.vlgmr.msra.gmra.mxu2 %vm383_vm12, %v545_v23  ;;  %579 = vst.sshfl [vmem:[#allocation1] sm:$0xff pattern:$0x75643120] %v570_v18  ;;  %v797_v18 = vshll.u32 %v758_v8, 16 }
  0x4e   : > { %597 = vst.sshfl [vmem:[#allocation1 + $0x10] sm:$0xff pattern:$0x75643120] %v575_v21  ;;  %v610_v25 = vshrl.u32 %v585_v24, 16  ;;  %v2738_v28 = vld [vmem:[#allocation1 + $0x21] ss:$2 sm:$0xff] }
  0x4f   : > { %891 = vst.sshfl [vmem:[#allocation1 + $0x20] sm:$0xff pattern:$0x75643120] %v866_v22  ;;  %v613_v32 = vshll.u32 %v585_v24, 16  ;;  %v807_v21 = vshrl.u32 %v764_v9, 16  ;;  %v810_v22 = vshll.u32 %v764_v9, 16 }
  0x50   : > { %v612_v31 = vrot.slane %v610_v25, 7  ;;  %v2767_v23 = vld [vmem:[#allocation1 + $0x30] ss:$2 sm:$0xff]  ;;  %v749_v24 = vrot.slane %v747_v13, 2  ;;  %v765_v25 = vsel %vm450_vm8, %v735_v58, %v743_v4  ;;  %v799_v38 = vrot.slane %v797_v18, 7 }
  0x51   : > { %893 = vst.sshfl [vmem:[#allocation1 + $0x30] sm:$0xff pattern:$0x75643120] %v867_v12  ;;  %v805_v58 = vrot.slane %v803_v49, 7  ;;  %v911_v12 = vshrl.u32 %v2767_v23, 16  ;;  %v907_v17 = vshrl.u32 %v2738_v28, 16 }
  0x52   : > { %v615_v46 = vor.u32 %v613_v32, %v612_v31  ;;  %v755_v31 = vrot.slane %v753_v16, 2  ;;  %v783_v32 = vrot.slane %v781_v14, 6  ;;  %v777_v30 = vshll.u32 %v749_v24, 16  ;;  %v864_v16 = vld [vmem:[#allocation2 + $0x34] sm:$0x8] }
  0x53   : > { %v913_v18 = vrot.slane %v911_v12, 7 }
  0x54   : > { %v583_v42 = vld [vmem:[#allocation1 + $0x1] ss:$2 sm:$0xff]  ;;  %v787_v40 = vor.u32 %v786_v34, %v783_v32 }
  0x55   : > { %v599_v44 = vld [vmem:[#allocation1 + $0x10] ss:$2 sm:$0xff]  ;;  %595 = vst.sshfl [vmem:[#allocation1] sm:$0xff pattern:$0x75643120] %v574_v29  ;;  %v606_v45 = vshrl.u32 %v583_v42, 16 }
  0x56   : > { %v632_v47 = vshrl.u32 %v599_v44, 16  ;;  %v2746_v51 = vld [vmem:[#allocation1 + $0x21] ss:$2 sm:$0xff]  ;;  %v635_v55 = vshll.u32 %v599_v44, 16  ;;  %v767_v42 = vrot.slane %v765_v25, 2  ;;  %v812_v44 = vrot.slane %v810_v22, 7 }
  0x57   : > { %v2349_v48 = vrot.slane %v606_v45, 9  ;;  %1223 = vst.sshfl [vmem:[#allocation1 + $0x20] sm:$0xff pattern:$0x75643120] %v1208_v43  ;;  %v690_v29 = vld [vmem:[#allocation2 + $0x20] sm:$0x3] }
  0x58   : > { %v634_v54 = vrot.slane %v632_v47, 7  ;;  %v809_v43 = vrot.slane %v807_v21, 6  ;;  %v692_v45 = vld [vmem:[#allocation2 + $0x38] sm:$0x3]  ;;  %v790_v47 = vshll.u32 %v755_v31, 16  ;;  %v816_v52 = vshll.u32 %v767_v42, 16 }
  0x59   : > { %v616_v53 = vsel %vm2674_vm14, %v2349_v48, %v615_v46  ;;  %v774_v46 = vor.u32 %v773_v27, %v770_v26  ;;  %v800_v48 = vor.u32 %v799_v38, %v796_v37  ;;  %v895_v9 = vld [vmem:[#allocation1 + $0x30] ss:$2 sm:$0xff]  ;;  %v929_v20 = vshrl.u32 %v2746_v51, 16  ;;  %v1022_v37 = vld [vmem:[#allocation2 + $0x20] sm:$0x7] }
  0x5a   : > { %654 = vst [vmem:[#allocation1] ss:$4 sm:$0xff] %v616_v53  ;;  %v637_v1 = vor.u32 %v635_v55, %v634_v54  ;;  %v813_v50 = vor.u32 %v812_v44, %v809_v43  ;;  %v779_v54 = vrot.slane %v777_v30, 7  ;;  %v788_v55 = vrot.slane %v787_v40, 2  ;;  %v1023_v51 = vld [vmem:[#allocation2 + $0x2c] sm:$0x7] }
  0x5b   : > { %v775_v53 = vrot.slane %v774_v46, 2  ;;  %v792_v56 = vrot.slane %v790_v47, 7  ;;  %v933_v13 = vshrl.u32 %v895_v9, 16  ;;  %v936_v22 = vshll.u32 %v895_v9, 16  ;;  %v1024_v42 = vld [vmem:[#allocation2 + $0x38] sm:$0x7] }
  0x5c   : > { %v598_v61 = vld [vmem:[#allocation1 + $0x1] ss:$2 sm:$0xff]  ;;  %v814_v60 = vrot.slane %v813_v50, 2  ;;  %v1031_v30 = vrot.slane %v1023_v51, 2  ;;  %v980_v9 = vld [vmem:[#allocation2 + $0x2c] sm:$0x3] }
  0x5d   : > { %v628_v63 = vshrl.u32 %v598_v61, 16  ;;  %657 = vst [vmem:[#allocation1 + $0x1] ss:$4 sm:$0xff] %v627_v57  ;;  %v2533_v57 = vld [vmem:[%s3067_s1 + $0x30] sm:$0xff]  ;;  %v818_v61 = vrot.slane %v816_v52, 7  ;;  %v780_v62 = vsel %vm2716_vm6, %v775_v53, %v779_v54  ;;  %v935_v21 = vrot.slane %v933_v13, 7 }
  0x5e   : > { %663 = vst [vmem:[#allocation1 + $0x3] ss:$4 sm:$0xff] %v649_v39  ;;  %v801_v39 = vrot.slane %v800_v48, 2  ;;  %970 = vmatpush.bf16.msrb.mxu2 %v2533_v57  ;;  %v1025_v44 = vld [vmem:[#allocation2 + $0x44] sm:$0x7]  ;;  %v1032_v48 = vrot.slane %v1024_v42, 2  ;;  %v1042_v53 = vsel %vm446_vm7, %v1023_v51, %v1031_v30 }
  0x5f   : > { %v2351_v3 = vrot.slane %v628_v63, 9  ;;  %v793_v63 = vsel %vm2716_vm6, %v788_v55, %v792_v56  ;;  %v819_v4 = vsel %vm2716_vm6, %v814_v60, %v818_v61  ;;  %v938_v36 = vor.u32 %v936_v22, %v935_v21  ;;  %v981_v13 = vld [vmem:[#allocation2 + $0x38] sm:$0x3]  ;;  %v982_v21 = vld [vmem:[#allocation2 + $0x44] sm:$0x3] }
  0x60   : > { %v806_v2 = vsel %vm2716_vm6, %v801_v39, %v805_v58  ;;  %v1033_v49 = vrot.slane %v1025_v44, 2  ;;  %v1048_v55 = vsel %vm446_vm7, %v1024_v42, %v1032_v48  ;;  %v1071_v58 = vshrl.u32 %v1042_v53, 16 }
  0x61   : > { %v638_v7 = vsel %vm2674_vm14, %v2351_v3, %v637_v1  ;;  %v861_v3 = vld [vmem:[#allocation2 + $0x20] sm:$0x3]  ;;  %v1074_v60 = vshll.u32 %v1042_v53, 16  ;;  %v1043_v61 = vsel %vm450_vm8, %v1023_v51, %v1031_v30 }
  0x62   : > { %660 = vst [vmem:[#allocation1 + $0x2] ss:$4 sm:$0xff] %v638_v7  ;;  %v865_v7 = vld [vmem:[#allocation2 + $0x38] sm:$0x3]  ;;  %v1054_v56 = vsel %vm446_vm7, %v1025_v44, %v1033_v49  ;;  %v1055_v6 = vsel %vm450_vm8, %v1025_v44, %v1033_v49 }
  0x63   : > { %v1076_v12 = vrot.slane %v1074_v60, 7 }
  0x69   : > { %v664_v41 = vld.sshfl [vmem:[#allocation1] sm:$0xff pattern:$0x73625140] }
  0x6a   : > { %2359 = vmatmul.msk.bf16.vlgmr.msra.gmra.mxu3 %vm383_vm12, %v664_v41  ;;  %697 = vst [vmem:[#allocation1] ss:$4 sm:$0xff] %v689_v19  ;;  %v914_v19 = vshll.u32 %v2767_v23, 16 }
  0x6b   : > { %700 = vst [vmem:[#allocation1 + $0x1] ss:$4 sm:$0xff] %v690_v29  ;;  %v2375_v29 = vrot.slane %v907_v17, 9 }
  0x6c   : > { %703 = vst [vmem:[#allocation1 + $0x2] ss:$4 sm:$0xff] %v691_v35  ;;  %v916_v31 = vor.u32 %v914_v19, %v913_v18  ;;  %v2377_v35 = vrot.slane %v929_v20, 9  ;;  %v1057_v18 = vrot.slane %v1055_v6, 2 }
  0x6d   : > { %706 = vst [vmem:[#allocation1 + $0x3] ss:$4 sm:$0xff] %v692_v45  ;;  %v1030_v45 = vrot.slane %v1022_v37, 2 }
  0x6e   : > { %v917_v41 = vsel %vm2674_vm14, %v2375_v29, %v916_v31  ;;  %v939_v43 = vsel %vm2674_vm14, %v2377_v35, %v938_v36 }
  0x6f   : > { %v1036_v52 = vsel %vm446_vm7, %v1022_v37, %v1030_v45  ;;  %v1037_v39 = vsel %vm450_vm8, %v1022_v37, %v1030_v45 }
  0x70   : > { %v1058_v57 = vshrl.u32 %v1036_v52, 16  ;;  %v1061_v33 = vshll.u32 %v1036_v52, 16  ;;  %v1171_v52 = vld [vmem:[#allocation3 + $0x8] sm:$0x7] }
  0x71   : > { %v1172_v53 = vsel %vm2824_vm11, 0, %v1171_v52 }
  0x72   : > { %1173 = vst [vmem:[#allocation3 + $0x8] sm:$0x7] %v1172_v53 }
  0x74   : > { %v707_v1 = vld.sshfl [vmem:[#allocation1] sm:$0xff pattern:$0x73625140] }
  0x75   : > { %2366 = vmatmul.msk.bf16.vlgmr.msrb.gmra.mxu0 %vm383_vm12, %v707_v1  ;;  %824 = vst [vmem:[#allocation1] ss:$4 sm:$0xff] %v780_v62  ;;  %v1084_v62 = vshrl.u32 %v1048_v55, 16  ;;  %v1049_v1 = vsel %vm450_vm8, %v1024_v42, %v1032_v48 }
  0x76   : > { %827 = vst [vmem:[#allocation1 + $0x1] ss:$4 sm:$0xff] %v793_v63  ;;  %v1087_v63 = vshll.u32 %v1048_v55, 16 }
  0x77   : > { %830 = vst [vmem:[#allocation1 + $0x2] ss:$4 sm:$0xff] %v806_v2  ;;  %v1097_v2 = vshrl.u32 %v1054_v56, 16 }
  0x78   : > { %833 = vst [vmem:[#allocation1 + $0x3] ss:$4 sm:$0xff] %v819_v4  ;;  %v1100_v4 = vshll.u32 %v1054_v56, 16  ;;  %v1176_v56 = vld [vmem:[#allocation3 + $0x14] sm:$0x7] }
  0x79   : > { %871 = vst.sshfl [vmem:[#allocation1 + $0x10] sm:$0xff pattern:$0x75643120] %v861_v3  ;;  %v979_v3 = vld [vmem:[#allocation2 + $0x20] sm:$0x3]  ;;  %v1099_v19 = vrot.slane %v1097_v2, 6 }
  0x7a   : > { %v1102_v20 = vrot.slane %v1100_v4, 7 }
  0x7c   : > { %v1103_v31 = vor.u32 %v1102_v20, %v1099_v19  ;;  %v1191_v19 = vld [vmem:[#allocation3 + $0x38] sm:$0x7] }
  0x7f   : > { %v834_v8 = vld.sshfl [vmem:[#allocation1] sm:$0xff pattern:$0x73625140] }
  0x80   : > { %v875_v10 = vld [vmem:[#allocation1 + $0x10] ss:$2 sm:$0xff]  ;;  %2373 = vmatmul.msk.bf16.vlgmr.msrb.gmra.mxu1 %vm383_vm12, %v834_v8  ;;  %869 = vst.sshfl [vmem:[#allocation1] sm:$0xff pattern:$0x75643120] %v860_v5  ;;  %v1039_v5 = vrot.slane %v1037_v39, 2 }
  0x81   : > { %887 = vst.sshfl [vmem:[#allocation1 + $0x10] sm:$0xff pattern:$0x75643120] %v865_v7  ;;  %v900_v11 = vshrl.u32 %v875_v10, 16  ;;  %v903_v15 = vshll.u32 %v875_v10, 16  ;;  %v1060_v7 = vrot.slane %v1058_v57, 6 }
  0x82   : > { %v1063_v8 = vrot.slane %v1061_v33, 7  ;;  %v1045_v10 = vrot.slane %v1043_v61, 2  ;;  %v1177_v57 = vsel %vm2824_vm11, 0, %v1176_v56  ;;  %v1181_v33 = vld [vmem:[#allocation3 + $0x20] sm:$0x7] }
  0x83   : > { %v902_v14 = vrot.slane %v900_v11, 7  ;;  %v1073_v11 = vrot.slane %v1071_v58, 6  ;;  %1178 = vst [vmem:[#allocation3 + $0x14] sm:$0x7] %v1177_v57  ;;  %v1182_v60 = vsel %vm2824_vm11, 0, %v1181_v33  ;;  %v2538_v56 = vld [vmem:[%s3069_s3 + $0x10] sm:$0xff] }
  0x84   : > { %v1064_v22 = vor.u32 %v1063_v8, %v1060_v7  ;;  %v1196_v61 = vld [vmem:[#allocation3 + $0x44] sm:$0x7]  ;;  %1183 = vst [vmem:[#allocation3 + $0x20] sm:$0x7] %v1182_v60  ;;  %v2537_v33 = vld [vmem:[%s3069_s3 + $0x8] sm:$0xff] }
  0x85   : > { %v905_v27 = vor.u32 %v903_v15, %v902_v14  ;;  %v1051_v14 = vrot.slane %v1049_v1, 2  ;;  %v1086_v15 = vrot.slane %v1084_v62, 6  ;;  %v1207_v1 = vld [vmem:[#allocation3 + $0x8] sm:$0x3]  ;;  %1372 = vmatpush.bf16.msra.mxu2 %v2537_v33 }
  0x86   : > { %v1380_v60 = vld [vmem:[#allocation3 + $0x8] sm:$0x7] }
  0x87   : > { %v873_v24 = vld [vmem:[#allocation1 + $0x1] ss:$2 sm:$0xff]  ;;  %v1093_v29 = vshll.u32 %v1051_v14, 16 }
  0x88   : > { %v889_v25 = vld [vmem:[#allocation1 + $0x10] ss:$2 sm:$0xff]  ;;  %885 = vst.sshfl [vmem:[#allocation1] sm:$0xff pattern:$0x75643120] %v864_v16  ;;  %v896_v26 = vshrl.u32 %v873_v24, 16 }
  0x89   : > { %v922_v32 = vshrl.u32 %v889_v25, 16  ;;  %v925_v38 = vshll.u32 %v889_v25, 16  ;;  %v1089_v16 = vrot.slane %v1087_v63, 7  ;;  %v1067_v24 = vshll.u32 %v1039_v5, 16 }
  0x8a   : > { %v2374_v34 = vrot.slane %v896_v26, 9  ;;  %v1077_v25 = vor.u32 %v1076_v12, %v1073_v11  ;;  %v1080_v26 = vshll.u32 %v1045_v10, 16  ;;  %v1197_v63 = vsel %vm2824_vm11, 0, %v1196_v61 }
  0x8b   : > { %v924_v23 = vrot.slane %v922_v32, 7  ;;  %v1106_v32 = vshll.u32 %v1057_v18, 16  ;;  %v1069_v35 = vrot.slane %v1067_v24, 7  ;;  %1198 = vst [vmem:[#allocation3 + $0x44] sm:$0x7] %v1197_v63  ;;  %v1388_v61 = vrot.slane %v1380_v60, 2 }
  0x8c   : > { %v906_v28 = vsel %vm2674_vm14, %v2374_v34, %v905_v27  ;;  %v1090_v27 = vor.u32 %v1089_v16, %v1086_v15  ;;  %v1065_v34 = vrot.slane %v1064_v22, 2  ;;  %v1078_v36 = vrot.slane %v1077_v25, 2  ;;  %v1186_v15 = vld [vmem:[#allocation3 + $0x2c] sm:$0x7]  ;;  %v2563_v25 = vld [vmem:[%s3068_s2] ss:$0 sm:$0xff] }
  0x8d   : > { %944 = vst [vmem:[#allocation1] ss:$4 sm:$0xff] %v906_v28  ;;  %v927_v47 = vor.u32 %v925_v38, %v924_v23  ;;  %v1082_v37 = vrot.slane %v1080_v26, 7  ;;  %v1095_v23 = vrot.slane %v1093_v29, 7  ;;  %v1104_v38 = vrot.slane %v1103_v31, 2 }
  0x8e   : > { %v1091_v28 = vrot.slane %v1090_v27, 2  ;;  %v1108_v51 = vrot.slane %v1106_v32, 7  ;;  %v1187_v18 = vsel %vm2824_vm11, 0, %v1186_v15  ;;  %v1192_v22 = vsel %vm2824_vm11, 0, %v1191_v19  ;;  %v2540_v19 = vld [vmem:[%s3069_s3 + $0x20] sm:$0xff] }
  0x8f   : > { %v888_v46 = vld [vmem:[#allocation1 + $0x1] ss:$2 sm:$0xff]  ;;  %v1083_v42 = vsel %vm2716_vm6, %v1078_v36, %v1082_v37  ;;  %1188 = vst [vmem:[#allocation3 + $0x2c] sm:$0x7] %v1187_v18  ;;  %v2878_v15 = vsel %vm450_vm8, %v1380_v60, %v1388_v61 }
  0x90   : > { %v918_v40 = vshrl.u32 %v888_v46, 16  ;;  %947 = vst [vmem:[#allocation1 + $0x1] ss:$4 sm:$0xff] %v917_v41  ;;  %v1070_v41 = vsel %vm2716_vm6, %v1065_v34, %v1069_v35  ;;  %v1096_v44 = vsel %vm2716_vm6, %v1091_v28, %v1095_v23  ;;  %v1109_v45 = vsel %vm2716_vm6, %v1104_v38, %v1108_v51  ;;  %v1206_v46 = vld [vmem:[#allocation3 + $0x4] sm:$0x8] }
  0x91   : > { %953 = vst [vmem:[#allocation1 + $0x3] ss:$4 sm:$0xff] %v939_v43 }
  0x92   : > { %v2376_v50 = vrot.slane %v918_v40, 9  ;;  %v1210_v40 = vld [vmem:[#allocation3 + $0x1c] sm:$0x8]  ;;  %1193 = vst [vmem:[#allocation3 + $0x38] sm:$0x7] %v1192_v22  ;;  %v1397_v22 = vrot.slane %v2878_v15, 2 }
  0x93   : > { %v2542_v15 = vld [vmem:[%s3069_s3 + $0x30] sm:$0xff] }
  0x94   : > { %v928_v54 = vsel %vm2674_vm14, %v2376_v50, %v927_v47  ;;  %v1290_v50 = vld [vmem:[#allocation3 + $0x8] sm:$0x3] }
  0x95   : > { %950 = vst [vmem:[#allocation1 + $0x2] ss:$4 sm:$0xff] %v928_v54 }
  0x9c   : > { %v954_v17 = vld.sshfl [vmem:[#allocation1] sm:$0xff pattern:$0x73625140] }
  0x9d   : > { %2384 = vmatmul.msk.bf16.vlgmr.msrb.gmra.mxu2 %vm383_vm12, %v954_v17  ;;  %987 = vst [vmem:[#allocation1] ss:$4 sm:$0xff] %v979_v3 }
  0x9e   : > { %990 = vst [vmem:[#allocation1 + $0x1] ss:$4 sm:$0xff] %v980_v9 }
  0x9f   : > { %993 = vst [vmem:[#allocation1 + $0x2] ss:$4 sm:$0xff] %v981_v13 }
  0xa0   : > { %996 = vst [vmem:[#allocation1 + $0x3] ss:$4 sm:$0xff] %v982_v21 }
  0xa7   : > { %v997_v43 = vld.sshfl [vmem:[#allocation1] sm:$0xff pattern:$0x73625140] }
  0xa8   : > { %2391 = vmatmul.msk.bf16.vlgmr.msrb.gmra.mxu3 %vm383_vm12, %v997_v43  ;;  %1114 = vst [vmem:[#allocation1] ss:$4 sm:$0xff] %v1070_v41 }
  0xa9   : > { %1117 = vst [vmem:[#allocation1 + $0x1] ss:$4 sm:$0xff] %v1083_v42 }
  0xaa   : > { %1120 = vst [vmem:[#allocation1 + $0x2] ss:$4 sm:$0xff] %v1096_v44 }
  0xab   : > { %1123 = vst [vmem:[#allocation1 + $0x3] ss:$4 sm:$0xff] %v1109_v45 }
  0xac   : > { %1217 = vst.sshfl [vmem:[#allocation1 + $0x10] sm:$0xff pattern:$0x75643120] %v1207_v1 }
  0xb1   : > { %v395_v48 = vpop.f32.mrf.mxu0 }
  0xb2   : > { %v1124_v30 = vld.sshfl [vmem:[#allocation1] sm:$0xff pattern:$0x73625140] }
  0xb3   : > { %2398 = vmatmul.msk.bf16.vlgmr.msra.gmra.mxu0 %vm383_vm12, %v1124_v30  ;;  %1215 = vst.sshfl [vmem:[#allocation1] sm:$0xff pattern:$0x75643120] %v1206_v46  ;;  %v2845_v44 = vld [vmem:[#allocation1 + $0x10] ss:$2 sm:$0xff]  ;;  %vm1323_vm12 = vcmask 261120  }
  0xb9   : > { %v397_v54 = vpop.f32.mrf.mxu0 }
  0xba   : > { %v2821_v47 = vld [vmem:[#allocation1 + $0x1] ss:$2 sm:$0xff] }
  0xbb   : > { %1231 = vst.sshfl [vmem:[#allocation1] sm:$0xff pattern:$0x75643120] %v1210_v40  ;;  %v1242_v18 = vshrl.u32 %v2821_v47, 16 }
  0xbf   : > { %v429_v49 = vpop.f32.mrf.mxu1 }
  0xc0   : > { %v430_v39 = vadd.f32 %v429_v49, %v395_v48 }
  0xc2   : > { %v2847_v30 = vld [vmem:[#allocation1 + $0x1] ss:$2 sm:$0xff] }
  0xc7   : > { %v431_v62 = vpop.f32.mrf.mxu1 }
  0xc8   : > { %v432_v5 = vadd.f32 %v431_v62, %v397_v54  ;;  %v2539_v54 = vld [vmem:[%s3069_s3 + $0x18] sm:$0xff] }
  0xc9   : > { %1332 = vmatpush.bf16.msra.mxu1 %v2539_v54 }
  0xcd   : > { %1333 = vmatpush.bf16.msra.mxu1 %v2538_v56 }
  0xd0   : > { %v563_v55 = vpop.f32.mrf.mxu2 }
  0xd1   : > { %v568_v2 = vadd.f32 %v563_v55, %v430_v39 }
  0xd8   : > { %v565_v3 = vpop.f32.mrf.mxu2 }
  0xd9   : > { %v569_v10 = vadd.f32 %v565_v3, %v432_v5  ;;  %v1212_v3 = vld [vmem:[#allocation3 + $0x28] sm:$0x8]  ;;  %v1227_v5 = vld [vmem:[#allocation1 + $0x21] ss:$2 sm:$0xff] }
  0xda   : > { %1237 = vst.sshfl [vmem:[#allocation1 + $0x20] sm:$0xff pattern:$0x75643120] %v1212_v3 }
  0xed   : > { %v682_v58 = vpop.f32.mrf.mxu3 }
  0xee   : > { %v687_v6 = vadd.f32 %v682_v58, %v568_v2  ;;  %v2536_v58 = vld [vmem:[%s3069_s3] sm:$0xff] }
  0xef   : > { %1373 = vmatpush.bf16.msra.mxu2 %v2536_v58 }
  0xf2   : > { %v725_v4 = vpop.f32.mrf.mxu0 }
  0xf3   : > { %v730_v9 = vadd.f32 %v725_v4, %v687_v6  ;;  %v1394_v4 = vsel %vm446_vm7, %v1380_v60, %v1388_v61 }
  0xf5   : > { %v684_v7 = vpop.f32.mrf.mxu3 }
  0xf6   : > { %v688_v14 = vadd.f32 %v684_v7, %v569_v10  ;;  %v1419_v10 = vshll.u32 %v1394_v4, 16 }
  0xfa   : > { %v727_v12 = vpop.f32.mrf.mxu0 }
  0xfb   : > { %v731_v20 = vadd.f32 %v727_v12, %v688_v14 }
  0xfd   : > { %v852_v8 = vpop.f32.mrf.mxu1 }
  0xfe   : > { %v857_v13 = vadd.f32 %v852_v8, %v730_v9  ;;  %v1416_v8 = vshrl.u32 %v1394_v4, 16 }
 0x105   : > { %v854_v24 = vpop.f32.mrf.mxu1 }
 0x106   : > { %v858_v29 = vadd.f32 %v854_v24, %v731_v20  ;;  %v2888_v24 = vrot.slane %v1416_v8, 6 }
 0x120   : > { %v972_v11 = vpop.f32.mrf.mxu2 }
 0x121   : > { %v977_v16 = vadd.f32 %v972_v11, %v857_v13  ;;  %v2541_v13 = vld [vmem:[%s3069_s3 + $0x28] sm:$0xff] }
 0x122   : > { %1505 = vmatpush.bf16.msra.mxu3 %v2541_v13 }
 0x126   : > { %1506 = vmatpush.bf16.msra.mxu3 %v2540_v19 }
 0x128   : > { %v974_v26 = vpop.f32.mrf.mxu2 }
 0x129   : > { %v978_v32 = vadd.f32 %v974_v26, %v858_v29 }
 0x12b   : > { %v1015_v17 = vpop.f32.mrf.mxu3 }
 0x12c   : > { %v1020_v21 = vadd.f32 %v1015_v17, %v977_v16  ;;  %v1246_v16 = vshrl.u32 %v2845_v44, 16 }
 0x12e   : > { %v1248_v29 = vrot.slane %v1246_v16, 7 }
 0x130   : > { %v1142_v27 = vpop.f32.mrf.mxu0 }
 0x131   : > { %v1147_v31 = vadd.f32 %v1142_v27, %v1020_v21  ;;  %v2892_v27 = vrot.slane %v1419_v10, 7 }
 0x133   : > { %v1152_v34 = vadd.f32 %v2563_v25, %v1147_v31  ;;  %v1017_v35 = vpop.f32.mrf.mxu3 }
 0x134   : > { %v1021_v37 = vadd.f32 %v1017_v35, %v978_v32  ;;  %v1240_v32 = vld [vmem:[#allocation1 + $0x21] ss:$2 sm:$0xff]  ;;  %v1249_v35 = vshll.u32 %v2845_v44, 16 }
 0x135   : > { %v1154_v36 = vmax.f32 %v1152_v34, 0.0  ;;  %v2399_v34 = vrot.slane %v1242_v18, 9  ;;  %v1275_v33 = vshrl.u32 %v1240_v32, 16 }
 0x137   : > { %v1158_v28 = vrot.slane %v1154_v36, 4  ;;  %v1162_v23 = vpack.c.bf16 %v1154_v36, %v1154_v36  ;;  %v1253_v36 = vshrl.u32 %v1227_v5, 16 }
 0x138   : > { %v1144_v38 = vpop.f32.mrf.mxu0 }
 0x139   : > { %v1163_v51 = vpack.c.bf16 %v1158_v28, %v1158_v28  ;;  %1201 = vst.msk [vmem:[#allocation3 + $0x14] sm:$0x3] %vm1200_vm2, %v1162_v23  ;;  %v1148_v41 = vadd.f32 %v1144_v38, %v1021_v37  ;;  %v1264_v38 = vshrl.u32 %v2847_v30, 16 }
 0x13b   : > { %1202 = vst.msk [vmem:[#allocation3 + $0x20] sm:$0x3] %vm1200_vm2, %v1163_v51  ;;  %v1153_v42 = vadd.f32 %v2563_v25, %v1148_v41  ;;  %v1517_v25 = vld [vmem:[#allocation3 + $0x1c] sm:$0x8] }
 0x13c   : > { %1532 = vst.sshfl [vmem:[#allocation1 + $0x20] sm:$0xff pattern:$0x75643120] %v1517_v25 }
 0x13d   : > { %v1155_v45 = vmax.f32 %v1153_v42, 0.0  ;;  %v1251_v42 = vor.u32 %v1249_v35, %v1248_v29  ;;  %v1831_v35 = vld [vmem:[#allocation3 + $0x28] sm:$0x8] }
 0x13f   : > { %v1159_v40 = vrot.slane %v1155_v45, 4  ;;  %v1164_v48 = vpack.c.bf16 %v1155_v45, %v1155_v45 }
 0x140   : > { %v1209_v43 = vld [vmem:[#allocation3 + $0x14] sm:$0x3] }
 0x141   : > { %1225 = vst.sshfl [vmem:[#allocation1 + $0x30] sm:$0xff pattern:$0x75643120] %v1209_v43  ;;  %v1291_v49 = vld [vmem:[#allocation3 + $0x14] sm:$0x3]  ;;  %v1165_v52 = vpack.c.bf16 %v1159_v40, %v1159_v40  ;;  %v2400_v43 = vrot.slane %v1253_v36, 9 }
 0x142   : > { %v1211_v46 = vld [vmem:[#allocation3 + $0x20] sm:$0x3]  ;;  %1203 = vst.msk [vmem:[#allocation3 + $0x2c] sm:$0x3] %vm1200_vm2, %v1164_v48  ;;  %v1381_v2 = vld [vmem:[#allocation3 + $0x14] sm:$0x7] }
 0x143   : > { %1233 = vst.sshfl [vmem:[#allocation1 + $0x10] sm:$0xff pattern:$0x75643120] %v1211_v46  ;;  %v1292_v55 = vld [vmem:[#allocation3 + $0x20] sm:$0x3]  ;;  %v1389_v7 = vrot.slane %v1381_v2, 2 }
 0x144   : > { %1303 = vst [vmem:[#allocation1 + $0x1] ss:$4 sm:$0xff] %v1291_v49  ;;  %v1518_v62 = vld [vmem:[#allocation3 + $0x20] sm:$0x3]  ;;  %v2916_v10 = vld [vmem:[#allocation1 + $0x21] ss:$2 sm:$0xff] }
 0x145   : > { %1204 = vst.msk [vmem:[#allocation3 + $0x38] sm:$0x3] %vm1200_vm2, %v1165_v52  ;;  %v1382_v6 = vld [vmem:[#allocation3 + $0x20] sm:$0x7]  ;;  %v1400_v17 = vsel %vm446_vm7, %v1381_v2, %v1389_v7  ;;  %v1401_v46 = vsel %vm450_vm8, %v1381_v2, %v1389_v7  ;;  %v2401_v52 = vrot.slane %v1264_v38, 9  ;;  %v2402_v2 = vrot.slane %v1275_v33, 9 }
 0x146   : > { %v1390_v14 = vrot.slane %v1382_v6, 2  ;;  %v1429_v47 = vshrl.u32 %v1400_v17, 16  ;;  %v1432_v28 = vshll.u32 %v1400_v17, 16  ;;  %v1836_v7 = vld [vmem:[#allocation3 + $0x44] sm:$0x3] }
 0x148   : > { %v2859_v57 = vld [vmem:[#allocation1 + $0x30] ss:$2 sm:$0xff]  ;;  %v1406_v26 = vsel %vm446_vm7, %v1382_v6, %v1390_v14  ;;  %v1431_v58 = vrot.slane %v1429_v47, 6 }
 0x149   : > { %v1213_v39 = vld [vmem:[#allocation3 + $0x2c] sm:$0x3]  ;;  %v1257_v37 = vshrl.u32 %v2859_v57, 16  ;;  %v1260_v44 = vshll.u32 %v2859_v57, 16  ;;  %v1442_v40 = vshrl.u32 %v1406_v26, 16  ;;  %v1445_v48 = vshll.u32 %v1406_v26, 16 }
 0x14a   : > { %v2850_v53 = vld [vmem:[#allocation1 + $0x10] ss:$2 sm:$0xff]  ;;  %1239 = vst.sshfl [vmem:[#allocation1 + $0x30] sm:$0xff pattern:$0x75643120] %v1213_v39  ;;  %v1407_v57 = vsel %vm450_vm8, %v1382_v6, %v1390_v14 }
 0x14b   : > { %1300 = vst [vmem:[#allocation1] ss:$4 sm:$0xff] %v1290_v50  ;;  %v1293_v1 = vld [vmem:[#allocation3 + $0x2c] sm:$0x3]  ;;  %v1268_v51 = vshrl.u32 %v2850_v53, 16  ;;  %v1259_v45 = vrot.slane %v1257_v37, 7  ;;  %v1252_v50 = vsel %vm2674_vm14, %v2399_v34, %v1251_v42 }
 0x14c   : > { %1306 = vst [vmem:[#allocation1 + $0x2] ss:$4 sm:$0xff] %v1292_v55  ;;  %v2870_v9 = vld [vmem:[#allocation3 + $0x2c] sm:$0x7]  ;;  %v1522_v11 = vld [vmem:[#allocation3 + $0x38] sm:$0x3] }
 0x14d   : > { %1309 = vst [vmem:[#allocation1 + $0x3] ss:$4 sm:$0xff] %v1293_v1  ;;  %v1391_v20 = vrot.slane %v2870_v9, 2  ;;  %v1832_v31 = vld [vmem:[#allocation3 + $0x2c] sm:$0x3]  ;;  %v1270_v49 = vrot.slane %v1268_v51, 7  ;;  %v1262_v30 = vor.u32 %v1260_v44, %v1259_v45 }
 0x14e   : > { %v1271_v54 = vshll.u32 %v2850_v53, 16  ;;  %v1434_v1 = vrot.slane %v1432_v28, 7  ;;  %v1444_v53 = vrot.slane %v1442_v40, 6  ;;  %v1447_v5 = vrot.slane %v1445_v48, 7  ;;  %v1835_v40 = vld [vmem:[#allocation3 + $0x40] sm:$0x8] }
 0x14f   : > { %v1412_v23 = vsel %vm446_vm7, %v2870_v9, %v1391_v20  ;;  %v1263_v60 = vsel %vm2674_vm14, %v2400_v43, %v1262_v30  ;;  %v1413_v8 = vsel %vm450_vm8, %v2870_v9, %v1391_v20  ;;  %v1409_v17 = vrot.slane %v1407_v57, 2  ;;  %v1519_v57 = vld [vmem:[#allocation3 + $0x28] sm:$0x8] }
 0x150   : > { %v1455_v55 = vshrl.u32 %v1412_v23, 16  ;;  %v1458_v56 = vshll.u32 %v1412_v23, 16  ;;  %v1273_v61 = vor.u32 %v1271_v54, %v1270_v49  ;;  %v1415_v19 = vrot.slane %v1413_v8, 2  ;;  %v1515_v49 = vld [vmem:[#allocation3 + $0x10] sm:$0x8] }
 0x151   : > { %v2867_v63 = vld [vmem:[#allocation1 + $0x30] ss:$2 sm:$0xff]  ;;  %v1422_v20 = vor.u32 %v2892_v27, %v2888_v24  ;;  %v1448_v25 = vor.u32 %v1447_v5, %v1444_v53  ;;  %v1451_v29 = vshll.u32 %v1409_v17, 16  ;;  %v1693_v17 = vld [vmem:[#allocation3 + $0x14] sm:$0x7] }
 0x152   : > { %1534 = vst.sshfl [vmem:[#allocation1 + $0x30] sm:$0xff pattern:$0x75643120] %v1518_v62  ;;  %v1279_v39 = vshrl.u32 %v2867_v63, 16  ;;  %v1521_v62 = vld [vmem:[#allocation3 + $0x34] sm:$0x8]  ;;  %v1274_v6 = vsel %vm2674_vm14, %v2401_v52, %v1273_v61 }
 0x153   : > { %v1282_v3 = vshll.u32 %v2867_v63, 16  ;;  %v1457_v13 = vrot.slane %v1455_v55, 6  ;;  %v1460_v14 = vrot.slane %v1458_v56, 7  ;;  %1546 = vst.sshfl [vmem:[#allocation1 + $0x20] sm:$0xff pattern:$0x75643120] %v1521_v62  ;;  %v1435_v63 = vor.u32 %v1434_v1, %v1431_v58 }
 0x154   : > { %v1310_v21 = vld.sshfl [vmem:[#allocation1] sm:$0xff pattern:$0x73625140]  ;;  %v1281_v4 = vrot.slane %v1279_v39, 7  ;;  %v1464_v34 = vshll.u32 %v1415_v19, 16  ;;  %v1423_v36 = vrot.slane %v1422_v20, 2 }
 0x155   : > { %2415 = vmatmul.msk.bf16.vlgmr.msra.gmra.mxu1 %vm1323_vm12, %v1310_v21  ;;  %1341 = vst [vmem:[#allocation1] ss:$4 sm:$0xff] %v1252_v50  ;;  %v1425_v21 = vshll.u32 %v1397_v22, 16  ;;  %v1461_v47 = vor.u32 %v1460_v14, %v1457_v13  ;;  %v1436_v32 = vrot.slane %v1435_v63, 2  ;;  %v1449_v28 = vrot.slane %v1448_v25, 2  ;;  %v2545_v52 = vld [vmem:[%s3069_s3 + $0x48] sm:$0xff] }
 0x156   : > { %1344 = vst [vmem:[#allocation1 + $0x1] ss:$4 sm:$0xff] %v1263_v60  ;;  %v1284_v16 = vor.u32 %v1282_v3, %v1281_v4  ;;  %v1453_v23 = vrot.slane %v1451_v29, 7  ;;  %v1466_v51 = vrot.slane %v1464_v34, 7  ;;  %v1520_v50 = vld [vmem:[#allocation3 + $0x2c] sm:$0x3]  ;;  %1683 = vmatpush.bf16.msrb.mxu1 %v2545_v52 }
 0x157   : > { %1347 = vst [vmem:[#allocation1 + $0x2] ss:$4 sm:$0xff] %v1274_v6  ;;  %v1427_v37 = vrot.slane %v1425_v21, 7  ;;  %v1462_v24 = vrot.slane %v1461_v47, 2  ;;  %v2544_v55 = vld [vmem:[%s3069_s3 + $0x40] sm:$0xff]  ;;  %v1562_v1 = vshrl.u32 %v2916_v10, 16 }
 0x158   : > { %v1285_v9 = vsel %vm2674_vm14, %v2402_v2, %v1284_v16  ;;  %v1454_v43 = vsel %vm2716_vm6, %v1449_v28, %v1453_v23  ;;  %v2547_v13 = vld [vmem:[%s3069_s3 + $0x58] sm:$0xff]  ;;  %v1701_v20 = vrot.slane %v1693_v17, 2  ;;  %v1696_v47 = vld [vmem:[#allocation3 + $0x38] sm:$0x7]  ;;  %v1643_v52 = vld [vmem:[#allocation3 + $0x20] sm:$0x3] }
 0x159   : > { %v2872_v12 = vld [vmem:[#allocation1 + $0x30] ss:$2 sm:$0xff]  ;;  %1350 = vst [vmem:[#allocation1 + $0x3] ss:$4 sm:$0xff] %v1285_v9  ;;  %v1428_v45 = vsel %vm2716_vm6, %v1423_v36, %v1427_v37  ;;  %v1467_v44 = vsel %vm2716_vm6, %v1462_v24, %v1466_v51  ;;  %v2439_v14 = vrot.slane %v1562_v1, 9  ;;  %1818 = vmatpush.bf16.msrb.mxu2 %v2547_v13  ;;  %v1704_v28 = vrot.slane %v1696_v47, 2 }
 0x15a   : > { %1548 = vst.sshfl [vmem:[#allocation1 + $0x30] sm:$0xff pattern:$0x75643120] %v1522_v11  ;;  %v1403_v11 = vrot.slane %v1401_v46, 2  ;;  %v1549_v27 = vld [vmem:[#allocation1 + $0x21] ss:$2 sm:$0xff]  ;;  %1684 = vmatpush.bf16.msrb.mxu1 %v2544_v55 }
 0x15b   : > { %1846 = vst.sshfl [vmem:[#allocation1 + $0x20] sm:$0xff pattern:$0x75643120] %v1831_v35  ;;  %v1516_v46 = vld [vmem:[#allocation3 + $0x14] sm:$0x3]  ;;  %v1566_v33 = vshrl.u32 %v2872_v12, 16  ;;  %v1725_v51 = vsel %vm446_vm7, %v1696_v47, %v1704_v28 }
 0x15c   : > { %v1438_v26 = vshll.u32 %v1403_v11, 16  ;;  %v1584_v2 = vshrl.u32 %v1549_v27, 16  ;;  %v1569_v5 = vshll.u32 %v2872_v12, 16  ;;  %v2546_v12 = vld [vmem:[%s3069_s3 + $0x50] sm:$0xff]  ;;  %v1695_v21 = vld [vmem:[#allocation3 + $0x2c] sm:$0x7] }
 0x15d   : > { %v1568_v60 = vrot.slane %v1566_v33, 7  ;;  %v1694_v9 = vld [vmem:[#allocation3 + $0x20] sm:$0x7]  ;;  %1819 = vmatpush.bf16.msrb.mxu2 %v2546_v12  ;;  %v1703_v35 = vrot.slane %v1695_v21, 2 }
 0x15e   : > { %v1440_v22 = vrot.slane %v1438_v26, 7  ;;  %v2441_v63 = vrot.slane %v1584_v2, 9  ;;  %v1702_v34 = vrot.slane %v1694_v9, 2  ;;  %v1644_v2 = vld [vmem:[#allocation3 + $0x2c] sm:$0x3] }
 0x15f   : > { %v1571_v16 = vor.u32 %v1569_v5, %v1568_v60  ;;  %v1719_v27 = vsel %vm446_vm7, %v1695_v21, %v1703_v35  ;;  %v1645_v5 = vld [vmem:[#allocation3 + $0x38] sm:$0x3] }
 0x160   : > { %v1441_v38 = vsel %vm2716_vm6, %v1436_v32, %v1440_v22  ;;  %v1351_v42 = vld.sshfl [vmem:[#allocation1] sm:$0xff pattern:$0x73625140]  ;;  %v1713_v24 = vsel %vm446_vm7, %v1694_v9, %v1702_v34 }
 0x161   : > { %v2900_v41 = vld [vmem:[#allocation1 + $0x30] ss:$2 sm:$0xff]  ;;  %2424 = vmatmul.msk.bf16.vlgmr.msra.gmra.mxu2 %vm1323_vm12, %v1351_v42  ;;  %1477 = vst [vmem:[#allocation1 + $0x1] ss:$4 sm:$0xff] %v1441_v38  ;;  %v1572_v26 = vsel %vm2674_vm14, %v2439_v14, %v1571_v16  ;;  %v1742_v42 = vshrl.u32 %v1713_v24, 16 }
 0x162   : > { %1848 = vst.sshfl [vmem:[#allocation1 + $0x30] sm:$0xff pattern:$0x75643120] %v1832_v31  ;;  %v2543_v31 = vld [vmem:[%s3069_s3 + $0x38] sm:$0xff]  ;;  %v2941_v48 = vld [vmem:[#allocation1 + $0x21] ss:$2 sm:$0xff] }
 0x163   : > { %1632 = vmatpush.bf16.msrb.mxu0 %v2543_v31  ;;  %1480 = vst [vmem:[#allocation1 + $0x2] ss:$4 sm:$0xff] %v1454_v43  ;;  %v1588_v39 = vshrl.u32 %v2900_v41, 16  ;;  %v1591_v11 = vshll.u32 %v2900_v41, 16  ;;  %v1745_v43 = vshll.u32 %v1713_v24, 16  ;;  %v1744_v33 = vrot.slane %v1742_v42, 6 }
 0x164   : > { %1483 = vst [vmem:[#allocation1 + $0x3] ss:$4 sm:$0xff] %v1467_v44  ;;  %v1755_v44 = vshrl.u32 %v1719_v27, 16 }
 0x165   : > { %1474 = vst [vmem:[#allocation1] ss:$4 sm:$0xff] %v1428_v45  ;;  %v1590_v4 = vrot.slane %v1588_v39, 7  ;;  %v1708_v45 = vsel %vm450_vm8, %v1693_v17, %v1701_v20  ;;  %v1747_v39 = vrot.slane %v1745_v43, 7 }
 0x166   : > { %1526 = vst.sshfl [vmem:[#allocation1 + $0x10] sm:$0xff pattern:$0x75643120] %v1516_v46  ;;  %v1758_v46 = vshll.u32 %v1719_v27, 16 }
 0x167   : > { %1633 = vmatpush.bf16.msrb.mxu0 %v2542_v15  ;;  %1860 = vst.sshfl [vmem:[#allocation1 + $0x20] sm:$0xff pattern:$0x75643120] %v1835_v40  ;;  %v1593_v19 = vor.u32 %v1591_v11, %v1590_v4  ;;  %v1707_v15 = vsel %vm446_vm7, %v1693_v17, %v1701_v20  ;;  %v1714_v40 = vsel %vm450_vm8, %v1694_v9, %v1702_v34 }
 0x168   : > { %v1729_v23 = vshrl.u32 %v1707_v15, 16  ;;  %v1732_v38 = vshll.u32 %v1707_v15, 16  ;;  %v1716_v60 = vrot.slane %v1714_v40, 2  ;;  %v1760_v1 = vrot.slane %v1758_v46, 7  ;;  %v1834_v15 = vld [vmem:[#allocation3 + $0x38] sm:$0x3] }
 0x169   : > { %v2918_v18 = vld [vmem:[#allocation1 + $0x30] ss:$2 sm:$0xff]  ;;  %v1594_v32 = vsel %vm2674_vm14, %v2441_v63, %v1593_v19 }
 0x16a   : > { %1862 = vst.sshfl [vmem:[#allocation1 + $0x30] sm:$0xff pattern:$0x75643120] %v1836_v7  ;;  %v1734_v55 = vrot.slane %v1732_v38, 7  ;;  %v1751_v14 = vshll.u32 %v1716_v60, 16  ;;  %v2550_v38 = vld [vmem:[%s3069_s3 + $0x70] sm:$0xff] }
 0x16c   : > { %v1484_v30 = vld.sshfl [vmem:[#allocation1] sm:$0xff pattern:$0x73625140] }
 0x16d   : > { %2437 = vmatmul.msk.bf16.vlgmr.msra.gmra.mxu3 %vm1323_vm12, %v1484_v30  ;;  %1524 = vst.sshfl [vmem:[#allocation1] sm:$0xff pattern:$0x75643120] %v1515_v49  ;;  %v1530_v54 = vld [vmem:[#allocation1 + $0x10] ss:$2 sm:$0xff]  ;;  %v1768_v49 = vshrl.u32 %v1725_v51, 16 }
 0x16e   : > { %1542 = vst.sshfl [vmem:[#allocation1 + $0x10] sm:$0xff pattern:$0x75643120] %v1520_v50  ;;  %v1555_v56 = vshrl.u32 %v1530_v54, 16  ;;  %v1558_v62 = vshll.u32 %v1530_v54, 16  ;;  %v1771_v50 = vshll.u32 %v1725_v51, 16 }
 0x16f   : > { %v1642_v30 = vld [vmem:[#allocation3 + $0x14] sm:$0x3]  ;;  %v1731_v54 = vrot.slane %v1729_v23, 6  ;;  %v1770_v4 = vrot.slane %v1768_v49, 6  ;;  %v2553_v23 = vld [vmem:[%s3069_s3 + $0x88] sm:$0xff] }
 0x170   : > { %v1557_v58 = vrot.slane %v1555_v56, 7  ;;  %v1710_v56 = vrot.slane %v1708_v45, 2  ;;  %v1863_v42 = vld [vmem:[#allocation1 + $0x21] ss:$2 sm:$0xff]  ;;  %2132 = vmatpush.bf16.msra.mxu1 %v2553_v23  ;;  %v1880_v45 = vshrl.u32 %v2918_v18, 16 }
 0x171   : > { %v1864_v24 = vld [vmem:[#allocation1 + $0x30] ss:$2 sm:$0xff]  ;;  %v1898_v46 = vshrl.u32 %v1863_v42, 16 }
 0x172   : > { %v1560_v8 = vor.u32 %v1558_v62, %v1557_v58  ;;  %v1757_v62 = vrot.slane %v1755_v44, 6  ;;  %v1738_v11 = vshll.u32 %v1710_v56, 16  ;;  %v1902_v43 = vshrl.u32 %v1864_v24, 16  ;;  %v1833_v44 = vld [vmem:[#allocation3 + $0x34] sm:$0x8] }
 0x174   : > { %v1528_v61 = vld [vmem:[#allocation1 + $0x1] ss:$2 sm:$0xff]  ;;  %v1761_v13 = vor.u32 %v1760_v1, %v1757_v62  ;;  %v1740_v12 = vrot.slane %v1738_v11, 7  ;;  %v1904_v49 = vrot.slane %v1902_v43, 7 }
 0x175   : > { %1540 = vst.sshfl [vmem:[#allocation1] sm:$0xff pattern:$0x75643120] %v1519_v57  ;;  %v1544_v3 = vld [vmem:[#allocation1 + $0x10] ss:$2 sm:$0xff]  ;;  %v1551_v53 = vshrl.u32 %v1528_v61, 16  ;;  %v1720_v57 = vsel %vm450_vm8, %v1695_v21, %v1703_v35  ;;  %v1726_v61 = vsel %vm450_vm8, %v1696_v47, %v1704_v28 }
 0x176   : > { %v1577_v6 = vshrl.u32 %v1544_v3, 16  ;;  %v1580_v31 = vshll.u32 %v1544_v3, 16  ;;  %v1773_v3 = vrot.slane %v1771_v50, 7  ;;  %v1762_v9 = vrot.slane %v1761_v13, 2  ;;  %v2549_v47 = vld [vmem:[%s3069_s3 + $0x68] sm:$0xff]  ;;  %v2548_v35 = vld [vmem:[%s3069_s3 + $0x60] sm:$0xff] }
 0x177   : > { %v2438_v7 = vrot.slane %v1551_v53, 9  ;;  %v1735_v53 = vor.u32 %v1734_v55, %v1731_v54  ;;  %1946 = vmatpush.bf16.msrb.mxu3 %v2549_v47  ;;  %v1829_v28 = vld [vmem:[#allocation3 + $0x1c] sm:$0x8]  ;;  %v1905_v50 = vshll.u32 %v1864_v24, 16  ;;  %v1876_v55 = vshrl.u32 %v2941_v48, 16 }
 0x178   : > { %v1579_v41 = vrot.slane %v1577_v6, 7  ;;  %v1728_v6 = vrot.slane %v1726_v61, 2  ;;  %v1774_v16 = vor.u32 %v1773_v3, %v1770_v4  ;;  %v2552_v4 = vld [vmem:[%s3069_s3 + $0x80] sm:$0xff]  ;;  %v2010_v3 = vld [vmem:[#allocation3 + $0x44] sm:$0x7] }
 0x179   : > { %v1561_v10 = vsel %vm2674_vm14, %v2438_v7, %v1560_v8  ;;  %v1722_v7 = vrot.slane %v1720_v57, 2  ;;  %v1748_v8 = vor.u32 %v1747_v39, %v1744_v33  ;;  %v1736_v17 = vrot.slane %v1735_v53, 2  ;;  %v2007_v53 = vld [vmem:[#allocation3 + $0x20] sm:$0x7]  ;;  %2133 = vmatpush.bf16.msra.mxu1 %v2552_v4  ;;  %v1959_v24 = vld [vmem:[#allocation3 + $0x44] sm:$0x3] }
 0x17a   : > { %1601 = vst [vmem:[#allocation1] ss:$4 sm:$0xff] %v1561_v10  ;;  %v1582_v37 = vor.u32 %v1580_v31, %v1579_v41  ;;  %v1777_v19 = vshll.u32 %v1728_v6, 16  ;;  %v1753_v41 = vrot.slane %v1751_v14, 7  ;;  %v1775_v20 = vrot.slane %v1774_v16, 2 }
 0x17b   : > { %v1764_v10 = vshll.u32 %v1722_v7, 16  ;;  %v1749_v63 = vrot.slane %v1748_v8, 2  ;;  %v1741_v21 = vsel %vm2716_vm6, %v1736_v17, %v1740_v12  ;;  %1947 = vmatpush.bf16.msrb.mxu3 %v2548_v35  ;;  %v1883_v39 = vshll.u32 %v2918_v18, 16  ;;  %v2009_v6 = vld [vmem:[#allocation3 + $0x38] sm:$0x7] }
 0x17c   : > { %v1543_v25 = vld [vmem:[#allocation1 + $0x1] ss:$2 sm:$0xff]  ;;  %v1779_v31 = vrot.slane %v1777_v19, 7  ;;  %v2484_v57 = vrot.slane %v1898_v46, 9  ;;  %v1907_v62 = vor.u32 %v1905_v50, %v1904_v49  ;;  %v2018_v8 = vrot.slane %v2010_v3, 2 }
 0x17d   : > { %v1573_v29 = vshrl.u32 %v1543_v25, 16  ;;  %1604 = vst [vmem:[#allocation1 + $0x1] ss:$4 sm:$0xff] %v1572_v26  ;;  %v1766_v25 = vrot.slane %v1764_v10, 7  ;;  %v2015_v14 = vrot.slane %v2007_v53, 2 }
 0x17e   : > { %1610 = vst [vmem:[#allocation1 + $0x3] ss:$4 sm:$0xff] %v1594_v32  ;;  %v2551_v32 = vld [vmem:[%s3069_s3 + $0x78] sm:$0xff]  ;;  %v1908_v7 = vsel %vm2674_vm14, %v2484_v57, %v1907_v62  ;;  %v2040_v47 = vsel %vm450_vm8, %v2010_v3, %v2018_v8 }
 0x17f   : > { %v2440_v36 = vrot.slane %v1573_v29, 9  ;;  %v1754_v29 = vsel %vm2716_vm6, %v1749_v63, %v1753_v41  ;;  %v1767_v34 = vsel %vm2716_vm6, %v1762_v9, %v1766_v25  ;;  %1997 = vmatpush.bf16.msra.mxu0 %v2551_v32  ;;  %v2017_v63 = vrot.slane %v2009_v6, 2 }
 0x180   : > { %v2039_v9 = vsel %vm446_vm7, %v2010_v3, %v2018_v8  ;;  %v2021_v41 = vsel %vm446_vm7, %v2007_v53, %v2015_v14 }
 0x181   : > { %v1583_v22 = vsel %vm2674_vm14, %v2440_v36, %v1582_v37  ;;  %v1780_v36 = vsel %vm2716_vm6, %v1775_v20, %v1779_v31  ;;  %v1830_v37 = vld [vmem:[#allocation3 + $0x20] sm:$0x3]  ;;  %v2082_v25 = vshrl.u32 %v2039_v9, 16  ;;  %v2046_v31 = vshll.u32 %v2021_v41, 16 }
 0x182   : > { %1607 = vst [vmem:[#allocation1 + $0x2] ss:$4 sm:$0xff] %v1583_v22  ;;  %v2085_v32 = vshll.u32 %v2039_v9, 16  ;;  %v2034_v43 = vsel %vm450_vm8, %v2009_v6, %v2017_v63 }
 0x183   : > { %1998 = vmatpush.bf16.msra.mxu0 %v2550_v38  ;;  %v2084_v0 = vrot.slane %v2082_v25, 6  ;;  %v2048_v23 = vrot.slane %v2046_v31, 7 }
 0x184   : > { %v2087_v38 = vrot.slane %v2085_v32, 7 }
 0x189   : > { %v1611_v58 = vld.sshfl [vmem:[#allocation1] sm:$0xff pattern:$0x73625140] }
 0x18a   : > { %2454 = vmatmul.msk.bf16.vlgmr.msrb.gmra.mxu0 %vm1323_vm12, %v1611_v58  ;;  %1652 = vst [vmem:[#allocation1] ss:$4 sm:$0xff] %v1642_v30  ;;  %v1882_v30 = vrot.slane %v1880_v45, 7 }
 0x18b   : > { %1655 = vst [vmem:[#allocation1 + $0x1] ss:$4 sm:$0xff] %v1643_v52 }
 0x18c   : > { %1658 = vst [vmem:[#allocation1 + $0x2] ss:$4 sm:$0xff] %v1644_v2  ;;  %v1885_v1 = vor.u32 %v1883_v39, %v1882_v30  ;;  %v2482_v2 = vrot.slane %v1876_v55, 9  ;;  %v1958_v30 = vld [vmem:[#allocation3 + $0x38] sm:$0x3]  ;;  %v2036_v55 = vrot.slane %v2034_v43, 2 }
 0x18d   : > { %1661 = vst [vmem:[#allocation1 + $0x3] ss:$4 sm:$0xff] %v1645_v5  ;;  %v2008_v5 = vld [vmem:[#allocation3 + $0x2c] sm:$0x7] }
 0x18e   : > { %v1886_v13 = vsel %vm2674_vm14, %v2482_v2, %v1885_v1  ;;  %v2016_v10 = vrot.slane %v2008_v5, 2  ;;  %v2078_v62 = vshll.u32 %v2036_v55, 16 }
 0x194   : > { %v1662_v26 = vld.sshfl [vmem:[#allocation1] sm:$0xff pattern:$0x73625140] }
 0x195   : > { %2467 = vmatmul.msk.bf16.vlgmr.msrb.gmra.mxu1 %vm1323_vm12, %v1662_v26  ;;  %1787 = vst [vmem:[#allocation1] ss:$4 sm:$0xff] %v1741_v21  ;;  %v2027_v21 = vsel %vm446_vm7, %v2008_v5, %v2016_v10  ;;  %v2033_v26 = vsel %vm446_vm7, %v2009_v6, %v2017_v63 }
 0x196   : > { %1790 = vst [vmem:[#allocation1 + $0x1] ss:$4 sm:$0xff] %v1754_v29  ;;  %v2043_v29 = vshrl.u32 %v2021_v41, 16  ;;  %v2059_v35 = vshll.u32 %v2027_v21, 16 }
 0x197   : > { %1793 = vst [vmem:[#allocation1 + $0x2] ss:$4 sm:$0xff] %v1767_v34  ;;  %v2056_v34 = vshrl.u32 %v2027_v21, 16 }
 0x198   : > { %1796 = vst [vmem:[#allocation1 + $0x3] ss:$4 sm:$0xff] %v1780_v36  ;;  %v2022_v36 = vsel %vm450_vm8, %v2007_v53, %v2015_v14 }
 0x199   : > { %1840 = vst.sshfl [vmem:[#allocation1 + $0x10] sm:$0xff pattern:$0x75643120] %v1830_v37  ;;  %v2069_v37 = vshrl.u32 %v2033_v26, 16  ;;  %v2024_v42 = vrot.slane %v2022_v36, 2  ;;  %v2058_v45 = vrot.slane %v2056_v34, 6 }
 0x19b   : > { %v2071_v49 = vrot.slane %v2069_v37, 6  ;;  %v2052_v57 = vshll.u32 %v2024_v42, 16 }
 0x19d   : > { %v2054_v3 = vrot.slane %v2052_v57, 7 }
 0x19f   : > { %v1797_v22 = vld.sshfl [vmem:[#allocation1] sm:$0xff pattern:$0x73625140] }
 0x1a0   : > { %2480 = vmatmul.msk.bf16.vlgmr.msrb.gmra.mxu2 %vm1323_vm12, %v1797_v22  ;;  %1838 = vst.sshfl [vmem:[#allocation1] sm:$0xff pattern:$0x75643120] %v1829_v28  ;;  %v1844_v27 = vld [vmem:[#allocation1 + $0x10] ss:$2 sm:$0xff]  ;;  %v2072_v28 = vshll.u32 %v2033_v26, 16 }
 0x1a1   : > { %1856 = vst.sshfl [vmem:[#allocation1 + $0x10] sm:$0xff pattern:$0x75643120] %v1834_v15  ;;  %v1869_v51 = vshrl.u32 %v1844_v27, 16  ;;  %v1872_v54 = vshll.u32 %v1844_v27, 16  ;;  %v2042_v15 = vrot.slane %v2040_v47, 2 }
 0x1a2   : > { %v1956_v22 = vld [vmem:[#allocation3 + $0x20] sm:$0x3]  ;;  %v2045_v27 = vrot.slane %v2043_v29, 6  ;;  %v2074_v50 = vrot.slane %v2072_v28, 7 }
 0x1a3   : > { %v1871_v40 = vrot.slane %v1869_v51, 7  ;;  %v2028_v51 = vsel %vm450_vm8, %v2008_v5, %v2016_v10 }
 0x1a5   : > { %v1874_v60 = vor.u32 %v1872_v54, %v1871_v40  ;;  %v1957_v40 = vld [vmem:[#allocation3 + $0x2c] sm:$0x3]  ;;  %v2049_v54 = vor.u32 %v2048_v23, %v2045_v27 }
 0x1a7   : > { %v1842_v52 = vld [vmem:[#allocation1 + $0x1] ss:$2 sm:$0xff] }
 0x1a8   : > { %1854 = vst.sshfl [vmem:[#allocation1] sm:$0xff pattern:$0x75643120] %v1833_v44  ;;  %v1858_v56 = vld [vmem:[#allocation1 + $0x10] ss:$2 sm:$0xff]  ;;  %v1865_v33 = vshrl.u32 %v1842_v52, 16 }
 0x1a9   : > { %v1891_v61 = vshrl.u32 %v1858_v56, 16  ;;  %v1894_v17 = vshll.u32 %v1858_v56, 16  ;;  %v2061_v44 = vrot.slane %v2059_v35, 7  ;;  %v2030_v52 = vrot.slane %v2028_v51, 2 }
 0x1aa   : > { %v2481_v58 = vrot.slane %v1865_v33, 9  ;;  %v2088_v56 = vor.u32 %v2087_v38, %v2084_v0  ;;  %v2091_v33 = vshll.u32 %v2042_v15, 16 }
 0x1ab   : > { %v1893_v18 = vrot.slane %v1891_v61, 7  ;;  %v2062_v39 = vor.u32 %v2061_v44, %v2058_v45  ;;  %v2050_v61 = vrot.slane %v2049_v54, 2 }
 0x1ac   : > { %v1875_v48 = vsel %vm2674_vm14, %v2481_v58, %v1874_v60  ;;  %v2075_v58 = vor.u32 %v2074_v50, %v2071_v49  ;;  %v2065_v60 = vshll.u32 %v2030_v52, 16  ;;  %v2089_v1 = vrot.slane %v2088_v56, 2 }
 0x1ad   : > { %1915 = vst [vmem:[#allocation1] ss:$4 sm:$0xff] %v1875_v48  ;;  %v1896_v12 = vor.u32 %v1894_v17, %v1893_v18  ;;  %v2093_v2 = vrot.slane %v2091_v33, 7  ;;  %v2063_v4 = vrot.slane %v2062_v39, 2  ;;  %v2055_v5 = vsel %vm2716_vm6, %v2050_v61, %v2054_v3 }
 0x1ae   : > { %v2076_v48 = vrot.slane %v2075_v58, 2  ;;  %v2067_v53 = vrot.slane %v2065_v60, 7  ;;  %v2080_v18 = vrot.slane %v2078_v62, 7 }
 0x1af   : > { %v1857_v11 = vld [vmem:[#allocation1 + $0x1] ss:$2 sm:$0xff]  ;;  %v2094_v8 = vsel %vm2716_vm6, %v2089_v1, %v2093_v2 }
 0x1b0   : > { %v1887_v16 = vshrl.u32 %v1857_v11, 16  ;;  %1918 = vst [vmem:[#allocation1 + $0x1] ss:$4 sm:$0xff] %v1886_v13  ;;  %v2068_v6 = vsel %vm2716_vm6, %v2063_v4, %v2067_v53  ;;  %v2081_v11 = vsel %vm2716_vm6, %v2076_v48, %v2080_v18 }
 0x1b1   : > { %1924 = vst [vmem:[#allocation1 + $0x3] ss:$4 sm:$0xff] %v1908_v7 }
 0x1b2   : > { %v2483_v19 = vrot.slane %v1887_v16, 9 }
 0x1b4   : > { %v1897_v20 = vsel %vm2674_vm14, %v2483_v19, %v1896_v12 }
 0x1b5   : > { %1921 = vst [vmem:[#allocation1 + $0x2] ss:$4 sm:$0xff] %v1897_v20 }
 0x1bc   : > { %v1925_v46 = vld.sshfl [vmem:[#allocation1] sm:$0xff pattern:$0x73625140] }
 0x1bd   : > { %2497 = vmatmul.msk.bf16.vlgmr.msrb.gmra.mxu3 %vm1323_vm12, %v1925_v46  ;;  %1966 = vst [vmem:[#allocation1] ss:$4 sm:$0xff] %v1956_v22  ;;  %v2564_v22 = vld [vmem:[%s3070_s4] ss:$0 sm:$0xff] }
 0x1be   : > { %1969 = vst [vmem:[#allocation1 + $0x1] ss:$4 sm:$0xff] %v1957_v40 }
 0x1bf   : > { %1972 = vst [vmem:[#allocation1 + $0x2] ss:$4 sm:$0xff] %v1958_v30 }
 0x1c0   : > { %1975 = vst [vmem:[#allocation1 + $0x3] ss:$4 sm:$0xff] %v1959_v24 }
 0x1c7   : > { %v1976_v7 = vld.sshfl [vmem:[#allocation1] sm:$0xff pattern:$0x73625140] }
 0x1c8   : > { %2510 = vmatmul.msk.bf16.vlgmr.msra.gmra.mxu0 %vm1323_vm12, %v1976_v7  ;;  %2101 = vst [vmem:[#allocation1] ss:$4 sm:$0xff] %v2055_v5 }
 0x1c9   : > { %2104 = vst [vmem:[#allocation1 + $0x1] ss:$4 sm:$0xff] %v2068_v6 }
 0x1ca   : > { %2107 = vst [vmem:[#allocation1 + $0x2] ss:$4 sm:$0xff] %v2081_v11 }
 0x1cb   : > { %2110 = vst [vmem:[#allocation1 + $0x3] ss:$4 sm:$0xff] %v2094_v8 }
 0x1d2   : > { %v2111_v13 = vld.sshfl [vmem:[#allocation1] sm:$0xff pattern:$0x73625140]  ;;  %v1335_v14 = vpop.f32.mrf.mxu1 }
 0x1d3   : > { %2523 = vmatmul.msk.bf16.vlgmr.msra.gmra.mxu1 %vm1323_vm12, %v2111_v13 }
 0x1da   : > { %v1337_v10 = vpop.f32.mrf.mxu1 }
 0x1e4   : > { %v1375_v16 = vpop.f32.mrf.mxu2 }
 0x1e5   : > { %v1376_v41 = vadd.f32 %v1375_v16, %v1335_v14 }
 0x1ec   : > { %v1377_v19 = vpop.f32.mrf.mxu2 }
 0x1ed   : > { %v1378_v31 = vadd.f32 %v1377_v19, %v1337_v10 }
 0x1f0   : > { %v1508_v17 = vpop.f32.mrf.mxu3 }
 0x1f1   : > { %v1513_v21 = vadd.f32 %v1508_v17, %v1376_v41 }
 0x1f8   : > { %v1510_v12 = vpop.f32.mrf.mxu3 }
 0x1f9   : > { %v1514_v35 = vadd.f32 %v1510_v12, %v1378_v31 }
 0x207   : > { %v1635_v63 = vpop.f32.mrf.mxu0 }
 0x208   : > { %v1640_v59 = vadd.f32 %v1635_v63, %v1513_v21 }
 0x20f   : > { %v1637_v20 = vpop.f32.mrf.mxu0 }
 0x210   : > { %v1641_v37 = vadd.f32 %v1637_v20, %v1514_v35 }
 0x212   : > { %v1686_v9 = vpop.f32.mrf.mxu1 }
 0x213   : > { %v1691_v47 = vadd.f32 %v1686_v9, %v1640_v59 }
 0x21a   : > { %v1688_v29 = vpop.f32.mrf.mxu1 }
 0x21b   : > { %v1692_v15 = vadd.f32 %v1688_v29, %v1641_v37 }
 0x223   : > { %v1821_v25 = vpop.f32.mrf.mxu2 }
 0x224   : > { %v1826_v32 = vadd.f32 %v1821_v25, %v1691_v47 }
 0x22b   : > { %v1823_v28 = vpop.f32.mrf.mxu2 }
 0x22c   : > { %v1827_v23 = vadd.f32 %v1823_v28, %v1692_v15 }
 0x240   : > { %v1949_v26 = vpop.f32.mrf.mxu3 }
 0x241   : > { %v1954_v36 = vadd.f32 %v1949_v26, %v1826_v32 }
 0x245   : > { %v2000_v34 = vpop.f32.mrf.mxu0 }
 0x246   : > { %v2005_v0 = vadd.f32 %v2000_v34, %v1954_v36 }
 0x248   : > { %v1951_v24 = vpop.f32.mrf.mxu3 }
 0x249   : > { %v1955_v51 = vadd.f32 %v1951_v24, %v1827_v23 }
 0x24d   : > { %v2002_v43 = vpop.f32.mrf.mxu0 }
 0x24e   : > { %v2006_v44 = vadd.f32 %v2002_v43, %v1955_v51 }
 0x250   : > { %v2135_v27 = vpop.f32.mrf.mxu1 }
 0x251   : > { %v2140_v38 = vadd.f32 %v2135_v27, %v2005_v0 }
 0x253   : > { %v2145_v42 = vadd.f32 %v2564_v22, %v2140_v38 }
 0x255   : > { %v2147_v45 = vmax.f32 %v2145_v42, 0.0 }
 0x257   : > { %v2151_v46 = vrot.slane %v2147_v45, 4  ;;  %v2155_v49 = vsel %vm1166_vm9, %v2147_v45, -inf }
 0x258   : > { %v2137_v40 = vpop.f32.mrf.mxu1 }
 0x259   : > { %v2156_v50 = vsel %vm1166_vm9, %v2151_v46, -inf  ;;  %v2141_v30 = vadd.f32 %v2137_v40, %v2006_v44 }
 0x25a   : > { %v2157_v52 = vmax.f32 %v2155_v49, %v2156_v50 }
 0x25b   : > { %v2146_v54 = vadd.f32 %v2564_v22, %v2141_v30 }
 0x25c   : > { %v2163_v55 = vrot.slane %v2157_v52, 2 }
 0x25d   : > { %v2148_v56 = vmax.f32 %v2146_v54, 0.0 }
 0x25e   : > { %v2165_v33 = vsel %vm446_vm7, %v2157_v52, %v2163_v55  ;;  %v2166_v39 = vsel %vm450_vm8, %v2157_v52, %v2163_v55 }
 0x25f   : > { %v2167_v57 = vrot.slane %v2166_v39, 2  ;;  %v2175_v58 = vsel %vm1200_vm2, %v2165_v33, -inf  ;;  %v2152_v60 = vrot.slane %v2148_v56, 4  ;;  %v2158_v1 = vsel %vm1166_vm9, %v2148_v56, -inf }
 0x260   : > { %v2176_v61 = vrot.slane %v2175_v58, 4 }
 0x261   : > { %v2182_v62 = vsel %vm1200_vm2, %v2167_v57, -inf  ;;  %v2159_v2 = vsel %vm1166_vm9, %v2152_v60, -inf }
 0x262   : > { %v2177_v4 = vmax.f32 %v2175_v58, %v2176_v61  ;;  %v2183_v3 = vrot.slane %v2182_v62, 4  ;;  %v2160_v48 = vmax.f32 %v2158_v1, %v2159_v2 }
 0x264   : > { %v2178_v53 = vrot.slane %v2177_v4, 2  ;;  %v2184_v5 = vmax.f32 %v2182_v62, %v2183_v3  ;;  %v2164_v18 = vrot.slane %v2160_v48, 2 }
 0x266   : > { %v2179_v7 = vmax.f32 %v2177_v4, %v2178_v53  ;;  %v2185_v8 = vrot.slane %v2184_v5, 2  ;;  %v2168_v6 = vsel %vm446_vm7, %v2160_v48, %v2164_v18  ;;  %v2169_v11 = vsel %vm450_vm8, %v2160_v48, %v2164_v18 }
 0x267   : > { %v2170_v13 = vrot.slane %v2169_v11, 2  ;;  %v2189_v14 = vsel %vm1200_vm2, %v2168_v6, -inf  ;;  %vm2246_vm7 = vcmask 1041409   ;;  %vm2262_vm8 = vcmask 253952  }
 0x268   : > { %v2180_v16 = vrot.slane %v2179_v7, 1  ;;  %v2186_v17 = vmax.f32 %v2184_v5, %v2185_v8  ;;  %v2190_v10 = vrot.slane %v2189_v14, 4 }
 0x269   : > { %v2196_v63 = vsel %vm1200_vm2, %v2170_v13, -inf }
 0x26a   : > { %v2181_v19 = vmax.f32 %v2179_v7, %v2180_v16  ;;  %v2187_v12 = vrot.slane %v2186_v17, 1  ;;  %v2191_v9 = vmax.f32 %v2189_v14, %v2190_v10  ;;  %v2197_v41 = vrot.slane %v2196_v63, 4 }
 0x26c   : > { %v2188_v20 = vmax.f32 %v2186_v17, %v2187_v12  ;;  %v2203_v21 = vpack.c.bf16 %v2181_v19, %v2181_v19  ;;  %v2192_v25 = vrot.slane %v2191_v9, 2  ;;  %v2198_v59 = vmax.f32 %v2196_v63, %v2197_v41 }
 0x26e   : > { %v2204_v26 = vpack.c.bf16 %v2188_v20, %v2188_v20  ;;  %v2211_v47 = vrot.slane %v2203_v21, 3  ;;  %v2193_v29 = vmax.f32 %v2191_v9, %v2192_v25  ;;  %v2199_v31 = vrot.slane %v2198_v59, 2 }
 0x270   : > { %v2212_v32 = vrot.slane %v2204_v26, 3  ;;  %v2218_v34 = vsel %vm2215_vm13, %v2203_v21, %v2211_v47  ;;  %v2194_v35 = vrot.slane %v2193_v29, 1  ;;  %v2200_v36 = vmax.f32 %v2198_v59, %v2199_v31 }
 0x271   : > { %2228 = vst [vmem:[#allocation1] ss:$4 sm:$0xff] %v2218_v34 }
 0x272   : > { %v2221_v37 = vsel %vm2215_vm13, %v2204_v26, %v2212_v32  ;;  %v2195_v28 = vmax.f32 %v2193_v29, %v2194_v35  ;;  %v2201_v15 = vrot.slane %v2200_v36, 1 }
 0x273   : > { %2232 = vst [vmem:[#allocation1 + $0x20] ss:$4 sm:$0xff] %v2221_v37 }
 0x274   : > { %v2202_v0 = vmax.f32 %v2200_v36, %v2201_v15  ;;  %v2205_v22 = vpack.c.bf16 %v2195_v28, %v2195_v28 }
 0x276   : > { %v2206_v24 = vpack.c.bf16 %v2202_v0, %v2202_v0  ;;  %v2213_v27 = vrot.slane %v2205_v22, 3 }
 0x278   : > { %v2229_v23 = vld [vmem:[#allocation1] sm:$0xf]  ;;  %v2214_v38 = vrot.slane %v2206_v24, 3  ;;  %v2224_v51 = vsel %vm2215_vm13, %v2205_v22, %v2213_v27 }
 0x279   : > { %2235 = vst [vmem:[#allocation1] ss:$4 sm:$0xff] %v2224_v51  ;;  %v2241_v44 = vunpack.c.l.b16 %v2229_v23 }
 0x27a   : > { %v2233_v42 = vld [vmem:[#allocation1 + $0x20] sm:$0xf]  ;;  %v2227_v43 = vsel %vm2215_vm13, %v2206_v24, %v2214_v38 }
 0x27b   : > { %v2242_v45 = vunpack.c.l.b16 %v2233_v42  ;;  %2238 = vst [vmem:[#allocation1 + $0x20] ss:$4 sm:$0xff] %v2227_v43 }
 0x27d   : > { %v2245_v46 = vrot.slane %v2242_v45, 7 }
 0x27f   : > { %v2247_v40 = vsel %vm2246_vm7, %v2245_v46, %v2241_v44 }
 0x280   : > { %v2250_v49 = vpack.c.b16 %v2247_v40, %v2247_v40  ;;  %v2236_v30 = vld [vmem:[#allocation1] sm:$0xf] }
 0x281   : > { %v2243_v56 = vunpack.c.l.b16 %v2236_v30 }
 0x282   : > { %v2252_v50 = vrot.slane %v2250_v49, 3  ;;  %v2239_v52 = vld [vmem:[#allocation1 + $0x20] sm:$0xf] }
 0x283   : > { %v2244_v54 = vunpack.c.l.b16 %v2239_v52 }
 0x284   : > { %v2256_v55 = vsel %vm2215_vm13, %v2250_v49, %v2252_v50 }
 0x285   : > { %2263 = vst.msk [vmem:[%s222_s14] sm:$0x1] %vm2262_vm8, %v2256_v55  ;;  %v2248_v33 = vrot.slane %v2244_v54, 7 }
 0x287   : > { %v2249_v39 = vsel %vm2246_vm7, %v2248_v33, %v2243_v56 }
 0x288   : > { %v2251_v57 = vpack.c.b16 %v2249_v39, %v2249_v39 }
 0x28a   : > { %v2253_v58 = vrot.slane %v2251_v57, 3 }
 0x28c   : > { %v2259_v60 = vsel %vm2215_vm13, %v2251_v57, %v2253_v58 }
 0x28d   : > { %2264 = vst.msk [vmem:[%s222_s14 + $0x1] sm:$0x1] %vm2262_vm8, %v2259_v60 }
 0x28e PF: > { %s15_s18 = sadd.s32 1, %s2571_s18  }
 0x28f   : > { %p12_p4 = scmp.ge.s32.totalorder %s15_s18, 4  }
 0x291   :  { %14 = sbr.rel (!%p12_p4) target bundleno = 1 (0x1), region = 169 }

// kernel: m_vggish_forward.7
= control target key start
LH: loop header
LB: loop body
LE: loop exit
PB: predicated region body
PF: predicated region fallthrough
CT: control target
= control target key end

     0   :  { %12 = vsyncpa [#allocation5], 0  ;;  %s2174_s21 = smov 0   ;;  %s2516_s0 = inlined_call_operand.vmem [shape: bf16[2,2,2,32], index: 0, kind: input, shape index: {}]   ;;  %s2517_s1 = inlined_call_operand.hbm [shape: bf16[3,3,32,64], index: 1, kind: input, shape index: {}]   ;;  %s2518_s2 = inlined_call_operand.vmem [shape: f32[1,64], index: 2, kind: input, shape index: {}]   ;;  %s2519_s3 = inlined_call_operand.vmem [shape: bf16[3,3,64,64], index: 3, kind: input, shape index: {}]   ;;  %s2520_s4 = inlined_call_operand.vmem [shape: f32[1,64], index: 4, kind: input, shape index: {}]   ;;  %s2521_s5 = inlined_call_operand.vmem [shape: f32[2,2,64], index: 5, kind: output, shape index: {0}]   ;;  %s2522_s6 = inlined_call_operand.vmem [shape: f32[2,2,64], index: 6, kind: output, shape index: {1}]  }
   0x1 LB: > { %s186_s24 = sshll.u32 %s2517_s1, 4  ;;  %s2183_s25 = sadd.s32 4294967295, %s2132_s21   ;;  %s2132_s21 = sphi %s2174_s21, %s18_s21   ;;  %s187_s24 = int_to_ptr.hbm [resolvable:$true] %s186_s24 }
   0x2   : > { %p1681_p0 = scmp.ge.s32.totalorder %s2132_s21, 1  ;;  %p175_p1 = scmp.lt.s32.totalorder %s2132_s21, 3 }
   0x3   : > { %p1682_p2 = scmp.ne.s32.totalorder %s2183_s25, 0  ;;  %p2075_p3 = scmp.eq.s32.totalorder %s2183_s25, 0 }
   0x4   : > { %p176_p4 = pnand %p1681_p0, %p175_p1  ;;  %s2134_s26 = smov [#allocation4]  }
   0x5   : > { %s188_s27 = sshll.u32 %s2134_s26, 4  ;;  %s2135_s28 = smov 64   ;;  %s189_s27 = int_to_ptr.vmem [resolvable:$true] %s188_s27 }
   0x6   : > { %p2071_p5 = pneg %p176_p4  ;;  %s2136_s29 = smov 4  }
   0x7   : > { %220 = sbr.rel (%p176_p4) target bundleno = 579 (0x243), region = 40 }
   0x8   : > { %p2072_p6 = pnand %p2075_p3, %p2071_p5 }
   0xa   : > { %2074 = dma.hbm_to_vmem [thread:$0]  (!%p2072_p6), %s187_s24, 2304, %s189_s27, [#allocation5], %s2135_s28, %s2135_s28, %s2136_s29  }
   0xc   : > { %2127 = dma.done.wait (%p2075_p3), [#allocation5], 2304  }
   0xd   : > { %2129 = vsyncadd (%p2075_p3), [#allocation5], 4294964992  ;;  %p245_p7 = scmp.lt.s32.totalorder %s2183_s25, 1 }
   0xe   : > { %253 = sbr.rel (%p1682_p2) target bundleno = 24 (0x18), region = 48 }
   0xf   : > { %s246_s30 = scalar_select %p245_p7, %s2183_s25, 1 }
  0x11   : > { %s1686_s7 = sshll.u32 %s246_s30, 1 }
  0x12   : > { %s2194_s10 = scalar_lea.vmem %s2516_s0, %s1686_s7 }
  0x13   : > { %vm254_vm0 = vcmask 517120   ;;  %v2137_v0 = vmov 0.0  }
  0x14   : > { %255 = vst.msk [vmem:[%s2521_s5] sm:$0x3] %vm254_vm0, %v2137_v0 }
  0x15   : > { %256 = vst.msk [vmem:[%s2521_s5 + $0x2] sm:$0x3] %vm254_vm0, %v2137_v0 }
  0x16   : > { %257 = vst.msk [vmem:[%s2522_s6] sm:$0x3] %vm254_vm0, %v2137_v0 }
  0x17   : > { %258 = vst.msk [vmem:[%s2522_s6 + $0x2] sm:$0x3] %vm254_vm0, %v2137_v0 }
  0x18 PF: > { %v2016_v1 = vld [vmem:[#allocation4 + $0x18] sm:$0xff]  ;;  %v2014_v2 = vld [vmem:[#allocation4 + $0x8] sm:$0xff]  ;;  %vm261_vm1 = vcmask 257024   ;;  %vm264_vm2 = vcmask 254976   ;;  %v2015_v3 = vld [vmem:[#allocation4 + $0x10] sm:$0xff]  ;;  %v2138_v6 = vmov 0  }
  0x19   : > { %v2013_v4 = vld [vmem:[#allocation4] sm:$0xff]  ;;  %v2018_v5 = vld [vmem:[#allocation4 + $0x28] sm:$0xff]  ;;  %375 = vmatpush.bf16.msra.mxu0 %v2016_v1  ;;  %408 = vmatpush.bf16.msra.mxu1 %v2014_v2  ;;  %263 = vst.msk [vmem:[#allocation2 + $0x4] sm:$0xf] %vm261_vm1, %v2138_v6  ;;  %vm265_vm3 = vsmask.f32 1280 }
  0x1a   : > { %v267_v7 = vld [vmem:[#allocation2 + $0x8] sm:$0x3]  ;;  %482 = vmatpush.bf16.msra.mxu2 %v2018_v5  ;;  %vm2213_vm4 = vmand %vm264_vm2, %vm265_vm3  ;;  %v272_v9 = vld [vmem:[#allocation2 + $0x14] sm:$0x3]  ;;  %271 = vst.msk [vmem:[#allocation2 + $0x10] sm:$0xf] %vm261_vm1, %v2138_v6 }
  0x1b   : > { %v282_v10 = vld [vmem:[#allocation2 + $0x2c] sm:$0x3]  ;;  %v268_v11 = vsel %vm2213_vm4, 0, %v267_v7  ;;  %v273_v12 = vsel %vm2213_vm4, 0, %v272_v9  ;;  %v259_v14 = vld [vmem:[%s2194_s10] sm:$0x1] }
  0x1c   : > { %269 = vst [vmem:[#allocation2 + $0x8] sm:$0x3] %v268_v11  ;;  %v283_v13 = vsel %vm2213_vm4, 0, %v282_v10  ;;  %vm286_vm5 = vcmask 253952   ;;  %vm308_vm6 = vsmask.f32 256 }
  0x1d   : > { %376 = vmatpush.bf16.msra.mxu0 %v2015_v3  ;;  %409 = vmatpush.bf16.msra.mxu1 %v2013_v4  ;;  %274 = vst [vmem:[#allocation2 + $0x14] sm:$0x3] %v273_v12  ;;  %v2020_v16 = vld [vmem:[#allocation4 + $0x38] sm:$0xff]  ;;  %vm309_vm7 = vsmask.f32 1284  ;;  %v2017_v38 = vld [vmem:[#allocation4 + $0x20] sm:$0xff] }
  0x1e   : > { %284 = vst [vmem:[#allocation2 + $0x2c] sm:$0x3] %v283_v13  ;;  %v277_v17 = vld [vmem:[#allocation2 + $0x20] sm:$0x3]  ;;  %vm311_vm8 = vsmask.f32 2312  ;;  %553 = vmatpush.bf16.msra.mxu3 %v2020_v16  ;;  %vm310_vm9 = vmor %vm308_vm6, %vm309_vm7  ;;  %483 = vmatpush.bf16.msra.mxu2 %v2017_v38 }
  0x1f   : > { %287 = vst.msk [vmem:[#allocation2 + $0x14] sm:$0x1] %vm286_vm5, %v259_v14  ;;  %v278_v19 = vsel %vm2213_vm4, 0, %v277_v17  ;;  %v260_v20 = vld [vmem:[%s2194_s10 + $0x1] sm:$0x1]  ;;  %vm312_vm10 = vmor %vm310_vm9, %vm311_vm8  ;;  %v2019_v39 = vld [vmem:[#allocation4 + $0x30] sm:$0xff] }
  0x20   : > { %v290_v15 = vld [vmem:[#allocation2 + $0x4] sm:$0x8]  ;;  %276 = vst.msk [vmem:[#allocation2 + $0x1c] sm:$0xf] %vm261_vm1, %v2138_v6  ;;  %vm313_vm11 = vsmask.f32 3340 }
  0x21   : > { %295 = vst [vmem:[#allocation1] sm:$0xff] %v290_v15  ;;  %v292_v21 = vld [vmem:[#allocation2 + $0x10] sm:$0x8]  ;;  %vm314_vm12 = vmor %vm312_vm10, %vm313_vm11  ;;  %vm315_vm13 = vsmask.f32 4368  ;;  %vm421_vm7 = vcmask 1040384  }
  0x22   : > { %281 = vst.msk [vmem:[#allocation2 + $0x28] sm:$0xf] %vm261_vm1, %v2138_v6  ;;  %vm316_vm14 = vmor %vm314_vm12, %vm315_vm13  ;;  %vm317_vm15 = vsmask.f32 5396  ;;  %vm319_vm2 = vsmask.f32 6424  ;;  %554 = vmatpush.bf16.msra.mxu3 %v2019_v39 }
  0x23   : > { %v291_v18 = vld [vmem:[#allocation2 + $0x8] sm:$0x1]  ;;  %279 = vst [vmem:[#allocation2 + $0x20] sm:$0x3] %v278_v19  ;;  %vm318_vm0 = vmor %vm316_vm14, %vm317_vm15  ;;  %vm321_vm4 = vsmask.f32 7452 }
  0x24   : > { %297 = vst [vmem:[#allocation1 + $0x20] sm:$0xff] %v291_v18  ;;  %v415_v26 = vld [vmem:[#allocation2 + $0x8] sm:$0x3]  ;;  %vm320_vm1 = vmor %vm318_vm0, %vm319_vm2  ;;  %vm366_vm8 = vcmask 261120   ;;  %v2024_v58 = vld [vmem:[#allocation4 + $0x58] sm:$0xff]  ;;  %vm872_vm9 = vcmask 519168  }
  0x25   : > { %288 = vst.msk [vmem:[#allocation2 + $0x20] sm:$0x1] %vm286_vm5, %v260_v20  ;;  %v341_v28 = vld [vmem:[#allocation2 + $0x8] sm:$0x1]  ;;  %v419_v31 = vrot.slane %v415_v26, 3  ;;  %vm425_vm5 = vcmask 1041409   ;;  %vm2235_vm6 = vmor %vm320_vm1, %vm321_vm4  ;;  %667 = vmatpush.bf16.msrb.mxu1 %v2024_v58 }
  0x26   : > { %v293_v22 = vld [vmem:[#allocation2 + $0x14] sm:$0x1]  ;;  %v2022_v57 = vld [vmem:[#allocation4 + $0x48] sm:$0xff]  ;;  %v490_v59 = vld [vmem:[#allocation2 + $0x10] sm:$0x8]  ;;  %vm875_vm10 = vcmask 517120  }
  0x27   : > { %v342_v25 = vld [vmem:[#allocation2 + $0x14] sm:$0x1]  ;;  %v426_v40 = vsel %vm425_vm5, %v415_v26, %v419_v31  ;;  %v424_v46 = vsel %vm421_vm7, %v415_v26, %v419_v31  ;;  %594 = vmatpush.bf16.msrb.mxu0 %v2022_v57  ;;  %v2021_v60 = vld [vmem:[#allocation4 + $0x40] sm:$0xff]  ;;  %v492_v1 = vld [vmem:[#allocation2 + $0x1c] sm:$0x8]  ;;  %vm981_vm12 = vcmask 523264  }
  0x28   : > { %v299_v23 = vld [vmem:[#allocation1 + $0x3] ss:$4 sm:$0xff]  ;;  %v416_v29 = vld [vmem:[#allocation2 + $0x14] sm:$0x3]  ;;  %v428_v44 = vrot.slane %v426_v40, 1  ;;  %v435_v49 = vshrl.u32 %v424_v46, 16  ;;  %vm876_vm11 = vmand %vm875_vm10, %vm265_vm3 }
  0x29   : > { %303 = vst [vmem:[#allocation1] sm:$0xff] %v292_v21  ;;  %v420_v32 = vrot.slane %v416_v29, 3  ;;  %v323_v33 = vshrl.u32 %v299_v23, 16  ;;  %v491_v56 = vld [vmem:[#allocation2 + $0x14] sm:$0x1]  ;;  %v2026_v16 = vld [vmem:[#allocation4 + $0x68] sm:$0xff] }
  0x2a   : > { %v440_v50 = vshll.u32 %v428_v44, 16  ;;  %v2023_v61 = vld [vmem:[#allocation4 + $0x50] sm:$0xff]  ;;  %v2028_v17 = vld [vmem:[#allocation4 + $0x78] sm:$0xff]  ;;  %739 = vmatpush.bf16.msrb.mxu2 %v2026_v16  ;;  %v2025_v20 = vld [vmem:[#allocation4 + $0x60] sm:$0xff]  ;;  %874 = vst.msk [vmem:[#allocation3 + $0x4] sm:$0xf] %vm872_vm9, %v2138_v6 }
  0x2b   : > { %v301_v24 = vld [vmem:[#allocation1 + $0x20] ss:$4 sm:$0xff]  ;;  %v432_v41 = vsel %vm425_vm5, %v416_v29, %v420_v32  ;;  %v431_v48 = vsel %vm421_vm7, %v416_v29, %v420_v32  ;;  %595 = vmatpush.bf16.msrb.mxu0 %v2021_v60  ;;  %668 = vmatpush.bf16.msrb.mxu1 %v2023_v61  ;;  %v676_v39 = vld [vmem:[#allocation2 + $0x1c] sm:$0x8]  ;;  %v678_v44 = vld [vmem:[#allocation2 + $0x28] sm:$0x8] }
  0x2c   : > { %305 = vst [vmem:[#allocation1 + $0x20] sm:$0xff] %v293_v22  ;;  %v327_v34 = vshll.u32 %v301_v24, 16  ;;  %v434_v47 = vrot.slane %v432_v41, 1  ;;  %v443_v51 = vshrl.u32 %v431_v48, 16  ;;  %v442_v53 = vsel %vm2235_vm6, %v435_v49, %v440_v50  ;;  %v493_v62 = vld [vmem:[#allocation2 + $0x20] sm:$0x1]  ;;  %780 = vmatpush.bf16.msrb.mxu3 %v2028_v17 }
  0x2d   : > { %v602_v10 = vld [vmem:[#allocation2 + $0x14] sm:$0x3]  ;;  %v603_v12 = vld [vmem:[#allocation2 + $0x20] sm:$0x3]  ;;  %v2030_v38 = vld [vmem:[#allocation4 + $0x88] sm:$0xff]  ;;  %vm896_vm3 = vcmask 516096  }
  0x2e   : > { %v329_v42 = vsel %vm2235_vm6, %v323_v33, %v327_v34  ;;  %v448_v52 = vshll.u32 %v434_v47, 16  ;;  %v606_v14 = vrot.slane %v602_v10, 3  ;;  %v607_v15 = vrot.slane %v603_v12, 3  ;;  %v562_v21 = vld [vmem:[#allocation2 + $0x20] sm:$0x1]  ;;  %740 = vmatpush.bf16.msrb.mxu2 %v2025_v20  ;;  %p2010_p8 = scmp.ne.s32.totalorder %s2183_s25, 1 }
  0x2f   : > { %v561_v22 = vld [vmem:[#allocation2 + $0x14] sm:$0x1]  ;;  %v679_v40 = vld [vmem:[#allocation2 + $0x2c] sm:$0x1]  ;;  %881 = vst.msk [vmem:[#allocation3 + $0x10] sm:$0xf] %vm872_vm9, %v2138_v6 }
  0x30   : > { %v306_v27 = vld [vmem:[#allocation1 + $0x3] ss:$4 sm:$0xff]  ;;  %v450_v54 = vsel %vm2235_vm6, %v443_v51, %v448_v52  ;;  %v611_v18 = vsel %vm425_vm5, %v602_v10, %v606_v14  ;;  %v617_v19 = vsel %vm425_vm5, %v603_v12, %v607_v15  ;;  %v789_v52 = vld [vmem:[#allocation2 + $0x2c] sm:$0x3]  ;;  %886 = vst.msk [vmem:[#allocation3 + $0x1c] sm:$0xf] %vm872_vm9, %v2138_v6 }
  0x31   : > { %352 = vst [vmem:[#allocation1 + $0x1] ss:$9 sm:$0xff] %v342_v25  ;;  %v330_v36 = vshrl.u32 %v306_v27, 16  ;;  %v613_v23 = vrot.slane %v611_v18, 1  ;;  %v610_v25 = vsel %vm421_vm7, %v602_v10, %v606_v14  ;;  %v619_v26 = vrot.slane %v617_v19, 1 }
  0x32   : > { %v616_v27 = vsel %vm421_vm7, %v603_v12, %v607_v15  ;;  %891 = vst.msk [vmem:[#allocation3 + $0x28] sm:$0xf] %vm872_vm9, %v2138_v6  ;;  %v748_v60 = vld [vmem:[#allocation2 + $0x2c] sm:$0x1]  ;;  %v747_v61 = vld [vmem:[#allocation2 + $0x20] sm:$0x1] }
  0x33   : > { %v307_v30 = vld [vmem:[#allocation1 + $0x20] ss:$4 sm:$0xff]  ;;  %v625_v29 = vshll.u32 %v613_v23, 16  ;;  %v633_v31 = vshll.u32 %v619_v26, 16  ;;  %v900_v10 = vld [vmem:[#allocation3 + $0x4] sm:$0x8] }
  0x34   : > { %349 = vst [vmem:[#allocation1] ss:$9 sm:$0xff] %v341_v28  ;;  %v334_v37 = vshll.u32 %v307_v30, 16  ;;  %v620_v28 = vshrl.u32 %v610_v25, 16  ;;  %v628_v30 = vshrl.u32 %v616_v27, 16 }
  0x35   : > { %v877_v26 = vld [vmem:[#allocation3 + $0x8] sm:$0x3] }
  0x36   : > { %v336_v43 = vsel %vm2235_vm6, %v330_v36, %v334_v37  ;;  %v627_v32 = vsel %vm2235_vm6, %v620_v28, %v625_v29  ;;  %v635_v33 = vsel %vm2235_vm6, %v628_v30, %v633_v31  ;;  %v677_v36 = vld [vmem:[#allocation2 + $0x20] sm:$0x1]  ;;  %v2027_v37 = vld [vmem:[#allocation4 + $0x70] sm:$0xff]  ;;  %v878_v27 = vsel %vm876_vm11, 0, %v877_v26  ;;  %v882_v28 = vld [vmem:[#allocation3 + $0x14] sm:$0x3] }
  0x37   : > { %781 = vmatpush.bf16.msrb.mxu3 %v2027_v37  ;;  %879 = vst [vmem:[#allocation3 + $0x8] sm:$0x3] %v878_v27  ;;  %v883_v29 = vsel %vm876_vm11, 0, %v882_v28  ;;  %v887_v30 = vld [vmem:[#allocation3 + $0x20] sm:$0x3] }
  0x38   : > { %884 = vst [vmem:[#allocation3 + $0x14] sm:$0x3] %v883_v29  ;;  %v888_v31 = vsel %vm876_vm11, 0, %v887_v30  ;;  %v902_v37 = vld [vmem:[#allocation3 + $0x10] sm:$0x8]  ;;  %v2050_v26 = vld [vmem:[%s2519_s3 + $0x98] sm:$0xff] }
  0x39   : > { %889 = vst [vmem:[#allocation3 + $0x20] sm:$0x3] %v888_v31  ;;  %v2045_v29 = vld [vmem:[%s2519_s3 + $0x70] sm:$0xff] }
  0x3b   : > { %v353_v45 = vld [vmem:[#allocation1] sm:$0xff] }
  0x3c   : > { %1698 = vmatmul.msk.bf16.vlgmr.msra.gmra.mxu0 %vm366_vm8, %v353_v45  ;;  %383 = vst [vmem:[#allocation1] ss:$9 sm:$0xff] %v329_v42 }
  0x3d   : > { %386 = vst [vmem:[#allocation1 + $0x1] ss:$9 sm:$0xff] %v336_v43  ;;  %853 = vmatpush.bf16.msra.mxu0 %v2030_v38  ;;  %v2029_v43 = vld [vmem:[#allocation4 + $0x80] sm:$0xff] }
  0x41   : > { %854 = vmatpush.bf16.msra.mxu0 %v2029_v43 }
  0x44   : > { %v387_v55 = vld [vmem:[#allocation1] sm:$0xff] }
  0x45   : > { %1707 = vmatmul.msk.bf16.vlgmr.msra.gmra.mxu1 %vm366_vm8, %v387_v55  ;;  %457 = vst [vmem:[#allocation1] ss:$9 sm:$0xff] %v442_v53  ;;  %v788_v53 = vld [vmem:[#allocation2 + $0x20] sm:$0x3] }
  0x46   : > { %460 = vst [vmem:[#allocation1 + $0x1] ss:$9 sm:$0xff] %v450_v54  ;;  %v792_v57 = vrot.slane %v788_v53, 3 }
  0x47   : > { %497 = vst [vmem:[#allocation1 + $0x20] sm:$0xff] %v491_v56  ;;  %v793_v56 = vrot.slane %v789_v52, 3 }
  0x49   : > { %v803_v58 = vsel %vm425_vm5, %v789_v52, %v793_v56 }
  0x4d   : > { %v461_v63 = vld [vmem:[#allocation1] sm:$0xff] }
  0x4e   : > { %v501_v0 = vld [vmem:[#allocation1 + $0x20] ss:$4 sm:$0xff]  ;;  %1718 = vmatmul.msk.bf16.vlgmr.msra.gmra.mxu2 %vm366_vm8, %v461_v63  ;;  %495 = vst [vmem:[#allocation1] sm:$0xff] %v490_v59  ;;  %v797_v59 = vsel %vm425_vm5, %v788_v53, %v792_v57 }
  0x4f   : > { %505 = vst [vmem:[#allocation1 + $0x20] sm:$0xff] %v493_v62  ;;  %v512_v4 = vshll.u32 %v501_v0, 16  ;;  %v805_v62 = vrot.slane %v803_v58, 1  ;;  %v799_v63 = vrot.slane %v797_v59, 1  ;;  %v2041_v59 = vld [vmem:[%s2519_s3 + $0x50] sm:$0xff] }
  0x55   : > { %v499_v2 = vld [vmem:[#allocation1 + $0x3] ss:$4 sm:$0xff] }
  0x56   : > { %503 = vst [vmem:[#allocation1] sm:$0xff] %v492_v1  ;;  %v508_v3 = vshrl.u32 %v499_v2, 16  ;;  %v507_v5 = vld [vmem:[#allocation1 + $0x20] ss:$4 sm:$0xff]  ;;  %v802_v1 = vsel %vm421_vm7, %v789_v52, %v793_v56  ;;  %v796_v2 = vsel %vm421_vm7, %v788_v53, %v792_v57 }
  0x57   : > { %v519_v8 = vshll.u32 %v507_v5, 16  ;;  %v806_v5 = vshrl.u32 %v796_v2, 16  ;;  %v2090_v52 = vld [vmem:[%s2518_s2] ss:$0 sm:$0xff]  ;;  %v2032_v57 = vld [vmem:[%s2519_s3 + $0x8] sm:$0xff] }
  0x58   : > { %v514_v7 = vsel %vm2235_vm6, %v508_v3, %v512_v4  ;;  %v814_v3 = vshrl.u32 %v802_v1, 16  ;;  %v819_v4 = vshll.u32 %v805_v62, 16  ;;  %v1605_v56 = vld [vmem:[%s2521_s5] sm:$0x3] }
  0x59   : > { %v2031_v1 = vld [vmem:[%s2519_s3] sm:$0xff] }
  0x5a   : > { %v821_v6 = vsel %vm2235_vm6, %v814_v3, %v819_v4 }
  0x5d   : > { %v506_v9 = vld [vmem:[#allocation1 + $0x3] ss:$4 sm:$0xff] }
  0x5e   : > { %v515_v11 = vshrl.u32 %v506_v9, 16  ;;  %528 = vst [vmem:[#allocation1] ss:$9 sm:$0xff] %v514_v7  ;;  %v811_v7 = vshll.u32 %v799_v63, 16 }
  0x60   : > { %v521_v13 = vsel %vm2235_vm6, %v515_v11, %v519_v8  ;;  %v813_v8 = vsel %vm2235_vm6, %v806_v5, %v811_v7 }
  0x61   : > { %531 = vst [vmem:[#allocation1 + $0x1] ss:$9 sm:$0xff] %v521_v13 }
  0x68   : > { %v532_v24 = vld [vmem:[#allocation1] sm:$0xff] }
  0x69   : > { %1729 = vmatmul.msk.bf16.vlgmr.msra.gmra.mxu3 %vm366_vm8, %v532_v24  ;;  %572 = vst [vmem:[#allocation1 + $0x1] ss:$9 sm:$0xff] %v562_v21 }
  0x6a   : > { %569 = vst [vmem:[#allocation1] ss:$9 sm:$0xff] %v561_v22 }
  0x71   : > { %v573_v34 = vld [vmem:[#allocation1] sm:$0xff] }
  0x72   : > { %1738 = vmatmul.msk.bf16.vlgmr.msrb.gmra.mxu0 %vm366_vm8, %v573_v34  ;;  %642 = vst [vmem:[#allocation1] ss:$9 sm:$0xff] %v627_v32  ;;  %v892_v32 = vld [vmem:[#allocation3 + $0x2c] sm:$0x3] }
  0x73   : > { %645 = vst [vmem:[#allocation1 + $0x1] ss:$9 sm:$0xff] %v635_v33  ;;  %v901_v33 = vld [vmem:[#allocation3 + $0x8] sm:$0x1]  ;;  %v893_v34 = vsel %vm876_vm11, 0, %v892_v32  ;;  %v2049_v32 = vld [vmem:[%s2519_s3 + $0x90] sm:$0xff] }
  0x74   : > { %683 = vst [vmem:[#allocation1 + $0x20] sm:$0xff] %v677_v36 }
  0x75   : > { %894 = vst [vmem:[#allocation3 + $0x2c] sm:$0x3] %v893_v34 }
  0x7a   : > { %v646_v41 = vld [vmem:[#allocation1] sm:$0xff] }
  0x7b   : > { %v687_v42 = vld [vmem:[#allocation1 + $0x20] ss:$4 sm:$0xff]  ;;  %1749 = vmatmul.msk.bf16.vlgmr.msrb.gmra.mxu1 %vm366_vm8, %v646_v41  ;;  %681 = vst [vmem:[#allocation1] sm:$0xff] %v676_v39 }
  0x7c   : > { %691 = vst [vmem:[#allocation1 + $0x20] sm:$0xff] %v679_v40  ;;  %v698_v47 = vshll.u32 %v687_v42, 16  ;;  %v2038_v40 = vld [vmem:[%s2519_s3 + $0x38] sm:$0xff]  ;;  %v2037_v42 = vld [vmem:[%s2519_s3 + $0x30] sm:$0xff] }
  0x7d   : > { %988 = vmatpush.bf16.msra.mxu1 %v2038_v40 }
  0x81   : > { %989 = vmatpush.bf16.msra.mxu1 %v2037_v42  ;;  %v2043_v42 = vld [vmem:[%s2519_s3 + $0x60] sm:$0xff] }
  0x82   : > { %v685_v45 = vld [vmem:[#allocation1 + $0x3] ss:$4 sm:$0xff] }
  0x83   : > { %689 = vst [vmem:[#allocation1] sm:$0xff] %v678_v44  ;;  %v694_v46 = vshrl.u32 %v685_v45, 16  ;;  %v693_v48 = vld [vmem:[#allocation1 + $0x20] ss:$4 sm:$0xff] }
  0x84   : > { %v705_v50 = vshll.u32 %v693_v48, 16 }
  0x85   : > { %v700_v49 = vsel %vm2235_vm6, %v694_v46, %v698_v47  ;;  %v2036_v46 = vld [vmem:[%s2519_s3 + $0x28] sm:$0xff]  ;;  %v2034_v47 = vld [vmem:[%s2519_s3 + $0x18] sm:$0xff] }
  0x86   : > { %990 = vmatpush.bf16.msra.mxu1 %v2036_v46  ;;  %1033 = vmatpush.bf16.msra.mxu2 %v2034_v47  ;;  %v2048_v47 = vld [vmem:[%s2519_s3 + $0x88] sm:$0xff] }
  0x8a   : > { %v692_v51 = vld [vmem:[#allocation1 + $0x3] ss:$4 sm:$0xff] }
  0x8b   : > { %v701_v54 = vshrl.u32 %v692_v51, 16  ;;  %714 = vst [vmem:[#allocation1] ss:$9 sm:$0xff] %v700_v49  ;;  %v2033_v51 = vld [vmem:[%s2519_s3 + $0x10] sm:$0xff] }
  0x8c   : > { %1034 = vmatpush.bf16.msra.mxu2 %v2033_v51  ;;  %v2053_v51 = vld [vmem:[%s2519_s3 + $0xb0] sm:$0xff] }
  0x8d   : > { %v707_v55 = vsel %vm2235_vm6, %v701_v54, %v705_v50  ;;  %v2035_v50 = vld [vmem:[%s2519_s3 + $0x20] sm:$0xff] }
  0x8e   : > { %717 = vst [vmem:[#allocation1 + $0x1] ss:$9 sm:$0xff] %v707_v55  ;;  %v2042_v55 = vld [vmem:[%s2519_s3 + $0x58] sm:$0xff]  ;;  %991 = vmatpush.bf16.msra.mxu1 %v2035_v50  ;;  %v2047_v50 = vld [vmem:[%s2519_s3 + $0x80] sm:$0xff] }
  0x8f   : > { %1121 = vmatpush.bf16.msra.mxu3 %v2042_v55  ;;  %v2052_v55 = vld [vmem:[%s2519_s3 + $0xa8] sm:$0xff] }
  0x90   : > { %1035 = vmatpush.bf16.msra.mxu2 %v2032_v57  ;;  %v2051_v57 = vld [vmem:[%s2519_s3 + $0xa0] sm:$0xff] }
  0x92   : > { %1265 = vmatpush.bf16.msrb.mxu1 %v2050_v26 }
  0x93   : > { %1122 = vmatpush.bf16.msra.mxu3 %v2041_v59 }
  0x94   : > { %1036 = vmatpush.bf16.msra.mxu2 %v2031_v1 }
  0x95   : > { %v718_v0 = vld [vmem:[#allocation1] sm:$0xff] }
  0x96   : > { %1760 = vmatmul.msk.bf16.vlgmr.msrb.gmra.mxu2 %vm366_vm8, %v718_v0  ;;  %758 = vst [vmem:[#allocation1 + $0x1] ss:$9 sm:$0xff] %v748_v60  ;;  %v1606_v60 = vld [vmem:[%s2521_s5 + $0x2] sm:$0x3]  ;;  %1266 = vmatpush.bf16.msrb.mxu1 %v2049_v32  ;;  %v1365_v32 = vld [vmem:[#allocation3 + $0x1c] sm:$0x8] }
  0x97   : > { %755 = vst [vmem:[#allocation1] ss:$9 sm:$0xff] %v747_v61 }
  0x9a   : > { %1267 = vmatpush.bf16.msrb.mxu1 %v2048_v47 }
  0x9e   : > { %v759_v9 = vld [vmem:[#allocation1] sm:$0xff]  ;;  %1268 = vmatpush.bf16.msrb.mxu1 %v2047_v50 }
  0x9f   : > { %1769 = vmatmul.msk.bf16.vlgmr.msrb.gmra.mxu3 %vm366_vm8, %v759_v9  ;;  %831 = vst [vmem:[#allocation1 + $0x1] ss:$9 sm:$0xff] %v821_v6  ;;  %v2040_v6 = vld [vmem:[%s2519_s3 + $0x48] sm:$0xff] }
  0xa0   : > { %828 = vst [vmem:[#allocation1] ss:$9 sm:$0xff] %v813_v8  ;;  %1123 = vmatpush.bf16.msra.mxu3 %v2040_v6  ;;  %v2039_v8 = vld [vmem:[%s2519_s3 + $0x40] sm:$0xff]  ;;  %v2058_v6 = vld [vmem:[%s2519_s3 + $0xd8] sm:$0xff] }
  0xa1   : > { %907 = vst [vmem:[#allocation1 + $0x20] sm:$0xff] %v901_v33 }
  0xa4   : > { %1124 = vmatpush.bf16.msra.mxu3 %v2039_v8 }
  0xa7   : > { %v832_v11 = vld [vmem:[#allocation1] sm:$0xff] }
  0xa8   : > { %1780 = vmatmul.msk.bf16.vlgmr.msra.gmra.mxu0 %vm366_vm8, %v832_v11  ;;  %905 = vst [vmem:[#allocation1] sm:$0xff] %v900_v10  ;;  %v911_v9 = vld [vmem:[#allocation1 + $0x20] ss:$4 sm:$0xff]  ;;  %1442 = vmatpush.bf16.msrb.mxu3 %v2058_v6 }
  0xaf   : > { %v2294_v36 = vld [vmem:[#allocation1 + $0x3] ss:$4 sm:$0xff] }
  0xb0   : > { %913 = vst [vmem:[#allocation1] sm:$0xff] %v902_v37 }
  0xb9   : > { %v378_v12 = vpop.f32.mrf.mxu0 }
  0xc1   : > { %v380_v13 = vpop.f32.mrf.mxu0 }
  0xc2   : > { %v411_v14 = vpop.f32.mrf.mxu1  ;;  %v1042_v13 = vld [vmem:[#allocation3 + $0x8] sm:$0x3] }
  0xc3   : > { %v412_v15 = vadd.f32 %v411_v14, %v378_v12  ;;  %v916_v12 = vld [vmem:[#allocation1 + $0x3] ss:$4 sm:$0xff]  ;;  %v940_v14 = vld [vmem:[#allocation3 + $0x8] sm:$0x1] }
  0xca   : > { %v413_v16 = vpop.f32.mrf.mxu1 }
  0xd1   : > { %v485_v17 = vpop.f32.mrf.mxu2 }
  0xd2   : > { %v489_v18 = vadd.f32 %v485_v17, %v412_v15  ;;  %v1046_v17 = vrot.slane %v1042_v13, 3 }
  0xd4   : > { %v1050_v30 = vsel %vm421_vm7, %v1042_v13, %v1046_v17 }
  0xd9   : > { %v487_v19 = vpop.f32.mrf.mxu2 }
  0xda   : > { %v922_v19 = vshll.u32 %v911_v9, 16  ;;  %v2062_v9 = vld [vmem:[%s2519_s3 + $0xf8] sm:$0xff] }
  0xec   : > { %v556_v20 = vpop.f32.mrf.mxu3 }
  0xed   : > { %v560_v38 = vadd.f32 %v556_v20, %v489_v18  ;;  %v918_v18 = vshrl.u32 %v2294_v36, 16  ;;  %v1060_v36 = vshrl.u32 %v1050_v30, 16  ;;  %v2066_v30 = vld [vmem:[%s2519_s3 + $0x118] sm:$0xff] }
  0xef   : > { %v597_v21 = vpop.f32.mrf.mxu0 }
  0xf0   : > { %v601_v41 = vadd.f32 %v597_v21, %v560_v38  ;;  %v1051_v21 = vsel %vm425_vm5, %v1042_v13, %v1046_v17  ;;  %v2044_v38 = vld [vmem:[%s2519_s3 + $0x68] sm:$0xff] }
  0xf1   : > { %v1053_v27 = vrot.slane %v1051_v21, 1 }
  0xf3   : > { %v1065_v37 = vshll.u32 %v1053_v27, 16 }
  0xf4   : > { %v558_v22 = vpop.f32.mrf.mxu3 }
  0xf5   : > { %v925_v22 = vshrl.u32 %v916_v12, 16 }
  0xf7   : > { %v599_v23 = vpop.f32.mrf.mxu0 }
  0xf8   : > { %v670_v24 = vpop.f32.mrf.mxu1 }
  0xf9   : > { %v674_v43 = vadd.f32 %v670_v24, %v601_v41  ;;  %v2046_v24 = vld [vmem:[%s2519_s3 + $0x78] sm:$0xff]  ;;  %v1067_v41 = vsel %vm2235_vm6, %v1060_v36, %v1065_v37  ;;  %v1368_v36 = vld [vmem:[#allocation3 + $0x2c] sm:$0x1] }
  0xfa   : > { %1208 = vmatpush.bf16.msrb.mxu0 %v2046_v24  ;;  %v2055_v24 = vld [vmem:[%s2519_s3 + $0xc0] sm:$0xff] }
  0xfe   : > { %1209 = vmatpush.bf16.msrb.mxu0 %v2045_v29 }
 0x100   : > { %v672_v25 = vpop.f32.mrf.mxu1 }
 0x101   : > { %v924_v25 = vsel %vm2235_vm6, %v918_v18, %v922_v19  ;;  %v2056_v18 = vld [vmem:[%s2519_s3 + $0xc8] sm:$0xff] }
 0x102   : > { %1210 = vmatpush.bf16.msrb.mxu0 %v2044_v38 }
 0x106   : > { %1211 = vmatpush.bf16.msrb.mxu0 %v2043_v42 }
 0x10a   : > { %1499 = vmatpush.bf16.msra.mxu0 %v2062_v9 }
 0x119   : > { %v742_v39 = vpop.f32.mrf.mxu2 }
 0x11a   : > { %v746_v44 = vadd.f32 %v742_v39, %v674_v43 }
 0x121   : > { %v744_v45 = vpop.f32.mrf.mxu2 }
 0x122   : > { %v783_v48 = vpop.f32.mrf.mxu3 }
 0x123   : > { %v787_v49 = vadd.f32 %v783_v48, %v746_v44  ;;  %v2054_v48 = vld [vmem:[%s2519_s3 + $0xb8] sm:$0xff] }
 0x124   : > { %1354 = vmatpush.bf16.msrb.mxu2 %v2054_v48 }
 0x125   : > { %v856_v53 = vpop.f32.mrf.mxu0 }
 0x126   : > { %v860_v54 = vadd.f32 %v856_v53, %v787_v49  ;;  %v1131_v49 = vld [vmem:[#allocation3 + $0x10] sm:$0x8] }
 0x128   : > { %v864_v58 = vadd.f32 %v2090_v52, %v860_v54  ;;  %1355 = vmatpush.bf16.msrb.mxu2 %v2053_v51 }
 0x12a   : > { %v866_v61 = vrot.slane %v864_v58, 2  ;;  %v868_v62 = vmax.f32 %v864_v58, 0.0  ;;  %v1607_v63 = vadd.f32 %v1605_v56, %v864_v58  ;;  %v785_v0 = vpop.f32.mrf.mxu3  ;;  %v1133_v56 = vld [vmem:[#allocation3 + $0x1c] sm:$0x8] }
 0x12c   : > { %v869_v2 = vmax.f32 %v866_v61, 0.0  ;;  %v870_v3 = vpack.c.bf16 %v868_v62, %v868_v62  ;;  %v1608_v4 = vadd.f32 %v1606_v60, %v866_v61  ;;  %1610 = vst.msk [vmem:[%s2521_s5] sm:$0x3] %vm875_vm10, %v1607_v63  ;;  %1356 = vmatpush.bf16.msrb.mxu2 %v2052_v55 }
 0x12d   : > { %v858_v5 = vpop.f32.mrf.mxu0 }
 0x12e   : > { %v871_v7 = vpack.c.bf16 %v869_v2, %v869_v2  ;;  %897 = vst.msk [vmem:[#allocation3 + $0x14] sm:$0x1] %vm896_vm3, %v870_v3 }
 0x12f   : > { %1611 = vst.msk [vmem:[%s2521_s5 + $0x2] sm:$0x3] %vm875_vm10, %v1608_v4 }
 0x130   : > { %898 = vst.msk [vmem:[#allocation3 + $0x20] sm:$0x1] %vm896_vm3, %v871_v7  ;;  %1357 = vmatpush.bf16.msrb.mxu2 %v2051_v57  ;;  %v1453_v57 = vld [vmem:[#allocation3 + $0x2c] sm:$0x1] }
 0x135   : > { %v903_v10 = vld [vmem:[#allocation3 + $0x14] sm:$0x1] }
 0x136   : > { %915 = vst [vmem:[#allocation1 + $0x20] sm:$0xff] %v903_v10  ;;  %v941_v11 = vld [vmem:[#allocation3 + $0x14] sm:$0x1] }
 0x137   : > { %955 = vst [vmem:[#allocation1 + $0x1] ss:$9 sm:$0xff] %v941_v11  ;;  %v1043_v16 = vld [vmem:[#allocation3 + $0x14] sm:$0x3]  ;;  %v1134_v53 = vld [vmem:[#allocation3 + $0x20] sm:$0x1] }
 0x138   : > { %v1047_v20 = vrot.slane %v1043_v16, 3  ;;  %v1132_v46 = vld [vmem:[#allocation3 + $0x14] sm:$0x1]  ;;  %v1276_v3 = vld [vmem:[#allocation3 + $0x20] sm:$0x3]  ;;  %v2057_v11 = vld [vmem:[%s2519_s3 + $0xd0] sm:$0xff] }
 0x139   : > { %v1275_v2 = vld [vmem:[#allocation3 + $0x14] sm:$0x3]  ;;  %v1280_v7 = vrot.slane %v1276_v3, 3  ;;  %1443 = vmatpush.bf16.msrb.mxu3 %v2057_v11  ;;  %v1366_v29 = vld [vmem:[#allocation3 + $0x20] sm:$0x1] }
 0x13a   : > { %v1057_v28 = vsel %vm425_vm5, %v1043_v16, %v1047_v20  ;;  %v1056_v39 = vsel %vm421_vm7, %v1043_v16, %v1047_v20  ;;  %v1279_v5 = vrot.slane %v1275_v2, 3  ;;  %v1218_v12 = vld [vmem:[#allocation3 + $0x14] sm:$0x1]  ;;  %v1509_v51 = vld [vmem:[#allocation3 + $0x20] sm:$0x3] }
 0x13b   : > { %v1059_v34 = vrot.slane %v1057_v28, 1  ;;  %v1068_v43 = vshrl.u32 %v1056_v39, 16  ;;  %v1290_v10 = vsel %vm425_vm5, %v1276_v3, %v1280_v7  ;;  %v1289_v20 = vsel %vm421_vm7, %v1276_v3, %v1280_v7  ;;  %v2064_v39 = vld [vmem:[%s2519_s3 + $0x108] sm:$0xff] }
 0x13c   : > { %v1284_v8 = vsel %vm425_vm5, %v1275_v2, %v1279_v5  ;;  %v1292_v17 = vrot.slane %v1290_v10, 1  ;;  %v1283_v19 = vsel %vm421_vm7, %v1275_v2, %v1279_v5 }
 0x13d   : > { %v917_v15 = vld [vmem:[#allocation1 + $0x20] ss:$4 sm:$0xff]  ;;  %v1073_v40 = vshll.u32 %v1059_v34, 16  ;;  %v1286_v16 = vrot.slane %v1284_v8, 1  ;;  %1444 = vmatpush.bf16.msrb.mxu3 %v2056_v18 }
 0x13e   : > { %952 = vst [vmem:[#allocation1] ss:$9 sm:$0xff] %v940_v14  ;;  %v929_v23 = vshll.u32 %v917_v15, 16  ;;  %v2061_v14 = vld [vmem:[%s2519_s3 + $0xf0] sm:$0xff]  ;;  %v1219_v15 = vld [vmem:[#allocation3 + $0x20] sm:$0x1] }
 0x13f   : > { %v1075_v45 = vsel %vm2235_vm6, %v1068_v43, %v1073_v40  ;;  %1500 = vmatpush.bf16.msra.mxu0 %v2061_v14  ;;  %v1298_v21 = vshll.u32 %v1286_v16, 16  ;;  %v2059_v34 = vld [vmem:[%s2519_s3 + $0xe0] sm:$0xff] }
 0x140   : > { %v931_v33 = vsel %vm2235_vm6, %v925_v22, %v929_v23  ;;  %v1306_v22 = vshll.u32 %v1292_v17, 16  ;;  %v1293_v23 = vshrl.u32 %v1283_v19, 16  ;;  %v1367_v40 = vld [vmem:[#allocation3 + $0x28] sm:$0x8] }
 0x141   : > { %1445 = vmatpush.bf16.msrb.mxu3 %v2055_v24 }
 0x142   : > { %v1300_v26 = vsel %vm2235_vm6, %v1293_v23, %v1298_v21 }
 0x145   : > { %v956_v31 = vld [vmem:[#allocation1] sm:$0xff] }
 0x146   : > { %1807 = vmatmul.msk.bf16.vlgmr.msra.gmra.mxu1 %vm981_vm12, %v956_v31  ;;  %998 = vst [vmem:[#allocation1] ss:$9 sm:$0xff] %v924_v25  ;;  %v1301_v25 = vshrl.u32 %v1289_v20, 16  ;;  %v2060_v31 = vld [vmem:[%s2519_s3 + $0xe8] sm:$0xff] }
 0x147   : > { %1001 = vst [vmem:[#allocation1 + $0x1] ss:$9 sm:$0xff] %v931_v33  ;;  %1588 = vmatpush.bf16.msra.mxu1 %v2066_v30  ;;  %1501 = vmatpush.bf16.msra.mxu0 %v2060_v31  ;;  %v2065_v33 = vld [vmem:[%s2519_s3 + $0x110] sm:$0xff]  ;;  %v2091_v30 = vld [vmem:[%s2520_s4] ss:$0 sm:$0xff] }
 0x148   : > { %v1308_v28 = vsel %vm2235_vm6, %v1301_v25, %v1306_v22 }
 0x14b   : > { %1589 = vmatpush.bf16.msra.mxu1 %v2065_v33  ;;  %1502 = vmatpush.bf16.msra.mxu0 %v2059_v34  ;;  %v1612_v33 = vld [vmem:[%s2522_s6] sm:$0x3] }
 0x14e   : > { %v1002_v44 = vld [vmem:[#allocation1] sm:$0xff] }
 0x14f   : > { %1824 = vmatmul.msk.bf16.vlgmr.msra.gmra.mxu2 %vm981_vm12, %v1002_v44  ;;  %1086 = vst [vmem:[#allocation1] ss:$9 sm:$0xff] %v1067_v41  ;;  %1590 = vmatpush.bf16.msra.mxu1 %v2064_v39  ;;  %v2063_v41 = vld [vmem:[%s2519_s3 + $0x100] sm:$0xff] }
 0x150   : > { %1089 = vst [vmem:[#allocation1 + $0x1] ss:$9 sm:$0xff] %v1075_v45 }
 0x151   : > { %1138 = vst [vmem:[#allocation1 + $0x20] sm:$0xff] %v1132_v46 }
 0x153   : > { %1591 = vmatpush.bf16.msra.mxu1 %v2063_v41 }
 0x157   : > { %v1090_v52 = vld [vmem:[#allocation1] sm:$0xff] }
 0x158   : > { %1851 = vmatmul.msk.bf16.vlgmr.msra.gmra.mxu3 %vm981_vm12, %v1090_v52  ;;  %1136 = vst [vmem:[#allocation1] sm:$0xff] %v1131_v49  ;;  %v1142_v54 = vld [vmem:[#allocation1 + $0x20] ss:$4 sm:$0xff] }
 0x159   : > { %1146 = vst [vmem:[#allocation1 + $0x20] sm:$0xff] %v1134_v53  ;;  %v1153_v60 = vshll.u32 %v1142_v54, 16  ;;  %v1510_v49 = vld [vmem:[#allocation3 + $0x2c] sm:$0x3]  ;;  %v1513_v54 = vrot.slane %v1509_v51, 3 }
 0x15a   : > { %v1514_v53 = vrot.slane %v1510_v49, 3 }
 0x15c   : > { %v1524_v55 = vsel %vm425_vm5, %v1510_v49, %v1514_v53 }
 0x15f   : > { %v1140_v58 = vld [vmem:[#allocation1 + $0x3] ss:$4 sm:$0xff] }
 0x160   : > { %1144 = vst [vmem:[#allocation1] sm:$0xff] %v1133_v56  ;;  %v1149_v59 = vshrl.u32 %v1140_v58, 16  ;;  %v1148_v61 = vld [vmem:[#allocation1 + $0x20] ss:$4 sm:$0xff]  ;;  %v1518_v56 = vsel %vm425_vm5, %v1509_v51, %v1513_v54 }
 0x161   : > { %v1160_v1 = vshll.u32 %v1148_v61, 16  ;;  %v1452_v58 = vld [vmem:[#allocation3 + $0x20] sm:$0x1]  ;;  %v1520_v61 = vrot.slane %v1518_v56, 1 }
 0x162   : > { %v1155_v62 = vsel %vm2235_vm6, %v1149_v59, %v1153_v60  ;;  %v1526_v59 = vrot.slane %v1524_v55, 1 }
 0x163   : > { %v1532_v2 = vshll.u32 %v1520_v61, 16 }
 0x167   : > { %v1147_v63 = vld [vmem:[#allocation1 + $0x3] ss:$4 sm:$0xff] }
 0x168   : > { %v1156_v0 = vshrl.u32 %v1147_v63, 16  ;;  %1173 = vst [vmem:[#allocation1] ss:$9 sm:$0xff] %v1155_v62  ;;  %v1523_v62 = vsel %vm421_vm7, %v1510_v49, %v1514_v53  ;;  %v1517_v63 = vsel %vm421_vm7, %v1509_v51, %v1513_v54 }
 0x169   : > { %v1527_v3 = vshrl.u32 %v1517_v63, 16 }
 0x16a   : > { %v1162_v4 = vsel %vm2235_vm6, %v1156_v0, %v1160_v1  ;;  %v1535_v0 = vshrl.u32 %v1523_v62, 16  ;;  %v1540_v1 = vshll.u32 %v1526_v59, 16 }
 0x16b   : > { %1176 = vst [vmem:[#allocation1 + $0x1] ss:$9 sm:$0xff] %v1162_v4  ;;  %v1534_v5 = vsel %vm2235_vm6, %v1527_v3, %v1532_v2 }
 0x16c   : > { %v1542_v4 = vsel %vm2235_vm6, %v1535_v0, %v1540_v1 }
 0x172   : > { %v1177_v13 = vld [vmem:[#allocation1] sm:$0xff] }
 0x173   : > { %1878 = vmatmul.msk.bf16.vlgmr.msrb.gmra.mxu0 %vm981_vm12, %v1177_v13  ;;  %1230 = vst [vmem:[#allocation1] ss:$9 sm:$0xff] %v1218_v12 }
 0x174   : > { %1233 = vst [vmem:[#allocation1 + $0x1] ss:$9 sm:$0xff] %v1219_v15 }
 0x17b   : > { %v1234_v27 = vld [vmem:[#allocation1] sm:$0xff] }
 0x17c   : > { %1903 = vmatmul.msk.bf16.vlgmr.msrb.gmra.mxu1 %vm981_vm12, %v1234_v27  ;;  %1319 = vst [vmem:[#allocation1] ss:$9 sm:$0xff] %v1300_v26 }
 0x17d   : > { %1322 = vst [vmem:[#allocation1 + $0x1] ss:$9 sm:$0xff] %v1308_v28 }
 0x17e   : > { %1372 = vst [vmem:[#allocation1 + $0x20] sm:$0xff] %v1366_v29 }
 0x184   : > { %v1323_v37 = vld [vmem:[#allocation1] sm:$0xff] }
 0x185   : > { %1930 = vmatmul.msk.bf16.vlgmr.msrb.gmra.mxu2 %vm981_vm12, %v1323_v37  ;;  %1370 = vst [vmem:[#allocation1] sm:$0xff] %v1365_v32  ;;  %v1376_v38 = vld [vmem:[#allocation1 + $0x20] ss:$4 sm:$0xff] }
 0x186   : > { %1380 = vst [vmem:[#allocation1 + $0x20] sm:$0xff] %v1368_v36  ;;  %v1387_v45 = vshll.u32 %v1376_v38, 16  ;;  %v1613_v36 = vld [vmem:[%s2522_s6 + $0x2] sm:$0x3] }
 0x18c   : > { %v1374_v42 = vld [vmem:[#allocation1 + $0x3] ss:$4 sm:$0xff] }
 0x18d   : > { %1378 = vst [vmem:[#allocation1] sm:$0xff] %v1367_v40  ;;  %v1383_v43 = vshrl.u32 %v1374_v42, 16  ;;  %v1382_v44 = vld [vmem:[#allocation1 + $0x20] ss:$4 sm:$0xff] }
 0x18e   : > { %v1394_v46 = vshll.u32 %v1382_v44, 16 }
 0x18f   : > { %v1389_v47 = vsel %vm2235_vm6, %v1383_v43, %v1387_v45 }
 0x194   : > { %v1381_v48 = vld [vmem:[#allocation1 + $0x3] ss:$4 sm:$0xff] }
 0x195   : > { %v1390_v50 = vshrl.u32 %v1381_v48, 16  ;;  %1407 = vst [vmem:[#allocation1] ss:$9 sm:$0xff] %v1389_v47 }
 0x197   : > { %v1396_v52 = vsel %vm2235_vm6, %v1390_v50, %v1394_v46 }
 0x198   : > { %1410 = vst [vmem:[#allocation1 + $0x1] ss:$9 sm:$0xff] %v1396_v52 }
 0x19f   : > { %v1411_v60 = vld [vmem:[#allocation1] sm:$0xff] }
 0x1a0   : > { %1957 = vmatmul.msk.bf16.vlgmr.msrb.gmra.mxu3 %vm981_vm12, %v1411_v60  ;;  %1464 = vst [vmem:[#allocation1] ss:$9 sm:$0xff] %v1452_v58 }
 0x1a1   : > { %1467 = vst [vmem:[#allocation1 + $0x1] ss:$9 sm:$0xff] %v1453_v57 }
 0x1a8   : > { %v1468_v7 = vld [vmem:[#allocation1] sm:$0xff] }
 0x1a9   : > { %1982 = vmatmul.msk.bf16.vlgmr.msra.gmra.mxu0 %vm981_vm12, %v1468_v7  ;;  %1553 = vst [vmem:[#allocation1] ss:$9 sm:$0xff] %v1534_v5 }
 0x1aa   : > { %1556 = vst [vmem:[#allocation1 + $0x1] ss:$9 sm:$0xff] %v1542_v4 }
 0x1b1   : > { %v1557_v6 = vld [vmem:[#allocation1] sm:$0xff] }
 0x1b2   : > { %2009 = vmatmul.msk.bf16.vlgmr.msra.gmra.mxu1 %vm981_vm12, %v1557_v6 }
 0x1c3   : > { %v993_v8 = vpop.f32.mrf.mxu1 }
 0x1cb   : > { %v995_v9 = vpop.f32.mrf.mxu1 }
 0x1d2   : > { %v1038_v10 = vpop.f32.mrf.mxu2 }
 0x1d3   : > { %v1039_v11 = vadd.f32 %v1038_v10, %v993_v8 }
 0x1da   : > { %v1040_v12 = vpop.f32.mrf.mxu2 }
 0x1db   : > { %v1126_v13 = vpop.f32.mrf.mxu3 }
 0x1dc   : > { %v1130_v14 = vadd.f32 %v1126_v13, %v1039_v11 }
 0x1e3   : > { %v1128_v15 = vpop.f32.mrf.mxu3 }
 0x1f0   : > { %v1213_v16 = vpop.f32.mrf.mxu0 }
 0x1f1   : > { %v1217_v22 = vadd.f32 %v1213_v16, %v1130_v14 }
 0x1f8   : > { %v1215_v17 = vpop.f32.mrf.mxu0 }
 0x1f9   : > { %v1270_v35 = vpop.f32.mrf.mxu1 }
 0x1fa   : > { %v1274_v23 = vadd.f32 %v1270_v35, %v1217_v22 }
 0x201   : > { %v1272_v18 = vpop.f32.mrf.mxu1 }
 0x208   : > { %v1359_v19 = vpop.f32.mrf.mxu2 }
 0x209   : > { %v1363_v25 = vadd.f32 %v1359_v19, %v1274_v23 }
 0x210   : > { %v1361_v20 = vpop.f32.mrf.mxu2 }
 0x223   : > { %v1447_v21 = vpop.f32.mrf.mxu3 }
 0x224   : > { %v1451_v26 = vadd.f32 %v1447_v21, %v1363_v25 }
 0x226   : > { %v1504_v24 = vpop.f32.mrf.mxu0 }
 0x227   : > { %v1508_v28 = vadd.f32 %v1504_v24, %v1451_v26 }
 0x22b   : > { %v1449_v27 = vpop.f32.mrf.mxu3 }
 0x22e   : > { %v1506_v29 = vpop.f32.mrf.mxu0 }
 0x22f   : > { %v1593_v31 = vpop.f32.mrf.mxu1 }
 0x230   : > { %v1597_v32 = vadd.f32 %v1593_v31, %v1508_v28 }
 0x232   : > { %v1601_v34 = vadd.f32 %v2091_v30, %v1597_v32 }
 0x234   : > { %v1603_v37 = vrot.slane %v1601_v34, 2  ;;  %v1614_v38 = vadd.f32 %v1612_v33, %v1601_v34  ;;  %1621 = sbr.rel (%p2010_p8) target bundleno = 579 (0x243), region = 52 }
 0x236   : > { %v1615_v39 = vadd.f32 %v1613_v36, %v1603_v37  ;;  %1616 = vst.msk [vmem:[%s2522_s6] sm:$0x3] %vm875_vm10, %v1614_v38 }
 0x237   : > { %v1595_v40 = vpop.f32.mrf.mxu1 }
 0x238   : > { %1617 = vst.msk [vmem:[%s2522_s6 + $0x2] sm:$0x3] %vm875_vm10, %v1615_v39 }
 0x239   : > { %v1622_v41 = vld [vmem:[%s2521_s5] sm:$0x3]  ;;  %v1623_v42 = vld [vmem:[%s2521_s5 + $0x2] sm:$0x3] }
 0x23a   : > { %v1624_v44 = vmul.f32 0.5, %v1622_v41  ;;  %v1625_v45 = vmul.f32 0.5, %v1623_v42 }
 0x23c   : > { %1626 = vst.msk [vmem:[%s2521_s5] sm:$0x3] %vm875_vm10, %v1624_v44 }
 0x23d   : > { %v1628_v43 = vld [vmem:[%s2522_s6] sm:$0x3]  ;;  %1627 = vst.msk [vmem:[%s2521_s5 + $0x2] sm:$0x3] %vm875_vm10, %v1625_v45 }
 0x23e   : > { %v1630_v46 = vmul.f32 0.5, %v1628_v43 }
 0x23f   : > { %v1629_v47 = vld [vmem:[%s2522_s6 + $0x2] sm:$0x3] }
 0x240   : > { %v1631_v48 = vmul.f32 0.5, %v1629_v47  ;;  %1632 = vst.msk [vmem:[%s2522_s6] sm:$0x3] %vm875_vm10, %v1630_v46 }
 0x242   : > { %1633 = vst.msk [vmem:[%s2522_s6 + $0x2] sm:$0x3] %vm875_vm10, %v1631_v48 }
 0x243 PF: > { %s18_s21 = sadd.s32 1, %s2132_s21  }
 0x244   : > { %p15_p9 = scmp.ge.s32.totalorder %s18_s21, 4  }
 0x246   :  { %17 = sbr.rel (!%p15_p9) target bundleno = 1 (0x1), region = 137 }
 0x24b   :  { %1651 = vsyncpa [#allocation5], 1 }
 0x24c   :  { %1653 = vsyncpa [#allocation5 + $0x1], 1 }

</bundles_post_ra>
